<compile_context>
chip_gen: v7x
topology: tpu7x:2x2x1
jax: 0.10.0
libtpu: 0.0.40
codegen_flags: <defaults>
</compile_context>

<pallas_src>
import jax
import jax.numpy as jnp
from jax.experimental import pallas as pl
from jax.experimental.pallas import tpu as pltpu

# ---------------- small configuration consistent with ViT.__init__ ----------------
BATCH = 2
NUM_PATCHES = 8           # sequence length after cls token = 9
DIM = 32                  # patch_to_embedding is Linear(dim, dim)
DEPTH = 2
HEADS = 4
DIM_HEAD = 8
INNER = HEADS * DIM_HEAD  # 32
MLP_DIM = 64
NUM_CLASSES = 5
SCALE = DIM_HEAD ** -0.5
LN_EPS = 1e-5


# ---------------------------- in-kernel helpers ------------------------------------
def _layernorm(x, gamma, beta):
    mu = jnp.mean(x, axis=-1, keepdims=True)
    var = jnp.mean((x - mu) ** 2, axis=-1, keepdims=True)
    return (x - mu) * jax.lax.rsqrt(var + LN_EPS) * gamma + beta


def _gelu(x):
    # TODO(synk): nn.GELU() default is the erf-exact form; using the tanh approximation
    # because lax.erf has no guaranteed Mosaic lowering. Max deviation ~1e-3.
    c = 0.7978845608028654  # sqrt(2/pi)
    return 0.5 * x * (1.0 + jnp.tanh(c * (x + 0.044715 * x * x * x)))


# ------------------------------- fused kernel --------------------------------------
def _vit_fused_kernel(
    x_ref, add0_ref, emb_w_ref, emb_b_ref,
    ln1_g_ref, ln1_b_ref, wq_ref, wk_ref, wv_ref, wout_ref, bout_ref,
    ln2_g_ref, ln2_b_ref, w1_ref, b1_ref, w2_ref, b2_ref,
    hg_ref, hb_ref, hw_ref, hbias_ref,
    out_ref, cls_ref,
    attn_buf,
):
    B, N1, D = x_ref.shape

    # ---- patch_to_embedding + cls token + positional embedding (dropout p=0) ------
    # x row 0 is all zeros; add0 row 0 carries (cls_token + pos[0] - emb_bias), so
    # h[:, 0] == cls_token + pos[0] and h[:, 1:] == x @ W + b + pos[1:].
    x2 = x_ref[...].reshape(B * N1, D)
    emb = jnp.dot(x2, emb_w_ref[...], preferred_element_type=jnp.float32) + emb_b_ref[...]
    h = emb.reshape(B, N1, D) + add0_ref[...]

    # ---- transformer layers (static unroll over DEPTH) ----------------------------
    for l in range(DEPTH):
        # --- Residual(PreNorm(Attention)) ---
        xn = _layernorm(h, ln1_g_ref[l], ln1_b_ref[l])            # (B, N1, D)
        wq, wk, wv, wo = wq_ref[l], wk_ref[l], wv_ref[l], wout_ref[l]
        for b in range(B):                                        # static unroll, B=2
            xh = jnp.broadcast_to(xn[b], (HEADS, N1, D))          # (H, N1, D)
            q = jnp.einsum('hnd,hde->hne', xh, wq, preferred_element_type=jnp.float32)
            k = jnp.einsum('hnd,hde->hne', xh, wk, preferred_element_type=jnp.float32)
            v = jnp.einsum('hnd,hde->hne', xh, wv, preferred_element_type=jnp.float32)
            dots = jnp.einsum('hne,hme->hnm', q, k,
                              preferred_element_type=jnp.float32) * SCALE   # (H, N1, N1)
            dots = dots - jnp.max(dots, axis=-1, keepdims=True)
            e = jnp.exp(dots)
            attn = e * pl.reciprocal(jnp.sum(e, axis=-1, keepdims=True), approx=True)
            o = jnp.einsum('hnm,hme->hne', attn, v,
                           preferred_element_type=jnp.float32)              # (H, N1, E)
            # concat-over-heads + Linear(INNER, DIM)  ==  sum_h (o_h @ W_out[h])
            yh = jnp.einsum('hne,hed->hnd', o, wo,
                            preferred_element_type=jnp.float32)             # (H, N1, D)
            attn_buf[b] = jnp.sum(yh, axis=0)                               # (N1, D)
        h = h + attn_buf[...] + bout_ref[l]

        # --- Residual(PreNorm(FeedForward)) ---
        xn = _layernorm(h, ln2_g_ref[l], ln2_b_ref[l])
        z = jnp.dot(xn.reshape(B * N1, D), w1_ref[l],
                    preferred_element_type=jnp.float32) + b1_ref[l]
        z = _gelu(z)
        y = jnp.dot(z, w2_ref[l], preferred_element_type=jnp.float32) + b2_ref[l]
        h = h + y.reshape(B, N1, D)

    # ---- outputs: transformer output + mlp_head(cls token) ------------------------
    out_ref[...] = h.astype(out_ref.dtype)
    cls_tok = h[:, 0, :]                                          # (B, D)
    cn = _layernorm(cls_tok, hg_ref[...], hb_ref[...])
    cls_ref[...] = (jnp.dot(cn, hw_ref[...], preferred_element_type=jnp.float32)
                    + hbias_ref[...]).astype(cls_ref.dtype)


# ----------------------------------- forward ---------------------------------------
@jax.jit
def vit_forward(x, params):
    b, n, dim = x.shape
    n1 = n + 1

    # Fold the cls-token concat into the kernel: prepend a zero row to x and bake
    # (cls_token + pos[0] - emb_bias) into row 0 of the additive term.
    x_ext = jnp.concatenate([jnp.zeros((b, 1, dim), x.dtype), x], axis=1)   # (B, N1, D)
    pos = params["pos_embedding"][:, :n1]                                    # (1, N1, D)
    add0 = pos.at[:, 0, :].add(params["cls_token"][0, 0] - params["emb_b"][0])

    args = (
        x_ext, add0, params["emb_w"], params["emb_b"],
        params["ln1_g"], params["ln1_b"], params["wq"], params["wk"], params["wv"],
        params["wout"], params["bout"],
        params["ln2_g"], params["ln2_b"], params["w1"], params["b1"],
        params["w2"], params["b2"],
        params["head_ln_g"], params["head_ln_b"], params["head_w"], params["head_b"],
    )
    vmem_spec = pl.BlockSpec(memory_space=pltpu.MemorySpace.VMEM)

    out, class_x = pl.pallas_call(
        _vit_fused_kernel,
        out_shape=(jax.ShapeDtypeStruct((b, n1, dim), x.dtype),
                   jax.ShapeDtypeStruct((b, NUM_CLASSES), x.dtype)),
        in_specs=[vmem_spec] * len(args),
        out_specs=(vmem_spec, vmem_spec),
        scratch_shapes=[pltpu.VMEM((b, n1, dim), jnp.float32)],
    )(*args)

    x_cls_token = out[:, 0]
    x_feature = out[:, 1:]
    return x_cls_token, x_feature, class_x, out


# --------------------------- deterministic parameter init --------------------------
def make_params(key):
    def nrm(k, shape, scale=0.02):
        return (scale * jax.random.normal(k, shape)).astype(jnp.float32)

    ks = iter(jax.random.split(key, 16))
    # Canonical (transposed-PyTorch) forms, then pre-split per head for the kernel.
    wqkv = nrm(next(ks), (DEPTH, DIM, 3 * INNER))         # to_qkv (bias=False), (in, out)
    wout2 = nrm(next(ks), (DEPTH, INNER, DIM))            # to_out Linear, (in, out)

    def split_heads(w):                                   # (DEPTH, DIM, INNER) -> (DEPTH, H, DIM, DH)
        return w.reshape(DEPTH, DIM, HEADS, DIM_HEAD).transpose(0, 2, 1, 3)

    params = {
        "pos_embedding": nrm(next(ks), (1, NUM_PATCHES + 1, DIM), 1.0),
        "cls_token": nrm(next(ks), (1, 1, DIM), 1.0),
        "emb_w": nrm(next(ks), (DIM, DIM)),
        "emb_b": nrm(next(ks), (1, DIM)),
        "ln1_g": jnp.ones((DEPTH, 1, DIM), jnp.float32),
        "ln1_b": jnp.zeros((DEPTH, 1, DIM), jnp.float32),
        "wq": split_heads(wqkv[:, :, 0 * INNER:1 * INNER]),
        "wk": split_heads(wqkv[:, :, 1 * INNER:2 * INNER]),
        "wv": split_heads(wqkv[:, :, 2 * INNER:3 * INNER]),
        "wout": wout2.reshape(DEPTH, HEADS, DIM_HEAD, DIM),
        "bout": nrm(next(ks), (DEPTH, 1, DIM)),
        "ln2_g": jnp.ones((DEPTH, 1, DIM), jnp.float32),
        "ln2_b": jnp.zeros((DEPTH, 1, DIM), jnp.float32),
        "w1": nrm(next(ks), (DEPTH, DIM, MLP_DIM)),
        "b1": nrm(next(ks), (DEPTH, 1, MLP_DIM)),
        "w2": nrm(next(ks), (DEPTH, MLP_DIM, DIM)),
        "b2": nrm(next(ks), (DEPTH, 1, DIM)),
        "head_ln_g": jnp.ones((1, DIM), jnp.float32),
        "head_ln_b": jnp.zeros((1, DIM), jnp.float32),
        "head_w": nrm(next(ks), (DIM, NUM_CLASSES)),
        "head_b": nrm(next(ks), (1, NUM_CLASSES)),
    }
    return params


if __name__ == "__main__":
    root = jax.random.PRNGKey(0)
    k_params, k_x = jax.random.split(root)
    params = make_params(k_params)
    x = jax.random.normal(k_x, (BATCH, NUM_PATCHES, DIM), dtype=jnp.float32)

    x_cls_token, x_feature, class_x, out = vit_forward(x, params)
    jax.block_until_ready((x_cls_token, x_feature, class_x, out))

    assert x_cls_token.shape == (BATCH, DIM)
    assert x_feature.shape == (BATCH, NUM_PATCHES, DIM)
    assert class_x.shape == (BATCH, NUM_CLASSES)
    assert out.shape == (BATCH, NUM_PATCHES + 1, DIM)
    assert bool(jnp.all(jnp.isfinite(out))) and bool(jnp.all(jnp.isfinite(class_x)))
    print("KERNEL_OK")
</pallas_src>

<mosaic_0001>
module attributes {stable_mosaic.version = 11 : i64} {
  func.func @_vit_fused_kernel(%arg0: memref<2x9x32xf32, #tpu.memory_space<vmem>>, %arg1: memref<1x9x32xf32, #tpu.memory_space<vmem>>, %arg2: memref<32x32xf32, #tpu.memory_space<vmem>>, %arg3: memref<1x32xf32, #tpu.memory_space<vmem>>, %arg4: memref<2x1x32xf32, #tpu.memory_space<vmem>>, %arg5: memref<2x1x32xf32, #tpu.memory_space<vmem>>, %arg6: memref<2x4x32x8xf32, #tpu.memory_space<vmem>>, %arg7: memref<2x4x32x8xf32, #tpu.memory_space<vmem>>, %arg8: memref<2x4x32x8xf32, #tpu.memory_space<vmem>>, %arg9: memref<2x4x8x32xf32, #tpu.memory_space<vmem>>, %arg10: memref<2x1x32xf32, #tpu.memory_space<vmem>>, %arg11: memref<2x1x32xf32, #tpu.memory_space<vmem>>, %arg12: memref<2x1x32xf32, #tpu.memory_space<vmem>>, %arg13: memref<2x32x64xf32, #tpu.memory_space<vmem>>, %arg14: memref<2x1x64xf32, #tpu.memory_space<vmem>>, %arg15: memref<2x64x32xf32, #tpu.memory_space<vmem>>, %arg16: memref<2x1x32xf32, #tpu.memory_space<vmem>>, %arg17: memref<1x32xf32, #tpu.memory_space<vmem>>, %arg18: memref<1x32xf32, #tpu.memory_space<vmem>>, %arg19: memref<32x5xf32, #tpu.memory_space<vmem>>, %arg20: memref<1x5xf32, #tpu.memory_space<vmem>>, %arg21: memref<2x9x32xf32, #tpu.memory_space<vmem>>, %arg22: memref<2x5xf32, #tpu.memory_space<vmem>>, %arg23: memref<2x9x32xf32, #tpu.memory_space<vmem>>) attributes {dimension_semantics = [], scalar_prefetch = 0 : i64, scratch_operands = 1 : i64, tpu.core_type = #tpu.core_type<tc>} {
    %c0 = arith.constant 0 : index
    %c0_0 = arith.constant 0 : index
    %c0_1 = arith.constant 0 : index
    %0 = vector.load %arg0[%c0, %c0_0, %c0_1] : memref<2x9x32xf32, #tpu.memory_space<vmem>>, vector<2x9x32xf32>
    %1 = vector.shape_cast %0 : vector<2x9x32xf32> to vector<18x32xf32>
    %c0_2 = arith.constant 0 : index
    %c0_3 = arith.constant 0 : index
    %2 = vector.load %arg2[%c0_2, %c0_3] : memref<32x32xf32, #tpu.memory_space<vmem>>, vector<32x32xf32>
    %cst = arith.constant dense<0.000000e+00> : vector<18x32xf32>
    %3 = tpu.matmul %1, %2, %cst {dimension_numbers = #tpu.dot_dimension_numbers<[1], [0], [0], [1], [0, 0, 1, 1], [], []>} : vector<18x32xf32>, vector<32x32xf32>, vector<18x32xf32> -> vector<18x32xf32>
    %c0_4 = arith.constant 0 : index
    %c0_5 = arith.constant 0 : index
    %4 = vector.load %arg3[%c0_4, %c0_5] : memref<1x32xf32, #tpu.memory_space<vmem>>, vector<1x32xf32>
    %5 = vector.broadcast %4 : vector<1x32xf32> to vector<18x32xf32>
    %6 = arith.addf %3, %5 : vector<18x32xf32>
    %7 = vector.shape_cast %6 : vector<18x32xf32> to vector<2x9x32xf32>
    %c0_6 = arith.constant 0 : index
    %c0_7 = arith.constant 0 : index
    %c0_8 = arith.constant 0 : index
    %8 = vector.load %arg1[%c0_6, %c0_7, %c0_8] : memref<1x9x32xf32, #tpu.memory_space<vmem>>, vector<1x9x32xf32>
    %9 = vector.broadcast %8 : vector<1x9x32xf32> to vector<2x9x32xf32>
    %10 = arith.addf %7, %9 : vector<2x9x32xf32>
    %c0_9 = arith.constant 0 : index
    %c0_10 = arith.constant 0 : index
    %c0_11 = arith.constant 0 : index
    %11 = vector.load %arg4[%c0_9, %c0_10, %c0_11] : memref<2x1x32xf32, #tpu.memory_space<vmem>>, vector<1x1x32xf32>
    %12 = vector.shape_cast %11 : vector<1x1x32xf32> to vector<1x32xf32>
    %c0_12 = arith.constant 0 : index
    %c0_13 = arith.constant 0 : index
    %c0_14 = arith.constant 0 : index
    %13 = vector.load %arg5[%c0_12, %c0_13, %c0_14] : memref<2x1x32xf32, #tpu.memory_space<vmem>>, vector<1x1x32xf32>
    %14 = vector.shape_cast %13 : vector<1x1x32xf32> to vector<1x32xf32>
    %cst_15 = arith.constant dense<0.000000e+00> : vector<2x9xf32>
    %15 = vector.multi_reduction <add>, %10, %cst_15 [2] : vector<2x9x32xf32> to vector<2x9xf32>
    %16 = vector.shape_cast %15 : vector<2x9xf32> to vector<2x9x1xf32>
    %cst_16 = arith.constant 3.200000e+01 : f32
    %17 = vector.broadcast %cst_16 : f32 to vector<2x9x1xf32>
    %18 = arith.divf %16, %17 : vector<2x9x1xf32>
    %19 = vector.broadcast %18 : vector<2x9x1xf32> to vector<2x9x32xf32>
    %20 = arith.subf %10, %19 : vector<2x9x32xf32>
    %21 = arith.mulf %20, %20 : vector<2x9x32xf32>
    %cst_17 = arith.constant dense<0.000000e+00> : vector<2x9xf32>
    %22 = vector.multi_reduction <add>, %21, %cst_17 [2] : vector<2x9x32xf32> to vector<2x9xf32>
    %23 = vector.shape_cast %22 : vector<2x9xf32> to vector<2x9x1xf32>
    %cst_18 = arith.constant 3.200000e+01 : f32
    %24 = vector.broadcast %cst_18 : f32 to vector<2x9x1xf32>
    %25 = arith.divf %23, %24 : vector<2x9x1xf32>
    %26 = vector.broadcast %18 : vector<2x9x1xf32> to vector<2x9x32xf32>
    %27 = arith.subf %10, %26 : vector<2x9x32xf32>
    %cst_19 = arith.constant 9.99999974E-6 : f32
    %28 = vector.broadcast %cst_19 : f32 to vector<2x9x1xf32>
    %29 = arith.addf %25, %28 : vector<2x9x1xf32>
    %30 = math.rsqrt %29 : vector<2x9x1xf32>
    %31 = vector.broadcast %30 : vector<2x9x1xf32> to vector<2x9x32xf32>
    %32 = arith.mulf %27, %31 : vector<2x9x32xf32>
    %33 = vector.shape_cast %12 : vector<1x32xf32> to vector<1x1x32xf32>
    %34 = vector.broadcast %33 : vector<1x1x32xf32> to vector<2x9x32xf32>
    %35 = arith.mulf %32, %34 : vector<2x9x32xf32>
    %36 = vector.shape_cast %14 : vector<1x32xf32> to vector<1x1x32xf32>
    %37 = vector.broadcast %36 : vector<1x1x32xf32> to vector<2x9x32xf32>
    %38 = arith.addf %35, %37 : vector<2x9x32xf32>
    %c0_20 = arith.constant 0 : index
    %c0_21 = arith.constant 0 : index
    %c0_22 = arith.constant 0 : index
    %c0_23 = arith.constant 0 : index
    %39 = vector.load %arg6[%c0_20, %c0_21, %c0_22, %c0_23] : memref<2x4x32x8xf32, #tpu.memory_space<vmem>>, vector<1x4x32x8xf32>
    %40 = vector.shape_cast %39 : vector<1x4x32x8xf32> to vector<4x32x8xf32>
    %c0_24 = arith.constant 0 : index
    %c0_25 = arith.constant 0 : index
    %c0_26 = arith.constant 0 : index
    %c0_27 = arith.constant 0 : index
    %41 = vector.load %arg7[%c0_24, %c0_25, %c0_26, %c0_27] : memref<2x4x32x8xf32, #tpu.memory_space<vmem>>, vector<1x4x32x8xf32>
    %42 = vector.shape_cast %41 : vector<1x4x32x8xf32> to vector<4x32x8xf32>
    %c0_28 = arith.constant 0 : index
    %c0_29 = arith.constant 0 : index
    %c0_30 = arith.constant 0 : index
    %c0_31 = arith.constant 0 : index
    %43 = vector.load %arg8[%c0_28, %c0_29, %c0_30, %c0_31] : memref<2x4x32x8xf32, #tpu.memory_space<vmem>>, vector<1x4x32x8xf32>
    %44 = vector.shape_cast %43 : vector<1x4x32x8xf32> to vector<4x32x8xf32>
    %c0_32 = arith.constant 0 : index
    %c0_33 = arith.constant 0 : index
    %c0_34 = arith.constant 0 : index
    %c0_35 = arith.constant 0 : index
    %45 = vector.load %arg9[%c0_32, %c0_33, %c0_34, %c0_35] : memref<2x4x8x32xf32, #tpu.memory_space<vmem>>, vector<1x4x8x32xf32>
    %46 = vector.shape_cast %45 : vector<1x4x8x32xf32> to vector<4x8x32xf32>
    %47 = vector.extract_strided_slice %38 {offsets = [0, 0, 0], sizes = [1, 9, 32], strides = [1, 1, 1]} : vector<2x9x32xf32> to vector<1x9x32xf32>
    %48 = vector.shape_cast %47 : vector<1x9x32xf32> to vector<9x32xf32>
    %49 = vector.shape_cast %48 : vector<9x32xf32> to vector<1x9x32xf32>
    %50 = vector.broadcast %49 : vector<1x9x32xf32> to vector<4x9x32xf32>
    "tpu.trace_start"() <{level = 10 : i32, message = "hnd,hde->hne"}> : () -> ()
    %cst_36 = arith.constant dense<0.000000e+00> : vector<4x9x8xf32>
    %51 = tpu.matmul %50, %40, %cst_36 {dimension_numbers = #tpu.dot_dimension_numbers<[2], [1], [1], [2], [0, 0, 0, 1, 1, 2], [0], [0]>} : vector<4x9x32xf32>, vector<4x32x8xf32>, vector<4x9x8xf32> -> vector<4x9x8xf32>
    %cst_37 = arith.constant dense<0.000000e+00> : vector<4x9x8xf32>
    %52 = tpu.matmul %50, %42, %cst_37 {dimension_numbers = #tpu.dot_dimension_numbers<[2], [1], [1], [2], [0, 0, 0, 1, 1, 2], [0], [0]>} : vector<4x9x32xf32>, vector<4x32x8xf32>, vector<4x9x8xf32> -> vector<4x9x8xf32>
    %cst_38 = arith.constant dense<0.000000e+00> : vector<4x9x8xf32>
    %53 = tpu.matmul %50, %44, %cst_38 {dimension_numbers = #tpu.dot_dimension_numbers<[2], [1], [1], [2], [0, 0, 0, 1, 1, 2], [0], [0]>} : vector<4x9x32xf32>, vector<4x32x8xf32>, vector<4x9x8xf32> -> vector<4x9x8xf32>
    "tpu.trace_stop"() : () -> ()
    "tpu.trace_start"() <{level = 10 : i32, message = "hne,hme->hnm"}> : () -> ()
    %cst_39 = arith.constant dense<0.000000e+00> : vector<4x9x9xf32>
    %54 = tpu.matmul %51, %52, %cst_39 {dimension_numbers = #tpu.dot_dimension_numbers<[2], [2], [1], [1], [0, 0, 0, 1, 1, 1], [0], [0]>} : vector<4x9x8xf32>, vector<4x9x8xf32>, vector<4x9x9xf32> -> vector<4x9x9xf32>
    "tpu.trace_stop"() : () -> ()
    %cst_40 = arith.constant 0.353553385 : f32
    %55 = vector.broadcast %cst_40 : f32 to vector<4x9x9xf32>
    %56 = arith.mulf %54, %55 : vector<4x9x9xf32>
    %cst_41 = arith.constant dense<0xFF800000> : vector<4x9xf32>
    %57 = vector.multi_reduction <maximumf>, %56, %cst_41 [2] : vector<4x9x9xf32> to vector<4x9xf32>
    %58 = vector.shape_cast %57 : vector<4x9xf32> to vector<4x9x1xf32>
    %59 = vector.broadcast %58 : vector<4x9x1xf32> to vector<4x9x9xf32>
    %60 = arith.subf %56, %59 : vector<4x9x9xf32>
    %61 = math.exp %60 : vector<4x9x9xf32>
    %cst_42 = arith.constant dense<0.000000e+00> : vector<4x9xf32>
    %62 = vector.multi_reduction <add>, %61, %cst_42 [2] : vector<4x9x9xf32> to vector<4x9xf32>
    %63 = vector.shape_cast %62 : vector<4x9xf32> to vector<4x9x1xf32>
    %64 = tpu.reciprocal %63 {approx = true} : vector<4x9x1xf32> -> vector<4x9x1xf32>
    %65 = vector.broadcast %64 : vector<4x9x1xf32> to vector<4x9x9xf32>
    %66 = arith.mulf %61, %65 : vector<4x9x9xf32>
    "tpu.trace_start"() <{level = 10 : i32, message = "hnm,hme->hne"}> : () -> ()
    %cst_43 = arith.constant dense<0.000000e+00> : vector<4x9x8xf32>
    %67 = tpu.matmul %66, %53, %cst_43 {dimension_numbers = #tpu.dot_dimension_numbers<[2], [1], [1], [2], [0, 0, 0, 1, 1, 2], [0], [0]>} : vector<4x9x9xf32>, vector<4x9x8xf32>, vector<4x9x8xf32> -> vector<4x9x8xf32>
    "tpu.trace_stop"() : () -> ()
    "tpu.trace_start"() <{level = 10 : i32, message = "hne,hed->hnd"}> : () -> ()
    %cst_44 = arith.constant dense<0.000000e+00> : vector<4x9x32xf32>
    %68 = tpu.matmul %67, %46, %cst_44 {dimension_numbers = #tpu.dot_dimension_numbers<[2], [1], [1], [2], [0, 0, 0, 1, 1, 2], [0], [0]>} : vector<4x9x8xf32>, vector<4x8x32xf32>, vector<4x9x32xf32> -> vector<4x9x32xf32>
    "tpu.trace_stop"() : () -> ()
    %cst_45 = arith.constant dense<0.000000e+00> : vector<9x32xf32>
    %69 = vector.multi_reduction <add>, %68, %cst_45 [0] : vector<4x9x32xf32> to vector<9x32xf32>
    %c0_46 = arith.constant 0 : index
    %c0_47 = arith.constant 0 : index
    %c0_48 = arith.constant 0 : index
    %70 = vector.load %arg23[%c0_46, %c0_47, %c0_48] : memref<2x9x32xf32, #tpu.memory_space<vmem>>, vector<1x9x32xf32>
    %71 = vector.shape_cast %70 : vector<1x9x32xf32> to vector<9x32xf32>
    %72 = vector.shape_cast %69 : vector<9x32xf32> to vector<1x9x32xf32>
    tpu.vector_store %arg23[%c0_46, %c0_47, %c0_48], %72 {strides = array<i32>} : memref<2x9x32xf32, #tpu.memory_space<vmem>>, vector<1x9x32xf32>,
    %73 = vector.extract_strided_slice %38 {offsets = [1, 0, 0], sizes = [1, 9, 32], strides = [1, 1, 1]} : vector<2x9x32xf32> to vector<1x9x32xf32>
    %74 = vector.shape_cast %73 : vector<1x9x32xf32> to vector<9x32xf32>
    %75 = vector.shape_cast %74 : vector<9x32xf32> to vector<1x9x32xf32>
    %76 = vector.broadcast %75 : vector<1x9x32xf32> to vector<4x9x32xf32>
    "tpu.trace_start"() <{level = 10 : i32, message = "hnd,hde->hne"}> : () -> ()
    %cst_49 = arith.constant dense<0.000000e+00> : vector<4x9x8xf32>
    %77 = tpu.matmul %76, %40, %cst_49 {dimension_numbers = #tpu.dot_dimension_numbers<[2], [1], [1], [2], [0, 0, 0, 1, 1, 2], [0], [0]>} : vector<4x9x32xf32>, vector<4x32x8xf32>, vector<4x9x8xf32> -> vector<4x9x8xf32>
    %cst_50 = arith.constant dense<0.000000e+00> : vector<4x9x8xf32>
    %78 = tpu.matmul %76, %42, %cst_50 {dimension_numbers = #tpu.dot_dimension_numbers<[2], [1], [1], [2], [0, 0, 0, 1, 1, 2], [0], [0]>} : vector<4x9x32xf32>, vector<4x32x8xf32>, vector<4x9x8xf32> -> vector<4x9x8xf32>
    %cst_51 = arith.constant dense<0.000000e+00> : vector<4x9x8xf32>
    %79 = tpu.matmul %76, %44, %cst_51 {dimension_numbers = #tpu.dot_dimension_numbers<[2], [1], [1], [2], [0, 0, 0, 1, 1, 2], [0], [0]>} : vector<4x9x32xf32>, vector<4x32x8xf32>, vector<4x9x8xf32> -> vector<4x9x8xf32>
    "tpu.trace_stop"() : () -> ()
    "tpu.trace_start"() <{level = 10 : i32, message = "hne,hme->hnm"}> : () -> ()
    %cst_52 = arith.constant dense<0.000000e+00> : vector<4x9x9xf32>
    %80 = tpu.matmul %77, %78, %cst_52 {dimension_numbers = #tpu.dot_dimension_numbers<[2], [2], [1], [1], [0, 0, 0, 1, 1, 1], [0], [0]>} : vector<4x9x8xf32>, vector<4x9x8xf32>, vector<4x9x9xf32> -> vector<4x9x9xf32>
    "tpu.trace_stop"() : () -> ()
    %cst_53 = arith.constant 0.353553385 : f32
    %81 = vector.broadcast %cst_53 : f32 to vector<4x9x9xf32>
    %82 = arith.mulf %80, %81 : vector<4x9x9xf32>
    %cst_54 = arith.constant dense<0xFF800000> : vector<4x9xf32>
    %83 = vector.multi_reduction <maximumf>, %82, %cst_54 [2] : vector<4x9x9xf32> to vector<4x9xf32>
    %84 = vector.shape_cast %83 : vector<4x9xf32> to vector<4x9x1xf32>
    %85 = vector.broadcast %84 : vector<4x9x1xf32> to vector<4x9x9xf32>
    %86 = arith.subf %82, %85 : vector<4x9x9xf32>
    %87 = math.exp %86 : vector<4x9x9xf32>
    %cst_55 = arith.constant dense<0.000000e+00> : vector<4x9xf32>
    %88 = vector.multi_reduction <add>, %87, %cst_55 [2] : vector<4x9x9xf32> to vector<4x9xf32>
    %89 = vector.shape_cast %88 : vector<4x9xf32> to vector<4x9x1xf32>
    %90 = tpu.reciprocal %89 {approx = true} : vector<4x9x1xf32> -> vector<4x9x1xf32>
    %91 = vector.broadcast %90 : vector<4x9x1xf32> to vector<4x9x9xf32>
    %92 = arith.mulf %87, %91 : vector<4x9x9xf32>
    "tpu.trace_start"() <{level = 10 : i32, message = "hnm,hme->hne"}> : () -> ()
    %cst_56 = arith.constant dense<0.000000e+00> : vector<4x9x8xf32>
    %93 = tpu.matmul %92, %79, %cst_56 {dimension_numbers = #tpu.dot_dimension_numbers<[2], [1], [1], [2], [0, 0, 0, 1, 1, 2], [0], [0]>} : vector<4x9x9xf32>, vector<4x9x8xf32>, vector<4x9x8xf32> -> vector<4x9x8xf32>
    "tpu.trace_stop"() : () -> ()
    "tpu.trace_start"() <{level = 10 : i32, message = "hne,hed->hnd"}> : () -> ()
    %cst_57 = arith.constant dense<0.000000e+00> : vector<4x9x32xf32>
    %94 = tpu.matmul %93, %46, %cst_57 {dimension_numbers = #tpu.dot_dimension_numbers<[2], [1], [1], [2], [0, 0, 0, 1, 1, 2], [0], [0]>} : vector<4x9x8xf32>, vector<4x8x32xf32>, vector<4x9x32xf32> -> vector<4x9x32xf32>
    "tpu.trace_stop"() : () -> ()
    %cst_58 = arith.constant dense<0.000000e+00> : vector<9x32xf32>
    %95 = vector.multi_reduction <add>, %94, %cst_58 [0] : vector<4x9x32xf32> to vector<9x32xf32>
    %c1 = arith.constant 1 : index
    %c0_59 = arith.constant 0 : index
    %c0_60 = arith.constant 0 : index
    %96 = vector.load %arg23[%c1, %c0_59, %c0_60] : memref<2x9x32xf32, #tpu.memory_space<vmem>>, vector<1x9x32xf32>
    %97 = vector.shape_cast %96 : vector<1x9x32xf32> to vector<9x32xf32>
    %98 = vector.shape_cast %95 : vector<9x32xf32> to vector<1x9x32xf32>
    tpu.vector_store %arg23[%c1, %c0_59, %c0_60], %98 {strides = array<i32>} : memref<2x9x32xf32, #tpu.memory_space<vmem>>, vector<1x9x32xf32>,
    %c0_61 = arith.constant 0 : index
    %c0_62 = arith.constant 0 : index
    %c0_63 = arith.constant 0 : index
    %99 = vector.load %arg23[%c0_61, %c0_62, %c0_63] : memref<2x9x32xf32, #tpu.memory_space<vmem>>, vector<2x9x32xf32>
    %100 = arith.addf %10, %99 : vector<2x9x32xf32>
    %c0_64 = arith.constant 0 : index
    %c0_65 = arith.constant 0 : index
    %c0_66 = arith.constant 0 : index
    %101 = vector.load %arg10[%c0_64, %c0_65, %c0_66] : memref<2x1x32xf32, #tpu.memory_space<vmem>>, vector<1x1x32xf32>
    %102 = vector.shape_cast %101 : vector<1x1x32xf32> to vector<1x32xf32>
    %103 = vector.shape_cast %102 : vector<1x32xf32> to vector<1x1x32xf32>
    %104 = vector.broadcast %103 : vector<1x1x32xf32> to vector<2x9x32xf32>
    %105 = arith.addf %100, %104 : vector<2x9x32xf32>
    %c0_67 = arith.constant 0 : index
    %c0_68 = arith.constant 0 : index
    %c0_69 = arith.constant 0 : index
    %106 = vector.load %arg11[%c0_67, %c0_68, %c0_69] : memref<2x1x32xf32, #tpu.memory_space<vmem>>, vector<1x1x32xf32>
    %107 = vector.shape_cast %106 : vector<1x1x32xf32> to vector<1x32xf32>
    %c0_70 = arith.constant 0 : index
    %c0_71 = arith.constant 0 : index
    %c0_72 = arith.constant 0 : index
    %108 = vector.load %arg12[%c0_70, %c0_71, %c0_72] : memref<2x1x32xf32, #tpu.memory_space<vmem>>, vector<1x1x32xf32>
    %109 = vector.shape_cast %108 : vector<1x1x32xf32> to vector<1x32xf32>
    %cst_73 = arith.constant dense<0.000000e+00> : vector<2x9xf32>
    %110 = vector.multi_reduction <add>, %105, %cst_73 [2] : vector<2x9x32xf32> to vector<2x9xf32>
    %111 = vector.shape_cast %110 : vector<2x9xf32> to vector<2x9x1xf32>
    %cst_74 = arith.constant 3.200000e+01 : f32
    %112 = vector.broadcast %cst_74 : f32 to vector<2x9x1xf32>
    %113 = arith.divf %111, %112 : vector<2x9x1xf32>
    %114 = vector.broadcast %113 : vector<2x9x1xf32> to vector<2x9x32xf32>
    %115 = arith.subf %105, %114 : vector<2x9x32xf32>
    %116 = arith.mulf %115, %115 : vector<2x9x32xf32>
    %cst_75 = arith.constant dense<0.000000e+00> : vector<2x9xf32>
    %117 = vector.multi_reduction <add>, %116, %cst_75 [2] : vector<2x9x32xf32> to vector<2x9xf32>
    %118 = vector.shape_cast %117 : vector<2x9xf32> to vector<2x9x1xf32>
    %cst_76 = arith.constant 3.200000e+01 : f32
    %119 = vector.broadcast %cst_76 : f32 to vector<2x9x1xf32>
    %120 = arith.divf %118, %119 : vector<2x9x1xf32>
    %121 = vector.broadcast %113 : vector<2x9x1xf32> to vector<2x9x32xf32>
    %122 = arith.subf %105, %121 : vector<2x9x32xf32>
    %cst_77 = arith.constant 9.99999974E-6 : f32
    %123 = vector.broadcast %cst_77 : f32 to vector<2x9x1xf32>
    %124 = arith.addf %120, %123 : vector<2x9x1xf32>
    %125 = math.rsqrt %124 : vector<2x9x1xf32>
    %126 = vector.broadcast %125 : vector<2x9x1xf32> to vector<2x9x32xf32>
    %127 = arith.mulf %122, %126 : vector<2x9x32xf32>
    %128 = vector.shape_cast %107 : vector<1x32xf32> to vector<1x1x32xf32>
    %129 = vector.broadcast %128 : vector<1x1x32xf32> to vector<2x9x32xf32>
    %130 = arith.mulf %127, %129 : vector<2x9x32xf32>
    %131 = vector.shape_cast %109 : vector<1x32xf32> to vector<1x1x32xf32>
    %132 = vector.broadcast %131 : vector<1x1x32xf32> to vector<2x9x32xf32>
    %133 = arith.addf %130, %132 : vector<2x9x32xf32>
    %134 = vector.shape_cast %133 : vector<2x9x32xf32> to vector<18x32xf32>
    %c0_78 = arith.constant 0 : index
    %c0_79 = arith.constant 0 : index
    %c0_80 = arith.constant 0 : index
    %135 = vector.load %arg13[%c0_78, %c0_79, %c0_80] : memref<2x32x64xf32, #tpu.memory_space<vmem>>, vector<1x32x64xf32>
    %136 = vector.shape_cast %135 : vector<1x32x64xf32> to vector<32x64xf32>
    %cst_81 = arith.constant dense<0.000000e+00> : vector<18x64xf32>
    %137 = tpu.matmul %134, %136, %cst_81 {dimension_numbers = #tpu.dot_dimension_numbers<[1], [0], [0], [1], [0, 0, 1, 1], [], []>} : vector<18x32xf32>, vector<32x64xf32>, vector<18x64xf32> -> vector<18x64xf32>
    %c0_82 = arith.constant 0 : index
    %c0_83 = arith.constant 0 : index
    %c0_84 = arith.constant 0 : index
    %138 = vector.load %arg14[%c0_82, %c0_83, %c0_84] : memref<2x1x64xf32, #tpu.memory_space<vmem>>, vector<1x1x64xf32>
    %139 = vector.shape_cast %138 : vector<1x1x64xf32> to vector<1x64xf32>
    %140 = vector.broadcast %139 : vector<1x64xf32> to vector<18x64xf32>
    %141 = arith.addf %137, %140 : vector<18x64xf32>
    %cst_85 = arith.constant 5.000000e-01 : f32
    %142 = vector.broadcast %cst_85 : f32 to vector<18x64xf32>
    %143 = arith.mulf %142, %141 : vector<18x64xf32>
    %cst_86 = arith.constant 4.471500e-02 : f32
    %144 = vector.broadcast %cst_86 : f32 to vector<18x64xf32>
    %145 = arith.mulf %144, %141 : vector<18x64xf32>
    %146 = arith.mulf %145, %141 : vector<18x64xf32>
    %147 = arith.mulf %146, %141 : vector<18x64xf32>
    %148 = arith.addf %141, %147 : vector<18x64xf32>
    %cst_87 = arith.constant 0.797884583 : f32
    %149 = vector.broadcast %cst_87 : f32 to vector<18x64xf32>
    %150 = arith.mulf %149, %148 : vector<18x64xf32>
    %151 = math.tanh %150 : vector<18x64xf32>
    %cst_88 = arith.constant 1.000000e+00 : f32
    %152 = vector.broadcast %cst_88 : f32 to vector<18x64xf32>
    %153 = arith.addf %152, %151 : vector<18x64xf32>
    %154 = arith.mulf %143, %153 : vector<18x64xf32>
    %c0_89 = arith.constant 0 : index
    %c0_90 = arith.constant 0 : index
    %c0_91 = arith.constant 0 : index
    %155 = vector.load %arg15[%c0_89, %c0_90, %c0_91] : memref<2x64x32xf32, #tpu.memory_space<vmem>>, vector<1x64x32xf32>
    %156 = vector.shape_cast %155 : vector<1x64x32xf32> to vector<64x32xf32>
    %cst_92 = arith.constant dense<0.000000e+00> : vector<18x32xf32>
    %157 = tpu.matmul %154, %156, %cst_92 {dimension_numbers = #tpu.dot_dimension_numbers<[1], [0], [0], [1], [0, 0, 1, 1], [], []>} : vector<18x64xf32>, vector<64x32xf32>, vector<18x32xf32> -> vector<18x32xf32>
    %c0_93 = arith.constant 0 : index
    %c0_94 = arith.constant 0 : index
    %c0_95 = arith.constant 0 : index
    %158 = vector.load %arg16[%c0_93, %c0_94, %c0_95] : memref<2x1x32xf32, #tpu.memory_space<vmem>>, vector<1x1x32xf32>
    %159 = vector.shape_cast %158 : vector<1x1x32xf32> to vector<1x32xf32>
    %160 = vector.broadcast %159 : vector<1x32xf32> to vector<18x32xf32>
    %161 = arith.addf %157, %160 : vector<18x32xf32>
    %162 = vector.shape_cast %161 : vector<18x32xf32> to vector<2x9x32xf32>
    %163 = arith.addf %105, %162 : vector<2x9x32xf32>
    %c1_96 = arith.constant 1 : index
    %c0_97 = arith.constant 0 : index
    %c0_98 = arith.constant 0 : index
    %164 = vector.load %arg4[%c1_96, %c0_97, %c0_98] : memref<2x1x32xf32, #tpu.memory_space<vmem>>, vector<1x1x32xf32>
    %165 = vector.shape_cast %164 : vector<1x1x32xf32> to vector<1x32xf32>
    %c1_99 = arith.constant 1 : index
    %c0_100 = arith.constant 0 : index
    %c0_101 = arith.constant 0 : index
    %166 = vector.load %arg5[%c1_99, %c0_100, %c0_101] : memref<2x1x32xf32, #tpu.memory_space<vmem>>, vector<1x1x32xf32>
    %167 = vector.shape_cast %166 : vector<1x1x32xf32> to vector<1x32xf32>
    %cst_102 = arith.constant dense<0.000000e+00> : vector<2x9xf32>
    %168 = vector.multi_reduction <add>, %163, %cst_102 [2] : vector<2x9x32xf32> to vector<2x9xf32>
    %169 = vector.shape_cast %168 : vector<2x9xf32> to vector<2x9x1xf32>
    %cst_103 = arith.constant 3.200000e+01 : f32
    %170 = vector.broadcast %cst_103 : f32 to vector<2x9x1xf32>
    %171 = arith.divf %169, %170 : vector<2x9x1xf32>
    %172 = vector.broadcast %171 : vector<2x9x1xf32> to vector<2x9x32xf32>
    %173 = arith.subf %163, %172 : vector<2x9x32xf32>
    %174 = arith.mulf %173, %173 : vector<2x9x32xf32>
    %cst_104 = arith.constant dense<0.000000e+00> : vector<2x9xf32>
    %175 = vector.multi_reduction <add>, %174, %cst_104 [2] : vector<2x9x32xf32> to vector<2x9xf32>
    %176 = vector.shape_cast %175 : vector<2x9xf32> to vector<2x9x1xf32>
    %cst_105 = arith.constant 3.200000e+01 : f32
    %177 = vector.broadcast %cst_105 : f32 to vector<2x9x1xf32>
    %178 = arith.divf %176, %177 : vector<2x9x1xf32>
    %179 = vector.broadcast %171 : vector<2x9x1xf32> to vector<2x9x32xf32>
    %180 = arith.subf %163, %179 : vector<2x9x32xf32>
    %cst_106 = arith.constant 9.99999974E-6 : f32
    %181 = vector.broadcast %cst_106 : f32 to vector<2x9x1xf32>
    %182 = arith.addf %178, %181 : vector<2x9x1xf32>
    %183 = math.rsqrt %182 : vector<2x9x1xf32>
    %184 = vector.broadcast %183 : vector<2x9x1xf32> to vector<2x9x32xf32>
    %185 = arith.mulf %180, %184 : vector<2x9x32xf32>
    %186 = vector.shape_cast %165 : vector<1x32xf32> to vector<1x1x32xf32>
    %187 = vector.broadcast %186 : vector<1x1x32xf32> to vector<2x9x32xf32>
    %188 = arith.mulf %185, %187 : vector<2x9x32xf32>
    %189 = vector.shape_cast %167 : vector<1x32xf32> to vector<1x1x32xf32>
    %190 = vector.broadcast %189 : vector<1x1x32xf32> to vector<2x9x32xf32>
    %191 = arith.addf %188, %190 : vector<2x9x32xf32>
    %c1_107 = arith.constant 1 : index
    %c0_108 = arith.constant 0 : index
    %c0_109 = arith.constant 0 : index
    %c0_110 = arith.constant 0 : index
    %192 = vector.load %arg6[%c1_107, %c0_108, %c0_109, %c0_110] : memref<2x4x32x8xf32, #tpu.memory_space<vmem>>, vector<1x4x32x8xf32>
    %193 = vector.shape_cast %192 : vector<1x4x32x8xf32> to vector<4x32x8xf32>
    %c1_111 = arith.constant 1 : index
    %c0_112 = arith.constant 0 : index
    %c0_113 = arith.constant 0 : index
    %c0_114 = arith.constant 0 : index
    %194 = vector.load %arg7[%c1_111, %c0_112, %c0_113, %c0_114] : memref<2x4x32x8xf32, #tpu.memory_space<vmem>>, vector<1x4x32x8xf32>
    %195 = vector.shape_cast %194 : vector<1x4x32x8xf32> to vector<4x32x8xf32>
    %c1_115 = arith.constant 1 : index
    %c0_116 = arith.constant 0 : index
    %c0_117 = arith.constant 0 : index
    %c0_118 = arith.constant 0 : index
    %196 = vector.load %arg8[%c1_115, %c0_116, %c0_117, %c0_118] : memref<2x4x32x8xf32, #tpu.memory_space<vmem>>, vector<1x4x32x8xf32>
    %197 = vector.shape_cast %196 : vector<1x4x32x8xf32> to vector<4x32x8xf32>
    %c1_119 = arith.constant 1 : index
    %c0_120 = arith.constant 0 : index
    %c0_121 = arith.constant 0 : index
    %c0_122 = arith.constant 0 : index
    %198 = vector.load %arg9[%c1_119, %c0_120, %c0_121, %c0_122] : memref<2x4x8x32xf32, #tpu.memory_space<vmem>>, vector<1x4x8x32xf32>
    %199 = vector.shape_cast %198 : vector<1x4x8x32xf32> to vector<4x8x32xf32>
    %200 = vector.extract_strided_slice %191 {offsets = [0, 0, 0], sizes = [1, 9, 32], strides = [1, 1, 1]} : vector<2x9x32xf32> to vector<1x9x32xf32>
    %201 = vector.shape_cast %200 : vector<1x9x32xf32> to vector<9x32xf32>
    %202 = vector.shape_cast %201 : vector<9x32xf32> to vector<1x9x32xf32>
    %203 = vector.broadcast %202 : vector<1x9x32xf32> to vector<4x9x32xf32>
    "tpu.trace_start"() <{level = 10 : i32, message = "hnd,hde->hne"}> : () -> ()
    %cst_123 = arith.constant dense<0.000000e+00> : vector<4x9x8xf32>
    %204 = tpu.matmul %203, %193, %cst_123 {dimension_numbers = #tpu.dot_dimension_numbers<[2], [1], [1], [2], [0, 0, 0, 1, 1, 2], [0], [0]>} : vector<4x9x32xf32>, vector<4x32x8xf32>, vector<4x9x8xf32> -> vector<4x9x8xf32>
    %cst_124 = arith.constant dense<0.000000e+00> : vector<4x9x8xf32>
    %205 = tpu.matmul %203, %195, %cst_124 {dimension_numbers = #tpu.dot_dimension_numbers<[2], [1], [1], [2], [0, 0, 0, 1, 1, 2], [0], [0]>} : vector<4x9x32xf32>, vector<4x32x8xf32>, vector<4x9x8xf32> -> vector<4x9x8xf32>
    %cst_125 = arith.constant dense<0.000000e+00> : vector<4x9x8xf32>
    %206 = tpu.matmul %203, %197, %cst_125 {dimension_numbers = #tpu.dot_dimension_numbers<[2], [1], [1], [2], [0, 0, 0, 1, 1, 2], [0], [0]>} : vector<4x9x32xf32>, vector<4x32x8xf32>, vector<4x9x8xf32> -> vector<4x9x8xf32>
    "tpu.trace_stop"() : () -> ()
    "tpu.trace_start"() <{level = 10 : i32, message = "hne,hme->hnm"}> : () -> ()
    %cst_126 = arith.constant dense<0.000000e+00> : vector<4x9x9xf32>
    %207 = tpu.matmul %204, %205, %cst_126 {dimension_numbers = #tpu.dot_dimension_numbers<[2], [2], [1], [1], [0, 0, 0, 1, 1, 1], [0], [0]>} : vector<4x9x8xf32>, vector<4x9x8xf32>, vector<4x9x9xf32> -> vector<4x9x9xf32>
    "tpu.trace_stop"() : () -> ()
    %cst_127 = arith.constant 0.353553385 : f32
    %208 = vector.broadcast %cst_127 : f32 to vector<4x9x9xf32>
    %209 = arith.mulf %207, %208 : vector<4x9x9xf32>
    %cst_128 = arith.constant dense<0xFF800000> : vector<4x9xf32>
    %210 = vector.multi_reduction <maximumf>, %209, %cst_128 [2] : vector<4x9x9xf32> to vector<4x9xf32>
    %211 = vector.shape_cast %210 : vector<4x9xf32> to vector<4x9x1xf32>
    %212 = vector.broadcast %211 : vector<4x9x1xf32> to vector<4x9x9xf32>
    %213 = arith.subf %209, %212 : vector<4x9x9xf32>
    %214 = math.exp %213 : vector<4x9x9xf32>
    %cst_129 = arith.constant dense<0.000000e+00> : vector<4x9xf32>
    %215 = vector.multi_reduction <add>, %214, %cst_129 [2] : vector<4x9x9xf32> to vector<4x9xf32>
    %216 = vector.shape_cast %215 : vector<4x9xf32> to vector<4x9x1xf32>
    %217 = tpu.reciprocal %216 {approx = true} : vector<4x9x1xf32> -> vector<4x9x1xf32>
    %218 = vector.broadcast %217 : vector<4x9x1xf32> to vector<4x9x9xf32>
    %219 = arith.mulf %214, %218 : vector<4x9x9xf32>
    "tpu.trace_start"() <{level = 10 : i32, message = "hnm,hme->hne"}> : () -> ()
    %cst_130 = arith.constant dense<0.000000e+00> : vector<4x9x8xf32>
    %220 = tpu.matmul %219, %206, %cst_130 {dimension_numbers = #tpu.dot_dimension_numbers<[2], [1], [1], [2], [0, 0, 0, 1, 1, 2], [0], [0]>} : vector<4x9x9xf32>, vector<4x9x8xf32>, vector<4x9x8xf32> -> vector<4x9x8xf32>
    "tpu.trace_stop"() : () -> ()
    "tpu.trace_start"() <{level = 10 : i32, message = "hne,hed->hnd"}> : () -> ()
    %cst_131 = arith.constant dense<0.000000e+00> : vector<4x9x32xf32>
    %221 = tpu.matmul %220, %199, %cst_131 {dimension_numbers = #tpu.dot_dimension_numbers<[2], [1], [1], [2], [0, 0, 0, 1, 1, 2], [0], [0]>} : vector<4x9x8xf32>, vector<4x8x32xf32>, vector<4x9x32xf32> -> vector<4x9x32xf32>
    "tpu.trace_stop"() : () -> ()
    %cst_132 = arith.constant dense<0.000000e+00> : vector<9x32xf32>
    %222 = vector.multi_reduction <add>, %221, %cst_132 [0] : vector<4x9x32xf32> to vector<9x32xf32>
    %c0_133 = arith.constant 0 : index
    %c0_134 = arith.constant 0 : index
    %c0_135 = arith.constant 0 : index
    %223 = vector.load %arg23[%c0_133, %c0_134, %c0_135] : memref<2x9x32xf32, #tpu.memory_space<vmem>>, vector<1x9x32xf32>
    %224 = vector.shape_cast %223 : vector<1x9x32xf32> to vector<9x32xf32>
    %225 = vector.shape_cast %222 : vector<9x32xf32> to vector<1x9x32xf32>
    tpu.vector_store %arg23[%c0_133, %c0_134, %c0_135], %225 {strides = array<i32>} : memref<2x9x32xf32, #tpu.memory_space<vmem>>, vector<1x9x32xf32>,
    %226 = vector.extract_strided_slice %191 {offsets = [1, 0, 0], sizes = [1, 9, 32], strides = [1, 1, 1]} : vector<2x9x32xf32> to vector<1x9x32xf32>
    %227 = vector.shape_cast %226 : vector<1x9x32xf32> to vector<9x32xf32>
    %228 = vector.shape_cast %227 : vector<9x32xf32> to vector<1x9x32xf32>
    %229 = vector.broadcast %228 : vector<1x9x32xf32> to vector<4x9x32xf32>
    "tpu.trace_start"() <{level = 10 : i32, message = "hnd,hde->hne"}> : () -> ()
    %cst_136 = arith.constant dense<0.000000e+00> : vector<4x9x8xf32>
    %230 = tpu.matmul %229, %193, %cst_136 {dimension_numbers = #tpu.dot_dimension_numbers<[2], [1], [1], [2], [0, 0, 0, 1, 1, 2], [0], [0]>} : vector<4x9x32xf32>, vector<4x32x8xf32>, vector<4x9x8xf32> -> vector<4x9x8xf32>
    %cst_137 = arith.constant dense<0.000000e+00> : vector<4x9x8xf32>
    %231 = tpu.matmul %229, %195, %cst_137 {dimension_numbers = #tpu.dot_dimension_numbers<[2], [1], [1], [2], [0, 0, 0, 1, 1, 2], [0], [0]>} : vector<4x9x32xf32>, vector<4x32x8xf32>, vector<4x9x8xf32> -> vector<4x9x8xf32>
    %cst_138 = arith.constant dense<0.000000e+00> : vector<4x9x8xf32>
    %232 = tpu.matmul %229, %197, %cst_138 {dimension_numbers = #tpu.dot_dimension_numbers<[2], [1], [1], [2], [0, 0, 0, 1, 1, 2], [0], [0]>} : vector<4x9x32xf32>, vector<4x32x8xf32>, vector<4x9x8xf32> -> vector<4x9x8xf32>
    "tpu.trace_stop"() : () -> ()
    "tpu.trace_start"() <{level = 10 : i32, message = "hne,hme->hnm"}> : () -> ()
    %cst_139 = arith.constant dense<0.000000e+00> : vector<4x9x9xf32>
    %233 = tpu.matmul %230, %231, %cst_139 {dimension_numbers = #tpu.dot_dimension_numbers<[2], [2], [1], [1], [0, 0, 0, 1, 1, 1], [0], [0]>} : vector<4x9x8xf32>, vector<4x9x8xf32>, vector<4x9x9xf32> -> vector<4x9x9xf32>
    "tpu.trace_stop"() : () -> ()
    %cst_140 = arith.constant 0.353553385 : f32
    %234 = vector.broadcast %cst_140 : f32 to vector<4x9x9xf32>
    %235 = arith.mulf %233, %234 : vector<4x9x9xf32>
    %cst_141 = arith.constant dense<0xFF800000> : vector<4x9xf32>
    %236 = vector.multi_reduction <maximumf>, %235, %cst_141 [2] : vector<4x9x9xf32> to vector<4x9xf32>
    %237 = vector.shape_cast %236 : vector<4x9xf32> to vector<4x9x1xf32>
    %238 = vector.broadcast %237 : vector<4x9x1xf32> to vector<4x9x9xf32>
    %239 = arith.subf %235, %238 : vector<4x9x9xf32>
    %240 = math.exp %239 : vector<4x9x9xf32>
    %cst_142 = arith.constant dense<0.000000e+00> : vector<4x9xf32>
    %241 = vector.multi_reduction <add>, %240, %cst_142 [2] : vector<4x9x9xf32> to vector<4x9xf32>
    %242 = vector.shape_cast %241 : vector<4x9xf32> to vector<4x9x1xf32>
    %243 = tpu.reciprocal %242 {approx = true} : vector<4x9x1xf32> -> vector<4x9x1xf32>
    %244 = vector.broadcast %243 : vector<4x9x1xf32> to vector<4x9x9xf32>
    %245 = arith.mulf %240, %244 : vector<4x9x9xf32>
    "tpu.trace_start"() <{level = 10 : i32, message = "hnm,hme->hne"}> : () -> ()
    %cst_143 = arith.constant dense<0.000000e+00> : vector<4x9x8xf32>
    %246 = tpu.matmul %245, %232, %cst_143 {dimension_numbers = #tpu.dot_dimension_numbers<[2], [1], [1], [2], [0, 0, 0, 1, 1, 2], [0], [0]>} : vector<4x9x9xf32>, vector<4x9x8xf32>, vector<4x9x8xf32> -> vector<4x9x8xf32>
    "tpu.trace_stop"() : () -> ()
    "tpu.trace_start"() <{level = 10 : i32, message = "hne,hed->hnd"}> : () -> ()
    %cst_144 = arith.constant dense<0.000000e+00> : vector<4x9x32xf32>
    %247 = tpu.matmul %246, %199, %cst_144 {dimension_numbers = #tpu.dot_dimension_numbers<[2], [1], [1], [2], [0, 0, 0, 1, 1, 2], [0], [0]>} : vector<4x9x8xf32>, vector<4x8x32xf32>, vector<4x9x32xf32> -> vector<4x9x32xf32>
    "tpu.trace_stop"() : () -> ()
    %cst_145 = arith.constant dense<0.000000e+00> : vector<9x32xf32>
    %248 = vector.multi_reduction <add>, %247, %cst_145 [0] : vector<4x9x32xf32> to vector<9x32xf32>
    %c1_146 = arith.constant 1 : index
    %c0_147 = arith.constant 0 : index
    %c0_148 = arith.constant 0 : index
    %249 = vector.load %arg23[%c1_146, %c0_147, %c0_148] : memref<2x9x32xf32, #tpu.memory_space<vmem>>, vector<1x9x32xf32>
    %250 = vector.shape_cast %249 : vector<1x9x32xf32> to vector<9x32xf32>
    %251 = vector.shape_cast %248 : vector<9x32xf32> to vector<1x9x32xf32>
    tpu.vector_store %arg23[%c1_146, %c0_147, %c0_148], %251 {strides = array<i32>} : memref<2x9x32xf32, #tpu.memory_space<vmem>>, vector<1x9x32xf32>,
    %c0_149 = arith.constant 0 : index
    %c0_150 = arith.constant 0 : index
    %c0_151 = arith.constant 0 : index
    %252 = vector.load %arg23[%c0_149, %c0_150, %c0_151] : memref<2x9x32xf32, #tpu.memory_space<vmem>>, vector<2x9x32xf32>
    %253 = arith.addf %163, %252 : vector<2x9x32xf32>
    %c1_152 = arith.constant 1 : index
    %c0_153 = arith.constant 0 : index
    %c0_154 = arith.constant 0 : index
    %254 = vector.load %arg10[%c1_152, %c0_153, %c0_154] : memref<2x1x32xf32, #tpu.memory_space<vmem>>, vector<1x1x32xf32>
    %255 = vector.shape_cast %254 : vector<1x1x32xf32> to vector<1x32xf32>
    %256 = vector.shape_cast %255 : vector<1x32xf32> to vector<1x1x32xf32>
    %257 = vector.broadcast %256 : vector<1x1x32xf32> to vector<2x9x32xf32>
    %258 = arith.addf %253, %257 : vector<2x9x32xf32>
    %c1_155 = arith.constant 1 : index
    %c0_156 = arith.constant 0 : index
    %c0_157 = arith.constant 0 : index
    %259 = vector.load %arg11[%c1_155, %c0_156, %c0_157] : memref<2x1x32xf32, #tpu.memory_space<vmem>>, vector<1x1x32xf32>
    %260 = vector.shape_cast %259 : vector<1x1x32xf32> to vector<1x32xf32>
    %c1_158 = arith.constant 1 : index
    %c0_159 = arith.constant 0 : index
    %c0_160 = arith.constant 0 : index
    %261 = vector.load %arg12[%c1_158, %c0_159, %c0_160] : memref<2x1x32xf32, #tpu.memory_space<vmem>>, vector<1x1x32xf32>
    %262 = vector.shape_cast %261 : vector<1x1x32xf32> to vector<1x32xf32>
    %cst_161 = arith.constant dense<0.000000e+00> : vector<2x9xf32>
    %263 = vector.multi_reduction <add>, %258, %cst_161 [2] : vector<2x9x32xf32> to vector<2x9xf32>
    %264 = vector.shape_cast %263 : vector<2x9xf32> to vector<2x9x1xf32>
    %cst_162 = arith.constant 3.200000e+01 : f32
    %265 = vector.broadcast %cst_162 : f32 to vector<2x9x1xf32>
    %266 = arith.divf %264, %265 : vector<2x9x1xf32>
    %267 = vector.broadcast %266 : vector<2x9x1xf32> to vector<2x9x32xf32>
    %268 = arith.subf %258, %267 : vector<2x9x32xf32>
    %269 = arith.mulf %268, %268 : vector<2x9x32xf32>
    %cst_163 = arith.constant dense<0.000000e+00> : vector<2x9xf32>
    %270 = vector.multi_reduction <add>, %269, %cst_163 [2] : vector<2x9x32xf32> to vector<2x9xf32>
    %271 = vector.shape_cast %270 : vector<2x9xf32> to vector<2x9x1xf32>
    %cst_164 = arith.constant 3.200000e+01 : f32
    %272 = vector.broadcast %cst_164 : f32 to vector<2x9x1xf32>
    %273 = arith.divf %271, %272 : vector<2x9x1xf32>
    %274 = vector.broadcast %266 : vector<2x9x1xf32> to vector<2x9x32xf32>
    %275 = arith.subf %258, %274 : vector<2x9x32xf32>
    %cst_165 = arith.constant 9.99999974E-6 : f32
    %276 = vector.broadcast %cst_165 : f32 to vector<2x9x1xf32>
    %277 = arith.addf %273, %276 : vector<2x9x1xf32>
    %278 = math.rsqrt %277 : vector<2x9x1xf32>
    %279 = vector.broadcast %278 : vector<2x9x1xf32> to vector<2x9x32xf32>
    %280 = arith.mulf %275, %279 : vector<2x9x32xf32>
    %281 = vector.shape_cast %260 : vector<1x32xf32> to vector<1x1x32xf32>
    %282 = vector.broadcast %281 : vector<1x1x32xf32> to vector<2x9x32xf32>
    %283 = arith.mulf %280, %282 : vector<2x9x32xf32>
    %284 = vector.shape_cast %262 : vector<1x32xf32> to vector<1x1x32xf32>
    %285 = vector.broadcast %284 : vector<1x1x32xf32> to vector<2x9x32xf32>
    %286 = arith.addf %283, %285 : vector<2x9x32xf32>
    %287 = vector.shape_cast %286 : vector<2x9x32xf32> to vector<18x32xf32>
    %c1_166 = arith.constant 1 : index
    %c0_167 = arith.constant 0 : index
    %c0_168 = arith.constant 0 : index
    %288 = vector.load %arg13[%c1_166, %c0_167, %c0_168] : memref<2x32x64xf32, #tpu.memory_space<vmem>>, vector<1x32x64xf32>
    %289 = vector.shape_cast %288 : vector<1x32x64xf32> to vector<32x64xf32>
    %cst_169 = arith.constant dense<0.000000e+00> : vector<18x64xf32>
    %290 = tpu.matmul %287, %289, %cst_169 {dimension_numbers = #tpu.dot_dimension_numbers<[1], [0], [0], [1], [0, 0, 1, 1], [], []>} : vector<18x32xf32>, vector<32x64xf32>, vector<18x64xf32> -> vector<18x64xf32>
    %c1_170 = arith.constant 1 : index
    %c0_171 = arith.constant 0 : index
    %c0_172 = arith.constant 0 : index
    %291 = vector.load %arg14[%c1_170, %c0_171, %c0_172] : memref<2x1x64xf32, #tpu.memory_space<vmem>>, vector<1x1x64xf32>
    %292 = vector.shape_cast %291 : vector<1x1x64xf32> to vector<1x64xf32>
    %293 = vector.broadcast %292 : vector<1x64xf32> to vector<18x64xf32>
    %294 = arith.addf %290, %293 : vector<18x64xf32>
    %cst_173 = arith.constant 5.000000e-01 : f32
    %295 = vector.broadcast %cst_173 : f32 to vector<18x64xf32>
    %296 = arith.mulf %295, %294 : vector<18x64xf32>
    %cst_174 = arith.constant 4.471500e-02 : f32
    %297 = vector.broadcast %cst_174 : f32 to vector<18x64xf32>
    %298 = arith.mulf %297, %294 : vector<18x64xf32>
    %299 = arith.mulf %298, %294 : vector<18x64xf32>
    %300 = arith.mulf %299, %294 : vector<18x64xf32>
    %301 = arith.addf %294, %300 : vector<18x64xf32>
    %cst_175 = arith.constant 0.797884583 : f32
    %302 = vector.broadcast %cst_175 : f32 to vector<18x64xf32>
    %303 = arith.mulf %302, %301 : vector<18x64xf32>
    %304 = math.tanh %303 : vector<18x64xf32>
    %cst_176 = arith.constant 1.000000e+00 : f32
    %305 = vector.broadcast %cst_176 : f32 to vector<18x64xf32>
    %306 = arith.addf %305, %304 : vector<18x64xf32>
    %307 = arith.mulf %296, %306 : vector<18x64xf32>
    %c1_177 = arith.constant 1 : index
    %c0_178 = arith.constant 0 : index
    %c0_179 = arith.constant 0 : index
    %308 = vector.load %arg15[%c1_177, %c0_178, %c0_179] : memref<2x64x32xf32, #tpu.memory_space<vmem>>, vector<1x64x32xf32>
    %309 = vector.shape_cast %308 : vector<1x64x32xf32> to vector<64x32xf32>
    %cst_180 = arith.constant dense<0.000000e+00> : vector<18x32xf32>
    %310 = tpu.matmul %307, %309, %cst_180 {dimension_numbers = #tpu.dot_dimension_numbers<[1], [0], [0], [1], [0, 0, 1, 1], [], []>} : vector<18x64xf32>, vector<64x32xf32>, vector<18x32xf32> -> vector<18x32xf32>
    %c1_181 = arith.constant 1 : index
    %c0_182 = arith.constant 0 : index
    %c0_183 = arith.constant 0 : index
    %311 = vector.load %arg16[%c1_181, %c0_182, %c0_183] : memref<2x1x32xf32, #tpu.memory_space<vmem>>, vector<1x1x32xf32>
    %312 = vector.shape_cast %311 : vector<1x1x32xf32> to vector<1x32xf32>
    %313 = vector.broadcast %312 : vector<1x32xf32> to vector<18x32xf32>
    %314 = arith.addf %310, %313 : vector<18x32xf32>
    %315 = vector.shape_cast %314 : vector<18x32xf32> to vector<2x9x32xf32>
    %316 = arith.addf %258, %315 : vector<2x9x32xf32>
    %c0_184 = arith.constant 0 : index
    %c0_185 = arith.constant 0 : index
    %c0_186 = arith.constant 0 : index
    %317 = vector.load %arg21[%c0_184, %c0_185, %c0_186] : memref<2x9x32xf32, #tpu.memory_space<vmem>>, vector<2x9x32xf32>
    tpu.vector_store %arg21[%c0_184, %c0_185, %c0_186], %316 {strides = array<i32>} : memref<2x9x32xf32, #tpu.memory_space<vmem>>, vector<2x9x32xf32>,
    %318 = vector.extract_strided_slice %316 {offsets = [0, 0, 0], sizes = [2, 1, 32], strides = [1, 1, 1]} : vector<2x9x32xf32> to vector<2x1x32xf32>
    %319 = vector.shape_cast %318 : vector<2x1x32xf32> to vector<2x32xf32>
    %c0_187 = arith.constant 0 : index
    %c0_188 = arith.constant 0 : index
    %320 = vector.load %arg17[%c0_187, %c0_188] : memref<1x32xf32, #tpu.memory_space<vmem>>, vector<1x32xf32>
    %c0_189 = arith.constant 0 : index
    %c0_190 = arith.constant 0 : index
    %321 = vector.load %arg18[%c0_189, %c0_190] : memref<1x32xf32, #tpu.memory_space<vmem>>, vector<1x32xf32>
    %cst_191 = arith.constant dense<0.000000e+00> : vector<2xf32>
    %322 = vector.multi_reduction <add>, %319, %cst_191 [1] : vector<2x32xf32> to vector<2xf32>
    %323 = vector.shape_cast %322 : vector<2xf32> to vector<2x1xf32>
    %cst_192 = arith.constant 3.200000e+01 : f32
    %324 = vector.broadcast %cst_192 : f32 to vector<2x1xf32>
    %325 = arith.divf %323, %324 : vector<2x1xf32>
    %326 = vector.broadcast %325 : vector<2x1xf32> to vector<2x32xf32>
    %327 = arith.subf %319, %326 : vector<2x32xf32>
    %328 = arith.mulf %327, %327 : vector<2x32xf32>
    %cst_193 = arith.constant dense<0.000000e+00> : vector<2xf32>
    %329 = vector.multi_reduction <add>, %328, %cst_193 [1] : vector<2x32xf32> to vector<2xf32>
    %330 = vector.shape_cast %329 : vector<2xf32> to vector<2x1xf32>
    %cst_194 = arith.constant 3.200000e+01 : f32
    %331 = vector.broadcast %cst_194 : f32 to vector<2x1xf32>
    %332 = arith.divf %330, %331 : vector<2x1xf32>
    %333 = vector.broadcast %325 : vector<2x1xf32> to vector<2x32xf32>
    %334 = arith.subf %319, %333 : vector<2x32xf32>
    %cst_195 = arith.constant 9.99999974E-6 : f32
    %335 = vector.broadcast %cst_195 : f32 to vector<2x1xf32>
    %336 = arith.addf %332, %335 : vector<2x1xf32>
    %337 = math.rsqrt %336 : vector<2x1xf32>
    %338 = vector.broadcast %337 : vector<2x1xf32> to vector<2x32xf32>
    %339 = arith.mulf %334, %338 : vector<2x32xf32>
    %340 = vector.broadcast %320 : vector<1x32xf32> to vector<2x32xf32>
    %341 = arith.mulf %339, %340 : vector<2x32xf32>
    %342 = vector.broadcast %321 : vector<1x32xf32> to vector<2x32xf32>
    %343 = arith.addf %341, %342 : vector<2x32xf32>
    %c0_196 = arith.constant 0 : index
    %c0_197 = arith.constant 0 : index
    %344 = vector.load %arg19[%c0_196, %c0_197] : memref<32x5xf32, #tpu.memory_space<vmem>>, vector<32x5xf32>
    %cst_198 = arith.constant dense<0.000000e+00> : vector<2x5xf32>
    %345 = tpu.matmul %343, %344, %cst_198 {dimension_numbers = #tpu.dot_dimension_numbers<[1], [0], [0], [1], [0, 0, 1, 1], [], []>} : vector<2x32xf32>, vector<32x5xf32>, vector<2x5xf32> -> vector<2x5xf32>
    %c0_199 = arith.constant 0 : index
    %c0_200 = arith.constant 0 : index
    %346 = vector.load %arg20[%c0_199, %c0_200] : memref<1x5xf32, #tpu.memory_space<vmem>>, vector<1x5xf32>
    %347 = vector.broadcast %346 : vector<1x5xf32> to vector<2x5xf32>
    %348 = arith.addf %345, %347 : vector<2x5xf32>
    %c0_201 = arith.constant 0 : index
    %c0_202 = arith.constant 0 : index
    %349 = vector.load %arg22[%c0_201, %c0_202] : memref<2x5xf32, #tpu.memory_space<vmem>>, vector<2x5xf32>
    tpu.vector_store %arg22[%c0_201, %c0_202], %348 {strides = array<i32>} : memref<2x5xf32, #tpu.memory_space<vmem>>, vector<2x5xf32>,
    return
  }
}

</mosaic_0001>

<bundles_post_ra>
// kernel: vit_forward.1
= control target key start
LH: loop header
LB: loop body
LE: loop exit
PB: predicated region body
PF: predicated region fallthrough
CT: control target
= control target key end

     0   :  { %s20265_s0 = inlined_call_operand.vmem [shape: f32[2,9,32], index: 0, kind: input, shape index: {}]   ;;  %s20266_s1 = inlined_call_operand.vmem [shape: f32[1,9,32], index: 1, kind: input, shape index: {}]   ;;  %s20267_s2 = inlined_call_operand.vmem [shape: f32[32,32], index: 2, kind: input, shape index: {}]   ;;  %s20268_s3 = inlined_call_operand.vmem [shape: f32[1,32], index: 3, kind: input, shape index: {}]   ;;  %s20269_s4 = inlined_call_operand.vmem [shape: f32[2,1,32], index: 4, kind: input, shape index: {}]   ;;  %s20270_s5 = inlined_call_operand.vmem [shape: f32[2,1,32], index: 5, kind: input, shape index: {}]   ;;  %s20271_s6 = inlined_call_operand.vmem [shape: f32[2,4,32,8], index: 6, kind: input, shape index: {}]   ;;  %s20272_s7 = inlined_call_operand.vmem [shape: f32[2,4,32,8], index: 7, kind: input, shape index: {}]   ;;  %s20273_s8 = inlined_call_operand.vmem [shape: f32[2,4,32,8], index: 8, kind: input, shape index: {}]   ;;  %s20274_s9 = inlined_call_operand.vmem [shape: f32[2,4,8,32], index: 9, kind: input, shape index: {}]   ;;  %s20275_s10 = inlined_call_operand.vmem [shape: f32[2,1,32], index: 10, kind: input, shape index: {}]   ;;  %s20276_s11 = inlined_call_operand.vmem [shape: f32[2,1,32], index: 11, kind: input, shape index: {}]   ;;  %s20277_s12 = inlined_call_operand.vmem [shape: f32[2,1,32], index: 12, kind: input, shape index: {}]   ;;  %s20278_s13 = inlined_call_operand.vmem [shape: f32[2,32,64], index: 13, kind: input, shape index: {}]   ;;  %s20279_s14 = inlined_call_operand.vmem [shape: f32[2,1,64], index: 14, kind: input, shape index: {}]   ;;  %s20280_s15 = inlined_call_operand.vmem [shape: f32[2,64,32], index: 15, kind: input, shape index: {}]   ;;  %s20281_s16 = inlined_call_operand.vmem [shape: f32[2,1,32], index: 16, kind: input, shape index: {}]   ;;  %s20282_s17 = inlined_call_operand.vmem [shape: f32[1,32], index: 17, kind: input, shape index: {}]   ;;  %s20283_s18 = inlined_call_operand.vmem [shape: f32[1,32], index: 18, kind: input, shape index: {}]   ;;  %s20284_s19 = inlined_call_operand.vmem [shape: f32[32,5], index: 19, kind: input, shape index: {}]   ;;  %s20285_s20 = inlined_call_operand.vmem [shape: f32[1,5], index: 20, kind: input, shape index: {}]   ;;  %s20286_s21 = inlined_call_operand.vmem [shape: f32[2,9,32], index: 21, kind: output, shape index: {0}]   ;;  %s20287_s22 = inlined_call_operand.hbm [shape: f32[2,5], index: 22, kind: output, shape index: {1}]  }
   0x1   :  { %20460 = sst [smem:[#allocation46_spill]] %s20265_s0 }
   0x2   :  { %20461 = sst [smem:[#allocation47_spill]] %s20266_s1 }
   0x3   :  { %20462 = sst [smem:[#allocation48_spill]] %s20267_s2 }
   0x4   :  { %20463 = sst [smem:[#allocation49_spill]] %s20268_s3 }
   0x5   :  { %20464 = sst [smem:[#allocation50_spill]] %s20269_s4 }
   0x6   :  { %20465 = sst [smem:[#allocation51_spill]] %s20270_s5 }
   0x7   :  { %20466 = sst [smem:[#allocation52_spill]] %s20271_s6 }
   0x8   :  { %s20467_s29 = sld [smem:[#allocation48_spill]]  ;;  %v83_v3 = vlaneseq  ;;  %v20296_v4 = vmov 0.0|0.0   ;;  %vm16713_vm0 = vmmov 0   ;;  %v20294_v7 = vmov 0.0   ;;  %s20468_s25 = sld [smem:[#allocation46_spill]] }
   0x9   :  { %15877 = vmatprep.subr.bf16.mxu0 %v20296_v4  ;;  %14941 = vmatprep.mubr.msk.f32.mxu0 %vm16713_vm0, %v20294_v7  ;;  %v16715_v9 = vmov 1966171168  }
   0xa   :  { %v81_v10 = vunpack.c.l.s4 %v16715_v9  ;;  %v16851_v11 = vshrl.u32 %v83_v3, 7 }
   0xc   :  { %v82_v15 = vunpack.c.0.s8 %v81_v10 }
   0xe   :  { %v205_v0 = vld [vmem:[%s20467_s29] sm:$0xff]  ;;  %v206_v1 = vld [vmem:[%s20467_s29 + $0x8] sm:$0xff]  ;;  %v207_v2 = vld [vmem:[%s20467_s29 + $0x10] sm:$0xff] }
   0xf   :  { %v15878_v5 = vpack.c.bf16 %v206_v1, %v205_v0  ;;  %v208_v6 = vld [vmem:[%s20467_s29 + $0x18] sm:$0xff]  ;;  %v71_v8 = vld [vmem:[%s20468_s25] sm:$0xff]  ;;  %v73_v12 = vld [vmem:[%s20468_s25 + $0x10] sm:$0xff] }
  0x10   :  { %v15881_v13 = vpack.c.bf16 %v208_v6, %v207_v2  ;;  %v79_v14 = vcombine.high %v71_v8, %v71_v8 }
  0x11   :  { %15879 = vmatpush3.bf16.msra.mxu0 %v15878_v5 }
  0x12   :  { %15880 = vmatprep.subr.bf16.mxu0 %v20296_v4 }
  0x13   :  { %28 = vsyncpa [#allocation4], 0  ;;  %v142_v16 = vcombine.high %v73_v12, %v73_v12  ;;  %v16858_v17 = vsub.s32 %v82_v15, %v16851_v11  ;;  %v14067_v18 = vld.sshfl [vmem:[%s20468_s25 + $0x8] sm:$0x1 pattern:$0x75316420] }
  0x14   :  { %v14068_v24 = vld.sshfl [vmem:[%s20468_s25 + $0x18] sm:$0x1 pattern:$0x75316420]  ;;  %vm329_vm1 = vcmask 261120   ;;  %s20469_s0 = sld [smem:[#allocation47_spill]] }
  0x15   :  { %15882 = vmatpush3.bf16.msra.mxu0 %v15881_v13  ;;  %v86_v19 = vrot.slane %v71_v8, %v16858_v17  ;;  %v93_v20 = vrot.slane %v79_v14, %v16858_v17  ;;  %v149_v21 = vrot.slane %v73_v12, %v16858_v17  ;;  %v141_v22 = vrot.slane %v14067_v18, %v16858_v17  ;;  %s20470_s5 = sld [smem:[#allocation49_spill]]  ;;  %s20486_s2 = sld [smem:[#allocation52_spill]] }
  0x16   :  { %v156_v23 = vrot.slane %v142_v16, %v16858_v17  ;;  %v204_v35 = vrot.slane %v14068_v24, %v16858_v17  ;;  %vm804_vm2 = vcmask 253952   ;;  %s20491_s24 = sld [smem:[#allocation50_spill]]  ;;  %s20492_s26 = sld [smem:[#allocation51_spill]]  ;;  %vm2421_vm3 = vcmask 64512  }
  0x17   :  { %v94_v25 = vcombine.high %v86_v19, %v86_v19  ;;  %v95_v26 = vcombine.high %v93_v20, %v93_v20  ;;  %v102_v27 = vrot.slane %v86_v19, %v16858_v17  ;;  %v109_v28 = vrot.slane %v93_v20, %v16858_v17  ;;  %vm17511_vm4 = vmpackc.low %vm2421_vm3, %vm2421_vm3 }
  0x18   :  { %v157_v29 = vcombine.high %v149_v21, %v149_v21  ;;  %v158_v30 = vcombine.high %v156_v23, %v156_v23  ;;  %v165_v31 = vrot.slane %v149_v21, %v16858_v17  ;;  %v172_v32 = vrot.slane %v156_v23, %v16858_v17 }
  0x19   :  { %v116_v33 = vrot.slane %v94_v25, %v16858_v17  ;;  %v123_v34 = vrot.slane %v95_v26, %v16858_v17  ;;  %vm2874_vm5 = vcmask 1040384   ;;  %vm16716_vm6 = vmmov 1  }
  0x1a   :  { %v179_v36 = vrot.slane %v157_v29, %v16858_v17  ;;  %v186_v37 = vrot.slane %v158_v30, %v16858_v17  ;;  %v187_v38 = vcombine.high %v165_v31, %v165_v31  ;;  %v188_v39 = vcombine.high %v172_v32, %v172_v32  ;;  %v557_v9 = vld [vmem:[%s20469_s0] sm:$0xff]  ;;  %vm17533_vm7 = vmpackc.low %vm2874_vm5, %vm16716_vm6 }
  0x1b   :  { %v216_v40 = vcombine.low %v102_v27, %v116_v33  ;;  %v14070_v41 = vcombine.high %v102_v27, %v116_v33  ;;  %v218_v42 = vcombine.low %v109_v28, %v123_v34  ;;  %v14071_v43 = vcombine.high %v109_v28, %v123_v34  ;;  %v16909_v14 = vld [vmem:[%s20470_s5] ss:$0 sm:$0xff] }
  0x1c   :  { %v189_v44 = vcombine.high %v179_v36, %v179_v36  ;;  %v265_v45 = vcombine.low %v141_v22, %v165_v31  ;;  %v266_v46 = vcombine.low %v179_v36, %v187_v38  ;;  %v268_v47 = vcombine.low %v186_v37, %v188_v39 }
  0x1d   :  { %v226_v48 = vrot.slane %v216_v40, %v16858_v17  ;;  %v233_v49 = vrot.slane %v14070_v41, %v16858_v17  ;;  %v240_v50 = vrot.slane %v218_v42, %v16858_v17  ;;  %v247_v51 = vrot.slane %v14071_v43, %v16858_v17 }
  0x1e   :  { %v267_v52 = vcombine.low %v189_v44, %v172_v32  ;;  %v275_v53 = vrot.slane %v265_v45, %v16858_v17  ;;  %v282_v54 = vrot.slane %v266_v46, %v16858_v17  ;;  %v296_v55 = vrot.slane %v268_v47, %v16858_v17  ;;  %v14075_v32 = vld.sshfl [vmem:[%s20469_s0 + $0x8] sm:$0x1 pattern:$0x75316420] }
  0x1f   :  { %v248_v56 = vcombine.low %v226_v48, %v233_v49  ;;  %v249_v57 = vcombine.low %v240_v50, %v247_v51  ;;  %v190_v58 = vcombine.high %v186_v37, %v186_v37  ;;  %v561_v10 = vcombine.high %v557_v9, %v557_v9 }
  0x20   :  { %v289_v59 = vrot.slane %v267_v52, %v16858_v17  ;;  %v297_v60 = vcombine.low %v275_v53, %v282_v54  ;;  %v568_v12 = vrot.slane %v557_v9, %v16858_v17  ;;  %v623_v44 = vrot.slane %v14075_v32, %v16858_v17 }
  0x21   :  { %v256_v61 = vrot.slane %v248_v56, %v16858_v17  ;;  %v263_v62 = vrot.slane %v249_v57, %v16858_v17  ;;  %v314_v63 = vcombine.low %v190_v58, %v204_v35  ;;  %v575_v13 = vrot.slane %v561_v10, %v16858_v17 }
  0x22   :  { %v298_v0 = vcombine.low %v289_v59, %v296_v55  ;;  %v305_v1 = vrot.slane %v297_v60, %v16858_v17  ;;  %v576_v15 = vcombine.high %v568_v12, %v568_v12  ;;  %v16913_v21 = vrot.slane %v568_v12, %v16858_v17 }
  0x23   :  { %v264_v2 = vcombine.low %v256_v61, %v263_v62  ;;  %v321_v5 = vrot.slane %v314_v63, %v16858_v17  ;;  %v577_v18 = vcombine.high %v575_v13, %v575_v13  ;;  %v16916_v22 = vrot.slane %v575_v13, %v16858_v17 }
  0x24   :  { %v312_v3 = vrot.slane %v298_v0, %v16858_v17  ;;  %v16919_v23 = vrot.slane %v576_v15, %v16858_v17  ;;  %v606_v34 = vcombine.high %v16913_v21, %v16913_v21  ;;  %vm2782_vm8 = vcmask 65536  }
  0x25   :  { %14942 = vmatmul.mubr.msk.f32.vlgmr.msra.gmra.mrb[0].mxu0 %vm329_vm1, %v264_v2  ;;  %v328_v8 = vrot.slane %v321_v5, %v16858_v17  ;;  %v16923_v26 = vrot.slane %v577_v18, %v16858_v17  ;;  %v607_v35 = vcombine.high %v16916_v22, %v16916_v22  ;;  %vm2778_vm9 = vcmask 72704  }
  0x26   :  { %14944 = vmatprep.mubr.msk.f32.mxu0 %vm16713_vm0, %v20294_v7  ;;  %v313_v6 = vcombine.low %v305_v1, %v312_v3  ;;  %v608_v36 = vcombine.high %v16919_v23, %v16919_v23  ;;  %vm6903_vm10 = vcmask 523264   ;;  %vm13828_vm11 = vcmask 254976  }
  0x27   :  { %v609_v41 = vcombine.high %v16923_v26, %v16923_v26  ;;  %vm14047_vm12 = vcmask 33792  }
  0x29   :  { %14945 = vmatmul.mubr.msk.f32.gmra.mrb[2].mxu0 %vm329_vm1, %v313_v6 }
  0x2a   :  { %14947 = vmatprep.mubr.msk.f32.mxu0 %vm16713_vm0, %v20294_v7 }
  0x2d   :  { %14948 = vmatmul.mubr.msk.f32.gmra.mrb[4].mxu0 %vm329_vm1, %v328_v8 }
  0xf8   :  { %v402_v16 = vpop.f32.mrb[0].mxu0 }
  0xf9   :  { %v403_v19 = vadd.f32 %v16909_v14, %v402_v16  ;;  %v14943_v20 = vpop.f32.mrb[1].mxu0 }
  0xfb   :  { %v419_v24 = vcombine.high %v403_v19, %v403_v19  ;;  %v426_v25 = vrot.slane %v403_v19, %v16858_v17 }
  0xfc   :  { %v407_v27 = vpop.f32.mrb[2].mxu0 }
  0xfd   :  { %v433_v28 = vrot.slane %v419_v24, %v16858_v17  ;;  %v434_v29 = vcombine.high %v426_v25, %v426_v25  ;;  %v442_v30 = vrot.slane %v426_v25, %v16858_v17  ;;  %v408_v31 = vadd.f32 %v16909_v14, %v407_v27  ;;  %v14946_v33 = vpop.f32.mrb[3].mxu0 }
  0xff   :  { %v435_v37 = vcombine.high %v433_v28, %v433_v28  ;;  %v449_v38 = vrot.slane %v433_v28, %v16858_v17  ;;  %v456_v39 = vrot.slane %v434_v29, %v16858_v17  ;;  %v464_v40 = vcombine.high %v442_v30, %v442_v30 }
 0x100   :  { %v468_v42 = vcombine.high %v408_v31, %v408_v31  ;;  %v475_v43 = vrot.slane %v408_v31, %v16858_v17  ;;  %v412_v45 = vpop.f32.mrb[4].mxu0  ;;  %v16948_v51 = vadd.f32 %v16913_v21, %v442_v30 }
 0x101   :  { %v463_v46 = vrot.slane %v435_v37, %v16858_v17  ;;  %v465_v47 = vcombine.high %v449_v38, %v449_v38  ;;  %v466_v48 = vcombine.high %v456_v39, %v456_v39  ;;  %v16945_v49 = vadd.f32 %v16919_v23, %v456_v39  ;;  %v14949_v50 = vpop.f32.mrb[5].mxu0 }
 0x102   :  { %20472 = vst [vmem:[#allocation7_spill] sm:$0xff] %v16948_v51  ;;  %v16950_v52 = vadd.f32 %v606_v34, %v464_v40  ;;  %v482_v53 = vrot.slane %v468_v42, %v16858_v17  ;;  %v483_v54 = vcombine.high %v475_v43, %v475_v43  ;;  %v16956_v57 = vadd.f32 %v16916_v22, %v449_v38 }
 0x103   :  { %20471 = vst [vmem:[#allocation6_spill] sm:$0xff] %v16945_v49  ;;  %v467_v55 = vcombine.high %v463_v46, %v463_v46  ;;  %v16953_v56 = vadd.f32 %v608_v36, %v466_v48  ;;  %v16959_v58 = vadd.f32 %v16923_v26, %v463_v46  ;;  %v16961_v59 = vadd.f32 %v607_v35, %v465_v47 }
 0x104   :  { %20473 = vst [vmem:[#allocation8_spill] sm:$0xff] %v16950_v52  ;;  %20475 = vst [vmem:[#allocation10_spill] sm:$0xff] %v16956_v57  ;;  %v484_v60 = vcombine.high %v482_v53, %v482_v53  ;;  %v16964_v61 = vrot.slane %v475_v43, %v16858_v17  ;;  %v16967_v62 = vrot.slane %v483_v54, %v16858_v17  ;;  %v17019_v40 = vsub.s32 0, %v16851_v11 }
 0x105   :  { %20474 = vst [vmem:[#allocation9_spill] sm:$0xff] %v16953_v56  ;;  %20476 = vst [vmem:[#allocation11_spill] sm:$0xff] %v16959_v58  ;;  %v16969_v63 = vadd.f32 %v609_v41, %v467_v55  ;;  %v16972_v0 = vrot.slane %v482_v53, %v16858_v17  ;;  %v671_v1 = vcombine.low %v16948_v51, %v16945_v49  ;;  %v17022_v42 = vsub.s32 1, %v16851_v11 }
 0x106   :  { %20477 = vst [vmem:[#allocation12_spill] sm:$0xff] %v16961_v59  ;;  %v672_v2 = vcombine.low %v16950_v52, %v16953_v56  ;;  %v16979_v3 = vrot.slane %v484_v60, %v16858_v17  ;;  %v515_v5 = vcombine.high %v16967_v62, %v16967_v62  ;;  %v673_v6 = vcombine.low %v16956_v57, %v16959_v58 }
 0x107   :  { %20478 = vst [vmem:[#allocation13_spill] sm:$0xff] %v16969_v63  ;;  %v16986_v8 = vadd.f32 %v608_v36, %v16972_v0  ;;  %v674_v9 = vcombine.low %v16961_v59, %v16969_v63  ;;  %v16993_v12 = vadd.f32 %v623_v44, %v16964_v61  ;;  %v681_v15 = vrot.slane %v671_v1, %v16858_v17 }
 0x108   :  { %v516_v10 = vcombine.high %v16979_v3, %v16979_v3  ;;  %v16995_v13 = vadd.f32 %v606_v34, %v515_v5  ;;  %v688_v16 = vrot.slane %v672_v2, %v16858_v17  ;;  %v695_v19 = vrot.slane %v673_v6, %v16858_v17 }
 0x109   :  { %20479 = vst [vmem:[#allocation14_spill] sm:$0xff] %v16986_v8  ;;  %20480 = vst [vmem:[#allocation15_spill] sm:$0xff] %v16993_v12  ;;  %v702_v20 = vrot.slane %v674_v9, %v16858_v17  ;;  %v413_v24 = vadd.f32 %v16909_v14, %v412_v45  ;;  %v726_v29 = vrot.slane %v16993_v12, %v16858_v17  ;;  %v17028_v43 = vsub.s32 3, %v16851_v11 }
 0x10a   :  { %v16999_v18 = vadd.f32 %v607_v35, %v516_v10  ;;  %v703_v25 = vcombine.low %v681_v15, %v688_v16  ;;  %v17034_v46 = vsub.s32 5, %v16851_v11  ;;  %v17037_v47 = vsub.s32 6, %v16851_v11 }
 0x10b   :  { %v704_v27 = vcombine.low %v695_v19, %v702_v20  ;;  %v523_v28 = vrot.slane %v413_v24, %v16858_v17  ;;  %v733_v14 = vrot.slane %v726_v29, %v16858_v17  ;;  %v17040_v48 = vsub.s32 7, %v16851_v11 }
 0x10c   :  { %20481 = vst [vmem:[#allocation16_spill] sm:$0xff] %v16999_v18  ;;  %v711_v30 = vrot.slane %v703_v25, %v16858_v17  ;;  %20484 = vst [vmem:[#allocation19_spill] sm:$0xff] %v17034_v46 }
 0x10d   :  { %v718_v31 = vrot.slane %v704_v27, %v16858_v17  ;;  %v524_v32 = vcombine.high %v523_v28, %v523_v28  ;;  %v531_v33 = vrot.slane %v523_v28, %v16858_v17  ;;  %v805_v39 = vsel %vm804_vm2, %v733_v14, 0.0  ;;  %20485 = vst [vmem:[#allocation20_spill] sm:$0xff] %v17037_v47 }
 0x10f   :  { %v719_v34 = vcombine.low %v711_v30, %v718_v31  ;;  %v538_v35 = vrot.slane %v524_v32, %v16858_v17  ;;  %v17011_v36 = vadd.f32 %v609_v41, %v531_v33  ;;  %v17025_v41 = vsub.s32 2, %v16851_v11 }
 0x111   :  { %20482 = vst [vmem:[#allocation17_spill] sm:$0xff] %v17011_v36  ;;  %v801_v37 = vsel %vm329_vm1, %v719_v34, 0.0  ;;  %v17015_v38 = vadd.f32 %v623_v44, %v538_v35  ;;  %v17031_v44 = vsub.s32 4, %v16851_v11 }
 0x112   :  { %802 = vadd.xlane.f32.xlu0 %v801_v37 }
 0x113   :  { %20483 = vst [vmem:[#allocation18_spill] sm:$0xff] %v17031_v44 }
 0x116   :  { %806 = vadd.xlane.f32.xlu0 %v805_v39 }
 0x19f   :  { %v803_v45 = vpop.xlane.xlu0 %802 }
 0x1a0   :  { %v815_v50 = vmul.f32 0.03125, %v803_v45 }
 0x1a2   :  { %v826_v53 = vrot.slane %v815_v50, %v17019_v40  ;;  %v830_v54 = vrot.slane %v815_v50, %v17022_v42  ;;  %v834_v55 = vrot.slane %v815_v50, %v17025_v41  ;;  %v838_v60 = vrot.slane %v815_v50, %v17028_v43 }
 0x1a3   :  { %v807_v1 = vpop.xlane.xlu0 %806  ;;  %v842_v2 = vrot.slane %v815_v50, %v17031_v44  ;;  %v846_v5 = vrot.slane %v815_v50, %v17034_v46  ;;  %v850_v6 = vrot.slane %v815_v50, %v17037_v47  ;;  %v854_v9 = vrot.slane %v815_v50, %v17040_v48 }
 0x1a4   :  { %v816_v11 = vmul.f32 0.03125, %v807_v1  ;;  %v17051_v10 = vsub.f32 %v16948_v51, %v826_v53  ;;  %v17054_v15 = vsub.f32 %v16945_v49, %v830_v54  ;;  %v17057_v16 = vsub.f32 %v16950_v52, %v834_v55 }
 0x1a5   :  { %v17060_v19 = vsub.f32 %v16953_v56, %v838_v60  ;;  %v17063_v20 = vsub.f32 %v16956_v57, %v842_v2  ;;  %v17066_v24 = vsub.f32 %v16959_v58, %v846_v5  ;;  %v17069_v25 = vsub.f32 %v16961_v59, %v850_v6 }
 0x1a6   :  { %v858_v27 = vrot.slane %v816_v11, %v17019_v40  ;;  %v17073_v28 = vsub.f32 %v16969_v63, %v854_v9  ;;  %v931_v29 = vmul.f32 %v17051_v10, %v17051_v10  ;;  %v932_v30 = vmul.f32 %v17054_v15, %v17054_v15 }
 0x1a7   :  { %v933_v31 = vmul.f32 %v17057_v16, %v17057_v16  ;;  %v934_v32 = vmul.f32 %v17060_v19, %v17060_v19  ;;  %v935_v33 = vmul.f32 %v17063_v20, %v17063_v20  ;;  %v936_v34 = vmul.f32 %v17066_v24, %v17066_v24 }
 0x1a8   :  { %v17088_v35 = vsub.f32 %v16993_v12, %v858_v27  ;;  %v937_v14 = vmul.f32 %v17069_v25, %v17069_v25  ;;  %v938_v37 = vmul.f32 %v17073_v28, %v17073_v28  ;;  %v967_v39 = vcombine.low %v931_v29, %v932_v30 }
 0x1a9   :  { %v968_v45 = vcombine.low %v933_v31, %v934_v32  ;;  %v969_v50 = vcombine.low %v935_v33, %v936_v34  ;;  %v1393_v33 = vld [vmem:[%s20486_s2] sm:$0xff]  ;;  %v1394_v34 = vld [vmem:[%s20486_s2 + $0x8] sm:$0xff] }
 0x1aa   :  { %v970_v53 = vcombine.low %v937_v14, %v938_v37  ;;  %v977_v54 = vrot.slane %v967_v39, %v16858_v17  ;;  %v939_v2 = vmul.f32 %v17088_v35, %v17088_v35  ;;  %v1401_v14 = vld [vmem:[%s20486_s2 + $0x40] sm:$0xff]  ;;  %v17115_v37 = vpack.c.bf16 %v1394_v34, %v1393_v33  ;;  %v1402_v39 = vld [vmem:[%s20486_s2 + $0x48] sm:$0xff] }
 0x1ab   :  { %v984_v55 = vrot.slane %v968_v45, %v16858_v17  ;;  %v991_v60 = vrot.slane %v969_v50, %v16858_v17  ;;  %v17120_v45 = vpack.c.bf16 %v1402_v39, %v1401_v14  ;;  %v1395_v50 = vld [vmem:[%s20486_s2 + $0x10] sm:$0xff] }
 0x1ac   :  { %v998_v1 = vrot.slane %v970_v53, %v16858_v17  ;;  %v1022_v27 = vrot.slane %v939_v2, %v16858_v17  ;;  %20487 = vst [vmem:[#allocation21_spill] sm:$0xff] %v17115_v37  ;;  %15884 = vmatprep.subr.bf16.mxu1 %v17115_v37  ;;  %v1396_v53 = vld [vmem:[%s20486_s2 + $0x18] sm:$0xff]  ;;  %v1397_v2 = vld [vmem:[%s20486_s2 + $0x20] sm:$0xff] }
 0x1ad   :  { %v999_v5 = vcombine.low %v977_v54, %v984_v55  ;;  %20488 = vst [vmem:[#allocation22_spill] sm:$0xff] %v17120_v45  ;;  %15900 = vmatprep.subr.bf16.mxu0 %v17120_v45  ;;  %15886 = vmatpush3.bf16.msra.mxu1 %v17115_v37  ;;  %v1403_v54 = vld [vmem:[%s20486_s2 + $0x50] sm:$0xff]  ;;  %v17135_v55 = vpack.c.bf16 %v1396_v53, %v1395_v50 }
 0x1ae   :  { %v1000_v6 = vcombine.low %v991_v60, %v998_v1  ;;  %v1029_v31 = vrot.slane %v1022_v27, %v16858_v17  ;;  %15902 = vmatpush3.bf16.msra.mxu0 %v17120_v45  ;;  %v1404_v60 = vld [vmem:[%s20486_s2 + $0x58] sm:$0xff] }
 0x1af   :  { %v1007_v9 = vrot.slane %v999_v5, %v16858_v17  ;;  %20489 = vst [vmem:[#allocation23_spill] sm:$0xff] %v17135_v55  ;;  %v17140_v1 = vpack.c.bf16 %v1404_v60, %v1403_v54  ;;  %15888 = vmatprep.subr.bf16.mxu1 %v17135_v55  ;;  %v1398_v5 = vld [vmem:[%s20486_s2 + $0x28] sm:$0xff] }
 0x1b0   :  { %v1014_v11 = vrot.slane %v1000_v6, %v16858_v17  ;;  %v1100_v32 = vsel %vm804_vm2, %v1029_v31, 0.0  ;;  %v1409_v6 = vld [vmem:[%s20272_s7] sm:$0xff] }
 0x1b1   :  { %20490 = vst [vmem:[#allocation24_spill] sm:$0xff] %v17140_v1  ;;  %15904 = vmatprep.subr.bf16.mxu0 %v17140_v1  ;;  %15890 = vmatpush3.bf16.msra.mxu1 %v17135_v55 }
 0x1b2   :  { %v1015_v29 = vcombine.low %v1007_v9, %v1014_v11  ;;  %15906 = vmatpush3.bf16.msra.mxu0 %v17140_v1  ;;  %v17155_v9 = vpack.c.bf16 %v1398_v5, %v1397_v2  ;;  %v1410_v11 = vld [vmem:[%s20272_s7 + $0x8] sm:$0xff] }
 0x1b3   :  { %v17160_v27 = vpack.c.bf16 %v1410_v11, %v1409_v6 }
 0x1b4   :  { %v1097_v30 = vsel %vm329_vm1, %v1015_v29, 0.0  ;;  %15892 = vmatprep.subr.bf16.mxu1 %v17155_v9  ;;  %v14076_v29 = vld [vmem:[%s20491_s24] ss:$0 sm:$0xff] }
 0x1b5   :  { %1098 = vadd.xlane.f32.xlu1 %v1097_v30  ;;  %15916 = vmatprep.subr.bf16.mxu0 %v17160_v27  ;;  %v14077_v30 = vld [vmem:[%s20492_s26] ss:$0 sm:$0xff]  ;;  %v1238_v31 = vcombine.high %v14076_v29, %v14076_v29  ;;  %v1245_v14 = vrot.slane %v14076_v29, %v16858_v17 }
 0x1b6   :  { %v1325_v53 = vrot.slane %v14077_v30, %v16858_v17 }
 0x1b7   :  { %v1252_v39 = vrot.slane %v1238_v31, %v16858_v17  ;;  %v1253_v5 = vcombine.high %v1245_v14, %v1245_v14  ;;  %v17175_v12 = vrot.slane %v1245_v14, %v16858_v17 }
 0x1b8   :  { %v1333_v11 = vcombine.high %v1325_v53, %v1325_v53 }
 0x1b9   :  { %1101 = vadd.xlane.f32.xlu1 %v1100_v32  ;;  %v1318_v32 = vcombine.high %v14077_v30, %v14077_v30  ;;  %v1254_v6 = vcombine.high %v1252_v39, %v1252_v39  ;;  %v17178_v29 = vrot.slane %v1252_v39, %v16858_v17  ;;  %v17181_v31 = vrot.slane %v1253_v5, %v16858_v17 }
 0x1ba   :  { %v17200_v39 = vcombine.high %v17175_v12, %v17175_v12 }
 0x1bb   :  { %v1332_v54 = vrot.slane %v1318_v32, %v16858_v17  ;;  %v17184_v30 = vrot.slane %v1254_v6, %v16858_v17  ;;  %v17187_v32 = vrot.slane %v1325_v53, %v16858_v17  ;;  %v17208_v53 = vcombine.high %v17181_v31, %v17181_v31 }
 0x1bd   :  { %v1334_v7 = vcombine.high %v1332_v54, %v1332_v54 }
 0x1bf   :  { %v17196_v14 = vrot.slane %v1334_v7, %v16858_v17 }
 0x1c1   :  { %v17228_v5 = vcombine.high %v17196_v14, %v17196_v14 }
 0x242   :  { %v1099_v33 = vpop.xlane.xlu1 %1098 }
 0x243   :  { %v1109_v34 = vmul.f32 0.03125, %v1099_v33  ;;  %v17190_v33 = vrot.slane %v1332_v54, %v16858_v17  ;;  %v17212_v54 = vcombine.high %v17184_v30, %v17184_v30 }
 0x245   :  { %v1113_v50 = vadd.f32 1e-05, %v1109_v34  ;;  %v17193_v34 = vrot.slane %v1333_v11, %v16858_v17  ;;  %v17220_v7 = vcombine.high %v17190_v33, %v17190_v33 }
 0x246   :  { %v1102_v60 = vpop.xlane.xlu1 %1101 }
 0x247   :  { %16514 = vrsqrt.f32 %v1113_v50  ;;  %v1110_v2 = vmul.f32 0.03125, %v1102_v60  ;;  %v17204_v50 = vcombine.high %v17178_v29, %v17178_v29 }
 0x249   :  { %v1114_v4 = vadd.f32 1e-05, %v1110_v2  ;;  %v17224_v2 = vcombine.high %v17193_v34, %v17193_v34 }
 0x24b   :  { %16516 = vrsqrt.f32 %v1114_v4  ;;  %v17216_v4 = vcombine.high %v17187_v32, %v17187_v32 }
 0x251   :  { %v16515_v60 = vpop.eup %16514 }
 0x252   :  { %v1128_v6 = vrot.slane %v16515_v60, %v17019_v40  ;;  %v1132_v11 = vrot.slane %v16515_v60, %v17022_v42  ;;  %v1136_v51 = vrot.slane %v16515_v60, %v17025_v41  ;;  %v1140_v57 = vrot.slane %v16515_v60, %v17028_v43 }
 0x253   :  { %v1144_v52 = vrot.slane %v16515_v60, %v17031_v44  ;;  %v1148_v49 = vrot.slane %v16515_v60, %v17034_v46  ;;  %v1152_v59 = vrot.slane %v16515_v60, %v17037_v47  ;;  %v1156_v58 = vrot.slane %v16515_v60, %v17040_v48 }
 0x254   :  { %v1215_v56 = vmul.f32 %v1128_v6, %v17051_v10  ;;  %v1216_v63 = vmul.f32 %v1132_v11, %v17054_v15  ;;  %v1217_v1 = vmul.f32 %v1136_v51, %v17057_v16  ;;  %v1218_v45 = vmul.f32 %v1140_v57, %v17060_v19 }
 0x255   :  { %v1219_v55 = vmul.f32 %v1144_v52, %v17063_v20  ;;  %v1220_v37 = vmul.f32 %v1148_v49, %v17066_v24  ;;  %v1221_v44 = vmul.f32 %v1152_v59, %v17069_v25  ;;  %v1222_v46 = vmul.f32 %v1156_v58, %v17073_v28  ;;  %v16517_v6 = vpop.eup %16516 }
 0x256   :  { %v1295_v47 = vmul.f32 %v17175_v12, %v1215_v56  ;;  %v1296_v60 = vmul.f32 %v17181_v31, %v1216_v63  ;;  %v1297_v10 = vmul.f32 %v17200_v39, %v1217_v1  ;;  %v1298_v15 = vmul.f32 %v17208_v53, %v1218_v45 }
 0x257   :  { %v1299_v51 = vmul.f32 %v17178_v29, %v1219_v55  ;;  %v1300_v57 = vmul.f32 %v17184_v30, %v1220_v37  ;;  %v1301_v52 = vmul.f32 %v17204_v50, %v1221_v44  ;;  %v1302_v49 = vmul.f32 %v17212_v54, %v1222_v46 }
 0x258   :  { %v1375_v59 = vadd.f32 %v17187_v32, %v1295_v47  ;;  %v1376_v58 = vadd.f32 %v17193_v34, %v1296_v60  ;;  %v1377_v56 = vadd.f32 %v17216_v4, %v1297_v10  ;;  %v1378_v63 = vadd.f32 %v17224_v2, %v1298_v15 }
 0x259   :  { %v1379_v16 = vadd.f32 %v17190_v33, %v1299_v51  ;;  %v1380_v19 = vadd.f32 %v17196_v14, %v1300_v57  ;;  %v1381_v20 = vadd.f32 %v17220_v7, %v1301_v52  ;;  %v1382_v24 = vadd.f32 %v17228_v5, %v1302_v49  ;;  %v1399_v52 = vld [vmem:[%s20486_s2 + $0x30] sm:$0xff]  ;;  %v1400_v49 = vld [vmem:[%s20486_s2 + $0x38] sm:$0xff] }
 0x25a   :  { %v1454_v25 = vcombine.low %v1375_v59, %v1376_v58  ;;  %v1455_v44 = vcombine.low %v1377_v56, %v1378_v63  ;;  %v1160_v46 = vrot.slane %v16517_v6, %v17019_v40  ;;  %v1411_v59 = vld [vmem:[%s20272_s7 + $0x10] sm:$0xff]  ;;  %v1412_v58 = vld [vmem:[%s20272_s7 + $0x18] sm:$0xff] }
 0x25b   :  { %v1456_v28 = vcombine.low %v1379_v16, %v1380_v19  ;;  %v1457_v47 = vcombine.low %v1381_v20, %v1382_v24  ;;  %v1405_v16 = vld [vmem:[%s20486_s2 + $0x60] sm:$0xff]  ;;  %v17297_v19 = vpack.c.bf16 %v1400_v49, %v1399_v52  ;;  %v17299_v20 = vpack.c.bf16 %v1412_v58, %v1411_v59  ;;  %v1406_v24 = vld [vmem:[%s20486_s2 + $0x68] sm:$0xff]  ;;  %v1415_v52 = vld [vmem:[%s20272_s7 + $0x30] sm:$0xff] }
 0x25c   :  { %v1464_v37 = vrot.slane %v1454_v25, %v16858_v17  ;;  %v1471_v45 = vrot.slane %v1455_v44, %v16858_v17  ;;  %v1223_v55 = vmul.f32 %v1160_v46, %v17088_v35  ;;  %v1417_v25 = vld [vmem:[%s20272_s7 + $0x40] sm:$0xff]  ;;  %v1418_v44 = vld [vmem:[%s20272_s7 + $0x48] sm:$0xff]  ;;  %v17320_v46 = vpack.c.bf16 %v1406_v24, %v1405_v16  ;;  %v1427_v49 = vld [vmem:[%s20273_s8 + $0x10] sm:$0xff] }
 0x25d   :  { %v1478_v1 = vrot.slane %v1456_v28, %v16858_v17  ;;  %v1485_v11 = vrot.slane %v1457_v47, %v16858_v17  ;;  %20493 = vst [vmem:[#allocation25_spill] sm:$0xff] %v17299_v20  ;;  %v17322_v28 = vpack.c.bf16 %v1418_v44, %v1417_v25  ;;  %v1407_v47 = vld [vmem:[%s20486_s2 + $0x70] sm:$0xff]  ;;  %v1428_v59 = vld [vmem:[%s20273_s8 + $0x18] sm:$0xff]  ;;  %v1421_v16 = vld [vmem:[%s20272_s7 + $0x60] sm:$0xff] }
 0x25e   :  { %v1486_v60 = vcombine.low %v1464_v37, %v1471_v45  ;;  %v1303_v10 = vmul.f32 %v17175_v12, %v1223_v55  ;;  %20494 = vst [vmem:[#allocation26_spill] sm:$0xff] %v17320_v46  ;;  %v1408_v37 = vld [vmem:[%s20486_s2 + $0x78] sm:$0xff]  ;;  %v1419_v45 = vld [vmem:[%s20272_s7 + $0x50] sm:$0xff]  ;;  %v1422_v24 = vld [vmem:[%s20272_s7 + $0x68] sm:$0xff]  ;;  %v17400_v25 = vpack.c.bf16 %v1428_v59, %v1427_v49 }
 0x25f   :  { %v1487_v15 = vcombine.low %v1478_v1, %v1485_v11  ;;  %20495 = vst [vmem:[#allocation27_spill] sm:$0xff] %v17322_v28  ;;  %v1420_v55 = vld [vmem:[%s20272_s7 + $0x58] sm:$0xff]  ;;  %v17342_v1 = vpack.c.bf16 %v1408_v37, %v1407_v47  ;;  %v1433_v44 = vld [vmem:[%s20273_s8 + $0x40] sm:$0xff]  ;;  %v1434_v47 = vld [vmem:[%s20273_s8 + $0x48] sm:$0xff]  ;;  %v17414_v37 = vpack.c.bf16 %v1422_v24, %v1421_v16 }
 0x260   :  { %v1494_v51 = vrot.slane %v1486_v60, %v16858_v17  ;;  %v1383_v6 = vadd.f32 %v17187_v32, %v1303_v10  ;;  %v17344_v11 = vpack.c.bf16 %v1420_v55, %v1419_v45  ;;  %v1413_v60 = vld [vmem:[%s20272_s7 + $0x20] sm:$0xff]  ;;  %v1414_v10 = vld [vmem:[%s20272_s7 + $0x28] sm:$0xff]  ;;  %20501 = vst [vmem:[#allocation33_spill] sm:$0xff] %v17400_v25  ;;  %v17419_v45 = vpack.c.bf16 %v1434_v47, %v1433_v44  ;;  %v1423_v55 = vld [vmem:[%s20272_s7 + $0x70] sm:$0xff] }
 0x261   :  { %v1501_v57 = vrot.slane %v1487_v15, %v16858_v17  ;;  %20496 = vst [vmem:[#allocation28_spill] sm:$0xff] %v17342_v1  ;;  %v1425_v15 = vld [vmem:[%s20273_s8] sm:$0xff]  ;;  %20502 = vst [vmem:[#allocation34_spill] sm:$0xff] %v17414_v37  ;;  %v1431_v16 = vld [vmem:[%s20273_s8 + $0x30] sm:$0xff] }
 0x262   :  { %v1509_v35 = vrot.slane %v1383_v6, %v16858_v17  ;;  %20497 = vst [vmem:[#allocation29_spill] sm:$0xff] %v17344_v11  ;;  %v17368_v6 = vpack.c.bf16 %v1414_v10, %v1413_v60  ;;  %20503 = vst [vmem:[#allocation35_spill] sm:$0xff] %v17419_v45  ;;  %v1424_v60 = vld [vmem:[%s20272_s7 + $0x78] sm:$0xff]  ;;  %v1435_v10 = vld [vmem:[%s20273_s8 + $0x50] sm:$0xff] }
 0x263   :  { %v17285_v56 = vcombine.low %v1494_v51, %v1501_v57  ;;  %v1426_v51 = vld [vmem:[%s20273_s8 + $0x8] sm:$0xff]  ;;  %v1432_v24 = vld [vmem:[%s20273_s8 + $0x38] sm:$0xff]  ;;  %v1437_v47 = vld [vmem:[%s20273_s8 + $0x60] sm:$0xff] }
 0x264   :  { %v17288_v63 = vrot.slane %v1509_v35, %v16858_v17  ;;  %20498 = vst [vmem:[#allocation30_spill] sm:$0xff] %v17368_v6  ;;  %v17372_v57 = vpack.c.bf16 %v1426_v51, %v1425_v15  ;;  %v1416_v35 = vld [vmem:[%s20272_s7 + $0x38] sm:$0xff]  ;;  %v17438_v51 = vpack.c.bf16 %v1424_v60, %v1423_v55  ;;  %v17471_v44 = vpack.c.bf16 %v1432_v24, %v1431_v16  ;;  %v1438_v55 = vld [vmem:[%s20273_s8 + $0x68] sm:$0xff] }
 0x265   :  { %14958 = vmatprep.mubr.msk.f32.mxu1 %vm329_vm1, %v17285_v56  ;;  %14980 = vmatprep.mubr.msk.f32.mxu0 %vm329_vm1, %v17285_v56  ;;  %v17390_v58 = vpack.c.bf16 %v1416_v35, %v1415_v52  ;;  %v1436_v15 = vld [vmem:[%s20273_s8 + $0x58] sm:$0xff]  ;;  %v1429_v52 = vld [vmem:[%s20273_s8 + $0x20] sm:$0xff]  ;;  %v1430_v35 = vld [vmem:[%s20273_s8 + $0x28] sm:$0xff]  ;;  %v17487_v60 = vpack.c.bf16 %v1438_v55, %v1437_v47 }
 0x266   :  { %14959 = vmatmul.mubr.msk.f32.vlgmr.msra.gmra.mrb[0].mxu1 %vm329_vm1, %v17288_v63  ;;  %14981 = vmatmul.mubr.msk.f32.vlgmr.msra.gmra.mrb[6].mxu0 %vm329_vm1, %v17288_v63  ;;  %20499 = vst [vmem:[#allocation31_spill] sm:$0xff] %v17372_v57  ;;  %20504 = vst [vmem:[#allocation36_spill] sm:$0xff] %v17438_v51  ;;  %v17448_v49 = vpack.c.bf16 %v1436_v15, %v1435_v10  ;;  %v17456_v59 = vpack.c.bf16 %v1430_v35, %v1429_v52  ;;  %v1439_v10 = vld [vmem:[%s20273_s8 + $0x70] sm:$0xff]  ;;  %v1440_v15 = vld [vmem:[%s20273_s8 + $0x78] sm:$0xff] }
 0x267   :  { %15894 = vmatpush3.bf16.msra.mxu1 %v17155_v9  ;;  %15918 = vmatpush3.bf16.msra.mxu0 %v17160_v27  ;;  %20500 = vst [vmem:[#allocation32_spill] sm:$0xff] %v17390_v58  ;;  %20507 = vst [vmem:[#allocation39_spill] sm:$0xff] %v17471_v44  ;;  %v17497_v52 = vpack.c.bf16 %v1440_v15, %v1439_v10 }
 0x268   :  { %14969 = vmatprep.mubr.msk.f32.mxu1 %vm329_vm1, %v17285_v56  ;;  %15002 = vmatprep.mubr.msk.f32.mxu0 %vm329_vm1, %v17285_v56  ;;  %20505 = vst [vmem:[#allocation37_spill] sm:$0xff] %v17448_v49  ;;  %20506 = vst [vmem:[#allocation38_spill] sm:$0xff] %v17456_v59 }
 0x269   :  { %15896 = vmatprep.subr.bf16.mxu1 %v17297_v19  ;;  %15920 = vmatprep.subr.bf16.mxu0 %v17299_v20  ;;  %20508 = vst [vmem:[#allocation40_spill] sm:$0xff] %v17487_v60  ;;  %20509 = vst [vmem:[#allocation41_spill] sm:$0xff] %v17497_v52 }
 0x26b   :  { %15898 = vmatpush3.bf16.msra.mxu1 %v17297_v19  ;;  %15922 = vmatpush3.bf16.msra.mxu0 %v17299_v20 }
 0x26c   :  { %15908 = vmatprep.subr.bf16.mxu1 %v17320_v46  ;;  %15932 = vmatprep.subr.bf16.mxu0 %v17322_v28 }
 0x26e   :  { %14970 = vmatmul.mubr.msk.f32.vlgmr.msra.gmra.mrb[2].mxu1 %vm329_vm1, %v17288_v63  ;;  %15003 = vmatmul.mubr.msk.f32.vlgmr.msra.gmra.mrb[8].mxu0 %vm329_vm1, %v17288_v63 }
 0x26f   :  { %15910 = vmatpush3.bf16.msra.mxu1 %v17320_v46  ;;  %14991 = vmatprep.mubr.msk.f32.mxu1 %vm329_vm1, %v17285_v56 }
 0x270   :  { %15934 = vmatpush3.bf16.msra.mxu0 %v17322_v28  ;;  %15024 = vmatprep.mubr.msk.f32.mxu0 %vm329_vm1, %v17285_v56 }
 0x271   :  { %15912 = vmatprep.subr.bf16.mxu1 %v17342_v1  ;;  %15936 = vmatprep.subr.bf16.mxu0 %v17344_v11 }
 0x273   :  { %15914 = vmatpush3.bf16.msra.mxu1 %v17342_v1 }
 0x274   :  { %15938 = vmatpush3.bf16.msra.mxu0 %v17344_v11  ;;  %15924 = vmatprep.subr.bf16.mxu1 %v17368_v6 }
 0x275   :  { %15948 = vmatprep.subr.bf16.mxu0 %v17372_v57 }
 0x276   :  { %14992 = vmatmul.mubr.msk.f32.vlgmr.msra.gmra.mrb[4].mxu1 %vm329_vm1, %v17288_v63 }
 0x277   :  { %15025 = vmatmul.mubr.msk.f32.vlgmr.msra.gmra.mrb[10].mxu0 %vm329_vm1, %v17288_v63  ;;  %15926 = vmatpush3.bf16.msra.mxu1 %v17368_v6 }
 0x278   :  { %15013 = vmatprep.mubr.msk.f32.mxu1 %vm329_vm1, %v17285_v56  ;;  %15950 = vmatpush3.bf16.msra.mxu0 %v17372_v57 }
 0x279   :  { %15046 = vmatprep.mubr.msk.f32.mxu0 %vm329_vm1, %v17285_v56  ;;  %15928 = vmatprep.subr.bf16.mxu1 %v17390_v58 }
 0x27a   :  { %15952 = vmatprep.subr.bf16.mxu0 %v17400_v25 }
 0x27b   :  { %15930 = vmatpush3.bf16.msra.mxu1 %v17390_v58 }
 0x27c   :  { %15954 = vmatpush3.bf16.msra.mxu0 %v17400_v25  ;;  %15940 = vmatprep.subr.bf16.mxu1 %v17414_v37 }
 0x27d   :  { %15964 = vmatprep.subr.bf16.mxu0 %v17419_v45 }
 0x27e   :  { %15014 = vmatmul.mubr.msk.f32.vlgmr.msra.gmra.mrb[6].mxu1 %vm329_vm1, %v17288_v63 }
 0x27f   :  { %15047 = vmatmul.mubr.msk.f32.vlgmr.msra.gmra.mrb[12].mxu0 %vm329_vm1, %v17288_v63  ;;  %15942 = vmatpush3.bf16.msra.mxu1 %v17414_v37 }
 0x280   :  { %15035 = vmatprep.mubr.msk.f32.mxu1 %vm329_vm1, %v17285_v56  ;;  %15966 = vmatpush3.bf16.msra.mxu0 %v17419_v45 }
 0x281   :  { %15068 = vmatprep.mubr.msk.f32.mxu0 %vm329_vm1, %v17285_v56  ;;  %15944 = vmatprep.subr.bf16.mxu1 %v17438_v51 }
 0x282   :  { %15968 = vmatprep.subr.bf16.mxu0 %v17448_v49 }
 0x283   :  { %15946 = vmatpush3.bf16.msra.mxu1 %v17438_v51 }
 0x284   :  { %15970 = vmatpush3.bf16.msra.mxu0 %v17448_v49  ;;  %15956 = vmatprep.subr.bf16.mxu1 %v17456_v59 }
 0x286   :  { %15036 = vmatmul.mubr.msk.f32.vlgmr.msra.gmra.mrb[8].mxu1 %vm329_vm1, %v17288_v63 }
 0x287   :  { %15069 = vmatmul.mubr.msk.f32.vlgmr.msra.gmra.mrb[14].mxu0 %vm329_vm1, %v17288_v63  ;;  %15958 = vmatpush3.bf16.msra.mxu1 %v17456_v59 }
 0x288   :  { %15057 = vmatprep.mubr.msk.f32.mxu1 %vm329_vm1, %v17285_v56  ;;  %15960 = vmatprep.subr.bf16.mxu1 %v17471_v44 }
 0x28b   :  { %15962 = vmatpush3.bf16.msra.mxu1 %v17471_v44 }
 0x28c   :  { %15972 = vmatprep.subr.bf16.mxu1 %v17487_v60 }
 0x28e   :  { %15058 = vmatmul.mubr.msk.f32.vlgmr.msra.gmra.mrb[10].mxu1 %vm329_vm1, %v17288_v63 }
 0x28f   :  { %15974 = vmatpush3.bf16.msra.mxu1 %v17487_v60  ;;  %15079 = vmatprep.mubr.msk.f32.mxu1 %vm329_vm1, %v17285_v56  ;;  %v20510_v56 = vmov 0 }
 0x290   :  { %15976 = vmatprep.subr.bf16.mxu1 %v17497_v52  ;;  %v20511_v56 = vsel %vm17511_vm4, 4294967295, %v20510_v56 }
 0x291   :  { %20512 = vst [vmem:[#allocation42_spill] sm:$0xff] %v20511_v56 }
 0x293   :  { %15978 = vmatpush3.bf16.msra.mxu1 %v17497_v52 }
 0x296   :  { %15080 = vmatmul.mubr.msk.f32.vlgmr.msra.gmra.mrb[12].mxu1 %vm329_vm1, %v17288_v63 }
 0x339   :  { %v14960_v35 = vpop.f32.mrb[0].mxu1  ;;  %v14982_v16 = vpop.f32.mrb[6].mxu0 }
 0x33a   :  { %v1587_v24 = vpop.f32.mrb[1].mxu1  ;;  %v1737_v47 = vpop.f32.mrb[7].mxu0 }
 0x33b   :  { %15086 = vmatprep.mubr.msk.f32.mxu0 %vm2421_vm3, %v1587_v24 }
 0x341   :  { %v14971_v55 = vpop.f32.mrb[2].mxu1  ;;  %v15004_v10 = vpop.f32.mrb[8].mxu0 }
 0x342   :  { %v1662_v15 = vpop.f32.mrb[3].mxu1  ;;  %v1887_v60 = vpop.f32.mrb[9].mxu0 }
 0x343   :  { %v15979_v52 = vpack.c.bf16 %v15004_v10, %v1887_v60  ;;  %15093 = vmatprep.mubr.msk.f32.mxu1 %vm2421_vm3, %v1662_v15 }
 0x345   :  { %15981 = vmatprep.subr.msk.bf16.mxu0 %vm17511_vm4, %v15979_v52 }
 0x346   :  { %15984 = vmatpush3.bf16.xpose.msk.msra.mxu0 %vm17511_vm4, %v15979_v52 }
 0x349   :  { %v14993_v63 = vpop.f32.mrb[4].mxu1 }
 0x34a   :  { %v15026_v24 = vpop.f32.mrb[10].mxu0  ;;  %v1812_v44 = vpop.f32.mrb[5].mxu1 }
 0x34b   :  { %v2037_v59 = vpop.f32.mrb[11].mxu0 }
 0x34c   :  { %v15991_v49 = vpack.c.bf16 %v15026_v24, %v2037_v59 }
 0x34d   :  { %15087 = vmatmul.mubr.msk.f32.vlgmr.msra.gmra.mrb[16].mxu0 %vm2421_vm3, %v14960_v35 }
 0x34e   :  { %15993 = vmatprep.subr.msk.bf16.mxu0 %vm17511_vm4, %v15991_v49  ;;  %15100 = vmatprep.mubr.msk.f32.mxu0 %vm2421_vm3, %v1737_v47 }
 0x34f   :  { %15996 = vmatpush3.bf16.xpose.msk.msra.mxu0 %vm17511_vm4, %v15991_v49 }
 0x351   :  { %v15015_v60 = vpop.f32.mrb[6].mxu1 }
 0x352   :  { %v15048_v10 = vpop.f32.mrb[12].mxu0  ;;  %v1962_v15 = vpop.f32.mrb[7].mxu1 }
 0x353   :  { %v15985_v51 = vpack.c.bf16 %v15015_v60, %v1962_v15  ;;  %v2187_v52 = vpop.f32.mrb[13].mxu0  ;;  %v20513_v60 = vmov 0 }
 0x354   :  { %v16003_v45 = vpack.c.bf16 %v15048_v10, %v2187_v52  ;;  %v20514_v60 = vsel %vm17533_vm7, 4294967295, %v20513_v60 }
 0x355   :  { %15987 = vmatprep.subr.msk.bf16.mxu1 %vm17511_vm4, %v15985_v51  ;;  %20515 = vst [vmem:[#allocation43_spill] sm:$0xff] %v20514_v60 }
 0x356   :  { %15101 = vmatmul.mubr.msk.f32.vlgmr.msra.gmra.mrb[18].mxu0 %vm2421_vm3, %v14982_v16  ;;  %15990 = vmatpush3.bf16.xpose.msk.msra.mxu1 %vm17511_vm4, %v15985_v51 }
 0x359   :  { %v15037_v59 = vpop.f32.mrb[8].mxu1 }
 0x35a   :  { %v15070_v35 = vpop.f32.mrb[14].mxu0  ;;  %v2112_v47 = vpop.f32.mrb[9].mxu1 }
 0x35b   :  { %v15997_v24 = vpack.c.bf16 %v15037_v59, %v2112_v47  ;;  %v2337_v49 = vpop.f32.mrb[15].mxu0 }
 0x35c   :  { %v17531_v37 = vpack.c.bf16 %v15070_v35, %v2337_v49 }
 0x35d   :  { %15094 = vmatmul.mubr.msk.f32.vlgmr.msra.gmra.mrb[14].mxu1 %vm2421_vm3, %v14971_v55  ;;  %15999 = vmatprep.subr.msk.bf16.mxu1 %vm17511_vm4, %v15997_v24 }
 0x35e   :  { %16002 = vmatpush3.bf16.xpose.msk.msra.mxu1 %vm17511_vm4, %v15997_v24  ;;  %15107 = vmatprep.mubr.msk.f32.mxu1 %vm2421_vm3, %v1812_v44 }
 0x35f   :  { %16005 = vmatprep.subr.msk.bf16.mxu1 %vm17533_vm7, %v16003_v45 }
 0x361   :  { %v15059_v51 = vpop.f32.mrb[10].mxu1 }
 0x362   :  { %v2262_v16 = vpop.f32.mrb[11].mxu1 }
 0x363   :  { %v16009_v10 = vpack.c.bf16 %v15059_v51, %v2262_v16 }
 0x365   :  { %15108 = vmatmul.mubr.msk.f32.vlgmr.msra.gmra.mrb[16].mxu1 %vm2421_vm3, %v14993_v63  ;;  %16011 = vmatprep.subr.msk.bf16.mxu0 %vm17533_vm7, %v16009_v10 }
 0x366   :  { %16008 = vmatpush3.bf16.msk.msra.mxu1 %vm17533_vm7, %v16003_v45  ;;  %16014 = vmatpush3.bf16.msk.msra.mxu0 %vm17533_vm7, %v16009_v10 }
 0x367   :  { %16017 = vmatprep.subr.msk.bf16.mxu1 %vm17533_vm7, %v17531_v37 }
 0x369   :  { %v15081_v44 = vpop.f32.mrb[12].mxu1 }
 0x36a   :  { %v2412_v55 = vpop.f32.mrb[13].mxu1 }
 0x36b   :  { %v17555_v15 = vpack.c.bf16 %v15081_v44, %v2412_v55 }
 0x36d   :  { %16023 = vmatprep.subr.msk.bf16.mxu0 %vm17533_vm7, %v17555_v15 }
 0x420   :  { %v15088_v63 = vpop.f32.mrb[16].mxu0 }
 0x421   :  { %v2771_v52 = vmul.f32 0.35355338, %v15088_v63  ;;  %v2500_v59 = vpop.f32.mrb[17].mxu0 }
 0x422   :  { %v2770_v45 = vmul.f32 0.35355338, %v2500_v59 }
 0x423   :  { %v2783_v35 = vsel %vm2782_vm8, %v2771_v52, -inf }
 0x424   :  { %2784 = vmax.xlane.f32.xlu1 %v2783_v35  ;;  %v2779_v47 = vsel %vm2778_vm9, %v2770_v45, -inf }
 0x425   :  { %2780 = vmax.xlane.f32.xlu0 %v2779_v47 }
 0x429   :  { %v15102_v24 = vpop.f32.mrb[18].mxu0 }
 0x42a   :  { %v2775_v49 = vmul.f32 0.35355338, %v15102_v24  ;;  %v2674_v51 = vpop.f32.mrb[19].mxu0 }
 0x42b   :  { %v2774_v16 = vmul.f32 0.35355338, %v2674_v51 }
 0x42c   :  { %v2795_v10 = vsel %vm2782_vm8, %v2775_v49, -inf }
 0x42d   :  { %2796 = vmax.xlane.f32.xlu1 %v2795_v10  ;;  %v2792_v44 = vsel %vm2778_vm9, %v2774_v16, -inf }
 0x42e   :  { %2793 = vmax.xlane.f32.xlu0 %v2792_v44 }
 0x430   :  { %v15095_v55 = vpop.f32.mrb[14].mxu1 }
 0x431   :  { %v2773_v63 = vmul.f32 0.35355338, %v15095_v55  ;;  %v2587_v56 = vpop.f32.mrb[15].mxu1 }
 0x432   :  { %v2772_v59 = vmul.f32 0.35355338, %v2587_v56 }
 0x433   :  { %v2789_v25 = vsel %vm2782_vm8, %v2773_v63, -inf }
 0x434   :  { %2790 = vmax.xlane.f32.xlu1 %v2789_v25  ;;  %v2786_v35 = vsel %vm2778_vm9, %v2772_v59, -inf }
 0x435   :  { %2787 = vmax.xlane.f32.xlu0 %v2786_v35 }
 0x438   :  { %v15109_v47 = vpop.f32.mrb[16].mxu1 }
 0x439   :  { %v2777_v24 = vmul.f32 0.35355338, %v15109_v47  ;;  %v2761_v58 = vpop.f32.mrb[17].mxu1 }
 0x43a   :  { %v2776_v51 = vmul.f32 0.35355338, %v2761_v58 }
 0x43b   :  { %v2801_v57 = vsel %vm2782_vm8, %v2777_v24, -inf }
 0x43c   :  { %2802 = vmax.xlane.f32.xlu1 %v2801_v57  ;;  %v2798_v10 = vsel %vm2778_vm9, %v2776_v51, -inf }
 0x43d   :  { %2799 = vmax.xlane.f32.xlu0 %v2798_v10  ;;  %v17582_v10 = vadd.f32 %v16913_v21, %v16967_v62 }
 0x4b1   :  { %v2785_v44 = vpop.xlane.xlu1 %2784 }
 0x4b2   :  { %v2805_v55 = vsub.f32 %v2771_v52, %v2785_v44  ;;  %v2781_v6 = vpop.xlane.xlu0 %2780  ;;  %v513_v52 = vcombine.high %v16964_v61, %v16964_v61 }
 0x4b3   :  { %v2804_v56 = vsub.f32 %v2770_v45, %v2781_v6 }
 0x4b4   :  { %v2814_v11 = vmul.f32 1.442695, %v2805_v55  ;;  %v17585_v61 = vadd.f32 %v16919_v23, %v513_v52  ;;  %v735_v23 = vcombine.low %v16995_v13, %v16986_v8 }
 0x4b5   :  { %v2812_v1 = vmul.f32 1.442695, %v2804_v56 }
 0x4b6   :  { %16518 = vpow2.f32 %v2814_v11  ;;  %v734_v21 = vcombine.low %v17582_v10, %v17585_v61 }
 0x4b7   :  { %16520 = vpow2.f32 %v2812_v1  ;;  %v514_v1 = vcombine.high %v16972_v0, %v16972_v0  ;;  %v17589_v0 = vadd.f32 %v16916_v22, %v16979_v3 }
 0x4b9   :  { %20516 = vst [vmem:[#allocation44_spill] sm:$0xff] %v17589_v0 }
 0x4ba   :  { %v2797_v25 = vpop.xlane.xlu1 %2796 }
 0x4bb   :  { %v2809_v35 = vsub.f32 %v2775_v49, %v2797_v25  ;;  %v2794_v28 = vpop.xlane.xlu0 %2793  ;;  %v737_v25 = vcombine.low %v16999_v18, %v17011_v36 }
 0x4bc   :  { %v2808_v47 = vsub.f32 %v2774_v16, %v2794_v28 }
 0x4bd   :  { %v2822_v46 = vmul.f32 1.442695, %v2809_v35 }
 0x4be   :  { %v2820_v58 = vmul.f32 1.442695, %v2808_v47 }
 0x4bf   :  { %16522 = vpow2.f32 %v2822_v46 }
 0x4c0   :  { %v17568_v20 = vpop.eup %16518  ;;  %16524 = vpow2.f32 %v2820_v58 }
 0x4c1   :  { %v17570_v57 = vpop.eup %16520  ;;  %v2791_v6 = vpop.xlane.xlu1 %2790  ;;  %v2831_v11 = vsel %vm2782_vm8, %v17568_v20, 0.0 }
 0x4c2   :  { %v2807_v45 = vsub.f32 %v2773_v63, %v2791_v6  ;;  %2832 = vadd.xlane.f32.xlu1 %v2831_v11  ;;  %v2788_v28 = vpop.xlane.xlu0 %2787  ;;  %v2828_v46 = vsel %vm2778_vm9, %v17570_v57, 0.0  ;;  %v17592_v63 = vadd.f32 %v16923_v26, %v514_v1  ;;  %v744_v6 = vrot.slane %v734_v21, %v16858_v17 }
 0x4c3   :  { %v2806_v49 = vsub.f32 %v2772_v59, %v2788_v28  ;;  %2829 = vadd.xlane.f32.xlu0 %v2828_v46  ;;  %v765_v1 = vrot.slane %v737_v25, %v16858_v17 }
 0x4c4   :  { %v2818_v16 = vmul.f32 1.442695, %v2807_v45  ;;  %20517 = vst [vmem:[#allocation45_spill] sm:$0xff] %v17592_v63  ;;  %v736_v26 = vcombine.low %v17589_v0, %v17592_v63 }
 0x4c5   :  { %v2816_v44 = vmul.f32 1.442695, %v2806_v49 }
 0x4c6   :  { %16526 = vpow2.f32 %v2818_v16  ;;  %v758_v11 = vrot.slane %v736_v26, %v16858_v17 }
 0x4c7   :  { %16528 = vpow2.f32 %v2816_v44  ;;  %v789_v44 = vrot.slane %v17015_v38, %v16858_v17 }
 0x4c8   :  { %v767_v16 = vcombine.low %v758_v11, %v765_v1 }
 0x4c9   :  { %v17594_v59 = vpop.eup %16522  ;;  %v2803_v55 = vpop.xlane.xlu1 %2802 }
 0x4ca   :  { %v16525_v62 = vpop.eup %16524  ;;  %v2811_v56 = vsub.f32 %v2777_v24, %v2803_v55  ;;  %v2843_v22 = vsel %vm2782_vm8, %v17594_v59, 0.0  ;;  %v2800_v3 = vpop.xlane.xlu0 %2799  ;;  %v751_v24 = vrot.slane %v735_v23, %v16858_v17  ;;  %v781_v21 = vrot.slane %v767_v16, %v16858_v17 }
 0x4cb   :  { %2844 = vadd.xlane.f32.xlu1 %v2843_v22  ;;  %v2810_v35 = vsub.f32 %v2776_v51, %v2800_v3  ;;  %v2840_v47 = vsel %vm2778_vm9, %v16525_v62, 0.0  ;;  %v796_v3 = vrot.slane %v789_v44, %v16858_v17 }
 0x4cc   :  { %v2826_v58 = vmul.f32 1.442695, %v2811_v56  ;;  %2841 = vadd.xlane.f32.xlu0 %v2840_v47  ;;  %v766_v49 = vcombine.low %v744_v6, %v751_v24 }
 0x4cd   :  { %v2824_v52 = vmul.f32 1.442695, %v2810_v35  ;;  %v811_v35 = vsel %vm804_vm2, %v796_v3, 0.0 }
 0x4ce   :  { %16530 = vpow2.f32 %v2826_v58  ;;  %v774_v55 = vrot.slane %v766_v49, %v16858_v17 }
 0x4cf   :  { %16532 = vpow2.f32 %v2824_v52 }
 0x4d0   :  { %v16527_v45 = vpop.eup %16526  ;;  %v782_v25 = vcombine.low %v774_v55, %v781_v21 }
 0x4d1   :  { %v16529_v28 = vpop.eup %16528  ;;  %v2837_v46 = vsel %vm2782_vm8, %v16527_v45, 0.0 }
 0x4d2   :  { %2838 = vadd.xlane.f32.xlu1 %v2837_v46  ;;  %v2834_v51 = vsel %vm2778_vm9, %v16529_v28, 0.0  ;;  %v808_v47 = vsel %vm329_vm1, %v782_v25, 0.0 }
 0x4d3   :  { %2835 = vadd.xlane.f32.xlu0 %v2834_v51 }
 0x4d8   :  { %v17617_v23 = vpop.eup %16530 }
 0x4d9   :  { %v17619_v56 = vpop.eup %16532  ;;  %v2849_v22 = vsel %vm2782_vm8, %v17617_v23, 0.0 }
 0x4da   :  { %2850 = vadd.xlane.f32.xlu1 %v2849_v22  ;;  %v2846_v26 = vsel %vm2778_vm9, %v17619_v56, 0.0 }
 0x4db   :  { %2847 = vadd.xlane.f32.xlu0 %v2846_v26 }
 0x4de   :  { %812 = vadd.xlane.f32.xlu1 %v811_v35 }
 0x4df   :  { %809 = vadd.xlane.f32.xlu0 %v808_v47 }
 0x54f   :  { %v2833_v58 = vpop.xlane.xlu1 %2832 }
 0x550   :  { %16534 = vrcp.f32 %v2833_v58  ;;  %v2830_v52 = vpop.xlane.xlu0 %2829 }
 0x551   :  { %16536 = vrcp.f32 %v2830_v52 }
 0x558   :  { %v2845_v6 = vpop.xlane.xlu1 %2844 }
 0x559   :  { %16538 = vrcp.f32 %v2845_v6  ;;  %v2842_v24 = vpop.xlane.xlu0 %2841 }
 0x55a   :  { %v16535_v11 = vpop.eup %16534  ;;  %16540 = vrcp.f32 %v2842_v24 }
 0x55b   :  { %v16537_v1 = vpop.eup %16536  ;;  %v2861_v51 = vmul.f32 %v16535_v11, %v17568_v20 }
 0x55c   :  { %v2860_v46 = vmul.f32 %v16537_v1, %v17570_v57 }
 0x55e   :  { %15114 = vmatprep.mubr.msk.f32.mxu1 %vm2778_vm9, %v2860_v46  ;;  %v20519_v46 = vld [vmem:[#allocation19_spill] sm:$0xff] }
 0x55f   :  { %v2839_v49 = vpop.xlane.xlu1 %2838  ;;  %15115 = vmatmul.mubr.msk.f32.vlgmr.msra.gmra.mrb[18].mxu1 %vm2778_vm9, %v2861_v51 }
 0x560   :  { %16542 = vrcp.f32 %v2839_v49  ;;  %16020 = vmatpush3.bf16.msk.msra.mxu1 %vm17533_vm7, %v17531_v37  ;;  %v2836_v16 = vpop.xlane.xlu0 %2835  ;;  %v20520_v49 = vld [vmem:[#allocation20_spill] sm:$0xff] }
 0x561   :  { %16544 = vrcp.f32 %v2836_v16 }
 0x563   :  { %v16539_v44 = vpop.eup %16538 }
 0x564   :  { %v16541_v55 = vpop.eup %16540  ;;  %v2865_v22 = vmul.f32 %v16539_v44, %v17594_v59 }
 0x565   :  { %v2864_v21 = vmul.f32 %v16541_v55, %v16525_v62 }
 0x567   :  { %15128 = vmatprep.mubr.msk.f32.mxu1 %vm2778_vm9, %v2864_v21  ;;  %v2851_v20 = vpop.xlane.xlu1 %2850 }
 0x568   :  { %16546 = vrcp.f32 %v2851_v20  ;;  %15129 = vmatmul.mubr.msk.f32.vlgmr.msra.gmra.mrb[20].mxu1 %vm2778_vm9, %v2865_v22  ;;  %v2848_v57 = vpop.xlane.xlu0 %2847 }
 0x569   :  { %16548 = vrcp.f32 %v2848_v57 }
 0x56a   :  { %v16543_v3 = vpop.eup %16542 }
 0x56b   :  { %v16545_v26 = vpop.eup %16544  ;;  %v813_v25 = vpop.xlane.xlu1 %812  ;;  %v2863_v58 = vmul.f32 %v16543_v3, %v16527_v45  ;;  %v20518_v45 = vld [vmem:[#allocation18_spill] sm:$0xff] }
 0x56c   :  { %v818_v35 = vmul.f32 0.03125, %v813_v25  ;;  %v810_v37 = vpop.xlane.xlu0 %809  ;;  %v2862_v47 = vmul.f32 %v16545_v26, %v16529_v28 }
 0x56d   :  { %v817_v52 = vmul.f32 0.03125, %v810_v37 }
 0x56e   :  { %v894_v62 = vrot.slane %v818_v35, %v17019_v40  ;;  %15121 = vmatprep.mubr.msk.f32.mxu0 %vm2778_vm9, %v2862_v47 }
 0x56f   :  { %15122 = vmatmul.mubr.msk.f32.vlgmr.msra.gmra.mrb[20].mxu0 %vm2778_vm9, %v2863_v58  ;;  %v862_v59 = vrot.slane %v817_v52, %v17019_v40  ;;  %v866_v6 = vrot.slane %v817_v52, %v17022_v42  ;;  %v870_v24 = vrot.slane %v817_v52, %v17025_v41  ;;  %v874_v11 = vrot.slane %v817_v52, %v17028_v43 }
 0x570   :  { %v17646_v1 = vsub.f32 %v17015_v38, %v894_v62  ;;  %16026 = vmatpush3.bf16.msk.msra.mxu0 %vm17533_vm7, %v17555_v15  ;;  %v878_v28 = vrot.slane %v817_v52, %v20518_v45  ;;  %v882_v51 = vrot.slane %v817_v52, %v20519_v46  ;;  %v886_v16 = vrot.slane %v817_v52, %v20520_v49 }
 0x571   :  { %v890_v44 = vrot.slane %v817_v52, %v17040_v48  ;;  %v17656_v55 = vsub.f32 %v17582_v10, %v862_v59  ;;  %v17659_v21 = vsub.f32 %v17585_v61, %v866_v6  ;;  %v17662_v22 = vsub.f32 %v16995_v13, %v870_v24 }
 0x572   :  { %v16547_v20 = vpop.eup %16546  ;;  %v948_v15 = vmul.f32 %v17646_v1, %v17646_v1  ;;  %v17667_v57 = vsub.f32 %v16986_v8, %v874_v11  ;;  %v17670_v3 = vsub.f32 %v17589_v0, %v878_v28  ;;  %v17673_v26 = vsub.f32 %v17592_v63, %v882_v51 }
 0x573   :  { %v16549_v25 = vpop.eup %16548  ;;  %v2867_v35 = vmul.f32 %v16547_v20, %v17617_v23  ;;  %v17677_v37 = vsub.f32 %v16999_v18, %v886_v16  ;;  %v17680_v47 = vsub.f32 %v17011_v36, %v890_v44  ;;  %v940_v58 = vmul.f32 %v17656_v55, %v17656_v55 }
 0x574   :  { %v2866_v52 = vmul.f32 %v16549_v25, %v17619_v56  ;;  %v1085_v62 = vrot.slane %v948_v15, %v16858_v17  ;;  %v941_v59 = vmul.f32 %v17659_v21, %v17659_v21  ;;  %v942_v6 = vmul.f32 %v17662_v22, %v17662_v22 }
 0x575   :  { %v943_v23 = vmul.f32 %v17667_v57, %v17667_v57  ;;  %v944_v24 = vmul.f32 %v17670_v3, %v17670_v3  ;;  %v945_v11 = vmul.f32 %v17673_v26, %v17673_v26  ;;  %v946_v56 = vmul.f32 %v17677_v37, %v17677_v37 }
 0x576   :  { %15135 = vmatprep.mubr.msk.f32.mxu0 %vm2778_vm9, %v2866_v52  ;;  %v1092_v28 = vrot.slane %v1085_v62, %v16858_v17  ;;  %v947_v51 = vmul.f32 %v17680_v47, %v17680_v47  ;;  %v1030_v16 = vcombine.low %v940_v58, %v941_v59 }
 0x577   :  { %15136 = vmatmul.mubr.msk.f32.vlgmr.msra.gmra.mrb[22].mxu0 %vm2778_vm9, %v2867_v35  ;;  %v1031_v44 = vcombine.low %v942_v6, %v943_v23  ;;  %v1032_v20 = vcombine.low %v944_v24, %v945_v11  ;;  %v17714_v23 = vld [vmem:[%s20274_s9] sm:$0xff] }
 0x578   :  { %v1106_v15 = vsel %vm804_vm2, %v1092_v28, 0.0  ;;  %v1033_v25 = vcombine.low %v946_v56, %v947_v51  ;;  %v1040_v36 = vrot.slane %v1030_v16, %v16858_v17  ;;  %15138 = vmatprep.subr.mxu1 %v17714_v23 }
 0x579   :  { %1107 = vadd.xlane.f32.xlu1 %v1106_v15  ;;  %v1047_v18 = vrot.slane %v1031_v44, %v16858_v17  ;;  %v1054_v52 = vrot.slane %v1032_v20, %v16858_v17  ;;  %15139 = vmatpush3.msra.mxu1 %v17714_v23 }
 0x57a   :  { %v1061_v62 = vrot.slane %v1033_v25, %v16858_v17 }
 0x57b   :  { %v1062_v63 = vcombine.low %v1040_v36, %v1047_v18  ;;  %v17721_v18 = vld [vmem:[%s20274_s9 + $0x10] sm:$0xff]  ;;  %v17734_v36 = vld [vmem:[%s20274_s9 + $0x18] sm:$0xff] }
 0x57c   :  { %v1063_v8 = vcombine.low %v1054_v52, %v1061_v62  ;;  %15148 = vmatprep.subr.mxu1 %v17721_v18 }
 0x57d   :  { %v1070_v58 = vrot.slane %v1062_v63, %v16858_v17 }
 0x57e   :  { %v1077_v35 = vrot.slane %v1063_v8, %v16858_v17  ;;  %v17727_v8 = vld [vmem:[%s20274_s9 + $0x8] sm:$0xff] }
 0x57f   :  { %15143 = vmatprep.subr.mxu0 %v17727_v8 }
 0x580   :  { %v1078_v59 = vcombine.low %v1070_v58, %v1077_v35  ;;  %15144 = vmatpush3.msra.mxu0 %v17727_v8 }
 0x581   :  { %15153 = vmatprep.subr.mxu0 %v17734_v36 }
 0x582   :  { %v1103_v6 = vsel %vm329_vm1, %v1078_v59, 0.0 }
 0x583   :  { %1104 = vadd.xlane.f32.xlu0 %v1103_v6 }
 0x606   :  { %v1108_v56 = vpop.xlane.xlu1 %1107 }
 0x607   :  { %v1112_v28 = vmul.f32 0.03125, %v1108_v56 }
 0x609   :  { %v1116_v51 = vadd.f32 1e-05, %v1112_v28 }
 0x610   :  { %v1105_v63 = vpop.xlane.xlu0 %1104 }
 0x611   :  { %v1111_v24 = vmul.f32 0.03125, %v1105_v63 }
 0x613   :  { %v1115_v11 = vadd.f32 1e-05, %v1111_v24 }
 0x615   :  { %16550 = vrsqrt.f32 %v1115_v11 }
 0x616   :  { %16552 = vrsqrt.f32 %v1116_v51 }
 0x61f   :  { %v16551_v16 = vpop.eup %16550 }
 0x620   :  { %v1164_v44 = vrot.slane %v16551_v16, %v17019_v40  ;;  %v1168_v20 = vrot.slane %v16551_v16, %v17022_v42  ;;  %v1172_v15 = vrot.slane %v16551_v16, %v17025_v41  ;;  %v1176_v25 = vrot.slane %v16551_v16, %v17028_v43 }
 0x621   :  { %v1180_v52 = vrot.slane %v16551_v16, %v20518_v45  ;;  %v1184_v62 = vrot.slane %v16551_v16, %v20519_v46  ;;  %v1188_v58 = vrot.slane %v16551_v16, %v20520_v49  ;;  %v1192_v35 = vrot.slane %v16551_v16, %v17040_v48 }
 0x622   :  { %v1224_v59 = vmul.f32 %v1164_v44, %v17656_v55  ;;  %v1225_v6 = vmul.f32 %v1168_v20, %v17659_v21  ;;  %v1226_v63 = vmul.f32 %v1172_v15, %v17662_v22  ;;  %v1227_v24 = vmul.f32 %v1176_v25, %v17667_v57  ;;  %v16553_v20 = vpop.eup %16552 }
 0x623   :  { %v1228_v11 = vmul.f32 %v1180_v52, %v17670_v3  ;;  %v1229_v56 = vmul.f32 %v1184_v62, %v17673_v26  ;;  %v1230_v28 = vmul.f32 %v1188_v58, %v17677_v37  ;;  %v1231_v51 = vmul.f32 %v1192_v35, %v17680_v47  ;;  %v20521_v58 = vld [vmem:[#allocation21_spill] sm:$0xff] }
 0x624   :  { %v1304_v0 = vmul.f32 %v17175_v12, %v1224_v59  ;;  %v1305_v16 = vmul.f32 %v17181_v31, %v1225_v6  ;;  %v1306_v55 = vmul.f32 %v17200_v39, %v1226_v63  ;;  %v1307_v21 = vmul.f32 %v17208_v53, %v1227_v24 }
 0x625   :  { %v1308_v22 = vmul.f32 %v17178_v29, %v1228_v11  ;;  %v1309_v57 = vmul.f32 %v17184_v30, %v1229_v56  ;;  %v1310_v3 = vmul.f32 %v17204_v50, %v1230_v28  ;;  %v1311_v26 = vmul.f32 %v17212_v54, %v1231_v51  ;;  %v20522_v56 = vld [vmem:[#allocation23_spill] sm:$0xff] }
 0x626   :  { %v1384_v37 = vadd.f32 %v17187_v32, %v1304_v0  ;;  %v1385_v47 = vadd.f32 %v17193_v34, %v1305_v16  ;;  %v1386_v44 = vadd.f32 %v17216_v4, %v1306_v55  ;;  %v1387_v31 = vadd.f32 %v17224_v2, %v1307_v21  ;;  %v20523_v16 = vld [vmem:[#allocation22_spill] sm:$0xff]  ;;  %v20524_v55 = vld [vmem:[#allocation24_spill] sm:$0xff] }
 0x627   :  { %v1388_v39 = vadd.f32 %v17190_v33, %v1308_v22  ;;  %v1389_v53 = vadd.f32 %v17196_v14, %v1309_v57  ;;  %v1390_v29 = vadd.f32 %v17220_v7, %v1310_v3  ;;  %v1391_v30 = vadd.f32 %v17228_v5, %v1311_v26  ;;  %v20525_v57 = vld [vmem:[#allocation25_spill] sm:$0xff]  ;;  %v20526_v3 = vld [vmem:[#allocation26_spill] sm:$0xff]  ;;  %v20527_v26 = vld [vmem:[#allocation27_spill] sm:$0xff] }
 0x628   :  { %v3554_v50 = vcombine.low %v1384_v37, %v1385_v47  ;;  %v3555_v15 = vcombine.low %v1386_v44, %v1387_v31  ;;  %v1196_v0 = vrot.slane %v16553_v20, %v17019_v40  ;;  %v20531_v37 = vld [vmem:[#allocation31_spill] sm:$0xff]  ;;  %v20532_v47 = vld [vmem:[#allocation32_spill] sm:$0xff]  ;;  %v20533_v44 = vld [vmem:[#allocation33_spill] sm:$0xff] }
 0x629   :  { %v3556_v54 = vcombine.low %v1388_v39, %v1389_v53  ;;  %v3557_v25 = vcombine.low %v1390_v29, %v1391_v30  ;;  %v20534_v31 = vld [vmem:[#allocation34_spill] sm:$0xff]  ;;  %v20535_v39 = vld [vmem:[#allocation35_spill] sm:$0xff]  ;;  %v20536_v53 = vld [vmem:[#allocation36_spill] sm:$0xff] }
 0x62a   :  { %v3564_v34 = vrot.slane %v3554_v50, %v16858_v17  ;;  %v3571_v4 = vrot.slane %v3555_v15, %v16858_v17  ;;  %v1232_v7 = vmul.f32 %v1196_v0, %v17646_v1  ;;  %v20537_v29 = vld [vmem:[#allocation37_spill] sm:$0xff]  ;;  %v20538_v30 = vld [vmem:[#allocation38_spill] sm:$0xff]  ;;  %v20539_v20 = vld [vmem:[#allocation39_spill] sm:$0xff] }
 0x62b   :  { %v3578_v2 = vrot.slane %v3556_v54, %v16858_v17  ;;  %v3585_v33 = vrot.slane %v3557_v25, %v16858_v17  ;;  %v20540_v50 = vld [vmem:[#allocation40_spill] sm:$0xff]  ;;  %v20541_v15 = vld [vmem:[#allocation41_spill] sm:$0xff] }
 0x62c   :  { %v3586_v5 = vcombine.low %v3564_v34, %v3571_v4  ;;  %v1312_v35 = vmul.f32 %v17175_v12, %v1232_v7 }
 0x62d   :  { %v3587_v62 = vcombine.low %v3578_v2, %v3585_v33 }
 0x62e   :  { %v3594_v59 = vrot.slane %v3586_v5, %v16858_v17  ;;  %v1392_v24 = vadd.f32 %v17187_v32, %v1312_v35 }
 0x62f   :  { %v3601_v6 = vrot.slane %v3587_v62, %v16858_v17 }
 0x630   :  { %v3609_v12 = vrot.slane %v1392_v24, %v16858_v17 }
 0x631   :  { %v17784_v11 = vcombine.low %v3594_v59, %v3601_v6 }
 0x632   :  { %v15116_v14 = vpop.f32.mrb[18].mxu1  ;;  %v17794_v51 = vrot.slane %v3609_v12, %v16858_v17 }
 0x633   :  { %v2944_v52 = vpop.f32.mrb[19].mxu1 }
 0x634   :  { %15140 = vmatprep.mubr.msk.f32.mxu1 %vm2421_vm3, %v2944_v52 }
 0x635   :  { %15141 = vmatmul.mubr.msk.f32.vlgmr.msra.gmra.mrb[22].mxu1 %vm2421_vm3, %v15116_v14 }
 0x636   :  { %15149 = vmatpush3.msra.mxu1 %v17721_v18 }
 0x637   :  { %16028 = vmatprep.subr.bf16.mxu1 %v20521_v58 }
 0x63b   :  { %v15130_v63 = vpop.f32.mrb[20].mxu1 }
 0x63c   :  { %v3112_v1 = vpop.f32.mrb[21].mxu1 }
 0x63d   :  { %15150 = vmatprep.mubr.msk.f32.mxu1 %vm2421_vm3, %v3112_v1 }
 0x63e   :  { %15151 = vmatmul.mubr.msk.f32.vlgmr.msra.gmra.mrb[24].mxu1 %vm2421_vm3, %v15130_v63 }
 0x63f   :  { %16030 = vmatpush3.bf16.msra.mxu1 %v20521_v58  ;;  %15166 = vmatprep.mubr.msk.f32.mxu1 %vm329_vm1, %v17784_v11 }
 0x640   :  { %16032 = vmatprep.subr.bf16.mxu1 %v20522_v56 }
 0x642   :  { %v15123_v28 = vpop.f32.mrb[20].mxu0 }
 0x643   :  { %16034 = vmatpush3.bf16.msra.mxu1 %v20522_v56  ;;  %v3028_v32 = vpop.f32.mrb[21].mxu0 }
 0x644   :  { %15145 = vmatprep.mubr.msk.f32.mxu0 %vm2421_vm3, %v3028_v32  ;;  %16044 = vmatprep.subr.bf16.mxu1 %v20523_v16 }
 0x645   :  { %15146 = vmatmul.mubr.msk.f32.vlgmr.msra.gmra.mrb[24].mxu0 %vm2421_vm3, %v15123_v28 }
 0x646   :  { %15167 = vmatmul.mubr.msk.f32.vlgmr.msra.gmra.mrb[26].mxu1 %vm329_vm1, %v17794_v51  ;;  %15154 = vmatpush3.msra.mxu0 %v17734_v36 }
 0x647   :  { %16046 = vmatpush3.bf16.msra.mxu1 %v20523_v16  ;;  %15188 = vmatprep.mubr.msk.f32.mxu1 %vm329_vm1, %v17784_v11 }
 0x648   :  { %16048 = vmatprep.subr.bf16.mxu1 %v20524_v55  ;;  %16036 = vmatprep.subr.bf16.mxu0 %v17155_v9 }
 0x64a   :  { %v15137_v21 = vpop.f32.mrb[22].mxu0 }
 0x64b   :  { %16050 = vmatpush3.bf16.msra.mxu1 %v20524_v55  ;;  %v3196_v22 = vpop.f32.mrb[23].mxu0 }
 0x64c   :  { %15155 = vmatprep.mubr.msk.f32.mxu0 %vm2421_vm3, %v3196_v22  ;;  %16060 = vmatprep.subr.bf16.mxu1 %v17160_v27 }
 0x64d   :  { %15156 = vmatmul.mubr.msk.f32.vlgmr.msra.gmra.mrb[26].mxu0 %vm2421_vm3, %v15137_v21 }
 0x64e   :  { %15189 = vmatmul.mubr.msk.f32.vlgmr.msra.gmra.mrb[28].mxu1 %vm329_vm1, %v17794_v51  ;;  %16038 = vmatpush3.bf16.msra.mxu0 %v17155_v9  ;;  %v20528_v9 = vld [vmem:[#allocation28_spill] sm:$0xff] }
 0x64f   :  { %16062 = vmatpush3.bf16.msra.mxu1 %v17160_v27  ;;  %15210 = vmatprep.mubr.msk.f32.mxu1 %vm329_vm1, %v17784_v11  ;;  %v20529_v27 = vld [vmem:[#allocation29_spill] sm:$0xff] }
 0x650   :  { %15177 = vmatprep.mubr.msk.f32.mxu0 %vm329_vm1, %v17784_v11  ;;  %16040 = vmatprep.subr.bf16.mxu0 %v17297_v19 }
 0x651   :  { %16064 = vmatprep.subr.bf16.mxu1 %v20525_v57 }
 0x652   :  { %16042 = vmatpush3.bf16.msra.mxu0 %v17297_v19  ;;  %v20530_v19 = vld [vmem:[#allocation30_spill] sm:$0xff] }
 0x653   :  { %16066 = vmatpush3.bf16.msra.mxu1 %v20525_v57  ;;  %16052 = vmatprep.subr.bf16.mxu0 %v20526_v3 }
 0x654   :  { %16076 = vmatprep.subr.bf16.mxu1 %v20527_v26 }
 0x655   :  { %15178 = vmatmul.mubr.msk.f32.vlgmr.msra.gmra.mrb[28].mxu0 %vm329_vm1, %v17794_v51 }
 0x656   :  { %15211 = vmatmul.mubr.msk.f32.vlgmr.msra.gmra.mrb[30].mxu1 %vm329_vm1, %v17794_v51  ;;  %16054 = vmatpush3.bf16.msra.mxu0 %v20526_v3 }
 0x657   :  { %15199 = vmatprep.mubr.msk.f32.mxu0 %vm329_vm1, %v17784_v11  ;;  %16078 = vmatpush3.bf16.msra.mxu1 %v20527_v26 }
 0x658   :  { %15232 = vmatprep.mubr.msk.f32.mxu1 %vm329_vm1, %v17784_v11  ;;  %16056 = vmatprep.subr.bf16.mxu0 %v20528_v9 }
 0x659   :  { %16080 = vmatprep.subr.bf16.mxu1 %v20529_v27 }
 0x65a   :  { %16058 = vmatpush3.bf16.msra.mxu0 %v20528_v9 }
 0x65b   :  { %16082 = vmatpush3.bf16.msra.mxu1 %v20529_v27  ;;  %16068 = vmatprep.subr.bf16.mxu0 %v20530_v19 }
 0x65c   :  { %16092 = vmatprep.subr.bf16.mxu1 %v20531_v37 }
 0x65d   :  { %15200 = vmatmul.mubr.msk.f32.vlgmr.msra.gmra.mrb[30].mxu0 %vm329_vm1, %v17794_v51 }
 0x65e   :  { %15233 = vmatmul.mubr.msk.f32.vlgmr.msra.gmra.mrb[32].mxu1 %vm329_vm1, %v17794_v51  ;;  %16070 = vmatpush3.bf16.msra.mxu0 %v20530_v19 }
 0x65f   :  { %15221 = vmatprep.mubr.msk.f32.mxu0 %vm329_vm1, %v17784_v11  ;;  %16094 = vmatpush3.bf16.msra.mxu1 %v20531_v37 }
 0x660   :  { %15254 = vmatprep.mubr.msk.f32.mxu1 %vm329_vm1, %v17784_v11  ;;  %16072 = vmatprep.subr.bf16.mxu0 %v20532_v47 }
 0x661   :  { %16096 = vmatprep.subr.bf16.mxu1 %v20533_v44 }
 0x662   :  { %16074 = vmatpush3.bf16.msra.mxu0 %v20532_v47 }
 0x663   :  { %16098 = vmatpush3.bf16.msra.mxu1 %v20533_v44  ;;  %16084 = vmatprep.subr.bf16.mxu0 %v20534_v31 }
 0x664   :  { %16108 = vmatprep.subr.bf16.mxu1 %v20535_v39 }
 0x665   :  { %15222 = vmatmul.mubr.msk.f32.vlgmr.msra.gmra.mrb[32].mxu0 %vm329_vm1, %v17794_v51 }
 0x666   :  { %15255 = vmatmul.mubr.msk.f32.vlgmr.msra.gmra.mrb[34].mxu1 %vm329_vm1, %v17794_v51  ;;  %16086 = vmatpush3.bf16.msra.mxu0 %v20534_v31 }
 0x667   :  { %15243 = vmatprep.mubr.msk.f32.mxu0 %vm329_vm1, %v17784_v11  ;;  %16110 = vmatpush3.bf16.msra.mxu1 %v20535_v39 }
 0x668   :  { %15276 = vmatprep.mubr.msk.f32.mxu1 %vm329_vm1, %v17784_v11  ;;  %16088 = vmatprep.subr.bf16.mxu0 %v20536_v53 }
 0x669   :  { %16112 = vmatprep.subr.bf16.mxu1 %v20537_v29 }
 0x66a   :  { %16090 = vmatpush3.bf16.msra.mxu0 %v20536_v53 }
 0x66b   :  { %16114 = vmatpush3.bf16.msra.mxu1 %v20537_v29  ;;  %16100 = vmatprep.subr.bf16.mxu0 %v20538_v30 }
 0x66d   :  { %15244 = vmatmul.mubr.msk.f32.vlgmr.msra.gmra.mrb[34].mxu0 %vm329_vm1, %v17794_v51 }
 0x66e   :  { %15277 = vmatmul.mubr.msk.f32.vlgmr.msra.gmra.mrb[36].mxu1 %vm329_vm1, %v17794_v51  ;;  %16102 = vmatpush3.bf16.msra.mxu0 %v20538_v30 }
 0x66f   :  { %15265 = vmatprep.mubr.msk.f32.mxu0 %vm329_vm1, %v17784_v11  ;;  %16104 = vmatprep.subr.bf16.mxu0 %v20539_v20 }
 0x672   :  { %16106 = vmatpush3.bf16.msra.mxu0 %v20539_v20 }
 0x673   :  { %16116 = vmatprep.subr.bf16.mxu0 %v20540_v50 }
 0x675   :  { %15266 = vmatmul.mubr.msk.f32.vlgmr.msra.gmra.mrb[36].mxu0 %vm329_vm1, %v17794_v51 }
 0x676   :  { %16118 = vmatpush3.bf16.msra.mxu0 %v20540_v50  ;;  %15287 = vmatprep.mubr.msk.f32.mxu0 %vm329_vm1, %v17784_v11 }
 0x677   :  { %16120 = vmatprep.subr.bf16.mxu0 %v20541_v15 }
 0x67a   :  { %16122 = vmatpush3.bf16.msra.mxu0 %v20541_v15 }
 0x67d   :  { %15288 = vmatmul.mubr.msk.f32.vlgmr.msra.gmra.mrb[38].mxu0 %vm329_vm1, %v17794_v51 }
 0x708   :  { %v15142_v54 = vpop.f32.mrb[22].mxu1 }
 0x709   :  { %v3277_v25 = vpop.f32.mrb[23].mxu1  ;;  %v3536_v2 = vsel %vm804_vm2, %v15142_v54, 0.0 }
 0x70a   :  { %v3529_v7 = vsel %vm329_vm1, %v3277_v25, 0.0 }
 0x711   :  { %v15152_v0 = vpop.f32.mrb[24].mxu1 }
 0x712   :  { %v3439_v34 = vpop.f32.mrb[25].mxu1  ;;  %v3539_v35 = vsel %vm804_vm2, %v15152_v0, 0.0 }
 0x713   :  { %v3532_v6 = vsel %vm329_vm1, %v3439_v34, 0.0 }
 0x718   :  { %v15147_v4 = vpop.f32.mrb[24].mxu0 }
 0x719   :  { %v15168_v33 = vpop.f32.mrb[26].mxu1  ;;  %v3537_v14 = vsel %vm804_vm2, %v15147_v4, 0.0  ;;  %v3358_v52 = vpop.f32.mrb[25].mxu0 }
 0x71a   :  { %v3538_v5 = vadd.f32 %v3537_v14, %v3536_v2  ;;  %v3687_v62 = vpop.f32.mrb[27].mxu1  ;;  %v3530_v58 = vsel %vm329_vm1, %v3358_v52, 0.0 }
 0x71b   :  { %v3531_v59 = vadd.f32 %v3530_v58, %v3529_v7  ;;  %15294 = vmatprep.mubr.msk.f32.mxu1 %vm2421_vm3, %v3687_v62 }
 0x71c   :  { %v3540_v63 = vadd.f32 %v3539_v35, %v3538_v5 }
 0x71d   :  { %v3533_v24 = vadd.f32 %v3532_v6, %v3531_v59 }
 0x720   :  { %v15157_v1 = vpop.f32.mrb[26].mxu0 }
 0x721   :  { %v15190_v11 = vpop.f32.mrb[28].mxu1  ;;  %v3541_v12 = vsel %vm804_vm2, %v15157_v1, 0.0  ;;  %v3520_v56 = vpop.f32.mrb[27].mxu0 }
 0x722   :  { %v3542_v28 = vadd.f32 %v3541_v12, %v3540_v63  ;;  %v3837_v32 = vpop.f32.mrb[29].mxu1  ;;  %v3534_v51 = vsel %vm329_vm1, %v3520_v56, 0.0 }
 0x723   :  { %v3535_v16 = vadd.f32 %v3534_v51, %v3533_v24 }
 0x724   :  { %3544 = vst.msk [vmem:[#allocation2 + $0x8] sm:$0x1] %vm804_vm2, %v3542_v28 }
 0x725   :  { %3543 = vst.msk [vmem:[#allocation2] sm:$0xff] %vm329_vm1, %v3535_v16 }
 0x728   :  { %v15179_v55 = vpop.f32.mrb[28].mxu0 }
 0x729   :  { %v15212_v21 = vpop.f32.mrb[30].mxu1  ;;  %v3762_v22 = vpop.f32.mrb[29].mxu0 }
 0x72a   :  { %v3987_v57 = vpop.f32.mrb[31].mxu1  ;;  %15301 = vmatprep.mubr.msk.f32.mxu0 %vm2421_vm3, %v3762_v22 }
 0x72b   :  { %v16123_v3 = vpack.c.bf16 %v15212_v21, %v3987_v57 }
 0x72d   :  { %16125 = vmatprep.subr.msk.bf16.mxu1 %vm17511_vm4, %v16123_v3 }
 0x72e   :  { %16128 = vmatpush3.bf16.xpose.msk.msra.mxu1 %vm17511_vm4, %v16123_v3 }
 0x730   :  { %v15201_v9 = vpop.f32.mrb[30].mxu0 }
 0x731   :  { %v15234_v27 = vpop.f32.mrb[32].mxu1  ;;  %v3912_v19 = vpop.f32.mrb[31].mxu0 }
 0x732   :  { %v4137_v37 = vpop.f32.mrb[33].mxu1 }
 0x733   :  { %v16135_v47 = vpack.c.bf16 %v15234_v27, %v4137_v37 }
 0x735   :  { %15295 = vmatmul.mubr.msk.f32.vlgmr.msra.gmra.mrb[38].mxu1 %vm2421_vm3, %v15168_v33  ;;  %16137 = vmatprep.subr.msk.bf16.mxu1 %vm17511_vm4, %v16135_v47 }
 0x736   :  { %16140 = vmatpush3.bf16.xpose.msk.msra.mxu1 %vm17511_vm4, %v16135_v47  ;;  %15308 = vmatprep.mubr.msk.f32.mxu1 %vm2421_vm3, %v3837_v32 }
 0x738   :  { %v15223_v44 = vpop.f32.mrb[32].mxu0 }
 0x739   :  { %v15256_v31 = vpop.f32.mrb[34].mxu1  ;;  %v4062_v39 = vpop.f32.mrb[33].mxu0 }
 0x73a   :  { %v16129_v53 = vpack.c.bf16 %v15223_v44, %v4062_v39  ;;  %v4287_v29 = vpop.f32.mrb[35].mxu1  ;;  %v14200_v44 = vld [vmem:[%s20275_s10] ss:$0 sm:$0xff] }
 0x73b   :  { %v16147_v30 = vpack.c.bf16 %v15256_v31, %v4287_v29  ;;  %v5818_v29 = vcombine.high %v14200_v44, %v14200_v44 }
 0x73c   :  { %16131 = vmatprep.subr.msk.bf16.mxu0 %vm17511_vm4, %v16129_v53 }
 0x73d   :  { %15309 = vmatmul.mubr.msk.f32.vlgmr.msra.gmra.mrb[40].mxu1 %vm2421_vm3, %v15190_v11  ;;  %16149 = vmatprep.subr.msk.bf16.mxu1 %vm17533_vm7, %v16147_v30 }
 0x73e   :  { %16134 = vmatpush3.bf16.xpose.msk.msra.mxu0 %vm17511_vm4, %v16129_v53  ;;  %16152 = vmatpush3.bf16.msk.msra.mxu1 %vm17533_vm7, %v16147_v30 }
 0x740   :  { %v15245_v20 = vpop.f32.mrb[34].mxu0 }
 0x741   :  { %v15278_v50 = vpop.f32.mrb[36].mxu1  ;;  %v4212_v15 = vpop.f32.mrb[35].mxu0 }
 0x742   :  { %v16141_v54 = vpack.c.bf16 %v15245_v20, %v4212_v15  ;;  %v4437_v25 = vpop.f32.mrb[37].mxu1 }
 0x743   :  { %v17922_v0 = vpack.c.bf16 %v15278_v50, %v4437_v25  ;;  %v5832_v25 = vrot.slane %v5818_v29, %v16858_v17 }
 0x744   :  { %16143 = vmatprep.subr.msk.bf16.mxu0 %vm17511_vm4, %v16141_v54 }
 0x745   :  { %15302 = vmatmul.mubr.msk.f32.vlgmr.msra.gmra.mrb[40].mxu0 %vm2421_vm3, %v15179_v55  ;;  %16161 = vmatprep.subr.msk.bf16.mxu1 %vm17533_vm7, %v17922_v0 }
 0x746   :  { %16146 = vmatpush3.bf16.xpose.msk.msra.mxu0 %vm17511_vm4, %v16141_v54  ;;  %15315 = vmatprep.mubr.msk.f32.mxu0 %vm2421_vm3, %v3912_v19  ;;  %v5642_v19 = vld [vmem:[#allocation2] sm:$0xff] }
 0x747   :  { %v5650_v37 = vcombine.high %v5642_v19, %v5642_v19  ;;  %v5657_v50 = vrot.slane %v5642_v19, %v16858_v17 }
 0x748   :  { %v15267_v34 = vpop.f32.mrb[36].mxu0 }
 0x749   :  { %v4362_v4 = vpop.f32.mrb[37].mxu0  ;;  %v5664_v53 = vrot.slane %v5650_v37, %v16858_v17 }
 0x74a   :  { %v16153_v2 = vpack.c.bf16 %v15267_v34, %v4362_v4  ;;  %v5665_v34 = vcombine.high %v5657_v50, %v5657_v50 }
 0x74b   :  { %v5666_v54 = vcombine.high %v5664_v53, %v5664_v53 }
 0x74c   :  { %16155 = vmatprep.subr.msk.bf16.mxu0 %vm17533_vm7, %v16153_v2 }
 0x74d   :  { %15316 = vmatmul.mubr.msk.f32.vlgmr.msra.gmra.mrb[42].mxu0 %vm2421_vm3, %v15201_v9 }
 0x74e   :  { %16158 = vmatpush3.bf16.msk.msra.mxu0 %vm17533_vm7, %v16153_v2  ;;  %v5825_v2 = vrot.slane %v14200_v44, %v16858_v17  ;;  %v20543_v44 = vld [vmem:[#allocation13_spill] sm:$0xff] }
 0x750   :  { %v15289_v33 = vpop.f32.mrb[38].mxu0  ;;  %v17999_v29 = vrot.slane %v5825_v2, %v16858_v17 }
 0x751   :  { %v4512_v14 = vpop.f32.mrb[39].mxu0 }
 0x752   :  { %v17938_v52 = vpack.c.bf16 %v15289_v33, %v4512_v14 }
 0x754   :  { %16167 = vmatprep.subr.msk.bf16.mxu0 %vm17533_vm7, %v17938_v52 }
 0x808   :  { %v15296_v7 = vpop.f32.mrb[38].mxu1 }
 0x809   :  { %v4870_v5 = vmul.f32 0.35355338, %v15296_v7  ;;  %v4599_v62 = vpop.f32.mrb[39].mxu1  ;;  %v5694_v7 = vrot.slane %v5666_v54, %v16858_v17  ;;  %v20545_v54 = vld [vmem:[#allocation11_spill] sm:$0xff] }
 0x80a   :  { %v4869_v58 = vmul.f32 0.35355338, %v4599_v62 }
 0x80b   :  { %v4880_v35 = vsel %vm2782_vm8, %v4870_v5, -inf }
 0x80c   :  { %4881 = vmax.xlane.f32.xlu1 %v4880_v35  ;;  %v4877_v59 = vsel %vm2778_vm9, %v4869_v58, -inf }
 0x80d   :  { %4878 = vmax.xlane.f32.xlu0 %v4877_v59  ;;  %v5680_v59 = vrot.slane %v5664_v53, %v16858_v17 }
 0x810   :  { %v15310_v6 = vpop.f32.mrb[40].mxu1 }
 0x811   :  { %v4874_v63 = vmul.f32 0.35355338, %v15310_v6  ;;  %v4773_v24 = vpop.f32.mrb[41].mxu1  ;;  %v5687_v6 = vrot.slane %v5665_v34, %v16858_v17  ;;  %v20546_v34 = vld [vmem:[#allocation12_spill] sm:$0xff] }
 0x812   :  { %v4873_v1 = vmul.f32 0.35355338, %v4773_v24 }
 0x813   :  { %v4892_v11 = vsel %vm2782_vm8, %v4874_v63, -inf }
 0x814   :  { %4893 = vmax.xlane.f32.xlu1 %v4892_v11  ;;  %v4889_v12 = vsel %vm2778_vm9, %v4873_v1, -inf  ;;  %v5673_v11 = vrot.slane %v5657_v50, %v16858_v17  ;;  %v20544_v50 = vld [vmem:[#allocation9_spill] sm:$0xff] }
 0x815   :  { %4890 = vmax.xlane.f32.xlu0 %v4889_v12  ;;  %v5698_v12 = vcombine.high %v5694_v7, %v5694_v7 }
 0x818   :  { %v15303_v56 = vpop.f32.mrb[40].mxu0 }
 0x819   :  { %v17947_v28 = vmul.f32 0.35355338, %v15303_v56  ;;  %v4686_v32 = vpop.f32.mrb[41].mxu0 }
 0x81a   :  { %v17949_v51 = vmul.f32 0.35355338, %v4686_v32 }
 0x81b   :  { %v4886_v16 = vsel %vm2782_vm8, %v17947_v28, -inf }
 0x81c   :  { %4887 = vmax.xlane.f32.xlu1 %v4886_v16  ;;  %v4883_v55 = vsel %vm2778_vm9, %v17949_v51, -inf  ;;  %v5696_v16 = vcombine.high %v5680_v59, %v5680_v59 }
 0x81d   :  { %4884 = vmax.xlane.f32.xlu0 %v4883_v55  ;;  %v5697_v55 = vcombine.high %v5687_v6, %v5687_v6 }
 0x820   :  { %v15317_v21 = vpop.f32.mrb[42].mxu0 }
 0x821   :  { %v17955_v22 = vmul.f32 0.35355338, %v15317_v21  ;;  %v4860_v57 = vpop.f32.mrb[43].mxu0 }
 0x822   :  { %v17957_v3 = vmul.f32 0.35355338, %v4860_v57 }
 0x823   :  { %v4898_v9 = vsel %vm2782_vm8, %v17955_v22, -inf }
 0x824   :  { %4899 = vmax.xlane.f32.xlu1 %v4898_v9  ;;  %v4895_v27 = vsel %vm2778_vm9, %v17957_v3, -inf }
 0x825   :  { %4896 = vmax.xlane.f32.xlu0 %v4895_v27  ;;  %v5695_v27 = vcombine.high %v5673_v11, %v5673_v11 }
 0x899   :  { %v4882_v47 = vpop.xlane.xlu1 %4881 }
 0x89a   :  { %v4902_v31 = vsub.f32 %v4870_v5, %v4882_v47  ;;  %v4879_v39 = vpop.xlane.xlu0 %4878  ;;  %v5834_v5 = vcombine.high %v5832_v25, %v5832_v25 }
 0x89b   :  { %v4901_v30 = vsub.f32 %v4869_v58, %v4879_v39  ;;  %v5833_v58 = vcombine.high %v5825_v2, %v5825_v2  ;;  %v20548_v2 = vld [vmem:[#allocation8_spill] sm:$0xff] }
 0x89c   :  { %v4911_v20 = vmul.f32 1.442695, %v4902_v31  ;;  %v17975_v56 = vrot.slane %v5834_v5, %v16858_v17  ;;  %v5801_v31 = vadd.f32 %v5698_v12, %v20543_v44  ;;  %v5796_v5 = vadd.f32 %v5695_v27, %v20548_v2 }
 0x89d   :  { %v4909_v15 = vmul.f32 1.442695, %v4901_v30 }
 0x89e   :  { %16554 = vpow2.f32 %v4911_v20  ;;  %v17995_v39 = vcombine.high %v17975_v56, %v17975_v56 }
 0x89f   :  { %16556 = vpow2.f32 %v4909_v15  ;;  %v5797_v15 = vadd.f32 %v5697_v55, %v20544_v50  ;;  %v14198_v50 = vld.sshfl [vmem:[#allocation2 + $0x8] sm:$0x1 pattern:$0x75316420] }
 0x8a1   :  { %v4894_v4 = vpop.xlane.xlu1 %4893 }
 0x8a2   :  { %v4906_v33 = vsub.f32 %v4874_v63, %v4894_v4  ;;  %v4891_v14 = vpop.xlane.xlu0 %4890  ;;  %v17978_v63 = vrot.slane %v5832_v25, %v16858_v17  ;;  %v5799_v25 = vadd.f32 %v5694_v7, %v20545_v54  ;;  %v5800_v4 = vadd.f32 %v5696_v16, %v20546_v34  ;;  %v20551_v7 = vld [vmem:[#allocation7_spill] sm:$0xff] }
 0x8a3   :  { %v4905_v62 = vsub.f32 %v4873_v1, %v4891_v14  ;;  %v17981_v1 = vrot.slane %v5833_v58, %v16858_v17  ;;  %v20549_v58 = vld [vmem:[#allocation10_spill] sm:$0xff]  ;;  %v5794_v16 = vadd.f32 %v5673_v11, %v20551_v7 }
 0x8a4   :  { %v4919_v35 = vmul.f32 1.442695, %v4906_v33  ;;  %v20547_v33 = vld [vmem:[#allocation6_spill] sm:$0xff] }
 0x8a5   :  { %v4917_v24 = vmul.f32 1.442695, %v4905_v62  ;;  %v18007_v30 = vcombine.high %v17981_v1, %v17981_v1  ;;  %v5795_v14 = vadd.f32 %v5687_v6, %v20547_v33  ;;  %v18016_v62 = vcombine.high %v17999_v29, %v17999_v29 }
 0x8a6   :  { %16558 = vpow2.f32 %v4919_v35  ;;  %v5798_v35 = vadd.f32 %v5680_v59, %v20549_v58  ;;  %v18029_v6 = vadd.f32 %v17975_v56, %v5799_v25  ;;  %v18054_v54 = vadd.f32 %v17999_v29, %v5794_v16 }
 0x8a7   :  { %16560 = vpow2.f32 %v4917_v24  ;;  %v18020_v24 = vadd.f32 %v17995_v39, %v5801_v31  ;;  %v18026_v55 = vadd.f32 %v18007_v30, %v5797_v15  ;;  %v18042_v11 = vadd.f32 %v18016_v62, %v5796_v5 }
 0x8a8   :  { %v17983_v32 = vpop.eup %16554  ;;  %20553 = vst [vmem:[#allocation20_spill] sm:$0xff] %v18029_v6  ;;  %v18048_v31 = vadd.f32 %v17978_v63, %v5798_v35  ;;  %20558 = vst [vmem:[#allocation25_spill] sm:$0xff] %v18054_v54 }
 0x8a9   :  { %v17985_v21 = vpop.eup %16556  ;;  %v4888_v57 = vpop.xlane.xlu1 %4887  ;;  %v4928_v9 = vsel %vm2782_vm8, %v17983_v32, 0.0  ;;  %20550 = vst [vmem:[#allocation18_spill] sm:$0xff] %v18020_v24  ;;  %20552 = vst [vmem:[#allocation19_spill] sm:$0xff] %v18026_v55 }
 0x8aa   :  { %v4904_v19 = vsub.f32 %v17947_v28, %v4888_v57  ;;  %4929 = vadd.xlane.f32.xlu1 %v4928_v9  ;;  %v4885_v37 = vpop.xlane.xlu0 %4884  ;;  %v4925_v47 = vsel %vm2778_vm9, %v17985_v21, 0.0  ;;  %v18003_v28 = vcombine.high %v17978_v63, %v17978_v63  ;;  %20556 = vst [vmem:[#allocation22_spill] sm:$0xff] %v18042_v11  ;;  %20557 = vst [vmem:[#allocation24_spill] sm:$0xff] %v18048_v31 }
 0x8ab   :  { %v4903_v53 = vsub.f32 %v17949_v51, %v4885_v37  ;;  %4926 = vadd.xlane.f32.xlu0 %v4925_v47  ;;  %v5915_v25 = vcombine.low %v18048_v31, %v18029_v6 }
 0x8ac   :  { %v4915_v20 = vmul.f32 1.442695, %v4904_v19  ;;  %v18032_v57 = vadd.f32 %v18003_v28, %v5800_v4  ;;  %v18039_v19 = vadd.f32 %v17981_v1, %v5795_v14 }
 0x8ad   :  { %v4913_v51 = vmul.f32 1.442695, %v4903_v53  ;;  %v5937_v2 = vrot.slane %v5915_v25, %v16858_v17 }
 0x8ae   :  { %16562 = vpow2.f32 %v4915_v20  ;;  %20554 = vst [vmem:[#allocation21_spill] sm:$0xff] %v18032_v57  ;;  %20555 = vst [vmem:[#allocation23_spill] sm:$0xff] %v18039_v19  ;;  %v5916_v53 = vcombine.low %v18032_v57, %v18020_v24  ;;  %v5913_v4 = vcombine.low %v18054_v54, %v18039_v19 }
 0x8af   :  { %16564 = vpow2.f32 %v4913_v51 }
 0x8b0   :  { %v18022_v12 = vpop.eup %16558  ;;  %v5944_v51 = vrot.slane %v5916_v53, %v16858_v17  ;;  %v5923_v7 = vrot.slane %v5913_v4, %v16858_v17 }
 0x8b1   :  { %v18034_v9 = vpop.eup %16560  ;;  %v4900_v59 = vpop.xlane.xlu1 %4899  ;;  %v4940_v27 = vsel %vm2782_vm8, %v18022_v12, 0.0 }
 0x8b2   :  { %v4908_v37 = vsub.f32 %v17955_v22, %v4900_v59  ;;  %4941 = vadd.xlane.f32.xlu1 %v4940_v27  ;;  %v4897_v47 = vpop.xlane.xlu0 %4896  ;;  %v4937_v44 = vsel %vm2778_vm9, %v18034_v9, 0.0  ;;  %v5914_v22 = vcombine.low %v18042_v11, %v18026_v55  ;;  %v5946_v16 = vcombine.low %v5937_v2, %v5944_v51  ;;  %v20559_v59 = vld [vmem:[#allocation15_spill] sm:$0xff] }
 0x8b3   :  { %v4907_v20 = vsub.f32 %v17957_v3, %v4897_v47  ;;  %4938 = vadd.xlane.f32.xlu0 %v4937_v44  ;;  %v5712_v3 = vrot.slane %v14198_v50, %v16858_v17 }
 0x8b4   :  { %v4923_v15 = vmul.f32 1.442695, %v4908_v37  ;;  %v5930_v14 = vrot.slane %v5914_v22, %v16858_v17  ;;  %v5960_v47 = vrot.slane %v5946_v16, %v16858_v17 }
 0x8b5   :  { %v4921_v34 = vmul.f32 1.442695, %v4907_v20  ;;  %v5802_v27 = vadd.f32 %v5712_v3, %v20559_v59 }
 0x8b6   :  { %16566 = vpow2.f32 %v4923_v15  ;;  %v5945_v37 = vcombine.low %v5923_v7, %v5930_v14 }
 0x8b7   :  { %16568 = vpow2.f32 %v4921_v34  ;;  %v18075_v44 = vadd.f32 %v17999_v29, %v5802_v27 }
 0x8b8   :  { %v18064_v33 = vpop.eup %16562  ;;  %v5953_v20 = vrot.slane %v5945_v37, %v16858_v17 }
 0x8b9   :  { %v16565_v5 = vpop.eup %16564  ;;  %v4934_v58 = vsel %vm2782_vm8, %v18064_v33, 0.0  ;;  %20560 = vst [vmem:[#allocation26_spill] sm:$0xff] %v18075_v44  ;;  %v5968_v34 = vrot.slane %v18075_v44, %v16858_v17 }
 0x8ba   :  { %4935 = vadd.xlane.f32.xlu1 %v4934_v58  ;;  %v4931_v35 = vsel %vm2778_vm9, %v16565_v5, 0.0  ;;  %v5961_v25 = vcombine.low %v5953_v20, %v5960_v47 }
 0x8bb   :  { %4932 = vadd.xlane.f32.xlu0 %v4931_v35  ;;  %v5975_v51 = vrot.slane %v5968_v34, %v16858_v17 }
 0x8bc   :  { %v6043_v4 = vsel %vm329_vm1, %v5961_v25, 0.0 }
 0x8bd   :  { %v6046_v3 = vsel %vm804_vm2, %v5975_v51, 0.0 }
 0x8c0   :  { %v16567_v53 = vpop.eup %16566 }
 0x8c1   :  { %v16569_v50 = vpop.eup %16568  ;;  %v4946_v15 = vsel %vm2782_vm8, %v16567_v53, 0.0 }
 0x8c2   :  { %4947 = vadd.xlane.f32.xlu1 %v4946_v15  ;;  %v4943_v22 = vsel %vm2778_vm9, %v16569_v50, 0.0 }
 0x8c3   :  { %4944 = vadd.xlane.f32.xlu0 %v4943_v22 }
 0x8c7   :  { %6044 = vadd.xlane.f32.xlu0 %v6043_v4 }
 0x8cb   :  { %6047 = vadd.xlane.f32.xlu0 %v6046_v3 }
 0x937   :  { %v4930_v14 = vpop.xlane.xlu1 %4929 }
 0x938   :  { %16570 = vrcp.f32 %v4930_v14  ;;  %v4927_v2 = vpop.xlane.xlu0 %4926 }
 0x939   :  { %16572 = vrcp.f32 %v4927_v2 }
 0x93f   :  { %v4942_v58 = vpop.xlane.xlu1 %4941 }
 0x940   :  { %16574 = vrcp.f32 %v4942_v58  ;;  %v4939_v35 = vpop.xlane.xlu0 %4938 }
 0x941   :  { %16576 = vrcp.f32 %v4939_v35 }
 0x942   :  { %v16571_v7 = vpop.eup %16570 }
 0x943   :  { %v16573_v16 = vpop.eup %16572  ;;  %v4958_v27 = vmul.f32 %v16571_v7, %v17983_v32 }
 0x944   :  { %v4957_v59 = vmul.f32 %v16573_v16, %v17985_v21 }
 0x946   :  { %15322 = vmatprep.mubr.msk.f32.mxu1 %vm2778_vm9, %v4957_v59  ;;  %v20561_v59 = vmov 0.0|0.0  }
 0x947   :  { %v4936_v37 = vpop.xlane.xlu1 %4935  ;;  %15323 = vmatmul.mubr.msk.f32.vlgmr.msra.gmra.mrb[42].mxu1 %vm2778_vm9, %v4958_v27 }
 0x948   :  { %16578 = vrcp.f32 %v4936_v37  ;;  %16164 = vmatpush3.bf16.msk.msra.mxu1 %vm17533_vm7, %v17922_v0  ;;  %v4933_v47 = vpop.xlane.xlu0 %4932  ;;  %v20562_v37 = vmov 0.0  }
 0x949   :  { %16580 = vrcp.f32 %v4933_v47  ;;  %15346 = vmatprep.subr.mxu1 %v17714_v23 }
 0x94a   :  { %v16575_v20 = vpop.eup %16574 }
 0x94b   :  { %v16577_v15 = vpop.eup %16576  ;;  %v4962_v32 = vmul.f32 %v16575_v20, %v18022_v12 }
 0x94c   :  { %v4961_v21 = vmul.f32 %v16577_v15, %v18034_v9 }
 0x94e   :  { %15336 = vmatprep.mubr.msk.f32.mxu1 %vm2778_vm9, %v4961_v21 }
 0x94f   :  { %v4948_v22 = vpop.xlane.xlu1 %4947  ;;  %15337 = vmatmul.mubr.msk.f32.vlgmr.msra.gmra.mrb[44].mxu1 %vm2778_vm9, %v4962_v32 }
 0x950   :  { %16582 = vrcp.f32 %v4948_v22  ;;  %v4945_v25 = vpop.xlane.xlu0 %4944  ;;  %15347 = vmatpush3.msra.mxu1 %v17714_v23 }
 0x951   :  { %16584 = vrcp.f32 %v4945_v25  ;;  %15356 = vmatprep.subr.mxu1 %v17721_v18 }
 0x952   :  { %v16579_v0 = vpop.eup %16578 }
 0x953   :  { %v16581_v34 = vpop.eup %16580  ;;  %v4960_v9 = vmul.f32 %v16579_v0, %v18064_v33 }
 0x954   :  { %v6045_v4 = vpop.xlane.xlu0 %6044  ;;  %v4959_v51 = vmul.f32 %v16581_v34, %v16565_v5 }
 0x956   :  { %15329 = vmatprep.mubr.msk.f32.mxu0 %vm2778_vm9, %v4959_v51 }
 0x957   :  { %15330 = vmatmul.mubr.msk.f32.vlgmr.msra.gmra.mrb[44].mxu0 %vm2778_vm9, %v4960_v9 }
 0x958   :  { %16170 = vmatpush3.bf16.msk.msra.mxu0 %vm17533_vm7, %v17938_v52  ;;  %v6048_v12 = vpop.xlane.xlu0 %6047 }
 0x959   :  { %v6056_v3 = vmul.f32 0.03125, %v6048_v12  ;;  %15351 = vmatprep.subr.mxu0 %v17727_v8 }
 0x95a   :  { %v16583_v23 = vpop.eup %16582 }
 0x95b   :  { %v16585_v14 = vpop.eup %16584  ;;  %v6098_v2 = vrot.slane %v6056_v3, %v17019_v40  ;;  %v4964_v5 = vmul.f32 %v16583_v23, %v16567_v53 }
 0x95c   :  { %v4963_v58 = vmul.f32 %v16585_v14, %v16569_v50 }
 0x95d   :  { %v18108_v33 = vsub.f32 %v18075_v44, %v6098_v2 }
 0x95e   :  { %15343 = vmatprep.mubr.msk.f32.mxu0 %vm2778_vm9, %v4963_v58 }
 0x95f   :  { %15344 = vmatmul.mubr.msk.f32.vlgmr.msra.gmra.mrb[46].mxu0 %vm2778_vm9, %v4964_v5  ;;  %v6179_v52 = vmul.f32 %v18108_v33, %v18108_v33 }
 0x960   :  { %15352 = vmatpush3.msra.mxu0 %v17727_v8 }
 0x961   :  { %v6262_v35 = vrot.slane %v6179_v52, %v16858_v17  ;;  %15361 = vmatprep.subr.mxu0 %v17734_v36  ;;  %v6055_v52 = vmul.f32 0.03125, %v6045_v4 }
 0x963   :  { %v6269_v7 = vrot.slane %v6262_v35, %v16858_v17  ;;  %v6082_v4 = vrot.slane %v6055_v52, %v20518_v45 }
 0x965   :  { %v6340_v53 = vsel %vm804_vm2, %v6269_v7, 0.0 }
 0x966   :  { %6341 = vadd.xlane.f32.xlu0 %v6340_v53 }
 0xa1a   :  { %v15324_v50 = vpop.f32.mrb[42].mxu1 }
 0xa1b   :  { %v5040_v16 = vpop.f32.mrb[43].mxu1 }
 0xa1c   :  { %15348 = vmatprep.mubr.msk.f32.mxu1 %vm2421_vm3, %v5040_v16 }
 0xa1d   :  { %15349 = vmatmul.mubr.msk.f32.vlgmr.msra.gmra.mrb[46].mxu1 %vm2421_vm3, %v15324_v50 }
 0xa1e   :  { %15357 = vmatpush3.msra.mxu1 %v17721_v18 }
 0xa1f   :  { %16171 = vmatprep.subr.bf16.mxu1 %v20561_v59 }
 0xa22   :  { %v15338_v8 = vpop.f32.mrb[44].mxu1 }
 0xa23   :  { %v5208_v27 = vpop.f32.mrb[45].mxu1 }
 0xa24   :  { %15358 = vmatprep.mubr.msk.f32.mxu1 %vm2421_vm3, %v5208_v27  ;;  %v6066_v27 = vrot.slane %v6055_v52, %v17019_v40 }
 0xa25   :  { %15359 = vmatmul.mubr.msk.f32.vlgmr.msra.gmra.mrb[48].mxu1 %vm2421_vm3, %v15338_v8 }
 0xa26   :  { %15374 = vmatprep.mubr.msk.f32.mxu1 %vm16713_vm0, %v20562_v37 }
 0xa2a   :  { %v15331_v47 = vpop.f32.mrb[44].mxu0 }
 0xa2b   :  { %v5124_v20 = vpop.f32.mrb[45].mxu0 }
 0xa2c   :  { %15353 = vmatprep.mubr.msk.f32.mxu0 %vm2421_vm3, %v5124_v20  ;;  %v6074_v20 = vrot.slane %v6055_v52, %v17025_v41 }
 0xa2d   :  { %15354 = vmatmul.mubr.msk.f32.vlgmr.msra.gmra.mrb[48].mxu0 %vm2421_vm3, %v15331_v47  ;;  %v6070_v47 = vrot.slane %v6055_v52, %v17022_v42 }
 0xa2e   :  { %15362 = vmatpush3.msra.mxu0 %v17734_v36 }
 0xa2f   :  { %16177 = vmatprep.subr.bf16.mxu0 %v20561_v59 }
 0xa32   :  { %v15345_v18 = vpop.f32.mrb[46].mxu0 }
 0xa33   :  { %v5292_v15 = vpop.f32.mrb[47].mxu0 }
 0xa34   :  { %15363 = vmatprep.mubr.msk.f32.mxu0 %vm2421_vm3, %v5292_v15  ;;  %v6086_v15 = vrot.slane %v6055_v52, %v20519_v46 }
 0xa35   :  { %15364 = vmatmul.mubr.msk.f32.vlgmr.msra.gmra.mrb[50].mxu0 %vm2421_vm3, %v15345_v18  ;;  %v6078_v18 = vrot.slane %v6055_v52, %v17028_v43 }
 0xa36   :  { %15399 = vmatprep.mubr.msk.f32.mxu0 %vm16713_vm0, %v20562_v37 }
 0xaf0   :  { %v15350_v21 = vpop.f32.mrb[46].mxu1 }
 0xaf1   :  { %v5373_v32 = vpop.f32.mrb[47].mxu1  ;;  %v5632_v34 = vsel %vm804_vm2, %v15350_v21, 0.0  ;;  %v6090_v21 = vrot.slane %v6055_v52, %v20520_v49 }
 0xaf2   :  { %v5625_v9 = vsel %vm329_vm1, %v5373_v32, 0.0  ;;  %v6094_v32 = vrot.slane %v6055_v52, %v17040_v48 }
 0xaf8   :  { %v15360_v22 = vpop.f32.mrb[48].mxu1 }
 0xaf9   :  { %v5535_v25 = vpop.f32.mrb[49].mxu1  ;;  %v5635_v23 = vsel %vm804_vm2, %v15360_v22, 0.0  ;;  %v18154_v22 = vsub.f32 %v18054_v54, %v6066_v27 }
 0xafa   :  { %v5628_v2 = vsel %vm329_vm1, %v5535_v25, 0.0  ;;  %v18157_v25 = vsub.f32 %v18039_v19, %v6070_v47 }
 0xb00   :  { %v15355_v0 = vpop.f32.mrb[48].mxu0 }
 0xb01   :  { %v5633_v36 = vsel %vm804_vm2, %v15355_v0, 0.0  ;;  %v5454_v51 = vpop.f32.mrb[49].mxu0  ;;  %v18160_v0 = vsub.f32 %v18042_v11, %v6074_v20 }
 0xb02   :  { %v5634_v12 = vadd.f32 %v5633_v36, %v5632_v34  ;;  %v5626_v3 = vsel %vm329_vm1, %v5454_v51, 0.0  ;;  %v18163_v34 = vsub.f32 %v18026_v55, %v6078_v18  ;;  %v18166_v36 = vsub.f32 %v18048_v31, %v6082_v4 }
 0xb03   :  { %v5627_v14 = vadd.f32 %v5626_v3, %v5625_v9  ;;  %v18169_v51 = vsub.f32 %v18029_v6, %v6086_v15  ;;  %v18172_v9 = vsub.f32 %v18032_v57, %v6090_v21  ;;  %v20565_v57 = vld [vmem:[#allocation14_spill] sm:$0xff] }
 0xb04   :  { %v5636_v58 = vadd.f32 %v5635_v23, %v5634_v12  ;;  %v18175_v12 = vsub.f32 %v18020_v24, %v6094_v32  ;;  %v6171_v23 = vmul.f32 %v18154_v22, %v18154_v22  ;;  %v6174_v52 = vmul.f32 %v18163_v34, %v18163_v34 }
 0xb05   :  { %v5629_v5 = vadd.f32 %v5628_v2, %v5627_v14 }
 0xb06   :  { %v6178_v27 = vmul.f32 %v18175_v12, %v18175_v12 }
 0xb08   :  { %v15365_v35 = vpop.f32.mrb[50].mxu0 }
 0xb09   :  { %v5637_v7 = vsel %vm804_vm2, %v15365_v35, 0.0  ;;  %v5616_v53 = vpop.f32.mrb[51].mxu0 }
 0xb0a   :  { %v5638_v50 = vadd.f32 %v5637_v7, %v5636_v58  ;;  %v5630_v16 = vsel %vm329_vm1, %v5616_v53, 0.0  ;;  %v6172_v58 = vmul.f32 %v18157_v25, %v18157_v25  ;;  %v6175_v53 = vmul.f32 %v18166_v36, %v18166_v36 }
 0xb0b   :  { %v5631_v8 = vadd.f32 %v5630_v16, %v5629_v5  ;;  %v6173_v5 = vmul.f32 %v18160_v0, %v18160_v0  ;;  %v6176_v16 = vmul.f32 %v18169_v51, %v18169_v51 }
 0xb0c   :  { %5641 = vst.msk [vmem:[#allocation2 + $0x18] sm:$0x1] %vm804_vm2, %v5638_v50  ;;  %v6207_v15 = vcombine.low %v6171_v23, %v6172_v58 }
 0xb0d   :  { %5640 = vst.msk [vmem:[#allocation2 + $0x10] sm:$0xff] %vm329_vm1, %v5631_v8  ;;  %v6177_v8 = vmul.f32 %v18172_v9, %v18172_v9  ;;  %v6208_v21 = vcombine.low %v6173_v5, %v6174_v52  ;;  %v20564_v52 = vld [vmem:[#allocation44_spill] sm:$0xff] }
 0xb0f   :  { %v6210_v26 = vcombine.low %v6177_v8, %v6178_v27 }
 0xb13   :  { %v14199_v3 = vld.sshfl [vmem:[#allocation2 + $0x18] sm:$0x1 pattern:$0x75316420] }
 0xb14   :  { %v5775_v14 = vrot.slane %v14199_v3, %v16858_v17  ;;  %v5644_v2 = vld [vmem:[#allocation2 + $0x10] sm:$0xff] }
 0xb15   :  { %v5713_v35 = vcombine.high %v5644_v2, %v5644_v2  ;;  %v5720_v7 = vrot.slane %v5644_v2, %v16858_v17 }
 0xb16   :  { %v5811_v50 = vadd.f32 %v5775_v14, %v17015_v38 }
 0xb17   :  { %v5727_v47 = vrot.slane %v5713_v35, %v16858_v17  ;;  %v5728_v20 = vcombine.high %v5720_v7, %v5720_v7  ;;  %v5736_v18 = vrot.slane %v5720_v7, %v16858_v17  ;;  %v6209_v35 = vcombine.low %v6175_v53, %v6176_v16  ;;  %v20567_v16 = vld [vmem:[#allocation16_spill] sm:$0xff] }
 0xb18   :  { %v18199_v4 = vadd.f32 %v17999_v29, %v5811_v50 }
 0xb19   :  { %v5729_v38 = vcombine.high %v5727_v47, %v5727_v47  ;;  %v5743_v32 = vrot.slane %v5727_v47, %v16858_v17  ;;  %v5750_v3 = vrot.slane %v5728_v20, %v16858_v17  ;;  %v5758_v14 = vcombine.high %v5736_v18, %v5736_v18 }
 0xb1a   :  { %20563 = vst [vmem:[#allocation27_spill] sm:$0xff] %v18199_v4  ;;  %v6031_v2 = vrot.slane %v18199_v4, %v16858_v17  ;;  %v5803_v60 = vadd.f32 %v5736_v18, %v17582_v10  ;;  %v6217_v20 = vrot.slane %v6207_v15, %v16858_v17  ;;  %v20566_v10 = vld [vmem:[#allocation45_spill] sm:$0xff] }
 0xb1b   :  { %v5757_v7 = vrot.slane %v5729_v38, %v16858_v17  ;;  %v5759_v44 = vcombine.high %v5743_v32, %v5743_v32  ;;  %v5760_v50 = vcombine.high %v5750_v3, %v5750_v3  ;;  %v5804_v23 = vadd.f32 %v5750_v3, %v17585_v61  ;;  %v20571_v15 = vld [vmem:[#allocation17_spill] sm:$0xff] }
 0xb1c   :  { %v6038_v58 = vrot.slane %v6031_v2, %v16858_v17  ;;  %v5805_v5 = vadd.f32 %v5758_v14, %v16995_v13  ;;  %v5807_v47 = vadd.f32 %v5743_v32, %v20564_v52  ;;  %v18217_v18 = vadd.f32 %v17999_v29, %v5803_v60 }
 0xb1d   :  { %v5761_v24 = vcombine.high %v5757_v7, %v5757_v7  ;;  %v5806_v6 = vadd.f32 %v5760_v50, %v20565_v57  ;;  %v5808_v53 = vadd.f32 %v5757_v7, %v20566_v10  ;;  %v5809_v8 = vadd.f32 %v5759_v44, %v20567_v16  ;;  %v6633_v10 = vld [vmem:[%s20278_s13] sm:$0xff]  ;;  %v6635_v16 = vld [vmem:[%s20278_s13 + $0x10] sm:$0xff] }
 0xb1e   :  { %v6052_v27 = vsel %vm804_vm2, %v6038_v58, 0.0  ;;  %20568 = vst [vmem:[#allocation28_spill] sm:$0xff] %v18217_v18  ;;  %v18220_v61 = vadd.f32 %v17981_v1, %v5804_v23  ;;  %v18223_v13 = vadd.f32 %v18016_v62, %v5805_v5  ;;  %v18230_v32 = vadd.f32 %v17978_v63, %v5807_v47 }
 0xb1f   :  { %6053 = vadd.xlane.f32.xlu0 %v6052_v27  ;;  %v5810_v38 = vadd.f32 %v5761_v24, %v20571_v15  ;;  %v18227_v57 = vadd.f32 %v18007_v30, %v5806_v6  ;;  %v18233_v44 = vadd.f32 %v17975_v56, %v5808_v53  ;;  %v6224_v1 = vrot.slane %v6208_v21, %v16858_v17  ;;  %v6634_v53 = vld [vmem:[%s20278_s13 + $0x8] sm:$0xff]  ;;  %v6636_v27 = vld [vmem:[%s20278_s13 + $0x18] sm:$0xff] }
 0xb20   :  { %20569 = vst [vmem:[#allocation29_spill] sm:$0xff] %v18220_v61  ;;  %20570 = vst [vmem:[#allocation30_spill] sm:$0xff] %v18223_v13  ;;  %v5976_v60 = vcombine.low %v18217_v18, %v18220_v61  ;;  %v6231_v29 = vrot.slane %v6209_v35, %v16858_v17  ;;  %v6238_v62 = vrot.slane %v6210_v26, %v16858_v17 }
 0xb21   :  { %20572 = vst [vmem:[#allocation31_spill] sm:$0xff] %v18227_v57  ;;  %20573 = vst [vmem:[#allocation32_spill] sm:$0xff] %v18230_v32  ;;  %v18241_v24 = vadd.f32 %v18003_v28, %v5809_v8  ;;  %v18244_v30 = vadd.f32 %v17995_v39, %v5810_v38  ;;  %v5977_v63 = vcombine.low %v18223_v13, %v18227_v57  ;;  %v18275_v38 = vpop.xlane.xlu0 %6341 }
 0xb22   :  { %20574 = vst [vmem:[#allocation33_spill] sm:$0xff] %v18233_v44  ;;  %v5978_v56 = vcombine.low %v18230_v32, %v18233_v44  ;;  %v5986_v21 = vrot.slane %v5976_v60, %v16858_v17  ;;  %v6239_v26 = vcombine.low %v6217_v20, %v6224_v1  ;;  %v6240_v2 = vcombine.low %v6231_v29, %v6238_v62  ;;  %v14201_v62 = vld [vmem:[%s20276_s11] ss:$0 sm:$0xff] }
 0xb23   :  { %20575 = vst [vmem:[#allocation34_spill] sm:$0xff] %v18241_v24  ;;  %20576 = vst [vmem:[#allocation35_spill] sm:$0xff] %v18244_v30  ;;  %v5979_v6 = vcombine.low %v18241_v24, %v18244_v30  ;;  %v5993_v3 = vrot.slane %v5977_v63, %v16858_v17  ;;  %v16172_v8 = vpack.c.bf16 %v6634_v53, %v6633_v10  ;;  %v14202_v63 = vld [vmem:[%s20277_s12] ss:$0 sm:$0xff] }
 0xb24   :  { %v6000_v28 = vrot.slane %v5978_v56, %v16858_v17  ;;  %v6247_v23 = vrot.slane %v6239_v26, %v16858_v17  ;;  %v6254_v58 = vrot.slane %v6240_v2, %v16858_v17  ;;  %v16175_v15 = vpack.c.bf16 %v6636_v27, %v6635_v16 }
 0xb25   :  { %v6007_v14 = vrot.slane %v5979_v6, %v16858_v17  ;;  %v6008_v39 = vcombine.low %v5986_v21, %v5993_v3  ;;  %16173 = vmatpush3.bf16.msra.mxu1 %v16172_v8  ;;  %v6478_v6 = vcombine.high %v14201_v62, %v14201_v62  ;;  %v6558_v21 = vcombine.high %v14202_v63, %v14202_v63 }
 0xb26   :  { %v6255_v47 = vcombine.low %v6247_v23, %v6254_v58  ;;  %16174 = vmatprep.subr.bf16.mxu1 %v20561_v59  ;;  %v6485_v3 = vrot.slane %v14201_v62, %v16858_v17 }
 0xb27   :  { %v6009_v35 = vcombine.low %v6000_v28, %v6007_v14  ;;  %v6016_v7 = vrot.slane %v6008_v39, %v16858_v17  ;;  %v6565_v14 = vrot.slane %v14202_v63, %v16858_v17  ;;  %v6492_v2 = vrot.slane %v6478_v6, %v16858_v17 }
 0xb28   :  { %v6337_v20 = vsel %vm329_vm1, %v6255_v47, 0.0 }
 0xb29   :  { %v6023_v50 = vrot.slane %v6009_v35, %v16858_v17  ;;  %16176 = vmatpush3.bf16.msra.mxu1 %v16175_v15  ;;  %v6493_v35 = vcombine.high %v6485_v3, %v6485_v3 }
 0xb2b   :  { %v6024_v5 = vcombine.low %v6016_v7, %v6023_v50  ;;  %v6572_v7 = vrot.slane %v6558_v21, %v16858_v17 }
 0xb2d   :  { %v6049_v52 = vsel %vm329_vm1, %v6024_v5, 0.0 }
 0xb2e   :  { %6050 = vadd.xlane.f32.xlu1 %v6049_v52 }
 0xb32   :  { %6338 = vadd.xlane.f32.xlu1 %v6337_v20 }
 0xbac   :  { %v6054_v60 = vpop.xlane.xlu0 %6053 }
 0xbad   :  { %v6058_v1 = vmul.f32 0.03125, %v6054_v60 }
 0xbaf   :  { %v6134_v29 = vrot.slane %v6058_v1, %v17019_v40 }
 0xbb1   :  { %v18285_v56 = vsub.f32 %v18199_v4, %v6134_v29 }
 0xbb3   :  { %20577 = vst [vmem:[#allocation36_spill] sm:$0xff] %v18285_v56  ;;  %v6188_v39 = vmul.f32 %v18285_v56, %v18285_v56 }
 0xbbb   :  { %v6051_v26 = vpop.xlane.xlu1 %6050 }
 0xbbc   :  { %v6057_v28 = vmul.f32 0.03125, %v6051_v26 }
 0xbbe   :  { %v6102_v50 = vrot.slane %v6057_v28, %v17019_v40  ;;  %v6106_v23 = vrot.slane %v6057_v28, %v17022_v42  ;;  %v6110_v58 = vrot.slane %v6057_v28, %v17025_v41  ;;  %v6114_v5 = vrot.slane %v6057_v28, %v17028_v43 }
 0xbbf   :  { %v6339_v52 = vpop.xlane.xlu1 %6338  ;;  %v6118_v47 = vrot.slane %v6057_v28, %v20518_v45  ;;  %v6122_v20 = vrot.slane %v6057_v28, %v20519_v46  ;;  %v6126_v10 = vrot.slane %v6057_v28, %v20520_v49  ;;  %v6130_v53 = vrot.slane %v6057_v28, %v17040_v48 }
 0xbc0   :  { %v6349_v16 = vmul.f32 0.03125, %v6339_v52  ;;  %v18302_v8 = vsub.f32 %v18217_v18, %v6102_v50  ;;  %v18305_v27 = vsub.f32 %v18220_v61, %v6106_v23  ;;  %v18308_v15 = vsub.f32 %v18223_v13, %v6110_v58 }
 0xbc1   :  { %v18311_v60 = vsub.f32 %v18227_v57, %v6114_v5  ;;  %v18314_v1 = vsub.f32 %v18230_v32, %v6118_v47  ;;  %v18317_v29 = vsub.f32 %v18233_v44, %v6122_v20  ;;  %v18320_v62 = vsub.f32 %v18241_v24, %v6126_v10 }
 0xbc2   :  { %v6353_v63 = vadd.f32 1e-05, %v6349_v16  ;;  %v18323_v6 = vsub.f32 %v18244_v30, %v6130_v53  ;;  %v6180_v21 = vmul.f32 %v18302_v8, %v18302_v8  ;;  %v6181_v26 = vmul.f32 %v18305_v27, %v18305_v27 }
 0xbc3   :  { %v6182_v28 = vmul.f32 %v18308_v15, %v18308_v15  ;;  %v6183_v50 = vmul.f32 %v18311_v60, %v18311_v60  ;;  %v6184_v23 = vmul.f32 %v18314_v1, %v18314_v1  ;;  %v6185_v58 = vmul.f32 %v18317_v29, %v18317_v29 }
 0xbc4   :  { %16586 = vrsqrt.f32 %v6353_v63  ;;  %v6186_v5 = vmul.f32 %v18320_v62, %v18320_v62  ;;  %v6187_v52 = vmul.f32 %v18323_v6, %v18323_v6  ;;  %v6270_v47 = vcombine.low %v6180_v21, %v6181_v26 }
 0xbc5   :  { %v6271_v20 = vcombine.low %v6182_v28, %v6183_v50  ;;  %v6272_v10 = vcombine.low %v6184_v23, %v6185_v58  ;;  %v6494_v53 = vcombine.high %v6492_v2, %v6492_v2  ;;  %v6573_v16 = vcombine.high %v6565_v14, %v6565_v14 }
 0xbc6   :  { %v6273_v4 = vcombine.low %v6186_v5, %v6187_v52  ;;  %v6280_v57 = vrot.slane %v6270_v47, %v16858_v17  ;;  %v6325_v61 = vrot.slane %v6188_v39, %v16858_v17  ;;  %v6574_v18 = vcombine.high %v6572_v7, %v6572_v7 }
 0xbc7   :  { %v6287_v30 = vrot.slane %v6271_v20, %v16858_v17  ;;  %v6294_v63 = vrot.slane %v6272_v10, %v16858_v17  ;;  %v18346_v44 = vrot.slane %v6485_v3, %v16858_v17  ;;  %v18350_v21 = vrot.slane %v6492_v2, %v16858_v17 }
 0xbc8   :  { %v6301_v32 = vrot.slane %v6273_v4, %v16858_v17  ;;  %v18353_v28 = vrot.slane %v6493_v35, %v16858_v17  ;;  %v18356_v50 = vrot.slane %v6494_v53, %v16858_v17  ;;  %v18359_v39 = vrot.slane %v6572_v7, %v16858_v17 }
 0xbc9   :  { %v6302_v26 = vcombine.low %v6280_v57, %v6287_v30  ;;  %v6332_v58 = vrot.slane %v6325_v61, %v16858_v17  ;;  %v18363_v3 = vrot.slane %v6573_v16, %v16858_v17  ;;  %v18366_v4 = vrot.slane %v6574_v18, %v16858_v17 }
 0xbca   :  { %v6303_v23 = vcombine.low %v6294_v63, %v6301_v32  ;;  %v18370_v30 = vrot.slane %v6565_v14, %v16858_v17  ;;  %v18375_v35 = vcombine.high %v18346_v44, %v18346_v44  ;;  %v18379_v61 = vcombine.high %v18350_v21, %v18350_v21 }
 0xbcb   :  { %v6310_v57 = vrot.slane %v6302_v26, %v16858_v17  ;;  %v18383_v32 = vcombine.high %v18353_v28, %v18353_v28  ;;  %v18387_v18 = vcombine.high %v18356_v50, %v18356_v50  ;;  %v18395_v7 = vcombine.high %v18359_v39, %v18359_v39 }
 0xbcc   :  { %v6317_v2 = vrot.slane %v6303_v23, %v16858_v17  ;;  %v18391_v14 = vcombine.high %v18370_v30, %v18370_v30  ;;  %v6346_v47 = vsel %vm804_vm2, %v6332_v58, 0.0  ;;  %v18400_v20 = vcombine.high %v18363_v3, %v18363_v3 }
 0xbcd   :  { %v18404_v10 = vcombine.high %v18366_v4, %v18366_v4 }
 0xbce   :  { %v16587_v5 = vpop.eup %16586  ;;  %v6318_v52 = vcombine.low %v6310_v57, %v6317_v2 }
 0xbcf   :  { %v6368_v53 = vrot.slane %v16587_v5, %v17019_v40  ;;  %v6372_v16 = vrot.slane %v16587_v5, %v17022_v42  ;;  %v6376_v63 = vrot.slane %v16587_v5, %v17025_v41  ;;  %v6380_v26 = vrot.slane %v16587_v5, %v17028_v43 }
 0xbd0   :  { %v6343_v23 = vsel %vm329_vm1, %v6318_v52, 0.0  ;;  %v6384_v58 = vrot.slane %v16587_v5, %v20518_v45  ;;  %v6388_v57 = vrot.slane %v16587_v5, %v20519_v46  ;;  %v6392_v2 = vrot.slane %v16587_v5, %v20520_v49 }
 0xbd1   :  { %6344 = vadd.xlane.f32.xlu1 %v6343_v23  ;;  %v6396_v13 = vrot.slane %v16587_v5, %v17040_v48  ;;  %v6455_v24 = vmul.f32 %v6368_v53, %v18154_v22  ;;  %v6456_v31 = vmul.f32 %v6372_v16, %v18157_v25  ;;  %v6457_v55 = vmul.f32 %v6376_v63, %v18160_v0 }
 0xbd2   :  { %v6458_v11 = vmul.f32 %v6380_v26, %v18163_v34  ;;  %v6459_v54 = vmul.f32 %v6384_v58, %v18166_v36  ;;  %v6460_v52 = vmul.f32 %v6388_v57, %v18169_v51  ;;  %v6461_v19 = vmul.f32 %v6392_v2, %v18172_v9 }
 0xbd3   :  { %v6462_v56 = vmul.f32 %v6396_v13, %v18175_v12  ;;  %v6535_v23 = vmul.f32 %v18346_v44, %v6455_v24  ;;  %v6536_v5 = vmul.f32 %v18353_v28, %v6456_v31  ;;  %v6537_v22 = vmul.f32 %v18375_v35, %v6457_v55 }
 0xbd4   :  { %v6538_v25 = vmul.f32 %v18383_v32, %v6458_v11  ;;  %v6539_v0 = vmul.f32 %v18350_v21, %v6459_v54  ;;  %v6540_v34 = vmul.f32 %v18356_v50, %v6460_v52  ;;  %v6541_v36 = vmul.f32 %v18379_v61, %v6461_v19 }
 0xbd5   :  { %6347 = vadd.xlane.f32.xlu1 %v6346_v47  ;;  %v6542_v51 = vmul.f32 %v18387_v18, %v6462_v56  ;;  %v6615_v9 = vadd.f32 %v18370_v30, %v6535_v23  ;;  %v6616_v12 = vadd.f32 %v18363_v3, %v6536_v5  ;;  %v6617_v13 = vadd.f32 %v18391_v14, %v6537_v22  ;;  %v6888_v22 = vld [vmem:[%s20280_s15] sm:$0xff] }
 0xbd6   :  { %v6618_v31 = vadd.f32 %v18400_v20, %v6538_v25  ;;  %v6619_v55 = vadd.f32 %v18359_v39, %v6539_v0  ;;  %v6620_v11 = vadd.f32 %v18366_v4, %v6540_v34  ;;  %v6621_v54 = vadd.f32 %v18395_v7, %v6541_v36  ;;  %v6889_v25 = vld [vmem:[%s20280_s15 + $0x8] sm:$0xff]  ;;  %v6890_v0 = vld [vmem:[%s20280_s15 + $0x10] sm:$0xff]  ;;  %v6891_v36 = vld [vmem:[%s20280_s15 + $0x18] sm:$0xff] }
 0xbd7   :  { %v6622_v24 = vadd.f32 %v18404_v10, %v6542_v51  ;;  %v6662_v19 = vcombine.low %v6615_v9, %v6616_v12  ;;  %v16178_v34 = vpack.c.bf16 %v6889_v25, %v6888_v22  ;;  %v16181_v51 = vpack.c.bf16 %v6891_v36, %v6890_v0  ;;  %v6892_v9 = vld [vmem:[%s20280_s15 + $0x20] sm:$0xff]  ;;  %v6893_v12 = vld [vmem:[%s20280_s15 + $0x28] sm:$0xff] }
 0xbd8   :  { %v6663_v47 = vcombine.low %v6617_v13, %v6618_v31  ;;  %v6664_v53 = vcombine.low %v6619_v55, %v6620_v11  ;;  %v16184_v13 = vpack.c.bf16 %v6893_v12, %v6892_v9  ;;  %v6894_v31 = vld [vmem:[%s20280_s15 + $0x30] sm:$0xff]  ;;  %v6895_v55 = vld [vmem:[%s20280_s15 + $0x38] sm:$0xff]  ;;  %v6350_v11 = vmul.f32 0.03125, %v18275_v38 }
 0xbd9   :  { %v6665_v56 = vcombine.low %v6621_v54, %v6622_v24  ;;  %v6672_v16 = vrot.slane %v6662_v19, %v16858_v17  ;;  %16179 = vmatpush3.bf16.msra.mxu0 %v16178_v34  ;;  %v16187_v54 = vpack.c.bf16 %v6895_v55, %v6894_v31 }
 0xbda   :  { %v6679_v63 = vrot.slane %v6663_v47, %v16858_v17  ;;  %v6686_v26 = vrot.slane %v6664_v53, %v16858_v17  ;;  %16180 = vmatprep.subr.bf16.mxu0 %v20561_v59  ;;  %v6354_v24 = vadd.f32 1e-05, %v6350_v11 }
 0xbdb   :  { %v6693_v58 = vrot.slane %v6665_v56, %v16858_v17 }
 0xbdc   :  { %v6694_v57 = vcombine.low %v6672_v16, %v6679_v63  ;;  %16588 = vrsqrt.f32 %v6354_v24 }
 0xbdd   :  { %v6695_v2 = vcombine.low %v6686_v26, %v6693_v58  ;;  %16182 = vmatpush3.bf16.msra.mxu0 %v16181_v51 }
 0xbde   :  { %v6702_v52 = vrot.slane %v6694_v57, %v16858_v17  ;;  %16183 = vmatprep.subr.bf16.mxu0 %v20561_v59 }
 0xbdf   :  { %v6709_v23 = vrot.slane %v6695_v2, %v16858_v17 }
 0xbe1   :  { %v6710_v5 = vcombine.low %v6702_v52, %v6709_v23  ;;  %16185 = vmatpush3.bf16.msra.mxu0 %v16184_v13 }
 0xbe2   :  { %16186 = vmatprep.subr.bf16.mxu0 %v20561_v59 }
 0xbe3   :  { %15375 = vmatmul.mubr.msk.f32.vlgmr.msra.gmra.mrb[50].mxu1 %vm329_vm1, %v6710_v5 }
 0xbe4   :  { %15377 = vmatprep.mubr.msk.f32.mxu1 %vm16713_vm0, %v20562_v37 }
 0xbe5   :  { %16188 = vmatpush3.bf16.msra.mxu0 %v16187_v54 }
 0xbe6   :  { %v16589_v19 = vpop.eup %16588 }
 0xbe7   :  { %v6400_v56 = vrot.slane %v16589_v19, %v17019_v40 }
 0xbe9   :  { %v6463_v58 = vmul.f32 %v6400_v56, %v18108_v33 }
 0xbeb   :  { %v6543_v38 = vmul.f32 %v18346_v44, %v6463_v58 }
 0xbed   :  { %v6623_v52 = vadd.f32 %v18370_v30, %v6543_v38 }
 0xc5e   :  { %v6345_v47 = vpop.xlane.xlu1 %6344 }
 0xc5f   :  { %v6351_v53 = vmul.f32 0.03125, %v6345_v47 }
 0xc61   :  { %v6355_v16 = vadd.f32 1e-05, %v6351_v53  ;;  %v20578_v53 = vld [vmem:[#allocation36_spill] sm:$0xff] }
 0xc62   :  { %v6348_v63 = vpop.xlane.xlu1 %6347 }
 0xc63   :  { %16590 = vrsqrt.f32 %v6355_v16  ;;  %v6352_v26 = vmul.f32 0.03125, %v6348_v63 }
 0xc65   :  { %v6356_v57 = vadd.f32 1e-05, %v6352_v26 }
 0xc67   :  { %16592 = vrsqrt.f32 %v6356_v57 }
 0xc6d   :  { %v16591_v2 = vpop.eup %16590 }
 0xc6e   :  { %v6404_v23 = vrot.slane %v16591_v2, %v17019_v40  ;;  %v6408_v5 = vrot.slane %v16591_v2, %v17022_v42  ;;  %v6412_v22 = vrot.slane %v16591_v2, %v17025_v41  ;;  %v6416_v25 = vrot.slane %v16591_v2, %v17028_v43 }
 0xc6f   :  { %v6420_v0 = vrot.slane %v16591_v2, %v20518_v45  ;;  %v6424_v34 = vrot.slane %v16591_v2, %v20519_v46  ;;  %v6428_v33 = vrot.slane %v16591_v2, %v20520_v49  ;;  %v6432_v36 = vrot.slane %v16591_v2, %v17040_v48 }
 0xc70   :  { %v6464_v51 = vmul.f32 %v6404_v23, %v18302_v8  ;;  %v6465_v9 = vmul.f32 %v6408_v5, %v18305_v27  ;;  %v6466_v12 = vmul.f32 %v6412_v22, %v18308_v15  ;;  %v6467_v13 = vmul.f32 %v6416_v25, %v18311_v60 }
 0xc71   :  { %v16593_v31 = vpop.eup %16592  ;;  %v6468_v55 = vmul.f32 %v6420_v0, %v18314_v1  ;;  %v6469_v11 = vmul.f32 %v6424_v34, %v18317_v29  ;;  %v6470_v54 = vmul.f32 %v6428_v33, %v18320_v62  ;;  %v6471_v24 = vmul.f32 %v6432_v36, %v18323_v6 }
 0xc72   :  { %v6436_v19 = vrot.slane %v16593_v31, %v17019_v40  ;;  %v6544_v47 = vmul.f32 %v18346_v44, %v6464_v51  ;;  %v6545_v8 = vmul.f32 %v18353_v28, %v6465_v9  ;;  %v6546_v27 = vmul.f32 %v18375_v35, %v6466_v12 }
 0xc73   :  { %v6547_v15 = vmul.f32 %v18383_v32, %v6467_v13  ;;  %v6548_v60 = vmul.f32 %v18350_v21, %v6468_v55  ;;  %v6549_v1 = vmul.f32 %v18356_v50, %v6469_v11  ;;  %v6550_v29 = vmul.f32 %v18379_v61, %v6470_v54 }
 0xc74   :  { %v6472_v62 = vmul.f32 %v6436_v19, %v20578_v53  ;;  %v6624_v6 = vadd.f32 %v18370_v30, %v6544_v47  ;;  %v6625_v56 = vadd.f32 %v18363_v3, %v6545_v8  ;;  %v6626_v16 = vadd.f32 %v18391_v14, %v6546_v27 }
 0xc75   :  { %v6627_v28 = vadd.f32 %v18400_v20, %v6547_v15  ;;  %v6628_v35 = vadd.f32 %v18359_v39, %v6548_v60  ;;  %v6629_v32 = vadd.f32 %v18366_v4, %v6549_v1  ;;  %v6630_v21 = vadd.f32 %v18395_v7, %v6550_v29 }
 0xc76   :  { %v6711_v63 = vcombine.low %v6623_v52, %v6624_v6  ;;  %v6712_v50 = vcombine.low %v6625_v56, %v6626_v16  ;;  %v6551_v61 = vmul.f32 %v18387_v18, %v6471_v24  ;;  %v6552_v26 = vmul.f32 %v18346_v44, %v6472_v62 }
 0xc77   :  { %v6713_v58 = vcombine.low %v6627_v28, %v6628_v35  ;;  %v6714_v57 = vcombine.low %v6629_v32, %v6630_v21 }
 0xc78   :  { %v6721_v3 = vrot.slane %v6711_v63, %v16858_v17  ;;  %v6728_v14 = vrot.slane %v6712_v50, %v16858_v17  ;;  %v6632_v20 = vadd.f32 %v18370_v30, %v6552_v26  ;;  %v6631_v7 = vadd.f32 %v18404_v10, %v6551_v61  ;;  %v14203_v10 = vld [vmem:[%s20279_s14] ss:$0 sm:$0xff] }
 0xc79   :  { %v6735_v39 = vrot.slane %v6713_v58, %v16858_v17  ;;  %v6742_v4 = vrot.slane %v6714_v57, %v16858_v17  ;;  %v18541_v58 = vld [vmem:[%s20281_s16] ss:$0 sm:$0xff] }
 0xc7a   :  { %v6743_v38 = vcombine.low %v6721_v3, %v6728_v14  ;;  %v6760_v52 = vcombine.low %v6631_v7, %v6632_v20 }
 0xc7b   :  { %v6744_v2 = vcombine.low %v6735_v39, %v6742_v4 }
 0xc7c   :  { %v6751_v18 = vrot.slane %v6743_v38, %v16858_v17  ;;  %v6767_v5 = vrot.slane %v6760_v52, %v16858_v17 }
 0xc7d   :  { %v6758_v44 = vrot.slane %v6744_v2, %v16858_v17 }
 0xc7e   :  { %v6774_v30 = vrot.slane %v6767_v5, %v16858_v17 }
 0xc7f   :  { %v6759_v23 = vcombine.low %v6751_v18, %v6758_v44 }
 0xc81   :  { %15378 = vmatmul.mubr.msk.f32.gmra.mrb[52].mxu1 %vm329_vm1, %v6759_v23 }
 0xc82   :  { %15380 = vmatprep.mubr.msk.f32.mxu1 %vm16713_vm0, %v20562_v37 }
 0xc85   :  { %15381 = vmatmul.mubr.msk.f32.gmra.mrb[54].mxu1 %vm329_vm1, %v6774_v30 }
 0xcb6   :  { %v6847_v22 = vpop.f32.mrb[50].mxu1 }
 0xcb7   :  { %v6848_v25 = vadd.f32 %v14203_v10, %v6847_v22  ;;  %v15376_v0 = vpop.f32.mrb[51].mxu1 }
 0xcb9   :  { %v6864_v34 = vmul.f32 0.044715, %v6848_v25  ;;  %v6861_v13 = vmul.f32 0.5, %v6848_v25 }
 0xcbb   :  { %v6867_v33 = vmul.f32 %v6864_v34, %v6848_v25  ;;  %v20583_v34 = vld [vmem:[#allocation22_spill] sm:$0xff] }
 0xcbd   :  { %v6870_v36 = vmul.f32 %v6867_v33, %v6848_v25 }
 0xcbf   :  { %v6873_v51 = vadd.f32 %v6870_v36, %v6848_v25  ;;  %v20581_v25 = vld [vmem:[#allocation25_spill] sm:$0xff] }
 0xcc1   :  { %v6876_v9 = vmul.f32 0.7978846, %v6873_v51  ;;  %v20585_v51 = vld [vmem:[#allocation19_spill] sm:$0xff] }
 0xcc3   :  { %16594 = vtanh.f32 %v6876_v9 }
 0xccd   :  { %v16595_v12 = vpop.eup %16594 }
 0xcce   :  { %v6882_v31 = vadd.f32 1.0, %v16595_v12  ;;  %v20587_v12 = vld [vmem:[#allocation24_spill] sm:$0xff] }
 0xcd0   :  { %v6885_v55 = vmul.f32 %v6882_v31, %v6861_v13  ;;  %v20589_v31 = vld [vmem:[#allocation20_spill] sm:$0xff] }
 0xcd2   :  { %15400 = vmatmul.mubr.msk.f32.vlgmr.msra.gmra.mrb[52].mxu0 %vm6903_vm10, %v6885_v55 }
 0xcd3   :  { %15402 = vmatprep.mubr.msk.f32.mxu0 %vm16713_vm0, %v20562_v37 }
 0xd54   :  { %v6852_v11 = vpop.f32.mrb[52].mxu1 }
 0xd55   :  { %v6853_v54 = vadd.f32 %v14203_v10, %v6852_v11  ;;  %v15379_v24 = vpop.f32.mrb[53].mxu1 }
 0xd57   :  { %v6865_v19 = vmul.f32 0.044715, %v6853_v54  ;;  %v6862_v35 = vmul.f32 0.5, %v6853_v54 }
 0xd58   :  { %v6857_v47 = vpop.f32.mrb[54].mxu1 }
 0xd59   :  { %v6868_v8 = vmul.f32 %v6865_v19, %v6853_v54  ;;  %v6858_v27 = vadd.f32 %v14203_v10, %v6857_v47  ;;  %v15382_v15 = vpop.f32.mrb[55].mxu1  ;;  %v20579_v10 = vld [vmem:[#allocation23_spill] sm:$0xff]  ;;  %v20593_v19 = vld [vmem:[#allocation18_spill] sm:$0xff] }
 0xd5b   :  { %v6871_v60 = vmul.f32 %v6868_v8, %v6853_v54  ;;  %v6866_v1 = vmul.f32 0.044715, %v6858_v27  ;;  %v6863_v50 = vmul.f32 0.5, %v6858_v27 }
 0xd5d   :  { %v6874_v29 = vadd.f32 %v6871_v60, %v6853_v54  ;;  %v6869_v53 = vmul.f32 %v6866_v1, %v6858_v27  ;;  %v20591_v54 = vld [vmem:[#allocation21_spill] sm:$0xff] }
 0xd5f   :  { %v6872_v62 = vmul.f32 %v6869_v53, %v6858_v27  ;;  %v6877_v6 = vmul.f32 0.7978846, %v6874_v29 }
 0xd61   :  { %v6875_v56 = vadd.f32 %v6872_v62, %v6858_v27  ;;  %16596 = vtanh.f32 %v6877_v6 }
 0xd63   :  { %v6878_v16 = vmul.f32 0.7978846, %v6875_v56 }
 0xd65   :  { %16598 = vtanh.f32 %v6878_v16 }
 0xd6b   :  { %v16597_v28 = vpop.eup %16596 }
 0xd6c   :  { %v6883_v32 = vadd.f32 1.0, %v16597_v28 }
 0xd6e   :  { %v6886_v21 = vmul.f32 %v6883_v32, %v6862_v35 }
 0xd6f   :  { %v16599_v63 = vpop.eup %16598 }
 0xd70   :  { %15403 = vmatmul.mubr.msk.f32.gmra.mrb[54].mxu0 %vm6903_vm10, %v6886_v21  ;;  %v6884_v61 = vadd.f32 1.0, %v16599_v63 }
 0xd71   :  { %15405 = vmatprep.mubr.msk.f32.mxu0 %vm16713_vm0, %v20562_v37 }
 0xd72   :  { %v6887_v26 = vmul.f32 %v6884_v61, %v6863_v50 }
 0xd74   :  { %15406 = vmatmul.mubr.msk.f32.gmra.mrb[56].mxu0 %vm6903_vm10, %v6887_v26 }
 0xda5   :  { %v6979_v57 = vpop.f32.mrb[52].mxu0 }
 0xda6   :  { %v6980_v3 = vadd.f32 %v18541_v58, %v6979_v57  ;;  %v15401_v14 = vpop.f32.mrb[53].mxu0 }
 0xda8   :  { %v6996_v20 = vcombine.high %v6980_v3, %v6980_v3  ;;  %v7003_v39 = vrot.slane %v6980_v3, %v16858_v17  ;;  %v20595_v3 = vld [vmem:[#allocation26_spill] sm:$0xff] }
 0xdaa   :  { %v7010_v4 = vrot.slane %v6996_v20, %v16858_v17  ;;  %v7011_v7 = vcombine.high %v7003_v39, %v7003_v39  ;;  %v7019_v38 = vrot.slane %v7003_v39, %v16858_v17 }
 0xdac   :  { %v7012_v2 = vcombine.high %v7010_v4, %v7010_v4  ;;  %v7026_v52 = vrot.slane %v7010_v4, %v16858_v17  ;;  %v7033_v18 = vrot.slane %v7011_v7, %v16858_v17  ;;  %v7041_v44 = vcombine.high %v7019_v38, %v7019_v38 }
 0xdad   :  { %v18554_v0 = vadd.f32 %v7019_v38, %v20581_v25 }
 0xdae   :  { %v7040_v23 = vrot.slane %v7012_v2, %v16858_v17  ;;  %v7042_v5 = vcombine.high %v7026_v52, %v7026_v52  ;;  %v7043_v30 = vcombine.high %v7033_v18, %v7033_v18  ;;  %v18551_v22 = vadd.f32 %v7033_v18, %v20579_v10 }
 0xdaf   :  { %20582 = vst [vmem:[#allocation38_spill] sm:$0xff] %v18554_v0  ;;  %v18557_v33 = vadd.f32 %v7041_v44, %v20583_v34  ;;  %v18563_v13 = vadd.f32 %v7026_v52, %v20587_v12 }
 0xdb0   :  { %20580 = vst [vmem:[#allocation37_spill] sm:$0xff] %v18551_v22  ;;  %v7044_v36 = vcombine.high %v7040_v23, %v7040_v23  ;;  %v18560_v9 = vadd.f32 %v7043_v30, %v20585_v51  ;;  %v18566_v55 = vadd.f32 %v7040_v23, %v20589_v31  ;;  %v7174_v11 = vcombine.low %v18554_v0, %v18551_v22 }
 0xdb1   :  { %20584 = vst [vmem:[#allocation39_spill] sm:$0xff] %v18557_v33  ;;  %20588 = vst [vmem:[#allocation41_spill] sm:$0xff] %v18563_v13  ;;  %v18571_v24 = vadd.f32 %v7042_v5, %v20591_v54 }
 0xdb2   :  { %20586 = vst [vmem:[#allocation40_spill] sm:$0xff] %v18560_v9  ;;  %20590 = vst [vmem:[#allocation13_spill] sm:$0xff] %v18566_v55  ;;  %v18574_v47 = vadd.f32 %v7044_v36, %v20593_v19  ;;  %v7175_v8 = vcombine.low %v18557_v33, %v18560_v9  ;;  %v7176_v27 = vcombine.low %v18563_v13, %v18566_v55 }
 0xdb3   :  { %20592 = vst [vmem:[#allocation9_spill] sm:$0xff] %v18571_v24  ;;  %v7184_v60 = vrot.slane %v7174_v11, %v16858_v17 }
 0xdb4   :  { %20594 = vst [vmem:[#allocation11_spill] sm:$0xff] %v18574_v47  ;;  %v7177_v15 = vcombine.low %v18571_v24, %v18574_v47  ;;  %v7191_v1 = vrot.slane %v7175_v8, %v16858_v17  ;;  %v7198_v29 = vrot.slane %v7176_v27, %v16858_v17 }
 0xdb6   :  { %v7205_v53 = vrot.slane %v7177_v15, %v16858_v17  ;;  %v7206_v62 = vcombine.low %v7184_v60, %v7191_v1 }
 0xdb8   :  { %v7207_v6 = vcombine.low %v7198_v29, %v7205_v53  ;;  %v7214_v56 = vrot.slane %v7206_v62, %v16858_v17 }
 0xdba   :  { %v7221_v16 = vrot.slane %v7207_v6, %v16858_v17 }
 0xdbc   :  { %v7222_v28 = vcombine.low %v7214_v56, %v7221_v16 }
 0xdbe   :  { %v7304_v35 = vsel %vm329_vm1, %v7222_v28, 0.0 }
 0xdbf   :  { %7305 = vadd.xlane.f32.xlu0 %v7304_v35 }
 0xe43   :  { %v6984_v32 = vpop.f32.mrb[54].mxu0 }
 0xe44   :  { %v18590_v21 = vadd.f32 %v18541_v58, %v6984_v32  ;;  %v15404_v63 = vpop.f32.mrb[55].mxu0 }
 0xe46   :  { %v18594_v50 = vrot.slane %v18590_v21, %v16858_v17 }
 0xe47   :  { %v18596_v61 = vpop.f32.mrb[56].mxu0 }
 0xe48   :  { %v18600_v26 = vrot.slane %v18594_v50, %v16858_v17  ;;  %v15407_v57 = vpop.f32.mrb[57].mxu0 }
 0xe4a   :  { %v18604_v14 = vadd.f32 %v18600_v26, %v20595_v3 }
 0xe4c   :  { %20596 = vst [vmem:[#allocation12_spill] sm:$0xff] %v18604_v14  ;;  %v7306_v20 = vpop.xlane.xlu0 %7305  ;;  %v7229_v4 = vrot.slane %v18604_v14, %v16858_v17 }
 0xe4d   :  { %v7316_v39 = vmul.f32 0.03125, %v7306_v20 }
 0xe4e   :  { %v7236_v7 = vrot.slane %v7229_v4, %v16858_v17 }
 0xe4f   :  { %v7327_v38 = vrot.slane %v7316_v39, %v17019_v40  ;;  %v7331_v2 = vrot.slane %v7316_v39, %v17022_v42  ;;  %v7335_v52 = vrot.slane %v7316_v39, %v17025_v41  ;;  %v7339_v18 = vrot.slane %v7316_v39, %v17028_v43 }
 0xe50   :  { %v7343_v44 = vrot.slane %v7316_v39, %v20518_v45  ;;  %v7347_v23 = vrot.slane %v7316_v39, %v20519_v46  ;;  %v7307_v5 = vsel %vm804_vm2, %v7236_v7, 0.0  ;;  %v7351_v30 = vrot.slane %v7316_v39, %v20520_v49 }
 0xe51   :  { %v7355_v10 = vrot.slane %v7316_v39, %v17040_v48  ;;  %v18619_v25 = vsub.f32 %v18554_v0, %v7327_v38  ;;  %7308 = vadd.xlane.f32.xlu1 %v7307_v5  ;;  %v18622_v34 = vsub.f32 %v18551_v22, %v7331_v2  ;;  %v18625_v36 = vsub.f32 %v18557_v33, %v7335_v52  ;;  %v14262_v33 = vld [vmem:[%s20273_s8 + $0xf8] sm:$0xff] }
 0xe52   :  { %v18628_v51 = vsub.f32 %v18560_v9, %v7339_v18  ;;  %v18631_v12 = vsub.f32 %v18563_v13, %v7343_v44  ;;  %v18634_v31 = vsub.f32 %v18566_v55, %v7347_v23  ;;  %v18637_v11 = vsub.f32 %v18571_v24, %v7351_v30  ;;  %v14213_v30 = vld [vmem:[%s20491_s24 + $0x1] ss:$0 sm:$0xff] }
 0xe53   :  { %v18640_v54 = vsub.f32 %v18574_v47, %v7355_v10  ;;  %v7432_v19 = vmul.f32 %v18619_v25, %v18619_v25  ;;  %v7433_v8 = vmul.f32 %v18622_v34, %v18622_v34  ;;  %v7434_v27 = vmul.f32 %v18625_v36, %v18625_v36  ;;  %v14214_v10 = vld [vmem:[%s20492_s26 + $0x1] ss:$0 sm:$0xff] }
 0xe54   :  { %v7435_v15 = vmul.f32 %v18628_v51, %v18628_v51  ;;  %v7436_v60 = vmul.f32 %v18631_v12, %v18631_v12  ;;  %v7437_v1 = vmul.f32 %v18634_v31, %v18634_v31  ;;  %v7438_v29 = vmul.f32 %v18637_v11, %v18637_v11 }
 0xe55   :  { %v7439_v53 = vmul.f32 %v18640_v54, %v18640_v54  ;;  %v7468_v62 = vcombine.low %v7432_v19, %v7433_v8  ;;  %v7739_v8 = vcombine.high %v14213_v30, %v14213_v30 }
 0xe56   :  { %v7469_v6 = vcombine.low %v7434_v27, %v7435_v15  ;;  %v7470_v56 = vcombine.low %v7436_v60, %v7437_v1  ;;  %v7819_v27 = vcombine.high %v14214_v10, %v14214_v10  ;;  %v7746_v1 = vrot.slane %v14213_v30, %v16858_v17 }
 0xe57   :  { %v7471_v16 = vcombine.low %v7438_v29, %v7439_v53  ;;  %v7478_v28 = vrot.slane %v7468_v62, %v16858_v17  ;;  %v7753_v29 = vrot.slane %v7739_v8, %v16858_v17  ;;  %v7826_v62 = vrot.slane %v14214_v10, %v16858_v17 }
 0xe58   :  { %v7485_v35 = vrot.slane %v7469_v6, %v16858_v17  ;;  %v7492_v32 = vrot.slane %v7470_v56, %v16858_v17  ;;  %v7833_v6 = vrot.slane %v7819_v27, %v16858_v17  ;;  %v7754_v56 = vcombine.high %v7746_v1, %v7746_v1 }
 0xe59   :  { %v7499_v63 = vrot.slane %v7471_v16, %v16858_v17  ;;  %v7755_v16 = vcombine.high %v7753_v29, %v7753_v29 }
 0xe5a   :  { %v7500_v57 = vcombine.low %v7478_v28, %v7485_v35  ;;  %v7834_v28 = vcombine.high %v7826_v62, %v7826_v62  ;;  %v7835_v35 = vcombine.high %v7833_v6, %v7833_v6 }
 0xe5b   :  { %v7501_v3 = vcombine.low %v7492_v32, %v7499_v63  ;;  %v18685_v32 = vrot.slane %v7746_v1, %v16858_v17  ;;  %v18688_v63 = vrot.slane %v7753_v29, %v16858_v17 }
 0xe5c   :  { %v7508_v20 = vrot.slane %v7500_v57, %v16858_v17  ;;  %v18691_v57 = vrot.slane %v7754_v56, %v16858_v17 }
 0xe5d   :  { %v7515_v39 = vrot.slane %v7501_v3, %v16858_v17  ;;  %v18694_v3 = vrot.slane %v7755_v16, %v16858_v17 }
 0xe5f   :  { %v7516_v4 = vcombine.low %v7508_v20, %v7515_v39  ;;  %v18697_v20 = vrot.slane %v7826_v62, %v16858_v17  ;;  %v18700_v39 = vrot.slane %v7833_v6, %v16858_v17 }
 0xe61   :  { %v7598_v7 = vsel %vm329_vm1, %v7516_v4, 0.0  ;;  %v18703_v4 = vrot.slane %v7834_v28, %v16858_v17  ;;  %v18730_v30 = vcombine.high %v18700_v39, %v18700_v39 }
 0xe62   :  { %7599 = vadd.xlane.f32.xlu0 %v7598_v7  ;;  %v18706_v7 = vrot.slane %v7835_v35, %v16858_v17 }
 0xe63   :  { %v18734_v10 = vcombine.high %v18703_v4, %v18703_v4 }
 0xede   :  { %v7309_v38 = vpop.xlane.xlu1 %7308 }
 0xedf   :  { %v7317_v2 = vmul.f32 0.03125, %v7309_v38  ;;  %v18710_v38 = vcombine.high %v18685_v32, %v18685_v32 }
 0xee1   :  { %v7359_v52 = vrot.slane %v7317_v2, %v17019_v40  ;;  %v18714_v2 = vcombine.high %v18688_v63, %v18688_v63 }
 0xee3   :  { %v18667_v18 = vsub.f32 %v18604_v14, %v7359_v52  ;;  %v18718_v52 = vcombine.high %v18691_v57, %v18691_v57 }
 0xee5   :  { %v7440_v44 = vmul.f32 %v18667_v18, %v18667_v18 }
 0xee7   :  { %v7523_v23 = vrot.slane %v7440_v44, %v16858_v17  ;;  %v18722_v44 = vcombine.high %v18694_v3, %v18694_v3 }
 0xee9   :  { %v7530_v5 = vrot.slane %v7523_v23, %v16858_v17 }
 0xeeb   :  { %v7601_v19 = vsel %vm804_vm2, %v7530_v5, 0.0  ;;  %v18726_v5 = vcombine.high %v18697_v20, %v18697_v20 }
 0xeec   :  { %7602 = vadd.xlane.f32.xlu1 %v7601_v19  ;;  %v18738_v19 = vcombine.high %v18706_v7, %v18706_v7 }
 0xeef   :  { %v7600_v15 = vpop.xlane.xlu0 %7599 }
 0xef0   :  { %v7610_v60 = vmul.f32 0.03125, %v7600_v15 }
 0xef2   :  { %v7614_v53 = vadd.f32 1e-05, %v7610_v60 }
 0xef4   :  { %16600 = vrsqrt.f32 %v7614_v53 }
 0xefe   :  { %v16601_v23 = vpop.eup %16600 }
 0xeff   :  { %v7629_v8 = vrot.slane %v16601_v23, %v17019_v40  ;;  %v7633_v27 = vrot.slane %v16601_v23, %v17022_v42  ;;  %v7637_v15 = vrot.slane %v16601_v23, %v17025_v41  ;;  %v7641_v60 = vrot.slane %v16601_v23, %v17028_v43 }
 0xf00   :  { %v7645_v1 = vrot.slane %v16601_v23, %v20518_v45  ;;  %v7649_v29 = vrot.slane %v16601_v23, %v20519_v46  ;;  %v7653_v53 = vrot.slane %v16601_v23, %v20520_v49  ;;  %v7657_v62 = vrot.slane %v16601_v23, %v17040_v48 }
 0xf01   :  { %v7716_v6 = vmul.f32 %v7629_v8, %v18619_v25  ;;  %v7717_v56 = vmul.f32 %v7633_v27, %v18622_v34  ;;  %v7718_v16 = vmul.f32 %v7637_v15, %v18625_v36  ;;  %v7719_v28 = vmul.f32 %v7641_v60, %v18628_v51 }
 0xf02   :  { %v7720_v35 = vmul.f32 %v7645_v1, %v18631_v12  ;;  %v7721_v37 = vmul.f32 %v7649_v29, %v18634_v31  ;;  %v7722_v59 = vmul.f32 %v7653_v53, %v18637_v11  ;;  %v7723_v14 = vmul.f32 %v7657_v62, %v18640_v54 }
 0xf03   :  { %v7796_v0 = vmul.f32 %v18685_v32, %v7716_v6  ;;  %v7797_v23 = vmul.f32 %v18691_v57, %v7717_v56  ;;  %v7798_v25 = vmul.f32 %v18710_v38, %v7718_v16  ;;  %v7799_v34 = vmul.f32 %v18718_v52, %v7719_v28  ;;  %v14215_v28 = vld [vmem:[%s20486_s2 + $0x80] sm:$0xff] }
 0xf04   :  { %v7800_v36 = vmul.f32 %v18688_v63, %v7720_v35  ;;  %v7801_v51 = vmul.f32 %v18694_v3, %v7721_v37  ;;  %v7802_v12 = vmul.f32 %v18714_v2, %v7722_v59  ;;  %v7803_v31 = vmul.f32 %v18722_v44, %v7723_v14  ;;  %v14216_v35 = vld [vmem:[%s20486_s2 + $0x88] sm:$0xff] }
 0xf05   :  { %v7876_v11 = vadd.f32 %v18697_v20, %v7796_v0  ;;  %v7877_v54 = vadd.f32 %v18703_v4, %v7797_v23  ;;  %v7878_v8 = vadd.f32 %v18726_v5, %v7798_v25  ;;  %v7879_v27 = vadd.f32 %v18734_v10, %v7799_v34  ;;  %v14223_v23 = vld [vmem:[%s20486_s2 + $0xc0] sm:$0xff] }
 0xf06   :  { %v7880_v15 = vadd.f32 %v18700_v39, %v7800_v36  ;;  %v7881_v60 = vadd.f32 %v18706_v7, %v7801_v51  ;;  %v7882_v1 = vadd.f32 %v18730_v30, %v7802_v12  ;;  %v7883_v37 = vadd.f32 %v18738_v19, %v7803_v31  ;;  %v14224_v36 = vld [vmem:[%s20486_s2 + $0xc8] sm:$0xff] }
 0xf07   :  { %v7959_v29 = vcombine.low %v7876_v11, %v7877_v54  ;;  %v7960_v59 = vcombine.low %v7878_v8, %v7879_v27  ;;  %v18785_v34 = vpack.c.bf16 %v14216_v35, %v14215_v28  ;;  %v18791_v12 = vpack.c.bf16 %v14224_v36, %v14223_v23  ;;  %v14217_v11 = vld [vmem:[%s20486_s2 + $0x90] sm:$0xff]  ;;  %v14218_v54 = vld [vmem:[%s20486_s2 + $0x98] sm:$0xff] }
 0xf08   :  { %v7961_v53 = vcombine.low %v7880_v15, %v7881_v60  ;;  %v7962_v14 = vcombine.low %v7882_v1, %v7883_v37  ;;  %v14225_v8 = vld [vmem:[%s20486_s2 + $0xd0] sm:$0xff]  ;;  %v18809_v15 = vpack.c.bf16 %v14218_v54, %v14217_v11  ;;  %v14226_v60 = vld [vmem:[%s20486_s2 + $0xd8] sm:$0xff]  ;;  %v14219_v37 = vld [vmem:[%s20486_s2 + $0xa0] sm:$0xff] }
 0xf09   :  { %v7969_v0 = vrot.slane %v7959_v29, %v16858_v17  ;;  %v7976_v62 = vrot.slane %v7960_v59, %v16858_v17  ;;  %16190 = vmatprep.subr.bf16.mxu1 %v18785_v34  ;;  %16206 = vmatprep.subr.bf16.mxu0 %v18791_v12  ;;  %v18814_v1 = vpack.c.bf16 %v14226_v60, %v14225_v8  ;;  %v14220_v29 = vld [vmem:[%s20486_s2 + $0xa8] sm:$0xff]  ;;  %v14231_v59 = vld [vmem:[%s20272_s7 + $0x80] sm:$0xff]  ;;  %v14221_v36 = vld [vmem:[%s20486_s2 + $0xb0] sm:$0xff] }
 0xf0a   :  { %v7983_v6 = vrot.slane %v7961_v53, %v16858_v17  ;;  %v7990_v56 = vrot.slane %v7962_v14, %v16858_v17  ;;  %16192 = vmatpush3.bf16.msra.mxu1 %v18785_v34  ;;  %16208 = vmatpush3.bf16.msra.mxu0 %v18791_v12  ;;  %v18833_v53 = vpack.c.bf16 %v14220_v29, %v14219_v37  ;;  %v14232_v14 = vld [vmem:[%s20272_s7 + $0x88] sm:$0xff]  ;;  %v14233_v11 = vld [vmem:[%s20272_s7 + $0x90] sm:$0xff]  ;;  %v14227_v8 = vld [vmem:[%s20486_s2 + $0xe0] sm:$0xff] }
 0xf0b   :  { %v7991_v16 = vcombine.low %v7969_v0, %v7976_v62  ;;  %16194 = vmatprep.subr.bf16.mxu1 %v18809_v15  ;;  %16210 = vmatprep.subr.bf16.mxu0 %v18814_v1  ;;  %v18838_v0 = vpack.c.bf16 %v14232_v14, %v14231_v59  ;;  %v14228_v29 = vld [vmem:[%s20486_s2 + $0xe8] sm:$0xff]  ;;  %v14239_v59 = vld [vmem:[%s20272_s7 + $0xc0] sm:$0xff] }
 0xf0c   :  { %v7992_v25 = vcombine.low %v7983_v6, %v7990_v56  ;;  %v14240_v14 = vld [vmem:[%s20272_s7 + $0xc8] sm:$0xff] }
 0xf0d   :  { %v7999_v51 = vrot.slane %v7991_v16, %v16858_v17  ;;  %20597 = vst [vmem:[#allocation6_spill] sm:$0xff] %v18838_v0 }
 0xf0e   :  { %v8006_v31 = vrot.slane %v7992_v25, %v16858_v17  ;;  %16196 = vmatpush3.bf16.msra.mxu1 %v18809_v15  ;;  %16212 = vmatpush3.bf16.msra.mxu0 %v18814_v1 }
 0xf0f   :  { %16198 = vmatprep.subr.bf16.mxu1 %v18833_v53  ;;  %16222 = vmatprep.subr.bf16.mxu0 %v18838_v0 }
 0xf10   :  { %v18806_v27 = vcombine.low %v7999_v51, %v8006_v31  ;;  %v14222_v31 = vld [vmem:[%s20486_s2 + $0xb8] sm:$0xff] }
 0xf11   :  { %v18865_v60 = vpack.c.bf16 %v14222_v31, %v14221_v36  ;;  %v14235_v36 = vld [vmem:[%s20272_s7 + $0xa0] sm:$0xff] }
 0xf12   :  { %15416 = vmatprep.mubr.msk.f32.mxu1 %vm329_vm1, %v18806_v27  ;;  %15438 = vmatprep.mubr.msk.f32.mxu0 %vm329_vm1, %v18806_v27  ;;  %v14247_v31 = vld [vmem:[%s20273_s8 + $0x80] sm:$0xff] }
 0xf13   :  { %20598 = vst [vmem:[#allocation8_spill] sm:$0xff] %v18865_v60 }
 0xf79   :  { %v7603_v62 = vpop.xlane.xlu1 %7602 }
 0xf7a   :  { %v7611_v6 = vmul.f32 0.03125, %v7603_v62  ;;  %v18888_v62 = vpack.c.bf16 %v14228_v29, %v14227_v8  ;;  %v14237_v29 = vld [vmem:[%s20272_s7 + $0xb0] sm:$0xff] }
 0xf7c   :  { %v7615_v56 = vadd.f32 1e-05, %v7611_v6  ;;  %20600 = vst [vmem:[#allocation7_spill] sm:$0xff] %v18888_v62  ;;  %v18890_v6 = vpack.c.bf16 %v14240_v14, %v14239_v59  ;;  %v14238_v59 = vld [vmem:[%s20272_s7 + $0xb8] sm:$0xff]  ;;  %v14249_v14 = vld [vmem:[%s20273_s8 + $0x90] sm:$0xff] }
 0xf7e   :  { %16602 = vrsqrt.f32 %v7615_v56  ;;  %20601 = vst [vmem:[#allocation15_spill] sm:$0xff] %v18890_v6  ;;  %v14229_v56 = vld [vmem:[%s20486_s2 + $0xf0] sm:$0xff] }
 0xf88   :  { %v16603_v16 = vpop.eup %16602 }
 0xf89   :  { %v7661_v28 = vrot.slane %v16603_v16, %v17019_v40  ;;  %v14230_v16 = vld [vmem:[%s20486_s2 + $0xf8] sm:$0xff] }
 0xf8b   :  { %v7724_v35 = vmul.f32 %v7661_v28, %v18667_v18  ;;  %v14234_v18 = vld [vmem:[%s20272_s7 + $0x98] sm:$0xff]  ;;  %v14241_v28 = vld [vmem:[%s20272_s7 + $0xd0] sm:$0xff] }
 0xf8c   :  { %v18867_v37 = vpack.c.bf16 %v14234_v18, %v14233_v11  ;;  %v14248_v11 = vld [vmem:[%s20273_s8 + $0x88] sm:$0xff] }
 0xf8d   :  { %v7804_v23 = vmul.f32 %v18685_v32, %v7724_v35  ;;  %v14242_v35 = vld [vmem:[%s20272_s7 + $0xd8] sm:$0xff]  ;;  %v18940_v8 = vpack.c.bf16 %v14248_v11, %v14247_v31  ;;  %v14256_v31 = vld [vmem:[%s20273_s8 + $0xc8] sm:$0xff] }
 0xf8e   :  { %20599 = vst [vmem:[#allocation10_spill] sm:$0xff] %v18867_v37 }
 0xf8f   :  { %v7884_v25 = vadd.f32 %v18697_v20, %v7804_v23  ;;  %v18910_v23 = vpack.c.bf16 %v14230_v16, %v14229_v56  ;;  %20605 = vst [vmem:[#allocation16_spill] sm:$0xff] %v18940_v8  ;;  %v14250_v56 = vld [vmem:[%s20273_s8 + $0x98] sm:$0xff]  ;;  %v18958_v16 = vpack.c.bf16 %v14238_v59, %v14237_v29  ;;  %v14245_v59 = vld [vmem:[%s20272_s7 + $0xf0] sm:$0xff] }
 0xf91   :  { %v8014_v51 = vrot.slane %v7884_v25, %v16858_v17  ;;  %20602 = vst [vmem:[#allocation44_spill] sm:$0xff] %v18910_v23  ;;  %v18912_v25 = vpack.c.bf16 %v14242_v35, %v14241_v28  ;;  %20606 = vst [vmem:[#allocation17_spill] sm:$0xff] %v18958_v16  ;;  %v14243_v28 = vld [vmem:[%s20272_s7 + $0xe0] sm:$0xff]  ;;  %v14244_v35 = vld [vmem:[%s20272_s7 + $0xe8] sm:$0xff] }
 0xf92   :  { %v18982_v11 = vpack.c.bf16 %v14244_v35, %v14243_v28  ;;  %v14258_v28 = vld [vmem:[%s20273_s8 + $0xd8] sm:$0xff] }
 0xf93   :  { %v18860_v54 = vrot.slane %v8014_v51, %v16858_v17  ;;  %20603 = vst [vmem:[#allocation14_spill] sm:$0xff] %v18912_v25  ;;  %v14236_v51 = vld [vmem:[%s20272_s7 + $0xa8] sm:$0xff] }
 0xf94   :  { %v18936_v18 = vpack.c.bf16 %v14236_v51, %v14235_v36  ;;  %v18968_v36 = vpack.c.bf16 %v14250_v56, %v14249_v14  ;;  %v14255_v51 = vld [vmem:[%s20273_s8 + $0xc0] sm:$0xff]  ;;  %20608 = vst [vmem:[#allocation23_spill] sm:$0xff] %v18982_v11  ;;  %v14246_v14 = vld [vmem:[%s20272_s7 + $0xf8] sm:$0xff]  ;;  %v14257_v56 = vld [vmem:[%s20273_s8 + $0xd0] sm:$0xff] }
 0xf95   :  { %15417 = vmatmul.mubr.msk.f32.vlgmr.msra.gmra.mrb[56].mxu1 %vm329_vm1, %v18860_v54  ;;  %15439 = vmatmul.mubr.msk.f32.vlgmr.msra.gmra.mrb[58].mxu0 %vm329_vm1, %v18860_v54  ;;  %v18987_v29 = vpack.c.bf16 %v14256_v31, %v14255_v51  ;;  %v19006_v35 = vpack.c.bf16 %v14246_v14, %v14245_v59  ;;  %v14251_v51 = vld [vmem:[%s20273_s8 + $0xa0] sm:$0xff]  ;;  %v14252_v31 = vld [vmem:[%s20273_s8 + $0xa8] sm:$0xff]  ;;  %v19016_v13 = vpack.c.bf16 %v14258_v28, %v14257_v56  ;;  %v14253_v14 = vld [vmem:[%s20273_s8 + $0xb0] sm:$0xff] }
 0xf96   :  { %16200 = vmatpush3.bf16.msra.mxu1 %v18833_v53  ;;  %16224 = vmatpush3.bf16.msra.mxu0 %v18838_v0  ;;  %20604 = vst [vmem:[#allocation45_spill] sm:$0xff] %v18936_v18  ;;  %20607 = vst [vmem:[#allocation36_spill] sm:$0xff] %v18968_v36  ;;  %v19024_v59 = vpack.c.bf16 %v14252_v31, %v14251_v51  ;;  %v14254_v56 = vld [vmem:[%s20273_s8 + $0xb8] sm:$0xff]  ;;  %v14259_v51 = vld [vmem:[%s20273_s8 + $0xe0] sm:$0xff] }
 0xf97   :  { %15427 = vmatprep.mubr.msk.f32.mxu1 %vm329_vm1, %v18806_v27  ;;  %15460 = vmatprep.mubr.msk.f32.mxu0 %vm329_vm1, %v18806_v27  ;;  %20609 = vst [vmem:[#allocation25_spill] sm:$0xff] %v18987_v29  ;;  %20610 = vst [vmem:[#allocation22_spill] sm:$0xff] %v19006_v35  ;;  %v19039_v28 = vpack.c.bf16 %v14254_v56, %v14253_v14  ;;  %v14260_v31 = vld [vmem:[%s20273_s8 + $0xe8] sm:$0xff]  ;;  %v14261_v56 = vld [vmem:[%s20273_s8 + $0xf0] sm:$0xff] }
 0xf98   :  { %16202 = vmatprep.subr.bf16.mxu1 %v18865_v60  ;;  %16226 = vmatprep.subr.bf16.mxu0 %v18867_v37  ;;  %20611 = vst [vmem:[#allocation19_spill] sm:$0xff] %v19016_v13  ;;  %20612 = vst [vmem:[#allocation24_spill] sm:$0xff] %v19024_v59  ;;  %v19055_v14 = vpack.c.bf16 %v14260_v31, %v14259_v51  ;;  %v19065_v22 = vpack.c.bf16 %v14262_v33, %v14261_v56 }
 0xf99   :  { %20613 = vst [vmem:[#allocation20_spill] sm:$0xff] %v19039_v28 }
 0xf9a   :  { %16204 = vmatpush3.bf16.msra.mxu1 %v18865_v60  ;;  %16228 = vmatpush3.bf16.msra.mxu0 %v18867_v37  ;;  %20614 = vst [vmem:[#allocation21_spill] sm:$0xff] %v19055_v14  ;;  %20615 = vst [vmem:[#allocation18_spill] sm:$0xff] %v19065_v22 }
 0xf9b   :  { %16214 = vmatprep.subr.bf16.mxu1 %v18888_v62  ;;  %16238 = vmatprep.subr.bf16.mxu0 %v18890_v6 }
 0xf9d   :  { %15428 = vmatmul.mubr.msk.f32.vlgmr.msra.gmra.mrb[58].mxu1 %vm329_vm1, %v18860_v54  ;;  %15461 = vmatmul.mubr.msk.f32.vlgmr.msra.gmra.mrb[60].mxu0 %vm329_vm1, %v18860_v54 }
 0xf9e   :  { %16216 = vmatpush3.bf16.msra.mxu1 %v18888_v62  ;;  %15449 = vmatprep.mubr.msk.f32.mxu1 %vm329_vm1, %v18806_v27 }
 0xf9f   :  { %16240 = vmatpush3.bf16.msra.mxu0 %v18890_v6  ;;  %15482 = vmatprep.mubr.msk.f32.mxu0 %vm329_vm1, %v18806_v27 }
 0xfa0   :  { %16218 = vmatprep.subr.bf16.mxu1 %v18910_v23  ;;  %16242 = vmatprep.subr.bf16.mxu0 %v18912_v25 }
 0xfa2   :  { %16220 = vmatpush3.bf16.msra.mxu1 %v18910_v23 }
 0xfa3   :  { %16244 = vmatpush3.bf16.msra.mxu0 %v18912_v25  ;;  %16230 = vmatprep.subr.bf16.mxu1 %v18936_v18 }
 0xfa4   :  { %16254 = vmatprep.subr.bf16.mxu0 %v18940_v8 }
 0xfa5   :  { %15450 = vmatmul.mubr.msk.f32.vlgmr.msra.gmra.mrb[60].mxu1 %vm329_vm1, %v18860_v54 }
 0xfa6   :  { %15483 = vmatmul.mubr.msk.f32.vlgmr.msra.gmra.mrb[62].mxu0 %vm329_vm1, %v18860_v54  ;;  %16232 = vmatpush3.bf16.msra.mxu1 %v18936_v18 }
 0xfa7   :  { %15471 = vmatprep.mubr.msk.f32.mxu1 %vm329_vm1, %v18806_v27  ;;  %16256 = vmatpush3.bf16.msra.mxu0 %v18940_v8 }
 0xfa8   :  { %15504 = vmatprep.mubr.msk.f32.mxu0 %vm329_vm1, %v18806_v27  ;;  %16234 = vmatprep.subr.bf16.mxu1 %v18958_v16 }
 0xfa9   :  { %16258 = vmatprep.subr.bf16.mxu0 %v18968_v36 }
 0xfaa   :  { %16236 = vmatpush3.bf16.msra.mxu1 %v18958_v16 }
 0xfab   :  { %16260 = vmatpush3.bf16.msra.mxu0 %v18968_v36  ;;  %16246 = vmatprep.subr.bf16.mxu1 %v18982_v11 }
 0xfac   :  { %16270 = vmatprep.subr.bf16.mxu0 %v18987_v29 }
 0xfad   :  { %15472 = vmatmul.mubr.msk.f32.vlgmr.msra.gmra.mrb[62].mxu1 %vm329_vm1, %v18860_v54 }
 0xfae   :  { %15505 = vmatmul.mubr.msk.f32.vlgmr.msra.gmra.mrb[64].mxu0 %vm329_vm1, %v18860_v54  ;;  %16248 = vmatpush3.bf16.msra.mxu1 %v18982_v11 }
 0xfaf   :  { %15493 = vmatprep.mubr.msk.f32.mxu1 %vm329_vm1, %v18806_v27  ;;  %16272 = vmatpush3.bf16.msra.mxu0 %v18987_v29 }
 0xfb0   :  { %15526 = vmatprep.mubr.msk.f32.mxu0 %vm329_vm1, %v18806_v27  ;;  %16250 = vmatprep.subr.bf16.mxu1 %v19006_v35 }
 0xfb1   :  { %16274 = vmatprep.subr.bf16.mxu0 %v19016_v13 }
 0xfb2   :  { %16252 = vmatpush3.bf16.msra.mxu1 %v19006_v35 }
 0xfb3   :  { %16276 = vmatpush3.bf16.msra.mxu0 %v19016_v13  ;;  %16262 = vmatprep.subr.bf16.mxu1 %v19024_v59 }
 0xfb5   :  { %15494 = vmatmul.mubr.msk.f32.vlgmr.msra.gmra.mrb[64].mxu1 %vm329_vm1, %v18860_v54 }
 0xfb6   :  { %15527 = vmatmul.mubr.msk.f32.vlgmr.msra.gmra.mrb[66].mxu0 %vm329_vm1, %v18860_v54  ;;  %16264 = vmatpush3.bf16.msra.mxu1 %v19024_v59 }
 0xfb7   :  { %15515 = vmatprep.mubr.msk.f32.mxu1 %vm329_vm1, %v18806_v27  ;;  %16266 = vmatprep.subr.bf16.mxu1 %v19039_v28 }
 0xfba   :  { %16268 = vmatpush3.bf16.msra.mxu1 %v19039_v28 }
 0xfbb   :  { %16278 = vmatprep.subr.bf16.mxu1 %v19055_v14 }
 0xfbd   :  { %15516 = vmatmul.mubr.msk.f32.vlgmr.msra.gmra.mrb[66].mxu1 %vm329_vm1, %v18860_v54 }
 0xfbe   :  { %16280 = vmatpush3.bf16.msra.mxu1 %v19055_v14  ;;  %15537 = vmatprep.mubr.msk.f32.mxu1 %vm329_vm1, %v18806_v27 }
 0xfbf   :  { %16282 = vmatprep.subr.bf16.mxu1 %v19065_v22 }
 0xfc2   :  { %16284 = vmatpush3.bf16.msra.mxu1 %v19065_v22 }
 0xfc5   :  { %15538 = vmatmul.mubr.msk.f32.vlgmr.msra.gmra.mrb[68].mxu1 %vm329_vm1, %v18860_v54 }
0x1068   :  { %v15418_v51 = vpop.f32.mrb[56].mxu1  ;;  %v15440_v31 = vpop.f32.mrb[58].mxu0 }
0x1069   :  { %v8092_v24 = vpop.f32.mrb[57].mxu1  ;;  %v8242_v33 = vpop.f32.mrb[59].mxu0 }
0x106a   :  { %15544 = vmatprep.mubr.msk.f32.mxu0 %vm2421_vm3, %v8092_v24 }
0x1070   :  { %v15429_v56 = vpop.f32.mrb[58].mxu1  ;;  %v15462_v55 = vpop.f32.mrb[60].mxu0 }
0x1071   :  { %v8167_v9 = vpop.f32.mrb[59].mxu1  ;;  %v8392_v47 = vpop.f32.mrb[61].mxu0 }
0x1072   :  { %v16285_v14 = vpack.c.bf16 %v15462_v55, %v8392_v47  ;;  %15551 = vmatprep.mubr.msk.f32.mxu1 %vm2421_vm3, %v8167_v9 }
0x1074   :  { %16287 = vmatprep.subr.msk.bf16.mxu0 %vm17511_vm4, %v16285_v14 }
0x1075   :  { %16290 = vmatpush3.bf16.xpose.msk.msra.mxu0 %vm17511_vm4, %v16285_v14 }
0x1078   :  { %v15451_v54 = vpop.f32.mrb[60].mxu1 }
0x1079   :  { %v15484_v22 = vpop.f32.mrb[62].mxu0  ;;  %v8317_v28 = vpop.f32.mrb[61].mxu1 }
0x107a   :  { %v8542_v59 = vpop.f32.mrb[63].mxu0 }
0x107b   :  { %v16297_v13 = vpack.c.bf16 %v15484_v22, %v8542_v59 }
0x107c   :  { %15545 = vmatmul.mubr.msk.f32.vlgmr.msra.gmra.mrb[68].mxu0 %vm2421_vm3, %v15418_v51 }
0x107d   :  { %16299 = vmatprep.subr.msk.bf16.mxu0 %vm17511_vm4, %v16297_v13  ;;  %15558 = vmatprep.mubr.msk.f32.mxu0 %vm2421_vm3, %v8242_v33 }
0x107e   :  { %16302 = vmatpush3.bf16.xpose.msk.msra.mxu0 %vm17511_vm4, %v16297_v13 }
0x1080   :  { %v15473_v9 = vpop.f32.mrb[62].mxu1 }
0x1081   :  { %v15506_v55 = vpop.f32.mrb[64].mxu0  ;;  %v8467_v24 = vpop.f32.mrb[63].mxu1 }
0x1082   :  { %v16291_v47 = vpack.c.bf16 %v15473_v9, %v8467_v24  ;;  %v8692_v14 = vpop.f32.mrb[65].mxu0 }
0x1083   :  { %v16309_v35 = vpack.c.bf16 %v15506_v55, %v8692_v14 }
0x1084   :  { %16293 = vmatprep.subr.msk.bf16.mxu1 %vm17511_vm4, %v16291_v47 }
0x1085   :  { %15559 = vmatmul.mubr.msk.f32.vlgmr.msra.gmra.mrb[70].mxu0 %vm2421_vm3, %v15440_v31  ;;  %16311 = vmatprep.subr.msk.bf16.mxu0 %vm17533_vm7, %v16309_v35 }
0x1086   :  { %16296 = vmatpush3.bf16.xpose.msk.msra.mxu1 %vm17511_vm4, %v16291_v47  ;;  %16314 = vmatpush3.bf16.msk.msra.mxu0 %vm17533_vm7, %v16309_v35 }
0x1088   :  { %v15495_v13 = vpop.f32.mrb[64].mxu1 }
0x1089   :  { %v15528_v59 = vpop.f32.mrb[66].mxu0  ;;  %v8617_v51 = vpop.f32.mrb[65].mxu1 }
0x108a   :  { %v16303_v33 = vpack.c.bf16 %v15495_v13, %v8617_v51  ;;  %v8842_v9 = vpop.f32.mrb[67].mxu0 }
0x108b   :  { %v16321_v55 = vpack.c.bf16 %v15528_v59, %v8842_v9 }
0x108c   :  { %16305 = vmatprep.subr.msk.bf16.mxu1 %vm17511_vm4, %v16303_v33 }
0x108d   :  { %15552 = vmatmul.mubr.msk.f32.vlgmr.msra.gmra.mrb[70].mxu1 %vm2421_vm3, %v15429_v56 }
0x108e   :  { %16308 = vmatpush3.bf16.xpose.msk.msra.mxu1 %vm17511_vm4, %v16303_v33  ;;  %15565 = vmatprep.mubr.msk.f32.mxu1 %vm2421_vm3, %v8317_v28 }
0x108f   :  { %16323 = vmatprep.subr.msk.bf16.mxu1 %vm17533_vm7, %v16321_v55 }
0x1090   :  { %v15517_v35 = vpop.f32.mrb[66].mxu1 }
0x1091   :  { %v8767_v31 = vpop.f32.mrb[67].mxu1 }
0x1092   :  { %v19105_v24 = vpack.c.bf16 %v15517_v35, %v8767_v31 }
0x1094   :  { %16317 = vmatprep.subr.msk.bf16.mxu0 %vm17533_vm7, %v19105_v24 }
0x1095   :  { %15566 = vmatmul.mubr.msk.f32.vlgmr.msra.gmra.mrb[72].mxu1 %vm2421_vm3, %v15451_v54 }
0x1096   :  { %16326 = vmatpush3.bf16.msk.msra.mxu1 %vm17533_vm7, %v16321_v55 }
0x1098   :  { %v15539_v56 = vpop.f32.mrb[68].mxu1 }
0x1099   :  { %v8917_v47 = vpop.f32.mrb[69].mxu1 }
0x109a   :  { %v19113_v14 = vpack.c.bf16 %v15539_v56, %v8917_v47 }
0x114f   :  { %v15546_v28 = vpop.f32.mrb[68].mxu0 }
0x1150   :  { %v9275_v13 = vmul.f32 0.35355338, %v15546_v28  ;;  %v9004_v59 = vpop.f32.mrb[69].mxu0 }
0x1151   :  { %v9274_v51 = vmul.f32 0.35355338, %v9004_v59 }
0x1152   :  { %v9285_v33 = vsel %vm2782_vm8, %v9275_v13, -inf }
0x1153   :  { %9286 = vmax.xlane.f32.xlu1 %v9285_v33  ;;  %v9282_v9 = vsel %vm2778_vm9, %v9274_v51, -inf }
0x1154   :  { %9283 = vmax.xlane.f32.xlu0 %v9282_v9 }
0x1158   :  { %v15560_v35 = vpop.f32.mrb[70].mxu0 }
0x1159   :  { %v9279_v31 = vmul.f32 0.35355338, %v15560_v35  ;;  %v9178_v54 = vpop.f32.mrb[71].mxu0 }
0x115a   :  { %v9278_v27 = vmul.f32 0.35355338, %v9178_v54 }
0x115b   :  { %v9297_v55 = vsel %vm2782_vm8, %v9279_v31, -inf }
0x115c   :  { %9298 = vmax.xlane.f32.xlu1 %v9297_v55  ;;  %v9294_v56 = vsel %vm2778_vm9, %v9278_v27, -inf }
0x115d   :  { %9295 = vmax.xlane.f32.xlu0 %v9294_v56 }
0x1160   :  { %v15553_v47 = vpop.f32.mrb[70].mxu1 }
0x1161   :  { %v9277_v28 = vmul.f32 0.35355338, %v15553_v47  ;;  %v9091_v29 = vpop.f32.mrb[71].mxu1 }
0x1162   :  { %v9276_v59 = vmul.f32 0.35355338, %v9091_v29 }
0x1163   :  { %v9291_v11 = vsel %vm2782_vm8, %v9277_v28, -inf }
0x1164   :  { %9292 = vmax.xlane.f32.xlu1 %v9291_v11  ;;  %v9288_v33 = vsel %vm2778_vm9, %v9276_v59, -inf }
0x1165   :  { %9289 = vmax.xlane.f32.xlu0 %v9288_v33  ;;  %v7045_v33 = vcombine.high %v18590_v21, %v18590_v21 }
0x1168   :  { %v15567_v9 = vpop.f32.mrb[72].mxu1 }
0x1169   :  { %v19121_v35 = vmul.f32 0.35355338, %v15567_v9  ;;  %v9265_v54 = vpop.f32.mrb[73].mxu1 }
0x116a   :  { %v19123_v36 = vmul.f32 0.35355338, %v9265_v54  ;;  %v7059_v54 = vrot.slane %v7045_v33, %v16858_v17 }
0x116b   :  { %v9303_v55 = vsel %vm2782_vm8, %v19121_v35, -inf }
0x116c   :  { %9304 = vmax.xlane.f32.xlu1 %v9303_v55  ;;  %v9300_v56 = vsel %vm2778_vm9, %v19123_v36, -inf  ;;  %v7061_v25 = vcombine.high %v7059_v54, %v7059_v54 }
0x116d   :  { %9301 = vmax.xlane.f32.xlu0 %v9300_v56  ;;  %v7060_v56 = vcombine.high %v18594_v50, %v18594_v50 }
0x11e0   :  { %v9287_v29 = vpop.xlane.xlu1 %9286 }
0x11e1   :  { %v9307_v47 = vsub.f32 %v9275_v13, %v9287_v29  ;;  %v9284_v11 = vpop.xlane.xlu0 %9283  ;;  %v6990_v13 = vadd.f32 %v18541_v58, %v18596_v61 }
0x11e2   :  { %v9306_v16 = vsub.f32 %v9274_v51, %v9284_v11  ;;  %v7089_v51 = vrot.slane %v7061_v25, %v16858_v17 }
0x11e3   :  { %v9316_v9 = vmul.f32 1.442695, %v9307_v47 }
0x11e4   :  { %v9314_v8 = vmul.f32 1.442695, %v9306_v16 }
0x11e5   :  { %16604 = vpow2.f32 %v9316_v9 }
0x11e6   :  { %16606 = vpow2.f32 %v9314_v8 }
0x11e9   :  { %v9299_v18 = vpop.xlane.xlu1 %9298 }
0x11ea   :  { %v9311_v55 = vsub.f32 %v9279_v31, %v9299_v18  ;;  %v9296_v23 = vpop.xlane.xlu0 %9295  ;;  %v7075_v18 = vrot.slane %v7059_v54, %v16858_v17 }
0x11eb   :  { %v9310_v6 = vsub.f32 %v9278_v27, %v9296_v23  ;;  %v7082_v23 = vrot.slane %v7060_v56, %v16858_v17  ;;  %v7100_v27 = vrot.slane %v6990_v13, %v16858_v17  ;;  %v20618_v13 = vld [vmem:[#allocation34_spill] sm:$0xff] }
0x11ec   :  { %v9324_v29 = vmul.f32 1.442695, %v9311_v55  ;;  %v7091_v11 = vcombine.high %v7075_v18, %v7075_v18  ;;  %v7090_v55 = vcombine.high %v18600_v26, %v18600_v26 }
0x11ed   :  { %v9322_v21 = vmul.f32 1.442695, %v9310_v6  ;;  %v7093_v6 = vcombine.high %v7089_v51, %v7089_v51  ;;  %v7092_v33 = vcombine.high %v7082_v23, %v7082_v23  ;;  %v7108_v9 = vrot.slane %v7100_v27, %v16858_v17 }
0x11ee   :  { %16608 = vpow2.f32 %v9324_v29 }
0x11ef   :  { %v19137_v16 = vpop.eup %16604  ;;  %16610 = vpow2.f32 %v9322_v21  ;;  %v19152_v29 = vadd.f32 %v7093_v6, %v20618_v13  ;;  %v20628_v6 = vld [vmem:[#allocation28_spill] sm:$0xff]  ;;  %v7101_v13 = vcombine.high %v7100_v27, %v7100_v27 }
0x11f0   :  { %v19139_v8 = vpop.eup %16606  ;;  %v9333_v50 = vsel %vm2782_vm8, %v19137_v16, 0.0 }
0x11f1   :  { %v9293_v58 = vpop.xlane.xlu1 %9292  ;;  %9334 = vadd.xlane.f32.xlu1 %v9333_v50  ;;  %v9330_v61 = vsel %vm2778_vm9, %v19139_v8, 0.0  ;;  %20619 = vst [vmem:[#allocation26_spill] sm:$0xff] %v19152_v29 }
0x11f2   :  { %v9309_v25 = vsub.f32 %v9277_v28, %v9293_v58  ;;  %v9290_v31 = vpop.xlane.xlu0 %9289  ;;  %9331 = vadd.xlane.f32.xlu0 %v9330_v61  ;;  %v20620_v28 = vld [vmem:[#allocation30_spill] sm:$0xff]  ;;  %v20624_v61 = vld [vmem:[#allocation33_spill] sm:$0xff] }
0x11f3   :  { %v9308_v47 = vsub.f32 %v9276_v59, %v9290_v31  ;;  %v19157_v50 = vadd.f32 %v7092_v33, %v20620_v28  ;;  %v20622_v59 = vld [vmem:[#allocation32_spill] sm:$0xff]  ;;  %v19163_v31 = vadd.f32 %v7091_v11, %v20624_v61  ;;  %v20631_v28 = vld [vmem:[#allocation31_spill] sm:$0xff] }
0x11f4   :  { %v9320_v54 = vmul.f32 1.442695, %v9309_v25  ;;  %v19160_v58 = vadd.f32 %v7089_v51, %v20622_v59  ;;  %v20626_v25 = vld [vmem:[#allocation35_spill] sm:$0xff]  ;;  %v19179_v59 = vadd.f32 %v7075_v18, %v20631_v28 }
0x11f5   :  { %v9318_v56 = vmul.f32 1.442695, %v9308_v47  ;;  %20621 = vst [vmem:[#allocation43_spill] sm:$0xff] %v19157_v50  ;;  %20625 = vst [vmem:[#allocation30_spill] sm:$0xff] %v19163_v31  ;;  %v19166_v62 = vadd.f32 %v7108_v9, %v20626_v25  ;;  %v19171_v47 = vadd.f32 %v7082_v23, %v20628_v6 }
0x11f6   :  { %16612 = vpow2.f32 %v9320_v54  ;;  %20623 = vst [vmem:[#allocation34_spill] sm:$0xff] %v19160_v58  ;;  %v20629_v54 = vld [vmem:[#allocation29_spill] sm:$0xff]  ;;  %20632 = vst [vmem:[#allocation35_spill] sm:$0xff] %v19179_v59  ;;  %v7238_v25 = vcombine.low %v19157_v50, %v19179_v59  ;;  %v7239_v18 = vcombine.low %v19160_v58, %v19163_v31 }
0x11f7   :  { %16614 = vpow2.f32 %v9318_v56  ;;  %20627 = vst [vmem:[#allocation32_spill] sm:$0xff] %v19166_v62  ;;  %v19174_v56 = vadd.f32 %v7090_v55, %v20629_v54  ;;  %v7240_v23 = vcombine.low %v19152_v29, %v19166_v62 }
0x11f8   :  { %v19154_v21 = vpop.eup %16608  ;;  %v7261_v28 = vrot.slane %v7239_v18, %v16858_v17 }
0x11f9   :  { %v19168_v26 = vpop.eup %16610  ;;  %20630 = vst [vmem:[#allocation33_spill] sm:$0xff] %v19174_v56  ;;  %v9305_v33 = vpop.xlane.xlu1 %9304  ;;  %v9345_v51 = vsel %vm2782_vm8, %v19154_v21, 0.0  ;;  %v7237_v54 = vcombine.low %v19171_v47, %v19174_v56 }
0x11fa   :  { %v9313_v11 = vsub.f32 %v19121_v35, %v9305_v33  ;;  %9346 = vadd.xlane.f32.xlu1 %v9345_v51  ;;  %v9302_v9 = vpop.xlane.xlu0 %9301  ;;  %v9342_v61 = vsel %vm2778_vm9, %v19168_v26, 0.0  ;;  %v7115_v35 = vrot.slane %v7101_v13, %v16858_v17  ;;  %v7268_v33 = vrot.slane %v7240_v23, %v16858_v17 }
0x11fb   :  { %v9312_v55 = vsub.f32 %v19123_v36, %v9302_v9  ;;  %9343 = vadd.xlane.f32.xlu0 %v9342_v61  ;;  %v7254_v36 = vrot.slane %v7238_v25, %v16858_v17  ;;  %v20633_v9 = vld [vmem:[#allocation27_spill] sm:$0xff] }
0x11fc   :  { %v9328_v27 = vmul.f32 1.442695, %v9313_v11  ;;  %v19200_v61 = vadd.f32 %v7115_v35, %v20633_v9  ;;  %v7270_v23 = vcombine.low %v7261_v28, %v7268_v33 }
0x11fd   :  { %v9326_v6 = vmul.f32 1.442695, %v9312_v55 }
0x11fe   :  { %16616 = vpow2.f32 %v9328_v27  ;;  %v7247_v27 = vrot.slane %v7237_v54, %v16858_v17  ;;  %v7292_v25 = vrot.slane %v19200_v61, %v16858_v17  ;;  %v7284_v18 = vrot.slane %v7270_v23, %v16858_v17 }
0x11ff   :  { %16618 = vpow2.f32 %v9326_v6 }
0x1200   :  { %v19195_v51 = vpop.eup %16612  ;;  %v7269_v6 = vcombine.low %v7247_v27, %v7254_v36  ;;  %v7299_v60 = vrot.slane %v7292_v25, %v16858_v17 }
0x1201   :  { %v16615_v11 = vpop.eup %16614  ;;  %v9339_v13 = vsel %vm2782_vm8, %v19195_v51, 0.0 }
0x1202   :  { %9340 = vadd.xlane.f32.xlu1 %v9339_v13  ;;  %v9336_v55 = vsel %vm2778_vm9, %v16615_v11, 0.0  ;;  %v7277_v35 = vrot.slane %v7269_v6, %v16858_v17  ;;  %v7313_v36 = vsel %vm804_vm2, %v7299_v60, 0.0 }
0x1203   :  { %9337 = vadd.xlane.f32.xlu0 %v9336_v55 }
0x1204   :  { %v7285_v33 = vcombine.low %v7277_v35, %v7284_v18 }
0x1206   :  { %v7310_v28 = vsel %vm329_vm1, %v7285_v33, 0.0 }
0x1208   :  { %v19209_v37 = vpop.eup %16616 }
0x1209   :  { %v19212_v9 = vpop.eup %16618  ;;  %v9351_v13 = vsel %vm2782_vm8, %v19209_v37, 0.0 }
0x120a   :  { %9352 = vadd.xlane.f32.xlu1 %v9351_v13  ;;  %v9348_v54 = vsel %vm2778_vm9, %v19212_v9, 0.0 }
0x120b   :  { %9349 = vadd.xlane.f32.xlu0 %v9348_v54 }
0x120e   :  { %7314 = vadd.xlane.f32.xlu1 %v7313_v36 }
0x120f   :  { %7311 = vadd.xlane.f32.xlu0 %v7310_v28 }
0x127e   :  { %v9335_v55 = vpop.xlane.xlu1 %9334 }
0x127f   :  { %16620 = vrcp.f32 %v9335_v55  ;;  %v9332_v27 = vpop.xlane.xlu0 %9331 }
0x1280   :  { %16622 = vrcp.f32 %v9332_v27 }
0x1287   :  { %v9347_v23 = vpop.xlane.xlu1 %9346 }
0x1288   :  { %16624 = vrcp.f32 %v9347_v23  ;;  %v9344_v6 = vpop.xlane.xlu0 %9343 }
0x1289   :  { %v16621_v25 = vpop.eup %16620  ;;  %16626 = vrcp.f32 %v9344_v6 }
0x128a   :  { %v16623_v13 = vpop.eup %16622  ;;  %v9363_v18 = vmul.f32 %v16621_v25, %v19137_v16 }
0x128b   :  { %v9362_v0 = vmul.f32 %v16623_v13, %v19139_v8 }
0x128d   :  { %15572 = vmatprep.mubr.msk.f32.mxu0 %vm2778_vm9, %v9362_v0 }
0x128e   :  { %15573 = vmatmul.mubr.msk.f32.vlgmr.msra.gmra.mrb[72].mxu0 %vm2778_vm9, %v9363_v18 }
0x128f   :  { %v9341_v60 = vpop.xlane.xlu1 %9340  ;;  %16320 = vmatpush3.bf16.msk.msra.mxu0 %vm17533_vm7, %v19105_v24 }
0x1290   :  { %16628 = vrcp.f32 %v9341_v60  ;;  %16329 = vmatprep.subr.msk.bf16.mxu0 %vm17533_vm7, %v19113_v14  ;;  %v9338_v35 = vpop.xlane.xlu0 %9337 }
0x1291   :  { %16630 = vrcp.f32 %v9338_v35 }
0x1292   :  { %v16625_v54 = vpop.eup %16624 }
0x1293   :  { %v16627_v8 = vpop.eup %16626  ;;  %v9367_v0 = vmul.f32 %v16625_v54, %v19154_v21 }
0x1294   :  { %v9366_v16 = vmul.f32 %v16627_v8, %v19168_v26 }
0x1296   :  { %15586 = vmatprep.mubr.msk.f32.mxu1 %vm2778_vm9, %v9366_v16 }
0x1297   :  { %v9353_v33 = vpop.xlane.xlu1 %9352  ;;  %15587 = vmatmul.mubr.msk.f32.vlgmr.msra.gmra.mrb[74].mxu1 %vm2778_vm9, %v9367_v0 }
0x1298   :  { %16632 = vrcp.f32 %v9353_v33  ;;  %v9350_v24 = vpop.xlane.xlu0 %9349 }
0x1299   :  { %16634 = vrcp.f32 %v9350_v24 }
0x129a   :  { %v16629_v36 = vpop.eup %16628 }
0x129b   :  { %v16631_v28 = vpop.eup %16630  ;;  %v7315_v55 = vpop.xlane.xlu1 %7314  ;;  %v9365_v25 = vmul.f32 %v16629_v36, %v19195_v51 }
0x129c   :  { %v7319_v27 = vmul.f32 0.03125, %v7315_v55  ;;  %v7312_v23 = vpop.xlane.xlu0 %7311  ;;  %v9364_v6 = vmul.f32 %v16631_v28, %v16615_v11 }
0x129d   :  { %v7318_v13 = vmul.f32 0.03125, %v7312_v23 }
0x129e   :  { %v7395_v26 = vrot.slane %v7319_v27, %v17019_v40  ;;  %15579 = vmatprep.mubr.msk.f32.mxu0 %vm2778_vm9, %v9364_v6 }
0x129f   :  { %15580 = vmatmul.mubr.msk.f32.vlgmr.msra.gmra.mrb[74].mxu0 %vm2778_vm9, %v9365_v25  ;;  %v7363_v21 = vrot.slane %v7318_v13, %v17019_v40  ;;  %v7367_v18 = vrot.slane %v7318_v13, %v17022_v42  ;;  %v7371_v60 = vrot.slane %v7318_v13, %v17025_v41  ;;  %v7375_v35 = vrot.slane %v7318_v13, %v17028_v43 }
0x12a0   :  { %v19244_v54 = vsub.f32 %v19200_v61, %v7395_v26  ;;  %16332 = vmatpush3.bf16.msk.msra.mxu0 %vm17533_vm7, %v19113_v14  ;;  %v7379_v51 = vrot.slane %v7318_v13, %v20518_v45  ;;  %v7383_v11 = vrot.slane %v7318_v13, %v20519_v46  ;;  %v7387_v8 = vrot.slane %v7318_v13, %v20520_v49 }
0x12a1   :  { %v7391_v16 = vrot.slane %v7318_v13, %v17040_v48  ;;  %v19254_v0 = vsub.f32 %v19171_v47, %v7363_v21  ;;  %v19257_v33 = vsub.f32 %v19174_v56, %v7367_v18  ;;  %v19260_v24 = vsub.f32 %v19157_v50, %v7371_v60 }
0x12a2   :  { %v16633_v36 = vpop.eup %16632  ;;  %v7449_v14 = vmul.f32 %v19244_v54, %v19244_v54  ;;  %v19265_v28 = vsub.f32 %v19179_v59, %v7375_v35  ;;  %v19268_v55 = vsub.f32 %v19160_v58, %v7379_v51  ;;  %v19271_v27 = vsub.f32 %v19163_v31, %v7383_v11 }
0x12a3   :  { %v16635_v23 = vpop.eup %16634  ;;  %v9369_v6 = vmul.f32 %v16633_v36, %v19209_v37  ;;  %v19275_v25 = vsub.f32 %v19152_v29, %v7387_v8  ;;  %v19278_v13 = vsub.f32 %v19166_v62, %v7391_v16  ;;  %v7441_v26 = vmul.f32 %v19254_v0, %v19254_v0 }
0x12a4   :  { %v9368_v21 = vmul.f32 %v16635_v23, %v19212_v9  ;;  %v7586_v18 = vrot.slane %v7449_v14, %v16858_v17  ;;  %v7442_v60 = vmul.f32 %v19257_v33, %v19257_v33  ;;  %v7443_v35 = vmul.f32 %v19260_v24, %v19260_v24 }
0x12a5   :  { %v7444_v37 = vmul.f32 %v19265_v28, %v19265_v28  ;;  %v7445_v51 = vmul.f32 %v19268_v55, %v19268_v55  ;;  %v7446_v11 = vmul.f32 %v19271_v27, %v19271_v27  ;;  %v7447_v9 = vmul.f32 %v19275_v25, %v19275_v25 }
0x12a6   :  { %15593 = vmatprep.mubr.msk.f32.mxu0 %vm2778_vm9, %v9368_v21  ;;  %v7593_v8 = vrot.slane %v7586_v18, %v16858_v17  ;;  %v7448_v16 = vmul.f32 %v19278_v13, %v19278_v13  ;;  %v7531_v36 = vcombine.low %v7441_v26, %v7442_v60 }
0x12a7   :  { %15594 = vmatmul.mubr.msk.f32.vlgmr.msra.gmra.mrb[76].mxu0 %vm2778_vm9, %v9369_v6  ;;  %v7532_v14 = vcombine.low %v7443_v35, %v7444_v37  ;;  %v7533_v23 = vcombine.low %v7445_v51, %v7446_v11 }
0x12a8   :  { %v7607_v62 = vsel %vm804_vm2, %v7593_v8, 0.0  ;;  %v7534_v29 = vcombine.low %v7447_v9, %v7448_v16  ;;  %v7541_v31 = vrot.slane %v7531_v36, %v16858_v17 }
0x12a9   :  { %7608 = vadd.xlane.f32.xlu1 %v7607_v62  ;;  %v7548_v59 = vrot.slane %v7532_v14, %v16858_v17  ;;  %v7555_v21 = vrot.slane %v7533_v23, %v16858_v17  ;;  %v19312_v62 = vld [vmem:[%s20274_s9 + $0x20] sm:$0xff] }
0x12aa   :  { %v7562_v18 = vrot.slane %v7534_v29, %v16858_v17  ;;  %15596 = vmatprep.subr.mxu1 %v19312_v62  ;;  %v19319_v29 = vld [vmem:[%s20274_s9 + $0x30] sm:$0xff] }
0x12ab   :  { %v7563_v58 = vcombine.low %v7541_v31, %v7548_v59  ;;  %15597 = vmatpush3.msra.mxu1 %v19312_v62 }
0x12ac   :  { %v7564_v50 = vcombine.low %v7555_v21, %v7562_v18  ;;  %15606 = vmatprep.subr.mxu1 %v19319_v29 }
0x12ad   :  { %v7571_v26 = vrot.slane %v7563_v58, %v16858_v17  ;;  %v19332_v58 = vld [vmem:[%s20274_s9 + $0x38] sm:$0xff] }
0x12ae   :  { %v7578_v6 = vrot.slane %v7564_v50, %v16858_v17  ;;  %v19325_v50 = vld [vmem:[%s20274_s9 + $0x28] sm:$0xff] }
0x12af   :  { %15601 = vmatprep.subr.mxu0 %v19325_v50 }
0x12b0   :  { %v7579_v60 = vcombine.low %v7571_v26, %v7578_v6  ;;  %15602 = vmatpush3.msra.mxu0 %v19325_v50 }
0x12b1   :  { %15611 = vmatprep.subr.mxu0 %v19332_v58 }
0x12b2   :  { %v7604_v35 = vsel %vm329_vm1, %v7579_v60, 0.0 }
0x12b3   :  { %7605 = vadd.xlane.f32.xlu0 %v7604_v35 }
0x1336   :  { %v7609_v51 = vpop.xlane.xlu1 %7608 }
0x1337   :  { %v7613_v11 = vmul.f32 0.03125, %v7609_v51 }
0x1339   :  { %v7617_v9 = vadd.f32 1e-05, %v7613_v11 }
0x1340   :  { %v7606_v31 = vpop.xlane.xlu0 %7605 }
0x1341   :  { %v7612_v59 = vmul.f32 0.03125, %v7606_v31 }
0x1343   :  { %v7616_v37 = vadd.f32 1e-05, %v7612_v59 }
0x1345   :  { %16636 = vrsqrt.f32 %v7616_v37 }
0x1346   :  { %16638 = vrsqrt.f32 %v7617_v9 }
0x134f   :  { %v16637_v8 = vpop.eup %16636 }
0x1350   :  { %v7665_v16 = vrot.slane %v16637_v8, %v17019_v40  ;;  %v7669_v36 = vrot.slane %v16637_v8, %v17022_v42  ;;  %v7673_v14 = vrot.slane %v16637_v8, %v17025_v41  ;;  %v7677_v23 = vrot.slane %v16637_v8, %v17028_v43 }
0x1351   :  { %v7681_v21 = vrot.slane %v16637_v8, %v20518_v45  ;;  %v7685_v18 = vrot.slane %v16637_v8, %v20519_v46  ;;  %v7689_v26 = vrot.slane %v16637_v8, %v20520_v49  ;;  %v7693_v6 = vrot.slane %v16637_v8, %v17040_v48 }
0x1352   :  { %v7725_v60 = vmul.f32 %v7665_v16, %v19254_v0  ;;  %v7726_v35 = vmul.f32 %v7669_v36, %v19257_v33  ;;  %v7727_v31 = vmul.f32 %v7673_v14, %v19260_v24  ;;  %v7728_v59 = vmul.f32 %v7677_v23, %v19265_v28  ;;  %v16639_v36 = vpop.eup %16638 }
0x1353   :  { %v7729_v37 = vmul.f32 %v7681_v21, %v19268_v55  ;;  %v7730_v51 = vmul.f32 %v7685_v18, %v19271_v27  ;;  %v7731_v11 = vmul.f32 %v7689_v26, %v19275_v25  ;;  %v7732_v9 = vmul.f32 %v7693_v6, %v19278_v13 }
0x1354   :  { %v7805_v56 = vmul.f32 %v18685_v32, %v7725_v60  ;;  %v7806_v8 = vmul.f32 %v18691_v57, %v7726_v35  ;;  %v7807_v0 = vmul.f32 %v18710_v38, %v7727_v31  ;;  %v7808_v33 = vmul.f32 %v18718_v52, %v7728_v59 }
0x1355   :  { %v7809_v24 = vmul.f32 %v18688_v63, %v7729_v37  ;;  %v7810_v28 = vmul.f32 %v18694_v3, %v7730_v51  ;;  %v7811_v55 = vmul.f32 %v18714_v2, %v7731_v11  ;;  %v7812_v27 = vmul.f32 %v18722_v44, %v7732_v9  ;;  %v20634_v11 = vld [vmem:[#allocation6_spill] sm:$0xff]  ;;  %v20637_v9 = vld [vmem:[#allocation7_spill] sm:$0xff] }
0x1356   :  { %v7885_v25 = vadd.f32 %v18697_v20, %v7805_v56  ;;  %v7886_v13 = vadd.f32 %v18703_v4, %v7806_v8  ;;  %v7887_v16 = vadd.f32 %v18726_v5, %v7807_v0  ;;  %v7888_v57 = vadd.f32 %v18734_v10, %v7808_v33  ;;  %v20638_v8 = vld [vmem:[#allocation15_spill] sm:$0xff]  ;;  %v20640_v0 = vld [vmem:[#allocation14_spill] sm:$0xff]  ;;  %v20641_v33 = vld [vmem:[#allocation45_spill] sm:$0xff] }
0x1357   :  { %v7889_v38 = vadd.f32 %v18700_v39, %v7809_v24  ;;  %v7890_v52 = vadd.f32 %v18706_v7, %v7810_v28  ;;  %v7891_v63 = vadd.f32 %v18730_v30, %v7811_v55  ;;  %v7892_v3 = vadd.f32 %v18738_v19, %v7812_v27  ;;  %v20642_v24 = vld [vmem:[#allocation16_spill] sm:$0xff]  ;;  %v20643_v28 = vld [vmem:[#allocation17_spill] sm:$0xff]  ;;  %v20645_v27 = vld [vmem:[#allocation23_spill] sm:$0xff] }
0x1358   :  { %v10055_v2 = vcombine.low %v7885_v25, %v7886_v13  ;;  %v10056_v14 = vcombine.low %v7887_v16, %v7888_v57  ;;  %v7697_v56 = vrot.slane %v16639_v36, %v17019_v40  ;;  %v20644_v55 = vld [vmem:[#allocation36_spill] sm:$0xff]  ;;  %v20646_v25 = vld [vmem:[#allocation25_spill] sm:$0xff]  ;;  %v20647_v13 = vld [vmem:[#allocation22_spill] sm:$0xff] }
0x1359   :  { %v10057_v44 = vcombine.low %v7889_v38, %v7890_v52  ;;  %v10058_v23 = vcombine.low %v7891_v63, %v7892_v3  ;;  %v20648_v16 = vld [vmem:[#allocation19_spill] sm:$0xff]  ;;  %v20649_v57 = vld [vmem:[#allocation24_spill] sm:$0xff]  ;;  %v20651_v52 = vld [vmem:[#allocation21_spill] sm:$0xff] }
0x135a   :  { %v10065_v4 = vrot.slane %v10055_v2, %v16858_v17  ;;  %v10072_v5 = vrot.slane %v10056_v14, %v16858_v17  ;;  %v7733_v30 = vmul.f32 %v7697_v56, %v19244_v54  ;;  %v20650_v38 = vld [vmem:[#allocation20_spill] sm:$0xff]  ;;  %v20652_v63 = vld [vmem:[#allocation18_spill] sm:$0xff] }
0x135b   :  { %v10079_v10 = vrot.slane %v10057_v44, %v16858_v17  ;;  %v10086_v39 = vrot.slane %v10058_v23, %v16858_v17 }
0x135c   :  { %v10087_v19 = vcombine.low %v10065_v4, %v10072_v5  ;;  %v7813_v26 = vmul.f32 %v18685_v32, %v7733_v30 }
0x135d   :  { %v10088_v18 = vcombine.low %v10079_v10, %v10086_v39 }
0x135e   :  { %v10095_v6 = vrot.slane %v10087_v19, %v16858_v17  ;;  %v7893_v31 = vadd.f32 %v18697_v20, %v7813_v26 }
0x135f   :  { %v10102_v60 = vrot.slane %v10088_v18, %v16858_v17 }
0x1360   :  { %v10110_v32 = vrot.slane %v7893_v31, %v16858_v17 }
0x1361   :  { %v15574_v7 = vpop.f32.mrb[72].mxu0  ;;  %v19382_v59 = vcombine.low %v10095_v6, %v10102_v60 }
0x1362   :  { %v9445_v21 = vpop.f32.mrb[73].mxu0  ;;  %v19392_v20 = vrot.slane %v10110_v32, %v16858_v17 }
0x1363   :  { %15598 = vmatprep.mubr.msk.f32.mxu1 %vm2421_vm3, %v9445_v21 }
0x1364   :  { %15599 = vmatmul.mubr.msk.f32.vlgmr.msra.gmra.mrb[76].mxu1 %vm2421_vm3, %v15574_v7 }
0x1365   :  { %15607 = vmatpush3.msra.mxu1 %v19319_v29 }
0x1366   :  { %16334 = vmatprep.subr.bf16.mxu1 %v18785_v34 }
0x136a   :  { %v15588_v35 = vpop.f32.mrb[74].mxu1 }
0x136b   :  { %v9613_v54 = vpop.f32.mrb[75].mxu1 }
0x136c   :  { %15608 = vmatprep.mubr.msk.f32.mxu1 %vm2421_vm3, %v9613_v54 }
0x136d   :  { %15609 = vmatmul.mubr.msk.f32.vlgmr.msra.gmra.mrb[78].mxu1 %vm2421_vm3, %v15588_v35 }
0x136e   :  { %16336 = vmatpush3.bf16.msra.mxu1 %v18785_v34  ;;  %15624 = vmatprep.mubr.msk.f32.mxu1 %vm329_vm1, %v19382_v59 }
0x136f   :  { %16338 = vmatprep.subr.bf16.mxu1 %v18809_v15 }
0x1372   :  { %16340 = vmatpush3.bf16.msra.mxu1 %v18809_v15  ;;  %v15581_v37 = vpop.f32.mrb[74].mxu0 }
0x1373   :  { %v9529_v51 = vpop.f32.mrb[75].mxu0  ;;  %16350 = vmatprep.subr.bf16.mxu1 %v18791_v12 }
0x1374   :  { %15603 = vmatprep.mubr.msk.f32.mxu0 %vm2421_vm3, %v9529_v51 }
0x1375   :  { %15625 = vmatmul.mubr.msk.f32.vlgmr.msra.gmra.mrb[80].mxu1 %vm329_vm1, %v19392_v20  ;;  %15604 = vmatmul.mubr.msk.f32.vlgmr.msra.gmra.mrb[78].mxu0 %vm2421_vm3, %v15581_v37 }
0x1376   :  { %16352 = vmatpush3.bf16.msra.mxu1 %v18791_v12  ;;  %15646 = vmatprep.mubr.msk.f32.mxu1 %vm329_vm1, %v19382_v59  ;;  %v20635_v12 = vld [vmem:[#allocation8_spill] sm:$0xff] }
0x1377   :  { %16354 = vmatprep.subr.bf16.mxu1 %v18814_v1  ;;  %15612 = vmatpush3.msra.mxu0 %v19332_v58 }
0x1378   :  { %16342 = vmatprep.subr.bf16.mxu0 %v18833_v53 }
0x137a   :  { %16356 = vmatpush3.bf16.msra.mxu1 %v18814_v1  ;;  %v15595_v34 = vpop.f32.mrb[76].mxu0  ;;  %v20636_v1 = vld [vmem:[#allocation10_spill] sm:$0xff] }
0x137b   :  { %v9697_v15 = vpop.f32.mrb[77].mxu0  ;;  %16366 = vmatprep.subr.bf16.mxu1 %v20634_v11 }
0x137c   :  { %15613 = vmatprep.mubr.msk.f32.mxu0 %vm2421_vm3, %v9697_v15 }
0x137d   :  { %15647 = vmatmul.mubr.msk.f32.vlgmr.msra.gmra.mrb[82].mxu1 %vm329_vm1, %v19392_v20  ;;  %15614 = vmatmul.mubr.msk.f32.vlgmr.msra.gmra.mrb[80].mxu0 %vm2421_vm3, %v15595_v34 }
0x137e   :  { %16344 = vmatpush3.bf16.msra.mxu0 %v18833_v53  ;;  %16368 = vmatpush3.bf16.msra.mxu1 %v20634_v11  ;;  %v20639_v53 = vld [vmem:[#allocation44_spill] sm:$0xff] }
0x137f   :  { %15668 = vmatprep.mubr.msk.f32.mxu1 %vm329_vm1, %v19382_v59  ;;  %15635 = vmatprep.mubr.msk.f32.mxu0 %vm329_vm1, %v19382_v59 }
0x1380   :  { %16346 = vmatprep.subr.bf16.mxu0 %v20635_v12  ;;  %16370 = vmatprep.subr.bf16.mxu1 %v20636_v1 }
0x1382   :  { %16348 = vmatpush3.bf16.msra.mxu0 %v20635_v12  ;;  %16372 = vmatpush3.bf16.msra.mxu1 %v20636_v1 }
0x1383   :  { %16358 = vmatprep.subr.bf16.mxu0 %v20637_v9  ;;  %16382 = vmatprep.subr.bf16.mxu1 %v20638_v8 }
0x1385   :  { %15636 = vmatmul.mubr.msk.f32.vlgmr.msra.gmra.mrb[82].mxu0 %vm329_vm1, %v19392_v20  ;;  %15669 = vmatmul.mubr.msk.f32.vlgmr.msra.gmra.mrb[84].mxu1 %vm329_vm1, %v19392_v20 }
0x1386   :  { %16360 = vmatpush3.bf16.msra.mxu0 %v20637_v9  ;;  %15657 = vmatprep.mubr.msk.f32.mxu0 %vm329_vm1, %v19382_v59 }
0x1387   :  { %16384 = vmatpush3.bf16.msra.mxu1 %v20638_v8  ;;  %15690 = vmatprep.mubr.msk.f32.mxu1 %vm329_vm1, %v19382_v59 }
0x1388   :  { %16362 = vmatprep.subr.bf16.mxu0 %v20639_v53  ;;  %16386 = vmatprep.subr.bf16.mxu1 %v20640_v0 }
0x138a   :  { %16364 = vmatpush3.bf16.msra.mxu0 %v20639_v53 }
0x138b   :  { %16388 = vmatpush3.bf16.msra.mxu1 %v20640_v0  ;;  %16374 = vmatprep.subr.bf16.mxu0 %v20641_v33 }
0x138c   :  { %16398 = vmatprep.subr.bf16.mxu1 %v20642_v24 }
0x138d   :  { %15658 = vmatmul.mubr.msk.f32.vlgmr.msra.gmra.mrb[84].mxu0 %vm329_vm1, %v19392_v20 }
0x138e   :  { %15691 = vmatmul.mubr.msk.f32.vlgmr.msra.gmra.mrb[86].mxu1 %vm329_vm1, %v19392_v20  ;;  %16376 = vmatpush3.bf16.msra.mxu0 %v20641_v33 }
0x138f   :  { %15679 = vmatprep.mubr.msk.f32.mxu0 %vm329_vm1, %v19382_v59  ;;  %16400 = vmatpush3.bf16.msra.mxu1 %v20642_v24 }
0x1390   :  { %15712 = vmatprep.mubr.msk.f32.mxu1 %vm329_vm1, %v19382_v59  ;;  %16378 = vmatprep.subr.bf16.mxu0 %v20643_v28 }
0x1391   :  { %16402 = vmatprep.subr.bf16.mxu1 %v20644_v55 }
0x1392   :  { %16380 = vmatpush3.bf16.msra.mxu0 %v20643_v28 }
0x1393   :  { %16404 = vmatpush3.bf16.msra.mxu1 %v20644_v55  ;;  %16390 = vmatprep.subr.bf16.mxu0 %v20645_v27 }
0x1394   :  { %16414 = vmatprep.subr.bf16.mxu1 %v20646_v25 }
0x1395   :  { %15680 = vmatmul.mubr.msk.f32.vlgmr.msra.gmra.mrb[86].mxu0 %vm329_vm1, %v19392_v20 }
0x1396   :  { %15713 = vmatmul.mubr.msk.f32.vlgmr.msra.gmra.mrb[88].mxu1 %vm329_vm1, %v19392_v20  ;;  %16392 = vmatpush3.bf16.msra.mxu0 %v20645_v27 }
0x1397   :  { %15701 = vmatprep.mubr.msk.f32.mxu0 %vm329_vm1, %v19382_v59  ;;  %16416 = vmatpush3.bf16.msra.mxu1 %v20646_v25 }
0x1398   :  { %15734 = vmatprep.mubr.msk.f32.mxu1 %vm329_vm1, %v19382_v59  ;;  %16394 = vmatprep.subr.bf16.mxu0 %v20647_v13 }
0x1399   :  { %16418 = vmatprep.subr.bf16.mxu1 %v20648_v16 }
0x139a   :  { %16396 = vmatpush3.bf16.msra.mxu0 %v20647_v13 }
0x139b   :  { %16420 = vmatpush3.bf16.msra.mxu1 %v20648_v16  ;;  %16406 = vmatprep.subr.bf16.mxu0 %v20649_v57 }
0x139d   :  { %15702 = vmatmul.mubr.msk.f32.vlgmr.msra.gmra.mrb[88].mxu0 %vm329_vm1, %v19392_v20 }
0x139e   :  { %15735 = vmatmul.mubr.msk.f32.vlgmr.msra.gmra.mrb[90].mxu1 %vm329_vm1, %v19392_v20  ;;  %16408 = vmatpush3.bf16.msra.mxu0 %v20649_v57 }
0x139f   :  { %15723 = vmatprep.mubr.msk.f32.mxu0 %vm329_vm1, %v19382_v59  ;;  %16410 = vmatprep.subr.bf16.mxu0 %v20650_v38 }
0x13a2   :  { %16412 = vmatpush3.bf16.msra.mxu0 %v20650_v38 }
0x13a3   :  { %16422 = vmatprep.subr.bf16.mxu0 %v20651_v52 }
0x13a5   :  { %15724 = vmatmul.mubr.msk.f32.vlgmr.msra.gmra.mrb[90].mxu0 %vm329_vm1, %v19392_v20 }
0x13a6   :  { %16424 = vmatpush3.bf16.msra.mxu0 %v20651_v52  ;;  %15745 = vmatprep.mubr.msk.f32.mxu0 %vm329_vm1, %v19382_v59 }
0x13a7   :  { %16426 = vmatprep.subr.bf16.mxu0 %v20652_v63 }
0x13aa   :  { %16428 = vmatpush3.bf16.msra.mxu0 %v20652_v63 }
0x13ad   :  { %15746 = vmatmul.mubr.msk.f32.vlgmr.msra.gmra.mrb[92].mxu0 %vm329_vm1, %v19392_v20 }
0x1437   :  { %v15600_v3 = vpop.f32.mrb[76].mxu1 }
0x1438   :  { %v9778_v36 = vpop.f32.mrb[77].mxu1  ;;  %v10037_v56 = vsel %vm804_vm2, %v15600_v3, 0.0 }
0x1439   :  { %v10030_v39 = vsel %vm329_vm1, %v9778_v36, 0.0 }
0x1440   :  { %v15610_v2 = vpop.f32.mrb[78].mxu1 }
0x1441   :  { %v9940_v14 = vpop.f32.mrb[79].mxu1  ;;  %v10040_v30 = vsel %vm804_vm2, %v15610_v2, 0.0 }
0x1442   :  { %v10033_v18 = vsel %vm329_vm1, %v9940_v14, 0.0 }
0x1448   :  { %v15626_v44 = vpop.f32.mrb[80].mxu1  ;;  %v15605_v23 = vpop.f32.mrb[78].mxu0 }
0x1449   :  { %v10038_v4 = vsel %vm804_vm2, %v15605_v23, 0.0  ;;  %v10188_v5 = vpop.f32.mrb[81].mxu1  ;;  %v9859_v10 = vpop.f32.mrb[79].mxu0 }
0x144a   :  { %v10039_v7 = vadd.f32 %v10038_v4, %v10037_v56  ;;  %v10031_v21 = vsel %vm329_vm1, %v9859_v10, 0.0  ;;  %15752 = vmatprep.mubr.msk.f32.mxu1 %vm2421_vm3, %v10188_v5 }
0x144b   :  { %v10032_v19 = vadd.f32 %v10031_v21, %v10030_v39 }
0x144c   :  { %v10041_v26 = vadd.f32 %v10040_v30, %v10039_v7 }
0x144d   :  { %v10034_v6 = vadd.f32 %v10033_v18, %v10032_v19 }
0x1450   :  { %v15648_v60 = vpop.f32.mrb[82].mxu1  ;;  %v15615_v35 = vpop.f32.mrb[80].mxu0 }
0x1451   :  { %v10042_v31 = vsel %vm804_vm2, %v15615_v35, 0.0  ;;  %v10338_v54 = vpop.f32.mrb[83].mxu1  ;;  %v10021_v59 = vpop.f32.mrb[81].mxu0 }
0x1452   :  { %v10043_v32 = vadd.f32 %v10042_v31, %v10041_v26  ;;  %v10035_v37 = vsel %vm329_vm1, %v10021_v59, 0.0 }
0x1453   :  { %v10036_v20 = vadd.f32 %v10035_v37, %v10034_v6 }
0x1454   :  { %10045 = vst.msk [vmem:[#allocation2 + $0x8] sm:$0x1] %vm804_vm2, %v10043_v32 }
0x1455   :  { %10044 = vst.msk [vmem:[#allocation2] sm:$0xff] %vm329_vm1, %v10036_v20 }
0x1458   :  { %v15637_v51 = vpop.f32.mrb[82].mxu0  ;;  %v15670_v34 = vpop.f32.mrb[84].mxu1 }
0x1459   :  { %v10263_v15 = vpop.f32.mrb[83].mxu0  ;;  %v10488_v11 = vpop.f32.mrb[85].mxu1 }
0x145a   :  { %v16429_v12 = vpack.c.bf16 %v15670_v34, %v10488_v11  ;;  %15759 = vmatprep.mubr.msk.f32.mxu0 %vm2421_vm3, %v10263_v15 }
0x145c   :  { %16431 = vmatprep.subr.msk.bf16.mxu1 %vm17511_vm4, %v16429_v12  ;;  %v12142_v1 = vld [vmem:[#allocation2] sm:$0xff] }
0x145d   :  { %16434 = vmatpush3.bf16.xpose.msk.msra.mxu1 %vm17511_vm4, %v16429_v12 }
0x1460   :  { %v15659_v9 = vpop.f32.mrb[84].mxu0 }
0x1461   :  { %v15692_v8 = vpop.f32.mrb[86].mxu1  ;;  %v10413_v53 = vpop.f32.mrb[85].mxu0 }
0x1462   :  { %v10638_v0 = vpop.f32.mrb[87].mxu1 }
0x1463   :  { %v16441_v33 = vpack.c.bf16 %v15692_v8, %v10638_v0 }
0x1464   :  { %15753 = vmatmul.mubr.msk.f32.vlgmr.msra.gmra.mrb[92].mxu1 %vm2421_vm3, %v15626_v44 }
0x1465   :  { %16443 = vmatprep.subr.msk.bf16.mxu1 %vm17511_vm4, %v16441_v33  ;;  %15766 = vmatprep.mubr.msk.f32.mxu1 %vm2421_vm3, %v10338_v54 }
0x1466   :  { %16446 = vmatpush3.bf16.xpose.msk.msra.mxu1 %vm17511_vm4, %v16441_v33  ;;  %v14390_v33 = vld [vmem:[%s20275_s10 + $0x1] ss:$0 sm:$0xff] }
0x1468   :  { %v15681_v24 = vpop.f32.mrb[86].mxu0 }
0x1469   :  { %v15714_v28 = vpop.f32.mrb[88].mxu1  ;;  %v10563_v55 = vpop.f32.mrb[87].mxu0 }
0x146a   :  { %v16435_v27 = vpack.c.bf16 %v15681_v24, %v10563_v55  ;;  %v10788_v25 = vpop.f32.mrb[89].mxu1  ;;  %v12319_v55 = vcombine.high %v14390_v33, %v14390_v33 }
0x146b   :  { %v16453_v13 = vpack.c.bf16 %v15714_v28, %v10788_v25 }
0x146c   :  { %16437 = vmatprep.subr.msk.bf16.mxu0 %vm17511_vm4, %v16435_v27 }
0x146d   :  { %15767 = vmatmul.mubr.msk.f32.vlgmr.msra.gmra.mrb[94].mxu1 %vm2421_vm3, %v15648_v60  ;;  %16455 = vmatprep.subr.msk.bf16.mxu1 %vm17533_vm7, %v16453_v13 }
0x146e   :  { %16440 = vmatpush3.bf16.xpose.msk.msra.mxu0 %vm17511_vm4, %v16435_v27  ;;  %16458 = vmatpush3.bf16.msk.msra.mxu1 %vm17533_vm7, %v16453_v13  ;;  %v12157_v13 = vrot.slane %v12142_v1, %v16858_v17 }
0x1470   :  { %v15703_v16 = vpop.f32.mrb[88].mxu0 }
0x1471   :  { %v15736_v57 = vpop.f32.mrb[90].mxu1  ;;  %v10713_v38 = vpop.f32.mrb[89].mxu0 }
0x1472   :  { %v16447_v52 = vpack.c.bf16 %v15703_v16, %v10713_v38  ;;  %v10938_v63 = vpop.f32.mrb[91].mxu1  ;;  %v12165_v38 = vcombine.high %v12157_v13, %v12157_v13 }
0x1473   :  { %v19520_v3 = vpack.c.bf16 %v15736_v57, %v10938_v63  ;;  %v12333_v57 = vrot.slane %v12319_v55, %v16858_v17  ;;  %v12326_v63 = vrot.slane %v14390_v33, %v16858_v17 }
0x1474   :  { %16449 = vmatprep.subr.msk.bf16.mxu0 %vm17511_vm4, %v16447_v52 }
0x1475   :  { %15760 = vmatmul.mubr.msk.f32.vlgmr.msra.gmra.mrb[94].mxu0 %vm2421_vm3, %v15637_v51  ;;  %16467 = vmatprep.subr.msk.bf16.mxu1 %vm17533_vm7, %v19520_v3 }
0x1476   :  { %16452 = vmatpush3.bf16.xpose.msk.msra.mxu0 %vm17511_vm4, %v16447_v52  ;;  %15773 = vmatprep.mubr.msk.f32.mxu0 %vm2421_vm3, %v10413_v53 }
0x1478   :  { %v15725_v36 = vpop.f32.mrb[90].mxu0 }
0x1479   :  { %v10863_v2 = vpop.f32.mrb[91].mxu0 }
0x147a   :  { %v16459_v14 = vpack.c.bf16 %v15725_v36, %v10863_v2 }
0x147c   :  { %16461 = vmatprep.subr.msk.bf16.mxu0 %vm17533_vm7, %v16459_v14 }
0x147d   :  { %15774 = vmatmul.mubr.msk.f32.vlgmr.msra.gmra.mrb[96].mxu0 %vm2421_vm3, %v15659_v9  ;;  %v12150_v9 = vcombine.high %v12142_v1, %v12142_v1  ;;  %v20654_v1 = vld [vmem:[#allocation11_spill] sm:$0xff] }
0x147e   :  { %16464 = vmatpush3.bf16.msk.msra.mxu0 %vm17533_vm7, %v16459_v14 }
0x147f   :  { %v12164_v28 = vrot.slane %v12150_v9, %v16858_v17 }
0x1480   :  { %v15747_v44 = vpop.f32.mrb[92].mxu0 }
0x1481   :  { %v11013_v23 = vpop.f32.mrb[93].mxu0  ;;  %v12166_v16 = vcombine.high %v12164_v28, %v12164_v28 }
0x1482   :  { %v19536_v56 = vpack.c.bf16 %v15747_v44, %v11013_v23  ;;  %v12335_v44 = vcombine.high %v12333_v57, %v12333_v57 }
0x1483   :  { %v12194_v14 = vrot.slane %v12166_v16, %v16858_v17 }
0x1484   :  { %16473 = vmatprep.subr.msk.bf16.mxu0 %vm17533_vm7, %v19536_v56 }
0x1537   :  { %v15754_v4 = vpop.f32.mrb[92].mxu1 }
0x1538   :  { %v11371_v5 = vmul.f32 0.35355338, %v15754_v4  ;;  %v11100_v10 = vpop.f32.mrb[93].mxu1  ;;  %v12334_v4 = vcombine.high %v12326_v63, %v12326_v63 }
0x1539   :  { %v11370_v39 = vmul.f32 0.35355338, %v11100_v10  ;;  %v12180_v10 = vrot.slane %v12164_v28, %v16858_v17  ;;  %v20655_v28 = vld [vmem:[#allocation40_spill] sm:$0xff] }
0x153a   :  { %v11381_v7 = vsel %vm2782_vm8, %v11371_v5, -inf }
0x153b   :  { %11382 = vmax.xlane.f32.xlu1 %v11381_v7  ;;  %v11378_v21 = vsel %vm2778_vm9, %v11370_v39, -inf }
0x153c   :  { %11379 = vmax.xlane.f32.xlu0 %v11378_v21  ;;  %v12173_v21 = vrot.slane %v12157_v13, %v16858_v17  ;;  %v20657_v13 = vld [vmem:[#allocation9_spill] sm:$0xff] }
0x1540   :  { %v15768_v30 = vpop.f32.mrb[94].mxu1 }
0x1541   :  { %v11375_v19 = vmul.f32 0.35355338, %v15768_v30  ;;  %v11274_v18 = vpop.f32.mrb[95].mxu1  ;;  %v12198_v30 = vcombine.high %v12194_v14, %v12194_v14 }
0x1542   :  { %v11374_v26 = vmul.f32 0.35355338, %v11274_v18  ;;  %v19573_v18 = vrot.slane %v12335_v44, %v16858_v17 }
0x1543   :  { %v11393_v6 = vsel %vm2782_vm8, %v11375_v19, -inf  ;;  %v12301_v9 = vadd.f32 %v12198_v30, %v20654_v1 }
0x1544   :  { %11394 = vmax.xlane.f32.xlu1 %v11393_v6  ;;  %v11390_v60 = vsel %vm2778_vm9, %v11374_v26, -inf  ;;  %v19578_v6 = vrot.slane %v12333_v57, %v16858_v17 }
0x1545   :  { %11391 = vmax.xlane.f32.xlu0 %v11390_v60 }
0x1546   :  { %v19601_v33 = vcombine.high %v19578_v6, %v19578_v6 }
0x1548   :  { %v15761_v35 = vpop.f32.mrb[94].mxu0 }
0x1549   :  { %v19545_v31 = vmul.f32 0.35355338, %v15761_v35  ;;  %v11187_v54 = vpop.f32.mrb[95].mxu0 }
0x154a   :  { %v19547_v59 = vmul.f32 0.35355338, %v11187_v54  ;;  %v12196_v54 = vcombine.high %v12180_v10, %v12180_v10 }
0x154b   :  { %v11387_v32 = vsel %vm2782_vm8, %v19545_v31, -inf }
0x154c   :  { %11388 = vmax.xlane.f32.xlu1 %v11387_v32  ;;  %v11384_v37 = vsel %vm2778_vm9, %v19547_v59, -inf  ;;  %v12300_v16 = vadd.f32 %v12196_v54, %v20657_v13 }
0x154d   :  { %11385 = vmax.xlane.f32.xlu0 %v11384_v37 }
0x154e   :  { %v19630_v30 = vadd.f32 %v19601_v33, %v12300_v16 }
0x1550   :  { %v15775_v20 = vpop.f32.mrb[96].mxu0  ;;  %20665 = vst [vmem:[#allocation27_spill] sm:$0xff] %v19630_v30 }
0x1551   :  { %v19553_v51 = vmul.f32 0.35355338, %v15775_v20  ;;  %v11361_v34 = vpop.f32.mrb[97].mxu0 }
0x1552   :  { %v19555_v15 = vmul.f32 0.35355338, %v11361_v34  ;;  %v12195_v34 = vcombine.high %v12173_v21, %v12173_v21 }
0x1553   :  { %v11399_v11 = vsel %vm2782_vm8, %v19553_v51, -inf }
0x1554   :  { %11400 = vmax.xlane.f32.xlu1 %v11399_v11  ;;  %v11396_v12 = vsel %vm2778_vm9, %v19555_v15, -inf }
0x1555   :  { %11397 = vmax.xlane.f32.xlu0 %v11396_v12 }
0x15c8   :  { %v11383_v8 = vpop.xlane.xlu1 %11382 }
0x15c9   :  { %v11403_v53 = vsub.f32 %v11371_v5, %v11383_v8  ;;  %v11380_v0 = vpop.xlane.xlu0 %11379  ;;  %v19593_v8 = vcombine.high %v19573_v18, %v19573_v18 }
0x15ca   :  { %v11402_v24 = vsub.f32 %v11370_v39, %v11380_v0  ;;  %v12187_v39 = vrot.slane %v12165_v38, %v16858_v17  ;;  %v19597_v0 = vrot.slane %v12326_v63, %v16858_v17 }
0x15cb   :  { %v11412_v27 = vmul.f32 1.442695, %v11403_v53 }
0x15cc   :  { %v11410_v25 = vmul.f32 1.442695, %v11402_v24  ;;  %v12197_v32 = vcombine.high %v12187_v39, %v12187_v39 }
0x15cd   :  { %16640 = vpow2.f32 %v11412_v27  ;;  %v20656_v27 = vld [vmem:[#allocation13_spill] sm:$0xff] }
0x15ce   :  { %16642 = vpow2.f32 %v11410_v25  ;;  %v12297_v55 = vadd.f32 %v12197_v32, %v20655_v28  ;;  %v12299_v25 = vadd.f32 %v12194_v14, %v20656_v27  ;;  %v20662_v14 = vld [vmem:[#allocation38_spill] sm:$0xff] }
0x15d1   :  { %v11395_v52 = vpop.xlane.xlu1 %11394 }
0x15d2   :  { %v11407_v36 = vsub.f32 %v11375_v19, %v11395_v52  ;;  %v11392_v2 = vpop.xlane.xlu0 %11391  ;;  %v20659_v52 = vld [vmem:[#allocation39_spill] sm:$0xff] }
0x15d3   :  { %v11406_v23 = vsub.f32 %v11374_v26, %v11392_v2  ;;  %v19581_v26 = vrot.slane %v12334_v4, %v16858_v17  ;;  %v12296_v63 = vadd.f32 %v12195_v34, %v20659_v52  ;;  %v20660_v2 = vld [vmem:[#allocation41_spill] sm:$0xff] }
0x15d4   :  { %v11420_v5 = vmul.f32 1.442695, %v11407_v36  ;;  %v19614_v36 = vcombine.high %v19597_v0, %v19597_v0  ;;  %v12298_v44 = vadd.f32 %v12180_v10, %v20660_v2 }
0x15d5   :  { %v11418_v7 = vmul.f32 1.442695, %v11406_v23  ;;  %v19618_v23 = vadd.f32 %v19593_v8, %v12301_v9  ;;  %v14387_v9 = vld.sshfl [vmem:[#allocation2 + $0x8] sm:$0x1 pattern:$0x75316420] }
0x15d6   :  { %16644 = vpow2.f32 %v11420_v5  ;;  %v12294_v5 = vadd.f32 %v12173_v21, %v20662_v14  ;;  %v19640_v21 = vadd.f32 %v19614_v36, %v12296_v63 }
0x15d7   :  { %v19575_v19 = vpop.eup %16640  ;;  %16646 = vpow2.f32 %v11418_v7  ;;  %20661 = vst [vmem:[#allocation28_spill] sm:$0xff] %v19618_v23 }
0x15d8   :  { %v19583_v60 = vpop.eup %16642  ;;  %v11429_v35 = vsel %vm2782_vm8, %v19575_v19, 0.0  ;;  %20667 = vst [vmem:[#allocation8_spill] sm:$0xff] %v19640_v21 }
0x15d9   :  { %v11389_v37 = vpop.xlane.xlu1 %11388  ;;  %11430 = vadd.xlane.f32.xlu1 %v11429_v35  ;;  %v11426_v20 = vsel %vm2778_vm9, %v19583_v60, 0.0 }
0x15da   :  { %v11405_v11 = vsub.f32 %v19545_v31, %v11389_v37  ;;  %v11386_v12 = vpop.xlane.xlu0 %11385  ;;  %11427 = vadd.xlane.f32.xlu0 %v11426_v20  ;;  %v19605_v31 = vcombine.high %v19581_v26, %v19581_v26 }
0x15db   :  { %v11404_v53 = vsub.f32 %v19547_v59, %v11386_v12  ;;  %v20658_v59 = vld [vmem:[#allocation37_spill] sm:$0xff]  ;;  %v12419_v12 = vcombine.low %v19630_v30, %v19618_v23 }
0x15dc   :  { %v11416_v24 = vmul.f32 1.442695, %v11405_v11  ;;  %v12295_v38 = vadd.f32 %v12187_v39, %v20658_v59  ;;  %v19624_v7 = vadd.f32 %v19605_v31, %v12297_v55  ;;  %v19627_v39 = vadd.f32 %v19573_v18, %v12299_v25 }
0x15dd   :  { %v11414_v57 = vmul.f32 1.442695, %v11404_v53  ;;  %v19646_v11 = vadd.f32 %v19578_v6, %v12298_v44  ;;  %v12447_v25 = vrot.slane %v12419_v12, %v16858_v17  ;;  %v20670_v44 = vld [vmem:[#allocation12_spill] sm:$0xff] }
0x15de   :  { %16648 = vpow2.f32 %v11416_v24  ;;  %20663 = vst [vmem:[#allocation29_spill] sm:$0xff] %v19624_v7  ;;  %20664 = vst [vmem:[#allocation31_spill] sm:$0xff] %v19627_v39  ;;  %v19637_v32 = vadd.f32 %v19581_v26, %v12295_v38  ;;  %v19652_v24 = vadd.f32 %v19597_v0, %v12294_v5 }
0x15df   :  { %16650 = vpow2.f32 %v11414_v57  ;;  %20668 = vst [vmem:[#allocation10_spill] sm:$0xff] %v19646_v11  ;;  %v12418_v28 = vcombine.low %v19646_v11, %v19627_v39 }
0x15e0   :  { %v19620_v4 = vpop.eup %16644  ;;  %20666 = vst [vmem:[#allocation6_spill] sm:$0xff] %v19637_v32  ;;  %20669 = vst [vmem:[#allocation7_spill] sm:$0xff] %v19652_v24  ;;  %v12416_v27 = vcombine.low %v19652_v24, %v19637_v32 }
0x15e1   :  { %v19632_v35 = vpop.eup %16646  ;;  %v11401_v10 = vpop.xlane.xlu1 %11400  ;;  %v11441_v54 = vsel %vm2782_vm8, %v19620_v4, 0.0  ;;  %v12440_v57 = vrot.slane %v12418_v28, %v16858_v17 }
0x15e2   :  { %v11409_v37 = vsub.f32 %v19553_v51, %v11401_v10  ;;  %11442 = vadd.xlane.f32.xlu1 %v11441_v54  ;;  %v11398_v20 = vpop.xlane.xlu0 %11397  ;;  %v11438_v34 = vsel %vm2778_vm9, %v19632_v35, 0.0  ;;  %v12417_v51 = vcombine.low %v19640_v21, %v19624_v7  ;;  %v12426_v63 = vrot.slane %v12416_v27, %v16858_v17 }
0x15e3   :  { %v11408_v1 = vsub.f32 %v19555_v15, %v11398_v20  ;;  %11439 = vadd.xlane.f32.xlu0 %v11438_v34  ;;  %v12212_v15 = vrot.slane %v14387_v9, %v16858_v17  ;;  %v12449_v2 = vcombine.low %v12440_v57, %v12447_v25 }
0x15e4   :  { %v11424_v53 = vmul.f32 1.442695, %v11409_v37  ;;  %v12433_v16 = vrot.slane %v12417_v51, %v16858_v17 }
0x15e5   :  { %v11422_v55 = vmul.f32 1.442695, %v11408_v1  ;;  %v12302_v14 = vadd.f32 %v12212_v15, %v20670_v44  ;;  %v12463_v10 = vrot.slane %v12449_v2, %v16858_v17 }
0x15e6   :  { %16652 = vpow2.f32 %v11424_v53  ;;  %v12448_v5 = vcombine.low %v12426_v63, %v12433_v16 }
0x15e7   :  { %16654 = vpow2.f32 %v11422_v55  ;;  %v19673_v54 = vadd.f32 %v19597_v0, %v12302_v14 }
0x15e8   :  { %v19662_v13 = vpop.eup %16648  ;;  %v12456_v20 = vrot.slane %v12448_v5, %v16858_v17 }
0x15e9   :  { %v16651_v59 = vpop.eup %16650  ;;  %v11435_v38 = vsel %vm2782_vm8, %v19662_v13, 0.0  ;;  %20671 = vst [vmem:[#allocation15_spill] sm:$0xff] %v19673_v54  ;;  %v12471_v53 = vrot.slane %v19673_v54, %v16858_v17 }
0x15ea   :  { %11436 = vadd.xlane.f32.xlu1 %v11435_v38  ;;  %v11432_v52 = vsel %vm2778_vm9, %v16651_v59, 0.0  ;;  %v12464_v9 = vcombine.low %v12456_v20, %v12463_v10 }
0x15eb   :  { %11433 = vadd.xlane.f32.xlu0 %v11432_v52  ;;  %v12478_v28 = vrot.slane %v12471_v53, %v16858_v17 }
0x15ec   :  { %v12546_v51 = vsel %vm329_vm1, %v12464_v9, 0.0 }
0x15ed   :  { %v12549_v55 = vsel %vm804_vm2, %v12478_v28, 0.0 }
0x15f0   :  { %v16653_v37 = vpop.eup %16652 }
0x15f1   :  { %v16655_v34 = vpop.eup %16654  ;;  %v11447_v12 = vsel %vm2782_vm8, %v16653_v37, 0.0 }
0x15f2   :  { %11448 = vadd.xlane.f32.xlu1 %v11447_v12  ;;  %v11444_v1 = vsel %vm2778_vm9, %v16655_v34, 0.0 }
0x15f3   :  { %11445 = vadd.xlane.f32.xlu0 %v11444_v1 }
0x15f7   :  { %12547 = vadd.xlane.f32.xlu0 %v12546_v51 }
0x15fb   :  { %12550 = vadd.xlane.f32.xlu0 %v12549_v55 }
0x1666   :  { %v11431_v27 = vpop.xlane.xlu1 %11430 }
0x1667   :  { %16656 = vrcp.f32 %v11431_v27  ;;  %v11428_v25 = vpop.xlane.xlu0 %11427 }
0x1668   :  { %16658 = vrcp.f32 %v11428_v25 }
0x166f   :  { %v11443_v15 = vpop.xlane.xlu1 %11442 }
0x1670   :  { %16660 = vrcp.f32 %v11443_v15  ;;  %v11440_v16 = vpop.xlane.xlu0 %11439  ;;  %v20672_v15 = vmov 0.0|0.0  }
0x1671   :  { %v16657_v57 = vpop.eup %16656  ;;  %16662 = vrcp.f32 %v11440_v16 }
0x1672   :  { %v16659_v38 = vpop.eup %16658  ;;  %v11459_v63 = vmul.f32 %v16657_v57, %v19575_v19  ;;  %v20673_v57 = vmov 0.0  }
0x1673   :  { %v11458_v52 = vmul.f32 %v16659_v38, %v19583_v60 }
0x1675   :  { %15780 = vmatprep.mubr.msk.f32.mxu1 %vm2778_vm9, %v11458_v52 }
0x1676   :  { %15781 = vmatmul.mubr.msk.f32.vlgmr.msra.gmra.mrb[96].mxu1 %vm2778_vm9, %v11459_v63 }
0x1677   :  { %v11437_v2 = vpop.xlane.xlu1 %11436  ;;  %16470 = vmatpush3.bf16.msk.msra.mxu1 %vm17533_vm7, %v19520_v3 }
0x1678   :  { %16664 = vrcp.f32 %v11437_v2  ;;  %v11434_v44 = vpop.xlane.xlu0 %11433  ;;  %15804 = vmatprep.subr.mxu1 %v19312_v62 }
0x1679   :  { %16666 = vrcp.f32 %v11434_v44 }
0x167a   :  { %v16661_v14 = vpop.eup %16660 }
0x167b   :  { %v16663_v5 = vpop.eup %16662  ;;  %v11463_v19 = vmul.f32 %v16661_v14, %v19620_v4 }
0x167c   :  { %v11462_v60 = vmul.f32 %v16663_v5, %v19632_v35 }
0x167e   :  { %15794 = vmatprep.mubr.msk.f32.mxu1 %vm2778_vm9, %v11462_v60 }
0x167f   :  { %v11449_v10 = vpop.xlane.xlu1 %11448  ;;  %15795 = vmatmul.mubr.msk.f32.vlgmr.msra.gmra.mrb[98].mxu1 %vm2778_vm9, %v11463_v19 }
0x1680   :  { %16668 = vrcp.f32 %v11449_v10  ;;  %v11446_v20 = vpop.xlane.xlu0 %11445  ;;  %15805 = vmatpush3.msra.mxu1 %v19312_v62 }
0x1681   :  { %16670 = vrcp.f32 %v11446_v20  ;;  %15814 = vmatprep.subr.mxu1 %v19319_v29 }
0x1682   :  { %v16665_v3 = vpop.eup %16664 }
0x1683   :  { %v16667_v12 = vpop.eup %16666  ;;  %v11461_v35 = vmul.f32 %v16665_v3, %v19662_v13 }
0x1684   :  { %v12548_v1 = vpop.xlane.xlu0 %12547  ;;  %v11460_v9 = vmul.f32 %v16667_v12, %v16651_v59 }
0x1686   :  { %15787 = vmatprep.mubr.msk.f32.mxu0 %vm2778_vm9, %v11460_v9 }
0x1687   :  { %15788 = vmatmul.mubr.msk.f32.vlgmr.msra.gmra.mrb[98].mxu0 %vm2778_vm9, %v11461_v35 }
0x1688   :  { %16476 = vmatpush3.bf16.msk.msra.mxu0 %vm17533_vm7, %v19536_v56  ;;  %v12551_v4 = vpop.xlane.xlu0 %12550 }
0x1689   :  { %v12559_v53 = vmul.f32 0.03125, %v12551_v4  ;;  %15809 = vmatprep.subr.mxu0 %v19325_v50 }
0x168a   :  { %v16669_v62 = vpop.eup %16668 }
0x168b   :  { %v16671_v51 = vpop.eup %16670  ;;  %v12601_v28 = vrot.slane %v12559_v53, %v17019_v40  ;;  %v11465_v59 = vmul.f32 %v16669_v62, %v16653_v37 }
0x168c   :  { %v11464_v55 = vmul.f32 %v16671_v51, %v16655_v34  ;;  %v12558_v51 = vmul.f32 0.03125, %v12548_v1 }
0x168d   :  { %v19706_v13 = vsub.f32 %v19673_v54, %v12601_v28 }
0x168e   :  { %15801 = vmatprep.mubr.msk.f32.mxu0 %vm2778_vm9, %v11464_v55  ;;  %v12585_v1 = vrot.slane %v12558_v51, %v20518_v45 }
0x168f   :  { %15802 = vmatmul.mubr.msk.f32.vlgmr.msra.gmra.mrb[100].mxu0 %vm2778_vm9, %v11465_v59  ;;  %v12682_v22 = vmul.f32 %v19706_v13, %v19706_v13 }
0x1690   :  { %15810 = vmatpush3.msra.mxu0 %v19325_v50 }
0x1691   :  { %v12765_v56 = vrot.slane %v12682_v22, %v16858_v17  ;;  %15819 = vmatprep.subr.mxu0 %v19332_v58 }
0x1693   :  { %v12772_v27 = vrot.slane %v12765_v56, %v16858_v17 }
0x1695   :  { %v12843_v37 = vsel %vm804_vm2, %v12772_v27, 0.0 }
0x1696   :  { %12844 = vadd.xlane.f32.xlu0 %v12843_v37  ;;  %v12569_v37 = vrot.slane %v12558_v51, %v17019_v40 }
0x1749   :  { %v15782_v34 = vpop.f32.mrb[96].mxu1 }
0x174a   :  { %v11541_v25 = vpop.f32.mrb[97].mxu1 }
0x174b   :  { %15806 = vmatprep.mubr.msk.f32.mxu1 %vm2421_vm3, %v11541_v25  ;;  %v12577_v25 = vrot.slane %v12558_v51, %v17025_v41 }
0x174c   :  { %15807 = vmatmul.mubr.msk.f32.vlgmr.msra.gmra.mrb[100].mxu1 %vm2421_vm3, %v15782_v34  ;;  %v12573_v34 = vrot.slane %v12558_v51, %v17022_v42 }
0x174d   :  { %15815 = vmatpush3.msra.mxu1 %v19319_v29 }
0x174e   :  { %16477 = vmatprep.subr.bf16.mxu1 %v20672_v15 }
0x1752   :  { %v15796_v50 = vpop.f32.mrb[98].mxu1 }
0x1753   :  { %v11709_v16 = vpop.f32.mrb[99].mxu1 }
0x1754   :  { %15816 = vmatprep.mubr.msk.f32.mxu1 %vm2421_vm3, %v11709_v16  ;;  %v12589_v16 = vrot.slane %v12558_v51, %v20519_v46 }
0x1755   :  { %15817 = vmatmul.mubr.msk.f32.vlgmr.msra.gmra.mrb[102].mxu1 %vm2421_vm3, %v15796_v50  ;;  %v12581_v50 = vrot.slane %v12558_v51, %v17028_v43 }
0x1756   :  { %15832 = vmatprep.mubr.msk.f32.mxu1 %vm16713_vm0, %v20673_v57 }
0x175a   :  { %v15789_v38 = vpop.f32.mrb[98].mxu0 }
0x175b   :  { %v11625_v52 = vpop.f32.mrb[99].mxu0 }
0x175c   :  { %15811 = vmatprep.mubr.msk.f32.mxu0 %vm2421_vm3, %v11625_v52  ;;  %v12597_v52 = vrot.slane %v12558_v51, %v17040_v48 }
0x175d   :  { %15812 = vmatmul.mubr.msk.f32.vlgmr.msra.gmra.mrb[102].mxu0 %vm2421_vm3, %v15789_v38  ;;  %v12593_v38 = vrot.slane %v12558_v51, %v20520_v49 }
0x175e   :  { %15820 = vmatpush3.msra.mxu0 %v19332_v58 }
0x175f   :  { %16483 = vmatprep.subr.bf16.mxu0 %v20672_v15 }
0x1762   :  { %v15803_v29 = vpop.f32.mrb[100].mxu0 }
0x1763   :  { %v11793_v63 = vpop.f32.mrb[101].mxu0 }
0x1764   :  { %15821 = vmatprep.mubr.msk.f32.mxu0 %vm2421_vm3, %v11793_v63  ;;  %v19755_v63 = vsub.f32 %v19637_v32, %v12573_v34 }
0x1765   :  { %15822 = vmatmul.mubr.msk.f32.vlgmr.msra.gmra.mrb[104].mxu0 %vm2421_vm3, %v15803_v29  ;;  %v19752_v29 = vsub.f32 %v19652_v24, %v12569_v37 }
0x1766   :  { %15857 = vmatprep.mubr.msk.f32.mxu0 %vm16713_vm0, %v20673_v57 }
0x181f   :  { %v15808_v2 = vpop.f32.mrb[100].mxu1 }
0x1820   :  { %v11874_v44 = vpop.f32.mrb[101].mxu1  ;;  %v12133_v19 = vsel %vm804_vm2, %v15808_v2, 0.0  ;;  %v19758_v2 = vsub.f32 %v19640_v21, %v12577_v25 }
0x1821   :  { %v12126_v20 = vsel %vm329_vm1, %v11874_v44, 0.0  ;;  %v19761_v44 = vsub.f32 %v19624_v7, %v12581_v50 }
0x1828   :  { %v15818_v14 = vpop.f32.mrb[102].mxu1 }
0x1829   :  { %v12036_v5 = vpop.f32.mrb[103].mxu1  ;;  %v12136_v9 = vsel %vm804_vm2, %v15818_v14, 0.0  ;;  %v19764_v14 = vsub.f32 %v19646_v11, %v12585_v1 }
0x182a   :  { %v12129_v4 = vsel %vm329_vm1, %v12036_v5, 0.0  ;;  %v19767_v5 = vsub.f32 %v19627_v39, %v12589_v16 }
0x1830   :  { %v15813_v60 = vpop.f32.mrb[102].mxu0 }
0x1831   :  { %v12134_v58 = vsel %vm804_vm2, %v15813_v60, 0.0  ;;  %v11955_v10 = vpop.f32.mrb[103].mxu0  ;;  %v19770_v60 = vsub.f32 %v19630_v30, %v12593_v38  ;;  %v20678_v30 = vld [vmem:[#allocation35_spill] sm:$0xff] }
0x1832   :  { %v12135_v3 = vadd.f32 %v12134_v58, %v12133_v19  ;;  %v12127_v12 = vsel %vm329_vm1, %v11955_v10, 0.0  ;;  %v19773_v19 = vsub.f32 %v19618_v23, %v12597_v52  ;;  %v12674_v10 = vmul.f32 %v19752_v29, %v19752_v29 }
0x1833   :  { %v12128_v35 = vadd.f32 %v12127_v12, %v12126_v20  ;;  %v12675_v12 = vmul.f32 %v19755_v63, %v19755_v63 }
0x1834   :  { %v12137_v53 = vadd.f32 %v12136_v9, %v12135_v3  ;;  %v12676_v9 = vmul.f32 %v19758_v2, %v19758_v2 }
0x1835   :  { %v12130_v62 = vadd.f32 %v12129_v4, %v12128_v35  ;;  %v12677_v35 = vmul.f32 %v19761_v44, %v19761_v44  ;;  %v12710_v34 = vcombine.low %v12674_v10, %v12675_v12 }
0x1837   :  { %v12711_v25 = vcombine.low %v12676_v9, %v12677_v35  ;;  %v20676_v9 = vld [vmem:[#allocation43_spill] sm:$0xff]  ;;  %v12720_v54 = vrot.slane %v12710_v34, %v16858_v17  ;;  %v20684_v34 = vld [vmem:[#allocation32_spill] sm:$0xff] }
0x1838   :  { %v15823_v28 = vpop.f32.mrb[104].mxu0 }
0x1839   :  { %v12138_v55 = vsel %vm804_vm2, %v15823_v28, 0.0  ;;  %v12117_v59 = vpop.f32.mrb[105].mxu0  ;;  %v12679_v28 = vmul.f32 %v19767_v5, %v19767_v5 }
0x183a   :  { %v12139_v22 = vadd.f32 %v12138_v55, %v12137_v53  ;;  %v12131_v56 = vsel %vm329_vm1, %v12117_v59, 0.0  ;;  %v12680_v55 = vmul.f32 %v19770_v60, %v19770_v60  ;;  %v12681_v59 = vmul.f32 %v19773_v19, %v19773_v19 }
0x183b   :  { %v12132_v27 = vadd.f32 %v12131_v56, %v12130_v62  ;;  %v12678_v62 = vmul.f32 %v19764_v14, %v19764_v14 }
0x183c   :  { %12141 = vst.msk [vmem:[#allocation2 + $0x18] sm:$0x1] %vm804_vm2, %v12139_v22 }
0x183d   :  { %12140 = vst.msk [vmem:[#allocation2 + $0x10] sm:$0xff] %vm329_vm1, %v12132_v27 }
0x1843   :  { %v14388_v58 = vld.sshfl [vmem:[#allocation2 + $0x18] sm:$0x1 pattern:$0x75316420] }
0x1844   :  { %v12275_v20 = vrot.slane %v14388_v58, %v16858_v17  ;;  %v12144_v3 = vld [vmem:[#allocation2 + $0x10] sm:$0xff]  ;;  %v12712_v58 = vcombine.low %v12678_v62, %v12679_v28  ;;  %v20680_v28 = vld [vmem:[#allocation26_spill] sm:$0xff] }
0x1845   :  { %v12213_v4 = vcombine.high %v12144_v3, %v12144_v3  ;;  %v12220_v53 = vrot.slane %v12144_v3, %v16858_v17 }
0x1846   :  { %v12311_v51 = vadd.f32 %v12275_v20, %v19200_v61  ;;  %v12713_v20 = vcombine.low %v12680_v55, %v12681_v59 }
0x1847   :  { %v12227_v22 = vrot.slane %v12213_v4, %v16858_v17  ;;  %v12228_v56 = vcombine.high %v12220_v53, %v12220_v53  ;;  %v12236_v27 = vrot.slane %v12220_v53, %v16858_v17 }
0x1848   :  { %v19797_v37 = vadd.f32 %v19597_v0, %v12311_v51  ;;  %v20675_v51 = vld [vmem:[#allocation33_spill] sm:$0xff] }
0x1849   :  { %v12229_v61 = vcombine.high %v12227_v22, %v12227_v22  ;;  %v12243_v50 = vrot.slane %v12227_v22, %v16858_v17  ;;  %v12250_v1 = vrot.slane %v12228_v56, %v16858_v17  ;;  %v12258_v16 = vcombine.high %v12236_v27, %v12236_v27  ;;  %v20677_v22 = vld [vmem:[#allocation34_spill] sm:$0xff] }
0x184a   :  { %20674 = vst [vmem:[#allocation44_spill] sm:$0xff] %v19797_v37  ;;  %v12534_v38 = vrot.slane %v19797_v37, %v16858_v17  ;;  %v12303_v52 = vadd.f32 %v12236_v27, %v19171_v47  ;;  %v20679_v47 = vld [vmem:[#allocation30_spill] sm:$0xff] }
0x184b   :  { %v12257_v3 = vrot.slane %v12229_v61, %v16858_v17  ;;  %v12259_v4 = vcombine.high %v12243_v50, %v12243_v50  ;;  %v12260_v53 = vcombine.high %v12250_v1, %v12250_v1  ;;  %v12304_v10 = vadd.f32 %v12250_v1, %v20675_v51 }
0x184c   :  { %v12541_v12 = vrot.slane %v12534_v38, %v16858_v17  ;;  %v12305_v35 = vadd.f32 %v12258_v16, %v20676_v9  ;;  %v12307_v56 = vadd.f32 %v12243_v50, %v20677_v22  ;;  %v19815_v27 = vadd.f32 %v19597_v0, %v12303_v52 }
0x184d   :  { %v12261_v23 = vcombine.high %v12257_v3, %v12257_v3  ;;  %v12306_v39 = vadd.f32 %v12260_v53, %v20678_v30  ;;  %v12308_v62 = vadd.f32 %v12257_v3, %v20679_v47  ;;  %v12309_v55 = vadd.f32 %v12259_v4, %v20680_v28  ;;  %v14395_v47 = vld [vmem:[%s20278_s13 + $0x20] sm:$0xff]  ;;  %v14397_v28 = vld [vmem:[%s20278_s13 + $0x30] sm:$0xff] }
0x184e   :  { %v12555_v59 = vsel %vm804_vm2, %v12541_v12, 0.0  ;;  %20681 = vst [vmem:[#allocation14_spill] sm:$0xff] %v19815_v27  ;;  %v19818_v61 = vadd.f32 %v19581_v26, %v12304_v10  ;;  %v19821_v1 = vadd.f32 %v19614_v36, %v12305_v35  ;;  %v19828_v16 = vadd.f32 %v19578_v6, %v12307_v56 }
0x184f   :  { %12556 = vadd.xlane.f32.xlu0 %v12555_v59  ;;  %v12310_v50 = vadd.f32 %v12261_v23, %v20684_v34  ;;  %v19825_v30 = vadd.f32 %v19605_v31, %v12306_v39  ;;  %v19831_v38 = vadd.f32 %v19573_v18, %v12308_v62  ;;  %v12727_v26 = vrot.slane %v12711_v25, %v16858_v17  ;;  %v14396_v62 = vld [vmem:[%s20278_s13 + $0x28] sm:$0xff]  ;;  %v14398_v59 = vld [vmem:[%s20278_s13 + $0x38] sm:$0xff] }
0x1850   :  { %20682 = vst [vmem:[#allocation45_spill] sm:$0xff] %v19818_v61  ;;  %20683 = vst [vmem:[#allocation16_spill] sm:$0xff] %v19821_v1  ;;  %v12479_v0 = vcombine.low %v19815_v27, %v19818_v61  ;;  %v12734_v36 = vrot.slane %v12712_v58, %v16858_v17  ;;  %v12741_v52 = vrot.slane %v12713_v20, %v16858_v17 }
0x1851   :  { %20685 = vst [vmem:[#allocation17_spill] sm:$0xff] %v19825_v30  ;;  %20686 = vst [vmem:[#allocation36_spill] sm:$0xff] %v19828_v16  ;;  %v19839_v23 = vadd.f32 %v19601_v33, %v12309_v55  ;;  %v19842_v31 = vadd.f32 %v19593_v8, %v12310_v50  ;;  %v12480_v6 = vcombine.low %v19821_v1, %v19825_v30  ;;  %v19874_v50 = vpop.xlane.xlu0 %12844 }
0x1852   :  { %20687 = vst [vmem:[#allocation23_spill] sm:$0xff] %v19831_v38  ;;  %v12481_v18 = vcombine.low %v19828_v16, %v19831_v38  ;;  %v12489_v25 = vrot.slane %v12479_v0, %v16858_v17  ;;  %v12742_v20 = vcombine.low %v12720_v54, %v12727_v26  ;;  %v12743_v4 = vcombine.low %v12734_v36, %v12741_v52  ;;  %v14393_v52 = vld [vmem:[%s20276_s11 + $0x1] ss:$0 sm:$0xff] }
0x1853   :  { %20688 = vst [vmem:[#allocation25_spill] sm:$0xff] %v19839_v23  ;;  %20689 = vst [vmem:[#allocation22_spill] sm:$0xff] %v19842_v31  ;;  %v12482_v39 = vcombine.low %v19839_v23, %v19842_v31  ;;  %v12496_v58 = vrot.slane %v12480_v6, %v16858_v17  ;;  %v16478_v55 = vpack.c.bf16 %v14396_v62, %v14395_v47  ;;  %v14394_v6 = vld [vmem:[%s20277_s12 + $0x1] ss:$0 sm:$0xff] }
0x1854   :  { %v12503_v33 = vrot.slane %v12481_v18, %v16858_v17  ;;  %v12750_v12 = vrot.slane %v12742_v20, %v16858_v17  ;;  %v12757_v9 = vrot.slane %v12743_v4, %v16858_v17  ;;  %v16481_v34 = vpack.c.bf16 %v14398_v59, %v14397_v28 }
0x1855   :  { %v12510_v3 = vrot.slane %v12482_v39, %v16858_v17  ;;  %v12511_v8 = vcombine.low %v12489_v25, %v12496_v58  ;;  %16479 = vmatpush3.bf16.msra.mxu1 %v16478_v55  ;;  %v12981_v39 = vcombine.high %v14393_v52, %v14393_v52  ;;  %v13061_v25 = vcombine.high %v14394_v6, %v14394_v6 }
0x1856   :  { %v12758_v56 = vcombine.low %v12750_v12, %v12757_v9  ;;  %16480 = vmatprep.subr.bf16.mxu1 %v20672_v15  ;;  %v12988_v58 = vrot.slane %v14393_v52, %v16858_v17 }
0x1857   :  { %v12512_v53 = vcombine.low %v12503_v33, %v12510_v3  ;;  %v12519_v51 = vrot.slane %v12511_v8, %v16858_v17  ;;  %v13068_v3 = vrot.slane %v14394_v6, %v16858_v17  ;;  %v12995_v4 = vrot.slane %v12981_v39, %v16858_v17 }
0x1858   :  { %v12840_v54 = vsel %vm329_vm1, %v12758_v56, 0.0 }
0x1859   :  { %v12526_v10 = vrot.slane %v12512_v53, %v16858_v17  ;;  %16482 = vmatpush3.bf16.msra.mxu1 %v16481_v34  ;;  %v12996_v53 = vcombine.high %v12988_v58, %v12988_v58 }
0x185a   :  { %16495 = vmatprep.subr.bf16.mxu1 %v20672_v15 }
0x185b   :  { %v12527_v35 = vcombine.low %v12519_v51, %v12526_v10  ;;  %v13075_v51 = vrot.slane %v13061_v25, %v16858_v17 }
0x185d   :  { %v12552_v22 = vsel %vm329_vm1, %v12527_v35, 0.0 }
0x185e   :  { %12553 = vadd.xlane.f32.xlu1 %v12552_v22 }
0x1862   :  { %12841 = vadd.xlane.f32.xlu1 %v12840_v54 }
0x18dc   :  { %v12557_v0 = vpop.xlane.xlu0 %12556 }
0x18dd   :  { %v12561_v26 = vmul.f32 0.03125, %v12557_v0 }
0x18df   :  { %v12637_v36 = vrot.slane %v12561_v26, %v17019_v40 }
0x18e1   :  { %v19884_v18 = vsub.f32 %v19797_v37, %v12637_v36 }
0x18e3   :  { %20690 = vst [vmem:[#allocation19_spill] sm:$0xff] %v19884_v18  ;;  %v12691_v8 = vmul.f32 %v19884_v18, %v19884_v18 }
0x18eb   :  { %v12554_v20 = vpop.xlane.xlu1 %12553 }
0x18ec   :  { %v12560_v33 = vmul.f32 0.03125, %v12554_v20 }
0x18ee   :  { %v12605_v10 = vrot.slane %v12560_v33, %v17019_v40  ;;  %v12609_v12 = vrot.slane %v12560_v33, %v17022_v42  ;;  %v12613_v9 = vrot.slane %v12560_v33, %v17025_v41  ;;  %v12617_v35 = vrot.slane %v12560_v33, %v17028_v43 }
0x18ef   :  { %v12842_v22 = vpop.xlane.xlu1 %12841  ;;  %v12621_v56 = vrot.slane %v12560_v33, %v20518_v45  ;;  %v12625_v54 = vrot.slane %v12560_v33, %v20519_v46  ;;  %v12629_v47 = vrot.slane %v12560_v33, %v20520_v49  ;;  %v12633_v62 = vrot.slane %v12560_v33, %v17040_v48 }
0x18f0   :  { %v12852_v28 = vmul.f32 0.03125, %v12842_v22  ;;  %v19901_v55 = vsub.f32 %v19815_v27, %v12605_v10  ;;  %v19904_v59 = vsub.f32 %v19818_v61, %v12609_v12  ;;  %v19907_v34 = vsub.f32 %v19821_v1, %v12613_v9 }
0x18f1   :  { %v19910_v0 = vsub.f32 %v19825_v30, %v12617_v35  ;;  %v19913_v26 = vsub.f32 %v19828_v16, %v12621_v56  ;;  %v19916_v36 = vsub.f32 %v19831_v38, %v12625_v54  ;;  %v19919_v52 = vsub.f32 %v19839_v23, %v12629_v47 }
0x18f2   :  { %v12856_v6 = vadd.f32 1e-05, %v12852_v28  ;;  %v19922_v39 = vsub.f32 %v19842_v31, %v12633_v62  ;;  %v12683_v25 = vmul.f32 %v19901_v55, %v19901_v55  ;;  %v12684_v20 = vmul.f32 %v19904_v59, %v19904_v59 }
0x18f3   :  { %v12685_v33 = vmul.f32 %v19907_v34, %v19907_v34  ;;  %v12686_v10 = vmul.f32 %v19910_v0, %v19910_v0  ;;  %v12687_v12 = vmul.f32 %v19913_v26, %v19913_v26  ;;  %v12688_v9 = vmul.f32 %v19916_v36, %v19916_v36 }
0x18f4   :  { %16672 = vrsqrt.f32 %v12856_v6  ;;  %v12689_v35 = vmul.f32 %v19919_v52, %v19919_v52  ;;  %v12690_v22 = vmul.f32 %v19922_v39, %v19922_v39  ;;  %v12773_v56 = vcombine.low %v12683_v25, %v12684_v20 }
0x18f5   :  { %v12774_v54 = vcombine.low %v12685_v33, %v12686_v10  ;;  %v12775_v47 = vcombine.low %v12687_v12, %v12688_v9  ;;  %v12997_v62 = vcombine.high %v12995_v4, %v12995_v4  ;;  %v13076_v28 = vcombine.high %v13068_v3, %v13068_v3 }
0x18f6   :  { %v12776_v37 = vcombine.low %v12689_v35, %v12690_v22  ;;  %v12783_v31 = vrot.slane %v12773_v56, %v16858_v17  ;;  %v12828_v23 = vrot.slane %v12691_v8, %v16858_v17  ;;  %v13077_v38 = vcombine.high %v13075_v51, %v13075_v51 }
0x18f7   :  { %v12790_v16 = vrot.slane %v12774_v54, %v16858_v17  ;;  %v12797_v6 = vrot.slane %v12775_v47, %v16858_v17  ;;  %v19945_v1 = vrot.slane %v12988_v58, %v16858_v17  ;;  %v19949_v25 = vrot.slane %v12995_v4, %v16858_v17 }
0x18f8   :  { %v12804_v30 = vrot.slane %v12776_v37, %v16858_v17  ;;  %v19952_v33 = vrot.slane %v12996_v53, %v16858_v17  ;;  %v19955_v10 = vrot.slane %v12997_v62, %v16858_v17  ;;  %v19958_v8 = vrot.slane %v13075_v51, %v16858_v17 }
0x18f9   :  { %v12805_v20 = vcombine.low %v12783_v31, %v12790_v16  ;;  %v12835_v9 = vrot.slane %v12828_v23, %v16858_v17  ;;  %v19962_v58 = vrot.slane %v13076_v28, %v16858_v17  ;;  %v19965_v37 = vrot.slane %v13077_v38, %v16858_v17 }
0x18fa   :  { %v12806_v12 = vcombine.low %v12797_v6, %v12804_v30  ;;  %v19969_v31 = vrot.slane %v13068_v3, %v16858_v17  ;;  %v19974_v53 = vcombine.high %v19945_v1, %v19945_v1  ;;  %v19978_v30 = vcombine.high %v19949_v25, %v19949_v25 }
0x18fb   :  { %v12813_v16 = vrot.slane %v12805_v20, %v16858_v17  ;;  %v19982_v23 = vcombine.high %v19952_v33, %v19952_v33  ;;  %v19986_v38 = vcombine.high %v19955_v10, %v19955_v10  ;;  %v19994_v51 = vcombine.high %v19958_v8, %v19958_v8 }
0x18fc   :  { %v12820_v4 = vrot.slane %v12806_v12, %v16858_v17  ;;  %v19990_v3 = vcombine.high %v19969_v31, %v19969_v31  ;;  %v12849_v56 = vsel %vm804_vm2, %v12835_v9, 0.0  ;;  %v19999_v54 = vcombine.high %v19962_v58, %v19962_v58 }
0x18fd   :  { %v20003_v47 = vcombine.high %v19965_v37, %v19965_v37 }
0x18fe   :  { %v16673_v35 = vpop.eup %16672  ;;  %v12821_v22 = vcombine.low %v12813_v16, %v12820_v4 }
0x18ff   :  { %v12871_v62 = vrot.slane %v16673_v35, %v17019_v40  ;;  %v12875_v28 = vrot.slane %v16673_v35, %v17022_v42  ;;  %v12879_v6 = vrot.slane %v16673_v35, %v17025_v41  ;;  %v12883_v20 = vrot.slane %v16673_v35, %v17028_v43 }
0x1900   :  { %v12846_v12 = vsel %vm329_vm1, %v12821_v22, 0.0  ;;  %v12887_v9 = vrot.slane %v16673_v35, %v20518_v45  ;;  %v12891_v16 = vrot.slane %v16673_v35, %v20519_v46  ;;  %v12895_v4 = vrot.slane %v16673_v35, %v20520_v49 }
0x1901   :  { %12847 = vadd.xlane.f32.xlu1 %v12846_v12  ;;  %v12899_v61 = vrot.slane %v16673_v35, %v17040_v48  ;;  %v12958_v27 = vmul.f32 %v12871_v62, %v19752_v29  ;;  %v12959_v11 = vmul.f32 %v12875_v28, %v19755_v63  ;;  %v12960_v7 = vmul.f32 %v12879_v6, %v19758_v2 }
0x1902   :  { %v12961_v21 = vmul.f32 %v12883_v20, %v19761_v44  ;;  %v12962_v24 = vmul.f32 %v12887_v9, %v19764_v14  ;;  %v12963_v22 = vmul.f32 %v12891_v16, %v19767_v5  ;;  %v12964_v32 = vmul.f32 %v12895_v4, %v19770_v60 }
0x1903   :  { %v12965_v18 = vmul.f32 %v12899_v61, %v19773_v19  ;;  %v13038_v12 = vmul.f32 %v19945_v1, %v12958_v27  ;;  %v13039_v35 = vmul.f32 %v19952_v33, %v12959_v11  ;;  %v13040_v29 = vmul.f32 %v19974_v53, %v12960_v7 }
0x1904   :  { %v13041_v63 = vmul.f32 %v19982_v23, %v12961_v21  ;;  %v13042_v2 = vmul.f32 %v19949_v25, %v12962_v24  ;;  %v13043_v44 = vmul.f32 %v19955_v10, %v12963_v22  ;;  %v13044_v14 = vmul.f32 %v19978_v30, %v12964_v32 }
0x1905   :  { %12850 = vadd.xlane.f32.xlu1 %v12849_v56  ;;  %v13045_v5 = vmul.f32 %v19986_v38, %v12965_v18  ;;  %v13118_v60 = vadd.f32 %v19969_v31, %v13038_v12  ;;  %v13119_v19 = vadd.f32 %v19962_v58, %v13039_v35  ;;  %v13120_v27 = vadd.f32 %v19990_v3, %v13040_v29  ;;  %v14404_v29 = vld [vmem:[%s20280_s15 + $0x40] sm:$0xff] }
0x1906   :  { %v13121_v11 = vadd.f32 %v19999_v54, %v13041_v63  ;;  %v13122_v7 = vadd.f32 %v19958_v8, %v13042_v2  ;;  %v13123_v21 = vadd.f32 %v19965_v37, %v13043_v44  ;;  %v13124_v24 = vadd.f32 %v19994_v51, %v13044_v14  ;;  %v14405_v63 = vld [vmem:[%s20280_s15 + $0x48] sm:$0xff]  ;;  %v14406_v2 = vld [vmem:[%s20280_s15 + $0x50] sm:$0xff]  ;;  %v14407_v14 = vld [vmem:[%s20280_s15 + $0x58] sm:$0xff] }
0x1907   :  { %v13125_v61 = vadd.f32 %v20003_v47, %v13045_v5  ;;  %v13167_v32 = vcombine.low %v13118_v60, %v13119_v19  ;;  %v16484_v44 = vpack.c.bf16 %v14405_v63, %v14404_v29  ;;  %v16487_v5 = vpack.c.bf16 %v14407_v14, %v14406_v2  ;;  %v14408_v60 = vld [vmem:[%s20280_s15 + $0x60] sm:$0xff]  ;;  %v14409_v19 = vld [vmem:[%s20280_s15 + $0x68] sm:$0xff] }
0x1908   :  { %v13168_v56 = vcombine.low %v13120_v27, %v13121_v11  ;;  %v13169_v62 = vcombine.low %v13122_v7, %v13123_v21  ;;  %v16490_v27 = vpack.c.bf16 %v14409_v19, %v14408_v60  ;;  %v14410_v11 = vld [vmem:[%s20280_s15 + $0x70] sm:$0xff]  ;;  %v14411_v7 = vld [vmem:[%s20280_s15 + $0x78] sm:$0xff]  ;;  %v12853_v21 = vmul.f32 0.03125, %v19874_v50 }
0x1909   :  { %v13170_v18 = vcombine.low %v13124_v24, %v13125_v61  ;;  %v13177_v28 = vrot.slane %v13167_v32, %v16858_v17  ;;  %16485 = vmatpush3.bf16.msra.mxu0 %v16484_v44  ;;  %v16493_v24 = vpack.c.bf16 %v14411_v7, %v14410_v11  ;;  %v20691_v7 = vld [vmem:[#allocation19_spill] sm:$0xff] }
0x190a   :  { %v13184_v6 = vrot.slane %v13168_v56, %v16858_v17  ;;  %v13191_v20 = vrot.slane %v13169_v62, %v16858_v17  ;;  %16486 = vmatprep.subr.bf16.mxu0 %v20672_v15  ;;  %v12857_v61 = vadd.f32 1e-05, %v12853_v21 }
0x190b   :  { %v13198_v9 = vrot.slane %v13170_v18, %v16858_v17 }
0x190c   :  { %v13199_v16 = vcombine.low %v13177_v28, %v13184_v6  ;;  %16674 = vrsqrt.f32 %v12857_v61 }
0x190d   :  { %v13200_v4 = vcombine.low %v13191_v20, %v13198_v9  ;;  %16488 = vmatpush3.bf16.msra.mxu0 %v16487_v5 }
0x190e   :  { %v13207_v22 = vrot.slane %v13199_v16, %v16858_v17  ;;  %16489 = vmatprep.subr.bf16.mxu0 %v20672_v15 }
0x190f   :  { %v13214_v12 = vrot.slane %v13200_v4, %v16858_v17 }
0x1911   :  { %v13215_v35 = vcombine.low %v13207_v22, %v13214_v12  ;;  %16491 = vmatpush3.bf16.msra.mxu0 %v16490_v27 }
0x1912   :  { %16492 = vmatprep.subr.bf16.mxu0 %v20672_v15 }
0x1913   :  { %15833 = vmatmul.mubr.msk.f32.vlgmr.msra.gmra.mrb[104].mxu1 %vm329_vm1, %v13215_v35 }
0x1914   :  { %15835 = vmatprep.mubr.msk.f32.mxu1 %vm16713_vm0, %v20673_v57 }
0x1915   :  { %16494 = vmatpush3.bf16.msra.mxu0 %v16493_v24 }
0x1916   :  { %v16675_v32 = vpop.eup %16674 }
0x1917   :  { %v12903_v18 = vrot.slane %v16675_v32, %v17019_v40 }
0x1919   :  { %v12966_v9 = vmul.f32 %v12903_v18, %v19706_v13 }
0x191b   :  { %v13046_v50 = vmul.f32 %v19945_v1, %v12966_v9 }
0x191d   :  { %v13126_v22 = vadd.f32 %v19969_v31, %v13046_v50 }
0x198e   :  { %v12848_v56 = vpop.xlane.xlu1 %12847 }
0x198f   :  { %v12854_v62 = vmul.f32 0.03125, %v12848_v56 }
0x1991   :  { %v12858_v28 = vadd.f32 1e-05, %v12854_v62 }
0x1992   :  { %v12851_v6 = vpop.xlane.xlu1 %12850 }
0x1993   :  { %16676 = vrsqrt.f32 %v12858_v28  ;;  %v12855_v20 = vmul.f32 0.03125, %v12851_v6 }
0x1995   :  { %v12859_v16 = vadd.f32 1e-05, %v12855_v20 }
0x1997   :  { %16678 = vrsqrt.f32 %v12859_v16 }
0x199d   :  { %v16677_v4 = vpop.eup %16676 }
0x199e   :  { %v12907_v12 = vrot.slane %v16677_v4, %v17019_v40  ;;  %v12911_v35 = vrot.slane %v16677_v4, %v17022_v42  ;;  %v12915_v29 = vrot.slane %v16677_v4, %v17025_v41  ;;  %v12919_v63 = vrot.slane %v16677_v4, %v17028_v43 }
0x199f   :  { %v12923_v2 = vrot.slane %v16677_v4, %v20518_v45  ;;  %v12927_v44 = vrot.slane %v16677_v4, %v20519_v46  ;;  %v12931_v13 = vrot.slane %v16677_v4, %v20520_v49  ;;  %v12935_v14 = vrot.slane %v16677_v4, %v17040_v48 }
0x19a0   :  { %v12967_v5 = vmul.f32 %v12907_v12, %v19901_v55  ;;  %v12968_v60 = vmul.f32 %v12911_v35, %v19904_v59  ;;  %v12969_v19 = vmul.f32 %v12915_v29, %v19907_v34  ;;  %v12970_v27 = vmul.f32 %v12919_v63, %v19910_v0 }
0x19a1   :  { %v16679_v11 = vpop.eup %16678  ;;  %v12971_v41 = vmul.f32 %v12923_v2, %v19913_v26  ;;  %v12972_v43 = vmul.f32 %v12927_v44, %v19916_v36  ;;  %v12973_v45 = vmul.f32 %v12931_v13, %v19919_v52  ;;  %v12974_v46 = vmul.f32 %v12935_v14, %v19922_v39 }
0x19a2   :  { %v12939_v49 = vrot.slane %v16679_v11, %v17019_v40  ;;  %v13047_v48 = vmul.f32 %v19945_v1, %v12967_v5  ;;  %v13048_v55 = vmul.f32 %v19952_v33, %v12968_v60  ;;  %v13049_v59 = vmul.f32 %v19974_v53, %v12969_v19 }
0x19a3   :  { %v13050_v34 = vmul.f32 %v19982_v23, %v12970_v27  ;;  %v13051_v0 = vmul.f32 %v19949_v25, %v12971_v41  ;;  %v13052_v26 = vmul.f32 %v19955_v10, %v12972_v43  ;;  %v13053_v36 = vmul.f32 %v19978_v30, %v12973_v45 }
0x19a4   :  { %v12975_v52 = vmul.f32 %v12939_v49, %v20691_v7  ;;  %v13127_v39 = vadd.f32 %v19969_v31, %v13047_v48  ;;  %v13128_v21 = vadd.f32 %v19962_v58, %v13048_v55  ;;  %v13129_v24 = vadd.f32 %v19990_v3, %v13049_v59 }
0x19a5   :  { %v13130_v33 = vadd.f32 %v19999_v54, %v13050_v34  ;;  %v13131_v53 = vadd.f32 %v19958_v8, %v13051_v0  ;;  %v13132_v23 = vadd.f32 %v19965_v37, %v13052_v26  ;;  %v13133_v25 = vadd.f32 %v19994_v51, %v13053_v36 }
0x19a6   :  { %v13216_v61 = vcombine.low %v13126_v22, %v13127_v39  ;;  %v13217_v10 = vcombine.low %v13128_v21, %v13129_v24  ;;  %v13054_v30 = vmul.f32 %v19986_v38, %v12974_v46  ;;  %v13055_v32 = vmul.f32 %v19945_v1, %v12975_v52 }
0x19a7   :  { %v13218_v56 = vcombine.low %v13130_v33, %v13131_v53  ;;  %v13219_v62 = vcombine.low %v13132_v23, %v13133_v25  ;;  %v14413_v23 = vld [vmem:[%s20281_s16 + $0x1] ss:$0 sm:$0xff] }
0x19a8   :  { %v13226_v58 = vrot.slane %v13216_v61, %v16858_v17  ;;  %v13233_v3 = vrot.slane %v13217_v10, %v16858_v17  ;;  %v13135_v54 = vadd.f32 %v19969_v31, %v13055_v32  ;;  %v13134_v51 = vadd.f32 %v20003_v47, %v13054_v30  ;;  %v14400_v47 = vld [vmem:[%s20279_s14 + $0x1] ss:$0 sm:$0xff] }
0x19a9   :  { %v13240_v8 = vrot.slane %v13218_v56, %v16858_v17  ;;  %v13247_v37 = vrot.slane %v13219_v62, %v16858_v17 }
0x19aa   :  { %v13248_v18 = vcombine.low %v13226_v58, %v13233_v3  ;;  %v13265_v6 = vcombine.low %v13134_v51, %v13135_v54 }
0x19ab   :  { %v13249_v28 = vcombine.low %v13240_v8, %v13247_v37 }
0x19ac   :  { %v13256_v38 = vrot.slane %v13248_v18, %v16858_v17  ;;  %v13272_v9 = vrot.slane %v13265_v6, %v16858_v17 }
0x19ad   :  { %v13263_v1 = vrot.slane %v13249_v28, %v16858_v17  ;;  %v20692_v28 = vld [vmem:[#allocation6_spill] sm:$0xff] }
0x19ae   :  { %v13279_v31 = vrot.slane %v13272_v9, %v16858_v17 }
0x19af   :  { %v13264_v20 = vcombine.low %v13256_v38, %v13263_v1  ;;  %v20693_v38 = vld [vmem:[#allocation7_spill] sm:$0xff] }
0x19b1   :  { %15836 = vmatmul.mubr.msk.f32.gmra.mrb[106].mxu1 %vm329_vm1, %v13264_v20  ;;  %v20694_v20 = vld [vmem:[#allocation8_spill] sm:$0xff] }
0x19b2   :  { %15838 = vmatprep.mubr.msk.f32.mxu1 %vm16713_vm0, %v20673_v57 }
0x19b5   :  { %15839 = vmatmul.mubr.msk.f32.gmra.mrb[108].mxu1 %vm329_vm1, %v13279_v31 }
0x19b6   :  { %15874 = vmatprep.mubr.msk.f32.mxu1 %vm16713_vm0, %v20673_v57 }
0x19e6   :  { %v13352_v16 = vpop.f32.mrb[104].mxu1 }
0x19e7   :  { %v13353_v50 = vadd.f32 %v14400_v47, %v13352_v16  ;;  %v15834_v4 = vpop.f32.mrb[105].mxu1 }
0x19e9   :  { %v13369_v22 = vmul.f32 0.044715, %v13353_v50  ;;  %v13366_v44 = vmul.f32 0.5, %v13353_v50 }
0x19eb   :  { %v13372_v12 = vmul.f32 %v13369_v22, %v13353_v50  ;;  %v20697_v22 = vld [vmem:[#allocation31_spill] sm:$0xff] }
0x19ed   :  { %v13375_v35 = vmul.f32 %v13372_v12, %v13353_v50 }
0x19ef   :  { %v13378_v29 = vadd.f32 %v13375_v35, %v13353_v50  ;;  %v20696_v50 = vld [vmem:[#allocation10_spill] sm:$0xff] }
0x19f1   :  { %v13381_v63 = vmul.f32 0.7978846, %v13378_v29  ;;  %v20698_v29 = vld [vmem:[#allocation27_spill] sm:$0xff] }
0x19f3   :  { %16680 = vtanh.f32 %v13381_v63 }
0x19fd   :  { %v16681_v2 = vpop.eup %16680 }
0x19fe   :  { %v13387_v13 = vadd.f32 1.0, %v16681_v2  ;;  %v20699_v2 = vld [vmem:[#allocation28_spill] sm:$0xff] }
0x1a00   :  { %v13390_v14 = vmul.f32 %v13387_v13, %v13366_v44 }
0x1a02   :  { %15858 = vmatmul.mubr.msk.f32.vlgmr.msra.gmra.mrb[106].mxu0 %vm6903_vm10, %v13390_v14 }
0x1a03   :  { %15860 = vmatprep.mubr.msk.f32.mxu0 %vm16713_vm0, %v20673_v57 }
0x1a84   :  { %v13357_v5 = vpop.f32.mrb[106].mxu1 }
0x1a85   :  { %v13358_v60 = vadd.f32 %v14400_v47, %v13357_v5  ;;  %v15837_v19 = vpop.f32.mrb[107].mxu1 }
0x1a87   :  { %v13370_v27 = vmul.f32 0.044715, %v13358_v60  ;;  %v13367_v7 = vmul.f32 0.5, %v13358_v60 }
0x1a88   :  { %v13362_v11 = vpop.f32.mrb[108].mxu1 }
0x1a89   :  { %v13373_v41 = vmul.f32 %v13370_v27, %v13358_v60  ;;  %v13363_v43 = vadd.f32 %v14400_v47, %v13362_v11  ;;  %v15840_v45 = vpop.f32.mrb[109].mxu1  ;;  %v20695_v47 = vld [vmem:[#allocation29_spill] sm:$0xff] }
0x1a8b   :  { %v13376_v46 = vmul.f32 %v13373_v41, %v13358_v60  ;;  %v13371_v49 = vmul.f32 0.044715, %v13363_v43  ;;  %v13368_v24 = vmul.f32 0.5, %v13363_v43 }
0x1a8d   :  { %v13379_v48 = vadd.f32 %v13376_v46, %v13358_v60  ;;  %v13374_v55 = vmul.f32 %v13371_v49, %v13363_v43 }
0x1a8f   :  { %v13377_v59 = vmul.f32 %v13374_v55, %v13363_v43  ;;  %v13382_v34 = vmul.f32 0.7978846, %v13379_v48 }
0x1a91   :  { %v13380_v0 = vadd.f32 %v13377_v59, %v13363_v43  ;;  %16682 = vtanh.f32 %v13382_v34 }
0x1a93   :  { %v13383_v26 = vmul.f32 0.7978846, %v13380_v0 }
0x1a95   :  { %16684 = vtanh.f32 %v13383_v26 }
0x1a9b   :  { %v16683_v36 = vpop.eup %16682 }
0x1a9c   :  { %v13388_v52 = vadd.f32 1.0, %v16683_v36 }
0x1a9e   :  { %v13391_v39 = vmul.f32 %v13388_v52, %v13367_v7 }
0x1a9f   :  { %v16685_v21 = vpop.eup %16684 }
0x1aa0   :  { %15861 = vmatmul.mubr.msk.f32.gmra.mrb[108].mxu0 %vm6903_vm10, %v13391_v39  ;;  %v13389_v33 = vadd.f32 1.0, %v16685_v21 }
0x1aa1   :  { %15863 = vmatprep.mubr.msk.f32.mxu0 %vm16713_vm0, %v20673_v57 }
0x1aa2   :  { %v13392_v53 = vmul.f32 %v13389_v33, %v13368_v24 }
0x1aa4   :  { %15864 = vmatmul.mubr.msk.f32.gmra.mrb[110].mxu0 %vm6903_vm10, %v13392_v53 }
0x1ad5   :  { %v13485_v25 = vpop.f32.mrb[106].mxu0 }
0x1ad6   :  { %v13486_v61 = vadd.f32 %v14413_v23, %v13485_v25  ;;  %v15859_v10 = vpop.f32.mrb[107].mxu0 }
0x1ad8   :  { %v13502_v30 = vcombine.high %v13486_v61, %v13486_v61  ;;  %v13509_v32 = vrot.slane %v13486_v61, %v16858_v17  ;;  %v20700_v61 = vld [vmem:[#allocation15_spill] sm:$0xff] }
0x1ada   :  { %v13516_v56 = vrot.slane %v13502_v30, %v16858_v17  ;;  %v13517_v62 = vcombine.high %v13509_v32, %v13509_v32  ;;  %v13525_v58 = vrot.slane %v13509_v32, %v16858_v17 }
0x1adc   :  { %v13518_v3 = vcombine.high %v13516_v56, %v13516_v56  ;;  %v13532_v57 = vrot.slane %v13516_v56, %v16858_v17  ;;  %v13539_v54 = vrot.slane %v13517_v62, %v16858_v17  ;;  %v13547_v8 = vcombine.high %v13525_v58, %v13525_v58 }
0x1add   :  { %v20150_v1 = vadd.f32 %v13525_v58, %v20693_v38  ;;  %v20701_v58 = vld [vmem:[#allocation14_spill] sm:$0xff]  ;;  %v20705_v38 = vld [vmem:[#allocation36_spill] sm:$0xff] }
0x1ade   :  { %v13546_v37 = vrot.slane %v13518_v3, %v16858_v17  ;;  %v13548_v51 = vcombine.high %v13532_v57, %v13532_v57  ;;  %v13549_v18 = vcombine.high %v13539_v54, %v13539_v54  ;;  %v13641_v6 = vadd.f32 %v13539_v54, %v20692_v28  ;;  %v20704_v28 = vld [vmem:[#allocation16_spill] sm:$0xff] }
0x1adf   :  { %v13642_v9 = vadd.f32 %v13547_v8, %v20694_v20  ;;  %v13644_v4 = vadd.f32 %v13532_v57, %v20696_v50  ;;  %v20702_v57 = vld [vmem:[#allocation45_spill] sm:$0xff] }
0x1ae0   :  { %v13550_v31 = vcombine.high %v13546_v37, %v13546_v37  ;;  %v13643_v16 = vadd.f32 %v13549_v18, %v20695_v47  ;;  %v13645_v12 = vadd.f32 %v13546_v37, %v20697_v22  ;;  %v13676_v35 = vcombine.low %v20150_v1, %v13641_v6 }
0x1ae1   :  { %v13646_v63 = vadd.f32 %v13548_v51, %v20698_v29 }
0x1ae2   :  { %v13647_v44 = vadd.f32 %v13550_v31, %v20699_v2  ;;  %v13677_v13 = vcombine.low %v13642_v9, %v13643_v16  ;;  %v13678_v14 = vcombine.low %v13644_v4, %v13645_v12  ;;  %v13686_v60 = vrot.slane %v13676_v35, %v16858_v17  ;;  %v20706_v9 = vld [vmem:[#allocation23_spill] sm:$0xff]  ;;  %v20707_v12 = vld [vmem:[#allocation25_spill] sm:$0xff]  ;;  %v20708_v2 = vld [vmem:[#allocation22_spill] sm:$0xff] }
0x1ae4   :  { %v13679_v5 = vcombine.low %v13646_v63, %v13647_v44  ;;  %v13693_v19 = vrot.slane %v13677_v13, %v16858_v17  ;;  %v13700_v27 = vrot.slane %v13678_v14, %v16858_v17  ;;  %v20709_v13 = vld [vmem:[#allocation44_spill] sm:$0xff] }
0x1ae6   :  { %v13707_v11 = vrot.slane %v13679_v5, %v16858_v17  ;;  %v13708_v41 = vcombine.low %v13686_v60, %v13693_v19 }
0x1ae8   :  { %v13709_v43 = vcombine.low %v13700_v27, %v13707_v11  ;;  %v13716_v45 = vrot.slane %v13708_v41, %v16858_v17 }
0x1aea   :  { %v13723_v46 = vrot.slane %v13709_v43, %v16858_v17 }
0x1aec   :  { %v13724_v49 = vcombine.low %v13716_v45, %v13723_v46 }
0x1aee   :  { %13806 = vst.msk [vmem:[%s20286_s21] sm:$0xff] %vm329_vm1, %v13724_v49 }
0x1b73   :  { %v13490_v48 = vpop.f32.mrb[108].mxu0 }
0x1b74   :  { %v13491_v55 = vadd.f32 %v14413_v23, %v13490_v48  ;;  %v15862_v59 = vpop.f32.mrb[109].mxu0 }
0x1b76   :  { %v13551_v34 = vcombine.high %v13491_v55, %v13491_v55  ;;  %v13558_v0 = vrot.slane %v13491_v55, %v16858_v17 }
0x1b77   :  { %v13495_v26 = vpop.f32.mrb[110].mxu0 }
0x1b78   :  { %v13565_v36 = vrot.slane %v13551_v34, %v16858_v17  ;;  %v13566_v7 = vcombine.high %v13558_v0, %v13558_v0  ;;  %v13574_v52 = vrot.slane %v13558_v0, %v16858_v17  ;;  %v13496_v39 = vadd.f32 %v14413_v23, %v13495_v26  ;;  %v15865_v21 = vpop.f32.mrb[111].mxu0  ;;  %v20703_v23 = vld [vmem:[#allocation17_spill] sm:$0xff] }
0x1b7a   :  { %v13567_v24 = vcombine.high %v13565_v36, %v13565_v36  ;;  %v13581_v33 = vrot.slane %v13565_v36, %v16858_v17  ;;  %v13588_v53 = vrot.slane %v13566_v7, %v16858_v17  ;;  %v13596_v25 = vcombine.high %v13574_v52, %v13574_v52 }
0x1b7b   :  { %v13648_v10 = vadd.f32 %v13574_v52, %v20700_v61  ;;  %v13606_v30 = vrot.slane %v13496_v39, %v16858_v17 }
0x1b7c   :  { %v13595_v32 = vrot.slane %v13567_v24, %v16858_v17  ;;  %v13597_v56 = vcombine.high %v13581_v33, %v13581_v33  ;;  %v13598_v62 = vcombine.high %v13588_v53, %v13588_v53  ;;  %v13649_v3 = vadd.f32 %v13588_v53, %v20701_v58 }
0x1b7d   :  { %v13650_v54 = vadd.f32 %v13596_v25, %v20702_v57  ;;  %v13652_v8 = vadd.f32 %v13581_v33, %v20703_v23  ;;  %v13731_v37 = vrot.slane %v13648_v10, %v16858_v17  ;;  %v13607_v51 = vcombine.high %v13606_v30, %v13606_v30  ;;  %v14417_v23 = vld [vmem:[%s20282_s17] ss:$0 sm:$0xff] }
0x1b7e   :  { %v13599_v18 = vcombine.high %v13595_v32, %v13595_v32  ;;  %v13651_v6 = vadd.f32 %v13598_v62, %v20704_v28  ;;  %v13653_v20 = vadd.f32 %v13595_v32, %v20705_v38  ;;  %v13654_v31 = vadd.f32 %v13597_v56, %v20706_v9  ;;  %v13948_v32 = vld [vmem:[%s20284_s19 + $0x8] sm:$0xff]  ;;  %v13949_v56 = vld [vmem:[%s20284_s19 + $0x10] sm:$0xff]  ;;  %v13950_v62 = vld [vmem:[%s20284_s19 + $0x18] sm:$0xff] }
0x1b7f   :  { %v13738_v47 = vrot.slane %v13731_v37, %v16858_v17  ;;  %v13739_v16 = vcombine.low %v13649_v3, %v13650_v54  ;;  %v13614_v50 = vrot.slane %v13606_v30, %v16858_v17  ;;  %v13621_v4 = vrot.slane %v13607_v51, %v16858_v17  ;;  %v13947_v30 = vld [vmem:[%s20284_s19] sm:$0xff]  ;;  %s16717_s19 = smov [#allocation3]  }
0x1b80   :  { %v13740_v22 = vcombine.low %v13651_v6, %v13652_v8  ;;  %v13655_v35 = vadd.f32 %v13599_v18, %v20707_v12  ;;  %v13812_v29 = vcombine.low %v20150_v1, %v13649_v3  ;;  %v13741_v63 = vcombine.low %v13653_v20, %v13654_v31  ;;  %v14418_v8 = vld [vmem:[%s20283_s18] ss:$0 sm:$0xff]  ;;  %s14057_s25 = sshll.u32 %s16717_s19, 4  ;;  %s14058_s25 = int_to_ptr.vmem [resolvable:$true] %s14057_s25 }
0x1b81   :  { %13807 = vst.msk [vmem:[%s20286_s21 + $0x8] sm:$0x1] %vm804_vm2, %v13738_v47  ;;  %v13656_v44 = vadd.f32 %v13614_v50, %v20708_v2  ;;  %v13657_v14 = vadd.f32 %v13621_v4, %v20709_v13  ;;  %v13749_v19 = vrot.slane %v13739_v16, %v16858_v17  ;;  %v16499_v58 = vpack.c.bf16 %v13950_v62, %v13949_v56  ;;  %s16688_s27 = scalar_lea.vmem %s14058_s25, 32  ;;  %p16693_p1 = scmp.lt.s32.totalorder %s14058_s25, %s14058_s25 }
0x1b82   :  { %v13756_v5 = vrot.slane %v13740_v22, %v16858_v17  ;;  %v13819_v60 = vrot.slane %v13812_v29, %v16858_v17  ;;  %v13763_v45 = vrot.slane %v13741_v63, %v16858_v17  ;;  %v13896_v37 = vrot.slane %v14417_v23, %v16858_v17  ;;  %p16689_p0 = scmp.ne.s32.totalorder %s14058_s25, %s16688_s27  ;;  %p16694_p2 = scmp.lt.s32.totalorder %s16688_s27, %s16688_s27 }
0x1b83   :  { %v13742_v27 = vcombine.low %v13655_v35, %v13656_v44  ;;  %v13794_v11 = vrot.slane %v13657_v14, %v16858_v17  ;;  %v13927_v51 = vrot.slane %v14418_v8, %v16858_v17 }
0x1b84   :  { %v13826_v41 = vrot.slane %v13819_v60, %v16858_v17  ;;  %v13771_v43 = vcombine.low %v13749_v19, %v13756_v5  ;;  %v13897_v18 = vcombine.high %v13896_v37, %v13896_v37  ;;  %v13904_v6 = vrot.slane %v13896_v37, %v16858_v17  ;;  %p16695_p3 = por %p16694_p2, %p16693_p1 }
0x1b85   :  { %v13770_v46 = vrot.slane %v13742_v27, %v16858_v17  ;;  %v13801_v49 = vrot.slane %v13794_v11, %v16858_v17  ;;  %v13935_v31 = vrot.slane %v13927_v51, %v16858_v17 }
0x1b86   :  { %v13829_v48 = vsel %vm13828_vm11, %v13826_v41, 0.0  ;;  %v13779_v59 = vrot.slane %v13771_v43, %v16858_v17  ;;  %v13911_v38 = vrot.slane %v13897_v18, %v16858_v17  ;;  %p16696_p4 = pnand %p16695_p3, %p16689_p0 }
0x1b87   :  { %v13772_v55 = vcombine.low %v13763_v45, %v13770_v46  ;;  %13809 = vst.msk [vmem:[%s20286_s21 + $0x18] sm:$0x1] %vm804_vm2, %v13801_v49  ;;  %13830 = vadd.xlane.f32.xlu0 %v13829_v48 }
0x1b89   :  { %v13786_v34 = vrot.slane %v13772_v55, %v16858_v17 }
0x1b8b   :  { %v13787_v0 = vcombine.low %v13779_v59, %v13786_v34 }
0x1b8d   :  { %13808 = vst.msk [vmem:[%s20286_s21 + $0x10] sm:$0xff] %vm329_vm1, %v13787_v0 }
0x1c14   :  { %v13831_v26 = vpop.xlane.xlu0 %13830 }
0x1c15   :  { %v13832_v36 = vmul.f32 0.03125, %v13831_v26 }
0x1c17   :  { %v13837_v7 = vrot.slane %v13832_v36, %v17019_v40  ;;  %v13841_v52 = vrot.slane %v13832_v36, %v17022_v42 }
0x1c19   :  { %v13844_v39 = vsub.f32 %v20150_v1, %v13837_v7  ;;  %v13845_v21 = vsub.f32 %v13649_v3, %v13841_v52  ;;  %v16496_v1 = vpack.c.bf16 %v13948_v32, %v13947_v30 }
0x1c1b   :  { %v13846_v24 = vmul.f32 %v13844_v39, %v13844_v39  ;;  %v13847_v33 = vmul.f32 %v13845_v21, %v13845_v21  ;;  %16497 = vmatpush3.bf16.msra.mxu1 %v16496_v1 }
0x1c1c   :  { %16498 = vmatprep.subr.bf16.mxu1 %v20672_v15  ;;  %v13928_v15 = vcombine.high %v13927_v51, %v13927_v51 }
0x1c1d   :  { %v13850_v53 = vcombine.low %v13846_v24, %v13847_v33 }
0x1c1e   :  { %v13942_v47 = vrot.slane %v13928_v15, %v16858_v17 }
0x1c1f   :  { %v13857_v25 = vrot.slane %v13850_v53, %v16858_v17  ;;  %16500 = vmatpush3.bf16.msra.mxu1 %v16499_v58 }
0x1c21   :  { %v13864_v61 = vrot.slane %v13857_v25, %v16858_v17 }
0x1c23   :  { %v13866_v10 = vsel %vm13828_vm11, %v13864_v61, 0.0 }
0x1c24   :  { %13867 = vadd.xlane.f32.xlu1 %v13866_v10 }
0x1cb1   :  { %v13868_v3 = vpop.xlane.xlu1 %13867 }
0x1cb2   :  { %v13869_v57 = vmul.f32 0.03125, %v13868_v3 }
0x1cb4   :  { %v13870_v54 = vadd.f32 1e-05, %v13869_v57 }
0x1cb6   :  { %16686 = vrsqrt.f32 %v13870_v54 }
0x1cc0   :  { %v16687_v28 = vpop.eup %16686 }
0x1cc1   :  { %v13876_v20 = vrot.slane %v16687_v28, %v17019_v40  ;;  %v13880_v9 = vrot.slane %v16687_v28, %v17022_v42  ;;  %v14419_v40 = vld [vmem:[%s20285_s20] ss:$0 sm:$0xff] }
0x1cc3   :  { %v13883_v16 = vmul.f32 %v13876_v20, %v13844_v39  ;;  %v13884_v50 = vmul.f32 %v13880_v9, %v13845_v21 }
0x1cc5   :  { %v13914_v4 = vmul.f32 %v13904_v6, %v13883_v16  ;;  %v13915_v22 = vmul.f32 %v13911_v38, %v13884_v50 }
0x1cc7   :  { %v13945_v12 = vadd.f32 %v13935_v31, %v13914_v4  ;;  %v13946_v35 = vadd.f32 %v13942_v47, %v13915_v22 }
0x1cc9   :  { %v13960_v29 = vcombine.low %v13945_v12, %v13946_v35 }
0x1ccb   :  { %v13967_v63 = vrot.slane %v13960_v29, %v16858_v17 }
0x1ccd   :  { %v13974_v2 = vrot.slane %v13967_v63, %v16858_v17 }
0x1ccf   :  { %15875 = vmatmul.mubr.msk.f32.vlgmr.msra.gmra.mrb[110].mxu1 %vm329_vm1, %v13974_v2 }
0x1da2   :  { %v14043_v42 = vpop.f32.mrb[110].mxu1 }
0x1da3   :  { %v14044_v44 = vadd.f32 %v14419_v40, %v14043_v42  ;;  %v15876_v13 = vpop.f32.mrb[111].mxu1 }
0x1da5   :  { %14048 = vst.msk [vmem:[#allocation3] sm:$0x3] %vm14047_vm12, %v14044_v44 }
0x1da6   :  { %16699 = shalt.err (!%p16696_p4)
}
0x1da7   :  { %s16700_s14 = scalar_lea.hbm %s20287_s22, 32 }
0x1da8   :  { %p16701_p5 = scmp.ne.s32.totalorder %s20287_s22, %s16700_s14  ;;  %p16704_p6 = scmp.lt.u32.totalorder %s16700_s14, %s20287_s22 }
0x1daa   :  { %p16706_p7 = pnand %p16704_p6, %p16701_p5 }
0x1dac   :  { %16709 = shalt.err (!%p16706_p7)
}
0x1dad   :  { %14060 = dma.vmem_to_hbm [thread:$0]  %s14058_s25, 32, %s20287_s22, [#allocation4]  }
0x1dae   :  { %16710 = dma.done.wait [#allocation4], 32  }
0x1daf   :  { %16711 = vsyncadd [#allocation4], 4294967264 }
0x1db0   :  { %14066 = vsyncpa [#allocation4], 1 }

</bundles_post_ra>
